<compile_context>
chip_gen: v6e
topology: v6e:2x2x1
jax: 0.10.0
libtpu: 0.0.40
codegen_flags: <defaults>
</compile_context>

<pallas_src>
import functools

import numpy as np
import jax
import jax.numpy as jnp
from jax.experimental import pallas as pl
from jax.experimental.pallas import tpu as pltpu

KSIZE = 4  # ResNet1D kernel_size


# ---------------------------------------------------------------------------
# host-side helpers: 0/1 selection matrices that fold 'same' padding + stride
# (zero rows == zero padding, so the matmul reproduces the padded conv exactly)
# ---------------------------------------------------------------------------
def _conv_sel_matrix(lin, stride, ksize):
    lout = -(-lin // stride)                                  # ceil(lin / stride)
    p = max(0, (lout - 1) * stride + ksize - lin)             # MyConv1dPadSame pad
    pad_left = p // 2
    g = np.zeros((ksize * lout, lin), np.float32)
    for k in range(ksize):
        for i in range(lout):
            j = i * stride + k - pad_left
            if 0 <= j < lin:
                g[k * lout + i, j] = 1.0
    return g, lout


def _pool_sel_matrix(lin, k):
    # MyMaxPool1dPadSame(kernel_size=k): zero pad ((k-1)//2, rest), MaxPool(k, k).
    # Out-of-range slots select nothing -> contribute 0 to the max, which matches
    # the zero-pad-then-max semantics of the PyTorch reference.
    pad_left = (k - 1) // 2
    lout = (lin + (k - 1) - k) // k + 1
    g = np.zeros((k * lout, lin), np.float32)
    for r in range(k):
        for i in range(lout):
            j = i * k + r - pad_left
            if 0 <= j < lin:
                g[r * lout + i, j] = 1.0
    return g, lout


# ---------------------------------------------------------------------------
# in-kernel building blocks (all static shapes / static Python control flow)
# ---------------------------------------------------------------------------
def _conv_op(h, sel_ref, w_ref, bias_ref, m):
    """MyConv1dPadSame: selection matmul -> im2col -> one MXU contraction."""
    k, lin, lout, cout = m["K"], m["Lin"], m["Lout"], m["cout"]
    g = sel_ref[m["sel"], :k * lout, :lin]                       # (K*Lout, Lin)
    taps = jnp.dot(g, h, preferred_element_type=jnp.float32)     # (K*Lout, Cin)
    im2col = jnp.concatenate(
        [taps[t * lout:(t + 1) * lout, :] for t in range(k)], axis=-1)  # (Lout, K*Cin)
    acc = jnp.dot(im2col, w_ref[...], preferred_element_type=jnp.float32)
    return acc + bias_ref[m["w"]:m["w"] + 1, :cout]               # (Lout, Cout)


def _bn_relu_op(h, bn_ref, m):
    """Inference BatchNorm1d folded to scale/shift, then ReLU."""
    c, i = m["C"], 2 * m["bn"]
    return jnp.maximum(h * bn_ref[i:i + 1, :c] + bn_ref[i + 1:i + 2, :c], 0.0)


def _maxpool_op(h, sel_ref, m):
    """MyMaxPool1dPadSame(k=2) shortcut: two selection matmuls + pairwise max."""
    lin, lout = m["Lin"], m["Lout"]
    s = sel_ref[m["sel"], :2 * lout, :lin]
    p = jnp.dot(s, h, preferred_element_type=jnp.float32)        # (2*Lout, C)
    return jnp.maximum(p[:lout, :], p[lout:2 * lout, :])


def _fused_resnet1d_kernel(x_ref, sel_ref, bn_ref, bias_ref, *rest, plan):
    w_refs, o_ref = rest[:-1], rest[-1]
    h = x_ref[0].astype(jnp.float32)                             # (L0, Cin)

    # first conv -> BN -> ReLU
    m = plan["first_conv"]
    h = _conv_op(h, sel_ref, w_refs[m["w"]], bias_ref, m)
    h = _bn_relu_op(h, bn_ref, plan["first_bn"])

    # 8 residual blocks, statically unrolled
    for blk in plan["blocks"]:
        identity = h
        t = h
        if not blk["is_first"]:
            t = _bn_relu_op(t, bn_ref, blk["bn1"])
        m1 = blk["conv1"]
        t = _conv_op(t, sel_ref, w_refs[m1["w"]], bias_ref, m1)
        t = _bn_relu_op(t, bn_ref, blk["bn2"])
        m2 = blk["conv2"]
        t = _conv_op(t, sel_ref, w_refs[m2["w"]], bias_ref, m2)
        if blk["downsample"]:
            identity = _maxpool_op(identity, sel_ref, blk["pool"])
        if blk["out_ch"] != blk["in_ch"]:
            lout = m2["Lout"]
            ch1 = (blk["out_ch"] - blk["in_ch"]) // 2
            ch2 = blk["out_ch"] - blk["in_ch"] - ch1
            identity = jnp.concatenate(
                [jnp.zeros((lout, ch1), jnp.float32), identity,
                 jnp.zeros((lout, ch2), jnp.float32)], axis=-1)
        h = t + identity

    # final BN -> ReLU; write lane-dense (Lout, Cout) block
    h = _bn_relu_op(h, bn_ref, plan["final_bn"])
    o_ref[0] = h.astype(o_ref.dtype)


# ---------------------------------------------------------------------------
# Deterministic parameter construction (synthetic, no checkpoint)
# ---------------------------------------------------------------------------
def make_conv_params(key, cin, cout, ksize):
    kw, kb = jax.random.split(key)
    bound = 1.0 / float(cin * ksize) ** 0.5
    w = jax.random.uniform(kw, (ksize, cin, cout), jnp.float32, -bound, bound)
    b = jax.random.uniform(kb, (cout,), jnp.float32, -bound, bound)
    return w, b


def make_bn_params(key, c, eps=1e-5):
    k1, k2, k3, k4 = jax.random.split(key, 4)
    weight = 1.0 + 0.1 * jax.random.normal(k1, (c,), jnp.float32)
    bias = 0.1 * jax.random.normal(k2, (c,), jnp.float32)
    running_mean = 0.1 * jax.random.normal(k3, (c,), jnp.float32)
    running_var = 1.0 + 0.1 * jax.random.uniform(k4, (c,), jnp.float32)
    scale = weight / jnp.sqrt(running_var + eps)
    shift = bias - running_mean * scale
    return scale, shift


def build_params(key, in_channels, base_filters=32, kernel_size=KSIZE,
                 n_block=8, downsample_gap=4, increasefilter_gap=2):
    keys = iter(jax.random.split(key, 4 * n_block + 8))
    params = {
        "first_conv": make_conv_params(next(keys), in_channels, base_filters, kernel_size),
        "first_bn": make_bn_params(next(keys), base_filters),
        "blocks": [],
    }
    out_channels = base_filters
    for i_block in range(n_block):
        is_first = i_block == 0
        downsample = (i_block % downsample_gap) == 1
        if is_first:
            in_ch, out_ch = base_filters, base_filters
        else:
            in_ch = int(base_filters * 2 ** ((i_block - 1) // increasefilter_gap))
            out_ch = in_ch * 2 if (i_block % increasefilter_gap == 0) else in_ch
        blk = {"is_first_block": is_first, "downsample": downsample,
               "in_ch": in_ch, "out_ch": out_ch}
        if not is_first:
            blk["bn1"] = make_bn_params(next(keys), in_ch)
        blk["conv1"] = make_conv_params(next(keys), in_ch, out_ch, kernel_size)
        blk["bn2"] = make_bn_params(next(keys), out_ch)
        blk["conv2"] = make_conv_params(next(keys), out_ch, out_ch, kernel_size)
        params["blocks"].append(blk)
        out_channels = out_ch
    params["final_bn"] = make_bn_params(next(keys), out_channels)
    params["out_channels"] = out_channels
    return params


# ---------------------------------------------------------------------------
# Build the static plan + packed operands for the fused kernel
# ---------------------------------------------------------------------------
def build_fused_inputs(params, seq_len, kernel_size=KSIZE, stride=2):
    sel_mats, bn_list, w_list, b_list = [], [], [], []

    def add_conv(w, b, lin, s):
        k, cin, cout = w.shape
        g, lout = _conv_sel_matrix(lin, s, k)
        si = len(sel_mats); sel_mats.append(g)
        wi = len(w_list)
        w_list.append(jnp.asarray(w, jnp.float32).reshape(k * cin, cout))
        b_list.append(np.asarray(b, np.float32))
        return dict(sel=si, w=wi, K=int(k), Lin=int(lin), Lout=int(lout),
                    cin=int(cin), cout=int(cout))

    def add_bn(scale, shift):
        bi = len(bn_list)
        bn_list.append((np.asarray(scale, np.float32), np.asarray(shift, np.float32)))
        return dict(bn=bi, C=int(scale.shape[0]))

    def add_pool(lin, k):
        g, lout = _pool_sel_matrix(lin, k)
        si = len(sel_mats); sel_mats.append(g)
        return dict(sel=si, Lin=int(lin), Lout=int(lout))

    plan = {}
    length = seq_len
    plan["first_conv"] = add_conv(*params["first_conv"], lin=length, s=1)
    length = plan["first_conv"]["Lout"]
    plan["first_bn"] = add_bn(*params["first_bn"])

    blocks = []
    for blk in params["blocks"]:
        pb = dict(is_first=blk["is_first_block"], downsample=blk["downsample"],
                  in_ch=blk["in_ch"], out_ch=blk["out_ch"])
        if not blk["is_first_block"]:
            pb["bn1"] = add_bn(*blk["bn1"])
        s = stride if blk["downsample"] else 1
        pb["conv1"] = add_conv(*blk["conv1"], lin=length, s=s)
        pb["bn2"] = add_bn(*blk["bn2"])
        pb["conv2"] = add_conv(*blk["conv2"], lin=pb["conv1"]["Lout"], s=1)
        if blk["downsample"]:
            pb["pool"] = add_pool(length, stride)
            assert pb["pool"]["Lout"] == pb["conv2"]["Lout"]
        length = pb["conv2"]["Lout"]
        blocks.append(pb)
    plan["blocks"] = blocks
    plan["final_bn"] = add_bn(*params["final_bn"])

    # pack the small per-layer constants into a few lane-dense arrays
    rmax = max(g.shape[0] for g in sel_mats)
    cmax_sel = max(g.shape[1] for g in sel_mats)
    sel_pack = np.zeros((len(sel_mats), rmax, cmax_sel), np.float32)
    for i, g in enumerate(sel_mats):
        sel_pack[i, :g.shape[0], :g.shape[1]] = g

    cmax = max(max(s.shape[0] for s, _ in bn_list), max(b.shape[0] for b in b_list))
    bn_pack = np.zeros((2 * len(bn_list), cmax), np.float32)
    for i, (s_, sh_) in enumerate(bn_list):
        bn_pack[2 * i, :s_.shape[0]] = s_
        bn_pack[2 * i + 1, :sh_.shape[0]] = sh_
    bias_pack = np.zeros((len(b_list), cmax), np.float32)
    for i, b in enumerate(b_list):
        bias_pack[i, :b.shape[0]] = b

    return dict(plan=plan,
                sel_pack=jnp.asarray(sel_pack),
                bn_pack=jnp.asarray(bn_pack),
                bias_pack=jnp.asarray(bias_pack),
                weights=w_list,
                out_len=int(length),
                out_channels=int(params["out_channels"]))


# ---------------------------------------------------------------------------
# ConvEncoder1D forward (pooling_method = FLATTEN, conditioning = None)
# ---------------------------------------------------------------------------
def conv_encoder_1d_forward(fused, x_ncl):
    """x_ncl: (B, n_channels, seq_len) PyTorch NCL layout -> (B, C_out * L_out)."""
    assert x_ncl.ndim == 3
    b, cin, l = x_ncl.shape
    x = jnp.transpose(x_ncl, (0, 2, 1)).astype(jnp.float32)      # (B, L, Cin)

    plan, weights = fused["plan"], fused["weights"]
    out_l, out_c = fused["out_len"], fused["out_channels"]

    kernel = functools.partial(_fused_resnet1d_kernel, plan=plan)
    in_specs = ([pl.BlockSpec((1, l, cin), lambda i: (i, 0, 0)),
                 pl.BlockSpec(fused["sel_pack"].shape, lambda i: (0, 0, 0)),
                 pl.BlockSpec(fused["bn_pack"].shape, lambda i: (0, 0)),
                 pl.BlockSpec(fused["bias_pack"].shape, lambda i: (0, 0))]
                + [pl.BlockSpec(w.shape, lambda i: (0, 0)) for w in weights])

    out = pl.pallas_call(
        kernel,
        out_shape=jax.ShapeDtypeStruct((b, out_l, out_c), jnp.float32),
        grid=(b,),
        in_specs=in_specs,
        out_specs=pl.BlockSpec((1, out_l, out_c), lambda i: (i, 0, 0)),
        compiler_params=pltpu.CompilerParams(
            dimension_semantics=("parallel",),          # v7x: one batch per TC
            vmem_limit_bytes=48 * 1024 * 1024),
    )(x, fused["sel_pack"], fused["bn_pack"], fused["bias_pack"], *weights)

    # FLATTEN pooling: back to NCL ordering, then flatten (matches torch.flatten).
    return jnp.transpose(out, (0, 2, 1)).reshape(b, out_c * out_l)


# ---------------------------------------------------------------------------
if __name__ == "__main__":
    key = jax.random.PRNGKey(0)
    k_x, k_p = jax.random.split(key)

    # input_shape = (n_channels=4, seq_len=16), batch=2
    B, C_IN, L = 2, 4, 16
    x = jax.random.normal(k_x, (B, C_IN, L), dtype=jnp.float32)

    params = build_params(k_p, in_channels=C_IN)
    fused = build_fused_inputs(params, seq_len=L)

    fwd = jax.jit(functools.partial(conv_encoder_1d_forward, fused))
    out = jax.block_until_ready(fwd(x))

    # two downsample blocks (i_block % 4 == 1 -> blocks 1 and 5): L/4 spatial,
    # channels doubled at blocks 2, 4, 6 -> 256 final channels -> 256 * 4 = 1024.
    expected_dim = fused["out_channels"] * fused["out_len"]
    assert out.shape == (B, expected_dim), out.shape
    assert bool(jnp.all(jnp.isfinite(out)))
    print("KERNEL_OK")
</pallas_src>

<mosaic_0001>
module attributes {stable_mosaic.version = 11 : i64} {
  func.func @_fused_resnet1d_kernel(%arg0: i32, %arg1: memref<1x16x4xf32, #tpu.memory_space<vmem>>, %arg2: memref<19x64x16xf32, #tpu.memory_space<vmem>>, %arg3: memref<34x256xf32, #tpu.memory_space<vmem>>, %arg4: memref<17x256xf32, #tpu.memory_space<vmem>>, %arg5: memref<16x32xf32, #tpu.memory_space<vmem>>, %arg6: memref<128x32xf32, #tpu.memory_space<vmem>>, %arg7: memref<128x32xf32, #tpu.memory_space<vmem>>, %arg8: memref<128x32xf32, #tpu.memory_space<vmem>>, %arg9: memref<128x32xf32, #tpu.memory_space<vmem>>, %arg10: memref<128x64xf32, #tpu.memory_space<vmem>>, %arg11: memref<256x64xf32, #tpu.memory_space<vmem>>, %arg12: memref<256x64xf32, #tpu.memory_space<vmem>>, %arg13: memref<256x64xf32, #tpu.memory_space<vmem>>, %arg14: memref<256x128xf32, #tpu.memory_space<vmem>>, %arg15: memref<512x128xf32, #tpu.memory_space<vmem>>, %arg16: memref<512x128xf32, #tpu.memory_space<vmem>>, %arg17: memref<512x128xf32, #tpu.memory_space<vmem>>, %arg18: memref<512x256xf32, #tpu.memory_space<vmem>>, %arg19: memref<1024x256xf32, #tpu.memory_space<vmem>>, %arg20: memref<1024x256xf32, #tpu.memory_space<vmem>>, %arg21: memref<1024x256xf32, #tpu.memory_space<vmem>>, %arg22: memref<1x4x256xf32, #tpu.memory_space<vmem>>) attributes {dimension_semantics = [#tpu.dimension_semantics<parallel>], iteration_bounds = array<i64: 2>, scalar_prefetch = 0 : i64, scratch_operands = 0 : i64, tpu.core_type = #tpu.core_type<tc>, window_params = [{transform_indices = @transform_0, window_bounds = array<i64: 1, 16, 4>}, {pipeline_mode = #tpu.pipeline_mode<synchronous>, transform_indices = @transform_1, window_bounds = array<i64: 19, 64, 16>}, {pipeline_mode = #tpu.pipeline_mode<synchronous>, transform_indices = @transform_2, window_bounds = array<i64: 34, 256>}, {pipeline_mode = #tpu.pipeline_mode<synchronous>, transform_indices = @transform_3, window_bounds = array<i64: 17, 256>}, {pipeline_mode = #tpu.pipeline_mode<synchronous>, transform_indices = @transform_4, window_bounds = array<i64: 16, 32>}, {pipeline_mode = #tpu.pipeline_mode<synchronous>, transform_indices = @transform_5, window_bounds = array<i64: 128, 32>}, {pipeline_mode = #tpu.pipeline_mode<synchronous>, transform_indices = @transform_6, window_bounds = array<i64: 128, 32>}, {pipeline_mode = #tpu.pipeline_mode<synchronous>, transform_indices = @transform_7, window_bounds = array<i64: 128, 32>}, {pipeline_mode = #tpu.pipeline_mode<synchronous>, transform_indices = @transform_8, window_bounds = array<i64: 128, 32>}, {pipeline_mode = #tpu.pipeline_mode<synchronous>, transform_indices = @transform_9, window_bounds = array<i64: 128, 64>}, {pipeline_mode = #tpu.pipeline_mode<synchronous>, transform_indices = @transform_10, window_bounds = array<i64: 256, 64>}, {pipeline_mode = #tpu.pipeline_mode<synchronous>, transform_indices = @transform_11, window_bounds = array<i64: 256, 64>}, {pipeline_mode = #tpu.pipeline_mode<synchronous>, transform_indices = @transform_12, window_bounds = array<i64: 256, 64>}, {pipeline_mode = #tpu.pipeline_mode<synchronous>, transform_indices = @transform_13, window_bounds = array<i64: 256, 128>}, {pipeline_mode = #tpu.pipeline_mode<synchronous>, transform_indices = @transform_14, window_bounds = array<i64: 512, 128>}, {pipeline_mode = #tpu.pipeline_mode<synchronous>, transform_indices = @transform_15, window_bounds = array<i64: 512, 128>}, {pipeline_mode = #tpu.pipeline_mode<synchronous>, transform_indices = @transform_16, window_bounds = array<i64: 512, 128>}, {pipeline_mode = #tpu.pipeline_mode<synchronous>, transform_indices = @transform_17, window_bounds = array<i64: 512, 256>}, {pipeline_mode = #tpu.pipeline_mode<synchronous>, transform_indices = @transform_18, window_bounds = array<i64: 1024, 256>}, {pipeline_mode = #tpu.pipeline_mode<synchronous>, transform_indices = @transform_19, window_bounds = array<i64: 1024, 256>}, {pipeline_mode = #tpu.pipeline_mode<synchronous>, transform_indices = @transform_20, window_bounds = array<i64: 1024, 256>}, {transform_indices = @transform_21, window_bounds = array<i64: 1, 4, 256>}]} {
    %c0 = arith.constant 0 : index
    %c0_0 = arith.constant 0 : index
    %c0_1 = arith.constant 0 : index
    %0 = vector.load %arg1[%c0, %c0_0, %c0_1] : memref<1x16x4xf32, #tpu.memory_space<vmem>>, vector<1x16x4xf32>
    %1 = vector.shape_cast %0 : vector<1x16x4xf32> to vector<16x4xf32>
    %c0_2 = arith.constant 0 : index
    %c0_3 = arith.constant 0 : index
    %c0_4 = arith.constant 0 : index
    %2 = vector.load %arg2[%c0_2, %c0_3, %c0_4] : memref<19x64x16xf32, #tpu.memory_space<vmem>>, vector<1x64x16xf32>
    %3 = vector.shape_cast %2 : vector<1x64x16xf32> to vector<64x16xf32>
    %cst = arith.constant dense<0.000000e+00> : vector<64x4xf32>
    %4 = tpu.matmul %3, %1, %cst {dimension_numbers = #tpu.dot_dimension_numbers<[1], [0], [0], [1], [0, 0, 1, 1], [], []>} : vector<64x16xf32>, vector<16x4xf32>, vector<64x4xf32> -> vector<64x4xf32>
    %5 = vector.extract_strided_slice %4 {offsets = [0, 0], sizes = [16, 4], strides = [1, 1]} : vector<64x4xf32> to vector<16x4xf32>
    %6 = vector.extract_strided_slice %4 {offsets = [16, 0], sizes = [16, 4], strides = [1, 1]} : vector<64x4xf32> to vector<16x4xf32>
    %7 = vector.extract_strided_slice %4 {offsets = [32, 0], sizes = [16, 4], strides = [1, 1]} : vector<64x4xf32> to vector<16x4xf32>
    %8 = vector.extract_strided_slice %4 {offsets = [48, 0], sizes = [16, 4], strides = [1, 1]} : vector<64x4xf32> to vector<16x4xf32>
    %9 = tpu.concatenate %5, %6, %7, %8 in 1 : vector<16x4xf32>, vector<16x4xf32>, vector<16x4xf32>, vector<16x4xf32> -> vector<16x16xf32>
    %c0_5 = arith.constant 0 : index
    %c0_6 = arith.constant 0 : index
    %10 = vector.load %arg5[%c0_5, %c0_6] : memref<16x32xf32, #tpu.memory_space<vmem>>, vector<16x32xf32>
    %cst_7 = arith.constant dense<0.000000e+00> : vector<16x32xf32>
    %11 = tpu.matmul %9, %10, %cst_7 {dimension_numbers = #tpu.dot_dimension_numbers<[1], [0], [0], [1], [0, 0, 1, 1], [], []>} : vector<16x16xf32>, vector<16x32xf32>, vector<16x32xf32> -> vector<16x32xf32>
    %c0_8 = arith.constant 0 : index
    %c0_9 = arith.constant 0 : index
    %12 = vector.load %arg4[%c0_8, %c0_9] : memref<17x256xf32, #tpu.memory_space<vmem>>, vector<1x32xf32>
    %13 = vector.broadcast %12 : vector<1x32xf32> to vector<16x32xf32>
    %14 = arith.addf %11, %13 : vector<16x32xf32>
    %c0_10 = arith.constant 0 : index
    %c0_11 = arith.constant 0 : index
    %15 = vector.load %arg3[%c0_10, %c0_11] : memref<34x256xf32, #tpu.memory_space<vmem>>, vector<1x32xf32>
    %16 = vector.broadcast %15 : vector<1x32xf32> to vector<16x32xf32>
    %17 = arith.mulf %14, %16 : vector<16x32xf32>
    %c1 = arith.constant 1 : index
    %c0_12 = arith.constant 0 : index
    %18 = vector.load %arg3[%c1, %c0_12] : memref<34x256xf32, #tpu.memory_space<vmem>>, vector<1x32xf32>
    %19 = vector.broadcast %18 : vector<1x32xf32> to vector<16x32xf32>
    %20 = arith.addf %17, %19 : vector<16x32xf32>
    %cst_13 = arith.constant 0.000000e+00 : f32
    %21 = vector.broadcast %cst_13 : f32 to vector<16x32xf32>
    %22 = arith.maximumf %20, %21 : vector<16x32xf32>
    %c1_14 = arith.constant 1 : index
    %c0_15 = arith.constant 0 : index
    %c0_16 = arith.constant 0 : index
    %23 = vector.load %arg2[%c1_14, %c0_15, %c0_16] : memref<19x64x16xf32, #tpu.memory_space<vmem>>, vector<1x64x16xf32>
    %24 = vector.shape_cast %23 : vector<1x64x16xf32> to vector<64x16xf32>
    %cst_17 = arith.constant dense<0.000000e+00> : vector<64x32xf32>
    %25 = tpu.matmul %24, %22, %cst_17 {dimension_numbers = #tpu.dot_dimension_numbers<[1], [0], [0], [1], [0, 0, 1, 1], [], []>} : vector<64x16xf32>, vector<16x32xf32>, vector<64x32xf32> -> vector<64x32xf32>
    %26 = vector.extract_strided_slice %25 {offsets = [0, 0], sizes = [16, 32], strides = [1, 1]} : vector<64x32xf32> to vector<16x32xf32>
    %27 = vector.extract_strided_slice %25 {offsets = [16, 0], sizes = [16, 32], strides = [1, 1]} : vector<64x32xf32> to vector<16x32xf32>
    %28 = vector.extract_strided_slice %25 {offsets = [32, 0], sizes = [16, 32], strides = [1, 1]} : vector<64x32xf32> to vector<16x32xf32>
    %29 = vector.extract_strided_slice %25 {offsets = [48, 0], sizes = [16, 32], strides = [1, 1]} : vector<64x32xf32> to vector<16x32xf32>
    %30 = tpu.concatenate %26, %27, %28, %29 in 1 : vector<16x32xf32>, vector<16x32xf32>, vector<16x32xf32>, vector<16x32xf32> -> vector<16x128xf32>
    %c0_18 = arith.constant 0 : index
    %c0_19 = arith.constant 0 : index
    %31 = vector.load %arg6[%c0_18, %c0_19] : memref<128x32xf32, #tpu.memory_space<vmem>>, vector<128x32xf32>
    %cst_20 = arith.constant dense<0.000000e+00> : vector<16x32xf32>
    %32 = tpu.matmul %30, %31, %cst_20 {dimension_numbers = #tpu.dot_dimension_numbers<[1], [0], [0], [1], [0, 0, 1, 1], [], []>} : vector<16x128xf32>, vector<128x32xf32>, vector<16x32xf32> -> vector<16x32xf32>
    %c1_21 = arith.constant 1 : index
    %c0_22 = arith.constant 0 : index
    %33 = vector.load %arg4[%c1_21, %c0_22] : memref<17x256xf32, #tpu.memory_space<vmem>>, vector<1x32xf32>
    %34 = vector.broadcast %33 : vector<1x32xf32> to vector<16x32xf32>
    %35 = arith.addf %32, %34 : vector<16x32xf32>
    %c2 = arith.constant 2 : index
    %c0_23 = arith.constant 0 : index
    %36 = vector.load %arg3[%c2, %c0_23] : memref<34x256xf32, #tpu.memory_space<vmem>>, vector<1x32xf32>
    %37 = vector.broadcast %36 : vector<1x32xf32> to vector<16x32xf32>
    %38 = arith.mulf %35, %37 : vector<16x32xf32>
    %c3 = arith.constant 3 : index
    %c0_24 = arith.constant 0 : index
    %39 = vector.load %arg3[%c3, %c0_24] : memref<34x256xf32, #tpu.memory_space<vmem>>, vector<1x32xf32>
    %40 = vector.broadcast %39 : vector<1x32xf32> to vector<16x32xf32>
    %41 = arith.addf %38, %40 : vector<16x32xf32>
    %cst_25 = arith.constant 0.000000e+00 : f32
    %42 = vector.broadcast %cst_25 : f32 to vector<16x32xf32>
    %43 = arith.maximumf %41, %42 : vector<16x32xf32>
    %c2_26 = arith.constant 2 : index
    %c0_27 = arith.constant 0 : index
    %c0_28 = arith.constant 0 : index
    %44 = vector.load %arg2[%c2_26, %c0_27, %c0_28] : memref<19x64x16xf32, #tpu.memory_space<vmem>>, vector<1x64x16xf32>
    %45 = vector.shape_cast %44 : vector<1x64x16xf32> to vector<64x16xf32>
    %cst_29 = arith.constant dense<0.000000e+00> : vector<64x32xf32>
    %46 = tpu.matmul %45, %43, %cst_29 {dimension_numbers = #tpu.dot_dimension_numbers<[1], [0], [0], [1], [0, 0, 1, 1], [], []>} : vector<64x16xf32>, vector<16x32xf32>, vector<64x32xf32> -> vector<64x32xf32>
    %47 = vector.extract_strided_slice %46 {offsets = [0, 0], sizes = [16, 32], strides = [1, 1]} : vector<64x32xf32> to vector<16x32xf32>
    %48 = vector.extract_strided_slice %46 {offsets = [16, 0], sizes = [16, 32], strides = [1, 1]} : vector<64x32xf32> to vector<16x32xf32>
    %49 = vector.extract_strided_slice %46 {offsets = [32, 0], sizes = [16, 32], strides = [1, 1]} : vector<64x32xf32> to vector<16x32xf32>
    %50 = vector.extract_strided_slice %46 {offsets = [48, 0], sizes = [16, 32], strides = [1, 1]} : vector<64x32xf32> to vector<16x32xf32>
    %51 = tpu.concatenate %47, %48, %49, %50 in 1 : vector<16x32xf32>, vector<16x32xf32>, vector<16x32xf32>, vector<16x32xf32> -> vector<16x128xf32>
    %c0_30 = arith.constant 0 : index
    %c0_31 = arith.constant 0 : index
    %52 = vector.load %arg7[%c0_30, %c0_31] : memref<128x32xf32, #tpu.memory_space<vmem>>, vector<128x32xf32>
    %cst_32 = arith.constant dense<0.000000e+00> : vector<16x32xf32>
    %53 = tpu.matmul %51, %52, %cst_32 {dimension_numbers = #tpu.dot_dimension_numbers<[1], [0], [0], [1], [0, 0, 1, 1], [], []>} : vector<16x128xf32>, vector<128x32xf32>, vector<16x32xf32> -> vector<16x32xf32>
    %c2_33 = arith.constant 2 : index
    %c0_34 = arith.constant 0 : index
    %54 = vector.load %arg4[%c2_33, %c0_34] : memref<17x256xf32, #tpu.memory_space<vmem>>, vector<1x32xf32>
    %55 = vector.broadcast %54 : vector<1x32xf32> to vector<16x32xf32>
    %56 = arith.addf %53, %55 : vector<16x32xf32>
    %57 = arith.addf %56, %22 : vector<16x32xf32>
    %c4 = arith.constant 4 : index
    %c0_35 = arith.constant 0 : index
    %58 = vector.load %arg3[%c4, %c0_35] : memref<34x256xf32, #tpu.memory_space<vmem>>, vector<1x32xf32>
    %59 = vector.broadcast %58 : vector<1x32xf32> to vector<16x32xf32>
    %60 = arith.mulf %57, %59 : vector<16x32xf32>
    %c5 = arith.constant 5 : index
    %c0_36 = arith.constant 0 : index
    %61 = vector.load %arg3[%c5, %c0_36] : memref<34x256xf32, #tpu.memory_space<vmem>>, vector<1x32xf32>
    %62 = vector.broadcast %61 : vector<1x32xf32> to vector<16x32xf32>
    %63 = arith.addf %60, %62 : vector<16x32xf32>
    %cst_37 = arith.constant 0.000000e+00 : f32
    %64 = vector.broadcast %cst_37 : f32 to vector<16x32xf32>
    %65 = arith.maximumf %63, %64 : vector<16x32xf32>
    %c3_38 = arith.constant 3 : index
    %c0_39 = arith.constant 0 : index
    %c0_40 = arith.constant 0 : index
    %66 = vector.load %arg2[%c3_38, %c0_39, %c0_40] : memref<19x64x16xf32, #tpu.memory_space<vmem>>, vector<1x32x16xf32>
    %67 = vector.shape_cast %66 : vector<1x32x16xf32> to vector<32x16xf32>
    %cst_41 = arith.constant dense<0.000000e+00> : vector<32x32xf32>
    %68 = tpu.matmul %67, %65, %cst_41 {dimension_numbers = #tpu.dot_dimension_numbers<[1], [0], [0], [1], [0, 0, 1, 1], [], []>} : vector<32x16xf32>, vector<16x32xf32>, vector<32x32xf32> -> vector<32x32xf32>
    %69 = vector.extract_strided_slice %68 {offsets = [0, 0], sizes = [8, 32], strides = [1, 1]} : vector<32x32xf32> to vector<8x32xf32>
    %70 = vector.extract_strided_slice %68 {offsets = [8, 0], sizes = [8, 32], strides = [1, 1]} : vector<32x32xf32> to vector<8x32xf32>
    %71 = vector.extract_strided_slice %68 {offsets = [16, 0], sizes = [8, 32], strides = [1, 1]} : vector<32x32xf32> to vector<8x32xf32>
    %72 = vector.extract_strided_slice %68 {offsets = [24, 0], sizes = [8, 32], strides = [1, 1]} : vector<32x32xf32> to vector<8x32xf32>
    %73 = tpu.concatenate %69, %70, %71, %72 in 1 : vector<8x32xf32>, vector<8x32xf32>, vector<8x32xf32>, vector<8x32xf32> -> vector<8x128xf32>
    %c0_42 = arith.constant 0 : index
    %c0_43 = arith.constant 0 : index
    %74 = vector.load %arg8[%c0_42, %c0_43] : memref<128x32xf32, #tpu.memory_space<vmem>>, vector<128x32xf32>
    %cst_44 = arith.constant dense<0.000000e+00> : vector<8x32xf32>
    %75 = tpu.matmul %73, %74, %cst_44 {dimension_numbers = #tpu.dot_dimension_numbers<[1], [0], [0], [1], [0, 0, 1, 1], [], []>} : vector<8x128xf32>, vector<128x32xf32>, vector<8x32xf32> -> vector<8x32xf32>
    %c3_45 = arith.constant 3 : index
    %c0_46 = arith.constant 0 : index
    %76 = vector.load %arg4[%c3_45, %c0_46] : memref<17x256xf32, #tpu.memory_space<vmem>>, vector<1x32xf32>
    %77 = vector.broadcast %76 : vector<1x32xf32> to vector<8x32xf32>
    %78 = arith.addf %75, %77 : vector<8x32xf32>
    %c6 = arith.constant 6 : index
    %c0_47 = arith.constant 0 : index
    %79 = vector.load %arg3[%c6, %c0_47] : memref<34x256xf32, #tpu.memory_space<vmem>>, vector<1x32xf32>
    %80 = vector.broadcast %79 : vector<1x32xf32> to vector<8x32xf32>
    %81 = arith.mulf %78, %80 : vector<8x32xf32>
    %c7 = arith.constant 7 : index
    %c0_48 = arith.constant 0 : index
    %82 = vector.load %arg3[%c7, %c0_48] : memref<34x256xf32, #tpu.memory_space<vmem>>, vector<1x32xf32>
    %83 = vector.broadcast %82 : vector<1x32xf32> to vector<8x32xf32>
    %84 = arith.addf %81, %83 : vector<8x32xf32>
    %cst_49 = arith.constant 0.000000e+00 : f32
    %85 = vector.broadcast %cst_49 : f32 to vector<8x32xf32>
    %86 = arith.maximumf %84, %85 : vector<8x32xf32>
    %c4_50 = arith.constant 4 : index
    %c0_51 = arith.constant 0 : index
    %c0_52 = arith.constant 0 : index
    %87 = vector.load %arg2[%c4_50, %c0_51, %c0_52] : memref<19x64x16xf32, #tpu.memory_space<vmem>>, vector<1x32x8xf32>
    %88 = vector.shape_cast %87 : vector<1x32x8xf32> to vector<32x8xf32>
    %cst_53 = arith.constant dense<0.000000e+00> : vector<32x32xf32>
    %89 = tpu.matmul %88, %86, %cst_53 {dimension_numbers = #tpu.dot_dimension_numbers<[1], [0], [0], [1], [0, 0, 1, 1], [], []>} : vector<32x8xf32>, vector<8x32xf32>, vector<32x32xf32> -> vector<32x32xf32>
    %90 = vector.extract_strided_slice %89 {offsets = [0, 0], sizes = [8, 32], strides = [1, 1]} : vector<32x32xf32> to vector<8x32xf32>
    %91 = vector.extract_strided_slice %89 {offsets = [8, 0], sizes = [8, 32], strides = [1, 1]} : vector<32x32xf32> to vector<8x32xf32>
    %92 = vector.extract_strided_slice %89 {offsets = [16, 0], sizes = [8, 32], strides = [1, 1]} : vector<32x32xf32> to vector<8x32xf32>
    %93 = vector.extract_strided_slice %89 {offsets = [24, 0], sizes = [8, 32], strides = [1, 1]} : vector<32x32xf32> to vector<8x32xf32>
    %94 = tpu.concatenate %90, %91, %92, %93 in 1 : vector<8x32xf32>, vector<8x32xf32>, vector<8x32xf32>, vector<8x32xf32> -> vector<8x128xf32>
    %c0_54 = arith.constant 0 : index
    %c0_55 = arith.constant 0 : index
    %95 = vector.load %arg9[%c0_54, %c0_55] : memref<128x32xf32, #tpu.memory_space<vmem>>, vector<128x32xf32>
    %cst_56 = arith.constant dense<0.000000e+00> : vector<8x32xf32>
    %96 = tpu.matmul %94, %95, %cst_56 {dimension_numbers = #tpu.dot_dimension_numbers<[1], [0], [0], [1], [0, 0, 1, 1], [], []>} : vector<8x128xf32>, vector<128x32xf32>, vector<8x32xf32> -> vector<8x32xf32>
    %c4_57 = arith.constant 4 : index
    %c0_58 = arith.constant 0 : index
    %97 = vector.load %arg4[%c4_57, %c0_58] : memref<17x256xf32, #tpu.memory_space<vmem>>, vector<1x32xf32>
    %98 = vector.broadcast %97 : vector<1x32xf32> to vector<8x32xf32>
    %99 = arith.addf %96, %98 : vector<8x32xf32>
    %c5_59 = arith.constant 5 : index
    %c0_60 = arith.constant 0 : index
    %c0_61 = arith.constant 0 : index
    %100 = vector.load %arg2[%c5_59, %c0_60, %c0_61] : memref<19x64x16xf32, #tpu.memory_space<vmem>>, vector<1x16x16xf32>
    %101 = vector.shape_cast %100 : vector<1x16x16xf32> to vector<16x16xf32>
    %cst_62 = arith.constant dense<0.000000e+00> : vector<16x32xf32>
    %102 = tpu.matmul %101, %57, %cst_62 {dimension_numbers = #tpu.dot_dimension_numbers<[1], [0], [0], [1], [0, 0, 1, 1], [], []>} : vector<16x16xf32>, vector<16x32xf32>, vector<16x32xf32> -> vector<16x32xf32>
    %103 = vector.extract_strided_slice %102 {offsets = [0, 0], sizes = [8, 32], strides = [1, 1]} : vector<16x32xf32> to vector<8x32xf32>
    %104 = vector.extract_strided_slice %102 {offsets = [8, 0], sizes = [8, 32], strides = [1, 1]} : vector<16x32xf32> to vector<8x32xf32>
    %105 = arith.maximumf %103, %104 : vector<8x32xf32>
    %106 = arith.addf %99, %105 : vector<8x32xf32>
    %c8 = arith.constant 8 : index
    %c0_63 = arith.constant 0 : index
    %107 = vector.load %arg3[%c8, %c0_63] : memref<34x256xf32, #tpu.memory_space<vmem>>, vector<1x32xf32>
    %108 = vector.broadcast %107 : vector<1x32xf32> to vector<8x32xf32>
    %109 = arith.mulf %106, %108 : vector<8x32xf32>
    %c9 = arith.constant 9 : index
    %c0_64 = arith.constant 0 : index
    %110 = vector.load %arg3[%c9, %c0_64] : memref<34x256xf32, #tpu.memory_space<vmem>>, vector<1x32xf32>
    %111 = vector.broadcast %110 : vector<1x32xf32> to vector<8x32xf32>
    %112 = arith.addf %109, %111 : vector<8x32xf32>
    %cst_65 = arith.constant 0.000000e+00 : f32
    %113 = vector.broadcast %cst_65 : f32 to vector<8x32xf32>
    %114 = arith.maximumf %112, %113 : vector<8x32xf32>
    %c6_66 = arith.constant 6 : index
    %c0_67 = arith.constant 0 : index
    %c0_68 = arith.constant 0 : index
    %115 = vector.load %arg2[%c6_66, %c0_67, %c0_68] : memref<19x64x16xf32, #tpu.memory_space<vmem>>, vector<1x32x8xf32>
    %116 = vector.shape_cast %115 : vector<1x32x8xf32> to vector<32x8xf32>
    %cst_69 = arith.constant dense<0.000000e+00> : vector<32x32xf32>
    %117 = tpu.matmul %116, %114, %cst_69 {dimension_numbers = #tpu.dot_dimension_numbers<[1], [0], [0], [1], [0, 0, 1, 1], [], []>} : vector<32x8xf32>, vector<8x32xf32>, vector<32x32xf32> -> vector<32x32xf32>
    %118 = vector.extract_strided_slice %117 {offsets = [0, 0], sizes = [8, 32], strides = [1, 1]} : vector<32x32xf32> to vector<8x32xf32>
    %119 = vector.extract_strided_slice %117 {offsets = [8, 0], sizes = [8, 32], strides = [1, 1]} : vector<32x32xf32> to vector<8x32xf32>
    %120 = vector.extract_strided_slice %117 {offsets = [16, 0], sizes = [8, 32], strides = [1, 1]} : vector<32x32xf32> to vector<8x32xf32>
    %121 = vector.extract_strided_slice %117 {offsets = [24, 0], sizes = [8, 32], strides = [1, 1]} : vector<32x32xf32> to vector<8x32xf32>
    %122 = tpu.concatenate %118, %119, %120, %121 in 1 : vector<8x32xf32>, vector<8x32xf32>, vector<8x32xf32>, vector<8x32xf32> -> vector<8x128xf32>
    %c0_70 = arith.constant 0 : index
    %c0_71 = arith.constant 0 : index
    %123 = vector.load %arg10[%c0_70, %c0_71] : memref<128x64xf32, #tpu.memory_space<vmem>>, vector<128x64xf32>
    %cst_72 = arith.constant dense<0.000000e+00> : vector<8x64xf32>
    %124 = tpu.matmul %122, %123, %cst_72 {dimension_numbers = #tpu.dot_dimension_numbers<[1], [0], [0], [1], [0, 0, 1, 1], [], []>} : vector<8x128xf32>, vector<128x64xf32>, vector<8x64xf32> -> vector<8x64xf32>
    %c5_73 = arith.constant 5 : index
    %c0_74 = arith.constant 0 : index
    %125 = vector.load %arg4[%c5_73, %c0_74] : memref<17x256xf32, #tpu.memory_space<vmem>>, vector<1x64xf32>
    %126 = vector.broadcast %125 : vector<1x64xf32> to vector<8x64xf32>
    %127 = arith.addf %124, %126 : vector<8x64xf32>
    %c10 = arith.constant 10 : index
    %c0_75 = arith.constant 0 : index
    %128 = vector.load %arg3[%c10, %c0_75] : memref<34x256xf32, #tpu.memory_space<vmem>>, vector<1x64xf32>
    %129 = vector.broadcast %128 : vector<1x64xf32> to vector<8x64xf32>
    %130 = arith.mulf %127, %129 : vector<8x64xf32>
    %c11 = arith.constant 11 : index
    %c0_76 = arith.constant 0 : index
    %131 = vector.load %arg3[%c11, %c0_76] : memref<34x256xf32, #tpu.memory_space<vmem>>, vector<1x64xf32>
    %132 = vector.broadcast %131 : vector<1x64xf32> to vector<8x64xf32>
    %133 = arith.addf %130, %132 : vector<8x64xf32>
    %cst_77 = arith.constant 0.000000e+00 : f32
    %134 = vector.broadcast %cst_77 : f32 to vector<8x64xf32>
    %135 = arith.maximumf %133, %134 : vector<8x64xf32>
    %c7_78 = arith.constant 7 : index
    %c0_79 = arith.constant 0 : index
    %c0_80 = arith.constant 0 : index
    %136 = vector.load %arg2[%c7_78, %c0_79, %c0_80] : memref<19x64x16xf32, #tpu.memory_space<vmem>>, vector<1x32x8xf32>
    %137 = vector.shape_cast %136 : vector<1x32x8xf32> to vector<32x8xf32>
    %cst_81 = arith.constant dense<0.000000e+00> : vector<32x64xf32>
    %138 = tpu.matmul %137, %135, %cst_81 {dimension_numbers = #tpu.dot_dimension_numbers<[1], [0], [0], [1], [0, 0, 1, 1], [], []>} : vector<32x8xf32>, vector<8x64xf32>, vector<32x64xf32> -> vector<32x64xf32>
    %139 = vector.extract_strided_slice %138 {offsets = [0, 0], sizes = [8, 64], strides = [1, 1]} : vector<32x64xf32> to vector<8x64xf32>
    %140 = vector.extract_strided_slice %138 {offsets = [8, 0], sizes = [8, 64], strides = [1, 1]} : vector<32x64xf32> to vector<8x64xf32>
    %141 = vector.extract_strided_slice %138 {offsets = [16, 0], sizes = [8, 64], strides = [1, 1]} : vector<32x64xf32> to vector<8x64xf32>
    %142 = vector.extract_strided_slice %138 {offsets = [24, 0], sizes = [8, 64], strides = [1, 1]} : vector<32x64xf32> to vector<8x64xf32>
    %143 = tpu.concatenate %139, %140, %141, %142 in 1 : vector<8x64xf32>, vector<8x64xf32>, vector<8x64xf32>, vector<8x64xf32> -> vector<8x256xf32>
    %c0_82 = arith.constant 0 : index
    %c0_83 = arith.constant 0 : index
    %144 = vector.load %arg11[%c0_82, %c0_83] : memref<256x64xf32, #tpu.memory_space<vmem>>, vector<256x64xf32>
    %cst_84 = arith.constant dense<0.000000e+00> : vector<8x64xf32>
    %145 = tpu.matmul %143, %144, %cst_84 {dimension_numbers = #tpu.dot_dimension_numbers<[1], [0], [0], [1], [0, 0, 1, 1], [], []>} : vector<8x256xf32>, vector<256x64xf32>, vector<8x64xf32> -> vector<8x64xf32>
    %c6_85 = arith.constant 6 : index
    %c0_86 = arith.constant 0 : index
    %146 = vector.load %arg4[%c6_85, %c0_86] : memref<17x256xf32, #tpu.memory_space<vmem>>, vector<1x64xf32>
    %147 = vector.broadcast %146 : vector<1x64xf32> to vector<8x64xf32>
    %148 = arith.addf %145, %147 : vector<8x64xf32>
    %cst_87 = arith.constant 0.000000e+00 : f32
    %149 = vector.broadcast %cst_87 : f32 to vector<8x16xf32>
    %cst_88 = arith.constant 0.000000e+00 : f32
    %150 = vector.broadcast %cst_88 : f32 to vector<8x16xf32>
    %151 = tpu.concatenate %149, %106, %150 in 1 : vector<8x16xf32>, vector<8x32xf32>, vector<8x16xf32> -> vector<8x64xf32>
    %152 = arith.addf %148, %151 : vector<8x64xf32>
    %c12 = arith.constant 12 : index
    %c0_89 = arith.constant 0 : index
    %153 = vector.load %arg3[%c12, %c0_89] : memref<34x256xf32, #tpu.memory_space<vmem>>, vector<1x64xf32>
    %154 = vector.broadcast %153 : vector<1x64xf32> to vector<8x64xf32>
    %155 = arith.mulf %152, %154 : vector<8x64xf32>
    %c13 = arith.constant 13 : index
    %c0_90 = arith.constant 0 : index
    %156 = vector.load %arg3[%c13, %c0_90] : memref<34x256xf32, #tpu.memory_space<vmem>>, vector<1x64xf32>
    %157 = vector.broadcast %156 : vector<1x64xf32> to vector<8x64xf32>
    %158 = arith.addf %155, %157 : vector<8x64xf32>
    %cst_91 = arith.constant 0.000000e+00 : f32
    %159 = vector.broadcast %cst_91 : f32 to vector<8x64xf32>
    %160 = arith.maximumf %158, %159 : vector<8x64xf32>
    %c8_92 = arith.constant 8 : index
    %c0_93 = arith.constant 0 : index
    %c0_94 = arith.constant 0 : index
    %161 = vector.load %arg2[%c8_92, %c0_93, %c0_94] : memref<19x64x16xf32, #tpu.memory_space<vmem>>, vector<1x32x8xf32>
    %162 = vector.shape_cast %161 : vector<1x32x8xf32> to vector<32x8xf32>
    %cst_95 = arith.constant dense<0.000000e+00> : vector<32x64xf32>
    %163 = tpu.matmul %162, %160, %cst_95 {dimension_numbers = #tpu.dot_dimension_numbers<[1], [0], [0], [1], [0, 0, 1, 1], [], []>} : vector<32x8xf32>, vector<8x64xf32>, vector<32x64xf32> -> vector<32x64xf32>
    %164 = vector.extract_strided_slice %163 {offsets = [0, 0], sizes = [8, 64], strides = [1, 1]} : vector<32x64xf32> to vector<8x64xf32>
    %165 = vector.extract_strided_slice %163 {offsets = [8, 0], sizes = [8, 64], strides = [1, 1]} : vector<32x64xf32> to vector<8x64xf32>
    %166 = vector.extract_strided_slice %163 {offsets = [16, 0], sizes = [8, 64], strides = [1, 1]} : vector<32x64xf32> to vector<8x64xf32>
    %167 = vector.extract_strided_slice %163 {offsets = [24, 0], sizes = [8, 64], strides = [1, 1]} : vector<32x64xf32> to vector<8x64xf32>
    %168 = tpu.concatenate %164, %165, %166, %167 in 1 : vector<8x64xf32>, vector<8x64xf32>, vector<8x64xf32>, vector<8x64xf32> -> vector<8x256xf32>
    %c0_96 = arith.constant 0 : index
    %c0_97 = arith.constant 0 : index
    %169 = vector.load %arg12[%c0_96, %c0_97] : memref<256x64xf32, #tpu.memory_space<vmem>>, vector<256x64xf32>
    %cst_98 = arith.constant dense<0.000000e+00> : vector<8x64xf32>
    %170 = tpu.matmul %168, %169, %cst_98 {dimension_numbers = #tpu.dot_dimension_numbers<[1], [0], [0], [1], [0, 0, 1, 1], [], []>} : vector<8x256xf32>, vector<256x64xf32>, vector<8x64xf32> -> vector<8x64xf32>
    %c7_99 = arith.constant 7 : index
    %c0_100 = arith.constant 0 : index
    %171 = vector.load %arg4[%c7_99, %c0_100] : memref<17x256xf32, #tpu.memory_space<vmem>>, vector<1x64xf32>
    %172 = vector.broadcast %171 : vector<1x64xf32> to vector<8x64xf32>
    %173 = arith.addf %170, %172 : vector<8x64xf32>
    %c14 = arith.constant 14 : index
    %c0_101 = arith.constant 0 : index
    %174 = vector.load %arg3[%c14, %c0_101] : memref<34x256xf32, #tpu.memory_space<vmem>>, vector<1x64xf32>
    %175 = vector.broadcast %174 : vector<1x64xf32> to vector<8x64xf32>
    %176 = arith.mulf %173, %175 : vector<8x64xf32>
    %c15 = arith.constant 15 : index
    %c0_102 = arith.constant 0 : index
    %177 = vector.load %arg3[%c15, %c0_102] : memref<34x256xf32, #tpu.memory_space<vmem>>, vector<1x64xf32>
    %178 = vector.broadcast %177 : vector<1x64xf32> to vector<8x64xf32>
    %179 = arith.addf %176, %178 : vector<8x64xf32>
    %cst_103 = arith.constant 0.000000e+00 : f32
    %180 = vector.broadcast %cst_103 : f32 to vector<8x64xf32>
    %181 = arith.maximumf %179, %180 : vector<8x64xf32>
    %c9_104 = arith.constant 9 : index
    %c0_105 = arith.constant 0 : index
    %c0_106 = arith.constant 0 : index
    %182 = vector.load %arg2[%c9_104, %c0_105, %c0_106] : memref<19x64x16xf32, #tpu.memory_space<vmem>>, vector<1x32x8xf32>
    %183 = vector.shape_cast %182 : vector<1x32x8xf32> to vector<32x8xf32>
    %cst_107 = arith.constant dense<0.000000e+00> : vector<32x64xf32>
    %184 = tpu.matmul %183, %181, %cst_107 {dimension_numbers = #tpu.dot_dimension_numbers<[1], [0], [0], [1], [0, 0, 1, 1], [], []>} : vector<32x8xf32>, vector<8x64xf32>, vector<32x64xf32> -> vector<32x64xf32>
    %185 = vector.extract_strided_slice %184 {offsets = [0, 0], sizes = [8, 64], strides = [1, 1]} : vector<32x64xf32> to vector<8x64xf32>
    %186 = vector.extract_strided_slice %184 {offsets = [8, 0], sizes = [8, 64], strides = [1, 1]} : vector<32x64xf32> to vector<8x64xf32>
    %187 = vector.extract_strided_slice %184 {offsets = [16, 0], sizes = [8, 64], strides = [1, 1]} : vector<32x64xf32> to vector<8x64xf32>
    %188 = vector.extract_strided_slice %184 {offsets = [24, 0], sizes = [8, 64], strides = [1, 1]} : vector<32x64xf32> to vector<8x64xf32>
    %189 = tpu.concatenate %185, %186, %187, %188 in 1 : vector<8x64xf32>, vector<8x64xf32>, vector<8x64xf32>, vector<8x64xf32> -> vector<8x256xf32>
    %c0_108 = arith.constant 0 : index
    %c0_109 = arith.constant 0 : index
    %190 = vector.load %arg13[%c0_108, %c0_109] : memref<256x64xf32, #tpu.memory_space<vmem>>, vector<256x64xf32>
    %cst_110 = arith.constant dense<0.000000e+00> : vector<8x64xf32>
    %191 = tpu.matmul %189, %190, %cst_110 {dimension_numbers = #tpu.dot_dimension_numbers<[1], [0], [0], [1], [0, 0, 1, 1], [], []>} : vector<8x256xf32>, vector<256x64xf32>, vector<8x64xf32> -> vector<8x64xf32>
    %c8_111 = arith.constant 8 : index
    %c0_112 = arith.constant 0 : index
    %192 = vector.load %arg4[%c8_111, %c0_112] : memref<17x256xf32, #tpu.memory_space<vmem>>, vector<1x64xf32>
    %193 = vector.broadcast %192 : vector<1x64xf32> to vector<8x64xf32>
    %194 = arith.addf %191, %193 : vector<8x64xf32>
    %195 = arith.addf %194, %152 : vector<8x64xf32>
    %c16 = arith.constant 16 : index
    %c0_113 = arith.constant 0 : index
    %196 = vector.load %arg3[%c16, %c0_113] : memref<34x256xf32, #tpu.memory_space<vmem>>, vector<1x64xf32>
    %197 = vector.broadcast %196 : vector<1x64xf32> to vector<8x64xf32>
    %198 = arith.mulf %195, %197 : vector<8x64xf32>
    %c17 = arith.constant 17 : index
    %c0_114 = arith.constant 0 : index
    %199 = vector.load %arg3[%c17, %c0_114] : memref<34x256xf32, #tpu.memory_space<vmem>>, vector<1x64xf32>
    %200 = vector.broadcast %199 : vector<1x64xf32> to vector<8x64xf32>
    %201 = arith.addf %198, %200 : vector<8x64xf32>
    %cst_115 = arith.constant 0.000000e+00 : f32
    %202 = vector.broadcast %cst_115 : f32 to vector<8x64xf32>
    %203 = arith.maximumf %201, %202 : vector<8x64xf32>
    %c10_116 = arith.constant 10 : index
    %c0_117 = arith.constant 0 : index
    %c0_118 = arith.constant 0 : index
    %204 = vector.load %arg2[%c10_116, %c0_117, %c0_118] : memref<19x64x16xf32, #tpu.memory_space<vmem>>, vector<1x32x8xf32>
    %205 = vector.shape_cast %204 : vector<1x32x8xf32> to vector<32x8xf32>
    %cst_119 = arith.constant dense<0.000000e+00> : vector<32x64xf32>
    %206 = tpu.matmul %205, %203, %cst_119 {dimension_numbers = #tpu.dot_dimension_numbers<[1], [0], [0], [1], [0, 0, 1, 1], [], []>} : vector<32x8xf32>, vector<8x64xf32>, vector<32x64xf32> -> vector<32x64xf32>
    %207 = vector.extract_strided_slice %206 {offsets = [0, 0], sizes = [8, 64], strides = [1, 1]} : vector<32x64xf32> to vector<8x64xf32>
    %208 = vector.extract_strided_slice %206 {offsets = [8, 0], sizes = [8, 64], strides = [1, 1]} : vector<32x64xf32> to vector<8x64xf32>
    %209 = vector.extract_strided_slice %206 {offsets = [16, 0], sizes = [8, 64], strides = [1, 1]} : vector<32x64xf32> to vector<8x64xf32>
    %210 = vector.extract_strided_slice %206 {offsets = [24, 0], sizes = [8, 64], strides = [1, 1]} : vector<32x64xf32> to vector<8x64xf32>
    %211 = tpu.concatenate %207, %208, %209, %210 in 1 : vector<8x64xf32>, vector<8x64xf32>, vector<8x64xf32>, vector<8x64xf32> -> vector<8x256xf32>
    %c0_120 = arith.constant 0 : index
    %c0_121 = arith.constant 0 : index
    %212 = vector.load %arg14[%c0_120, %c0_121] : memref<256x128xf32, #tpu.memory_space<vmem>>, vector<256x128xf32>
    %cst_122 = arith.constant dense<0.000000e+00> : vector<8x128xf32>
    %213 = tpu.matmul %211, %212, %cst_122 {dimension_numbers = #tpu.dot_dimension_numbers<[1], [0], [0], [1], [0, 0, 1, 1], [], []>} : vector<8x256xf32>, vector<256x128xf32>, vector<8x128xf32> -> vector<8x128xf32>
    %c9_123 = arith.constant 9 : index
    %c0_124 = arith.constant 0 : index
    %214 = vector.load %arg4[%c9_123, %c0_124] : memref<17x256xf32, #tpu.memory_space<vmem>>, vector<1x128xf32>
    %215 = vector.broadcast %214 : vector<1x128xf32> to vector<8x128xf32>
    %216 = arith.addf %213, %215 : vector<8x128xf32>
    %c18 = arith.constant 18 : index
    %c0_125 = arith.constant 0 : index
    %217 = vector.load %arg3[%c18, %c0_125] : memref<34x256xf32, #tpu.memory_space<vmem>>, vector<1x128xf32>
    %218 = vector.broadcast %217 : vector<1x128xf32> to vector<8x128xf32>
    %219 = arith.mulf %216, %218 : vector<8x128xf32>
    %c19 = arith.constant 19 : index
    %c0_126 = arith.constant 0 : index
    %220 = vector.load %arg3[%c19, %c0_126] : memref<34x256xf32, #tpu.memory_space<vmem>>, vector<1x128xf32>
    %221 = vector.broadcast %220 : vector<1x128xf32> to vector<8x128xf32>
    %222 = arith.addf %219, %221 : vector<8x128xf32>
    %cst_127 = arith.constant 0.000000e+00 : f32
    %223 = vector.broadcast %cst_127 : f32 to vector<8x128xf32>
    %224 = arith.maximumf %222, %223 : vector<8x128xf32>
    %c11_128 = arith.constant 11 : index
    %c0_129 = arith.constant 0 : index
    %c0_130 = arith.constant 0 : index
    %225 = vector.load %arg2[%c11_128, %c0_129, %c0_130] : memref<19x64x16xf32, #tpu.memory_space<vmem>>, vector<1x32x8xf32>
    %226 = vector.shape_cast %225 : vector<1x32x8xf32> to vector<32x8xf32>
    %cst_131 = arith.constant dense<0.000000e+00> : vector<32x128xf32>
    %227 = tpu.matmul %226, %224, %cst_131 {dimension_numbers = #tpu.dot_dimension_numbers<[1], [0], [0], [1], [0, 0, 1, 1], [], []>} : vector<32x8xf32>, vector<8x128xf32>, vector<32x128xf32> -> vector<32x128xf32>
    %228 = vector.extract_strided_slice %227 {offsets = [0, 0], sizes = [8, 128], strides = [1, 1]} : vector<32x128xf32> to vector<8x128xf32>
    %229 = vector.extract_strided_slice %227 {offsets = [8, 0], sizes = [8, 128], strides = [1, 1]} : vector<32x128xf32> to vector<8x128xf32>
    %230 = vector.extract_strided_slice %227 {offsets = [16, 0], sizes = [8, 128], strides = [1, 1]} : vector<32x128xf32> to vector<8x128xf32>
    %231 = vector.extract_strided_slice %227 {offsets = [24, 0], sizes = [8, 128], strides = [1, 1]} : vector<32x128xf32> to vector<8x128xf32>
    %232 = tpu.concatenate %228, %229, %230, %231 in 1 : vector<8x128xf32>, vector<8x128xf32>, vector<8x128xf32>, vector<8x128xf32> -> vector<8x512xf32>
    %c0_132 = arith.constant 0 : index
    %c0_133 = arith.constant 0 : index
    %233 = vector.load %arg15[%c0_132, %c0_133] : memref<512x128xf32, #tpu.memory_space<vmem>>, vector<512x128xf32>
    %cst_134 = arith.constant dense<0.000000e+00> : vector<8x128xf32>
    %234 = tpu.matmul %232, %233, %cst_134 {dimension_numbers = #tpu.dot_dimension_numbers<[1], [0], [0], [1], [0, 0, 1, 1], [], []>} : vector<8x512xf32>, vector<512x128xf32>, vector<8x128xf32> -> vector<8x128xf32>
    %c10_135 = arith.constant 10 : index
    %c0_136 = arith.constant 0 : index
    %235 = vector.load %arg4[%c10_135, %c0_136] : memref<17x256xf32, #tpu.memory_space<vmem>>, vector<1x128xf32>
    %236 = vector.broadcast %235 : vector<1x128xf32> to vector<8x128xf32>
    %237 = arith.addf %234, %236 : vector<8x128xf32>
    %cst_137 = arith.constant 0.000000e+00 : f32
    %238 = vector.broadcast %cst_137 : f32 to vector<8x32xf32>
    %cst_138 = arith.constant 0.000000e+00 : f32
    %239 = vector.broadcast %cst_138 : f32 to vector<8x32xf32>
    %240 = tpu.concatenate %238, %195, %239 in 1 : vector<8x32xf32>, vector<8x64xf32>, vector<8x32xf32> -> vector<8x128xf32>
    %241 = arith.addf %237, %240 : vector<8x128xf32>
    %c20 = arith.constant 20 : index
    %c0_139 = arith.constant 0 : index
    %242 = vector.load %arg3[%c20, %c0_139] : memref<34x256xf32, #tpu.memory_space<vmem>>, vector<1x128xf32>
    %243 = vector.broadcast %242 : vector<1x128xf32> to vector<8x128xf32>
    %244 = arith.mulf %241, %243 : vector<8x128xf32>
    %c21 = arith.constant 21 : index
    %c0_140 = arith.constant 0 : index
    %245 = vector.load %arg3[%c21, %c0_140] : memref<34x256xf32, #tpu.memory_space<vmem>>, vector<1x128xf32>
    %246 = vector.broadcast %245 : vector<1x128xf32> to vector<8x128xf32>
    %247 = arith.addf %244, %246 : vector<8x128xf32>
    %cst_141 = arith.constant 0.000000e+00 : f32
    %248 = vector.broadcast %cst_141 : f32 to vector<8x128xf32>
    %249 = arith.maximumf %247, %248 : vector<8x128xf32>
    %c12_142 = arith.constant 12 : index
    %c0_143 = arith.constant 0 : index
    %c0_144 = arith.constant 0 : index
    %250 = vector.load %arg2[%c12_142, %c0_143, %c0_144] : memref<19x64x16xf32, #tpu.memory_space<vmem>>, vector<1x16x8xf32>
    %251 = vector.shape_cast %250 : vector<1x16x8xf32> to vector<16x8xf32>
    %cst_145 = arith.constant dense<0.000000e+00> : vector<16x128xf32>
    %252 = tpu.matmul %251, %249, %cst_145 {dimension_numbers = #tpu.dot_dimension_numbers<[1], [0], [0], [1], [0, 0, 1, 1], [], []>} : vector<16x8xf32>, vector<8x128xf32>, vector<16x128xf32> -> vector<16x128xf32>
    %253 = vector.extract_strided_slice %252 {offsets = [0, 0], sizes = [4, 128], strides = [1, 1]} : vector<16x128xf32> to vector<4x128xf32>
    %254 = vector.extract_strided_slice %252 {offsets = [4, 0], sizes = [4, 128], strides = [1, 1]} : vector<16x128xf32> to vector<4x128xf32>
    %255 = vector.extract_strided_slice %252 {offsets = [8, 0], sizes = [4, 128], strides = [1, 1]} : vector<16x128xf32> to vector<4x128xf32>
    %256 = vector.extract_strided_slice %252 {offsets = [12, 0], sizes = [4, 128], strides = [1, 1]} : vector<16x128xf32> to vector<4x128xf32>
    %257 = tpu.concatenate %253, %254, %255, %256 in 1 : vector<4x128xf32>, vector<4x128xf32>, vector<4x128xf32>, vector<4x128xf32> -> vector<4x512xf32>
    %c0_146 = arith.constant 0 : index
    %c0_147 = arith.constant 0 : index
    %258 = vector.load %arg16[%c0_146, %c0_147] : memref<512x128xf32, #tpu.memory_space<vmem>>, vector<512x128xf32>
    %cst_148 = arith.constant dense<0.000000e+00> : vector<4x128xf32>
    %259 = tpu.matmul %257, %258, %cst_148 {dimension_numbers = #tpu.dot_dimension_numbers<[1], [0], [0], [1], [0, 0, 1, 1], [], []>} : vector<4x512xf32>, vector<512x128xf32>, vector<4x128xf32> -> vector<4x128xf32>
    %c11_149 = arith.constant 11 : index
    %c0_150 = arith.constant 0 : index
    %260 = vector.load %arg4[%c11_149, %c0_150] : memref<17x256xf32, #tpu.memory_space<vmem>>, vector<1x128xf32>
    %261 = vector.broadcast %260 : vector<1x128xf32> to vector<4x128xf32>
    %262 = arith.addf %259, %261 : vector<4x128xf32>
    %c22 = arith.constant 22 : index
    %c0_151 = arith.constant 0 : index
    %263 = vector.load %arg3[%c22, %c0_151] : memref<34x256xf32, #tpu.memory_space<vmem>>, vector<1x128xf32>
    %264 = vector.broadcast %263 : vector<1x128xf32> to vector<4x128xf32>
    %265 = arith.mulf %262, %264 : vector<4x128xf32>
    %c23 = arith.constant 23 : index
    %c0_152 = arith.constant 0 : index
    %266 = vector.load %arg3[%c23, %c0_152] : memref<34x256xf32, #tpu.memory_space<vmem>>, vector<1x128xf32>
    %267 = vector.broadcast %266 : vector<1x128xf32> to vector<4x128xf32>
    %268 = arith.addf %265, %267 : vector<4x128xf32>
    %cst_153 = arith.constant 0.000000e+00 : f32
    %269 = vector.broadcast %cst_153 : f32 to vector<4x128xf32>
    %270 = arith.maximumf %268, %269 : vector<4x128xf32>
    %c13_154 = arith.constant 13 : index
    %c0_155 = arith.constant 0 : index
    %c0_156 = arith.constant 0 : index
    %271 = vector.load %arg2[%c13_154, %c0_155, %c0_156] : memref<19x64x16xf32, #tpu.memory_space<vmem>>, vector<1x16x4xf32>
    %272 = vector.shape_cast %271 : vector<1x16x4xf32> to vector<16x4xf32>
    %cst_157 = arith.constant dense<0.000000e+00> : vector<16x128xf32>
    %273 = tpu.matmul %272, %270, %cst_157 {dimension_numbers = #tpu.dot_dimension_numbers<[1], [0], [0], [1], [0, 0, 1, 1], [], []>} : vector<16x4xf32>, vector<4x128xf32>, vector<16x128xf32> -> vector<16x128xf32>
    %274 = vector.extract_strided_slice %273 {offsets = [0, 0], sizes = [4, 128], strides = [1, 1]} : vector<16x128xf32> to vector<4x128xf32>
    %275 = vector.extract_strided_slice %273 {offsets = [4, 0], sizes = [4, 128], strides = [1, 1]} : vector<16x128xf32> to vector<4x128xf32>
    %276 = vector.extract_strided_slice %273 {offsets = [8, 0], sizes = [4, 128], strides = [1, 1]} : vector<16x128xf32> to vector<4x128xf32>
    %277 = vector.extract_strided_slice %273 {offsets = [12, 0], sizes = [4, 128], strides = [1, 1]} : vector<16x128xf32> to vector<4x128xf32>
    %278 = tpu.concatenate %274, %275, %276, %277 in 1 : vector<4x128xf32>, vector<4x128xf32>, vector<4x128xf32>, vector<4x128xf32> -> vector<4x512xf32>
    %c0_158 = arith.constant 0 : index
    %c0_159 = arith.constant 0 : index
    %279 = vector.load %arg17[%c0_158, %c0_159] : memref<512x128xf32, #tpu.memory_space<vmem>>, vector<512x128xf32>
    %cst_160 = arith.constant dense<0.000000e+00> : vector<4x128xf32>
    %280 = tpu.matmul %278, %279, %cst_160 {dimension_numbers = #tpu.dot_dimension_numbers<[1], [0], [0], [1], [0, 0, 1, 1], [], []>} : vector<4x512xf32>, vector<512x128xf32>, vector<4x128xf32> -> vector<4x128xf32>
    %c12_161 = arith.constant 12 : index
    %c0_162 = arith.constant 0 : index
    %281 = vector.load %arg4[%c12_161, %c0_162] : memref<17x256xf32, #tpu.memory_space<vmem>>, vector<1x128xf32>
    %282 = vector.broadcast %281 : vector<1x128xf32> to vector<4x128xf32>
    %283 = arith.addf %280, %282 : vector<4x128xf32>
    %c14_163 = arith.constant 14 : index
    %c0_164 = arith.constant 0 : index
    %c0_165 = arith.constant 0 : index
    %284 = vector.load %arg2[%c14_163, %c0_164, %c0_165] : memref<19x64x16xf32, #tpu.memory_space<vmem>>, vector<1x8x8xf32>
    %285 = vector.shape_cast %284 : vector<1x8x8xf32> to vector<8x8xf32>
    %cst_166 = arith.constant dense<0.000000e+00> : vector<8x128xf32>
    %286 = tpu.matmul %285, %241, %cst_166 {dimension_numbers = #tpu.dot_dimension_numbers<[1], [0], [0], [1], [0, 0, 1, 1], [], []>} : vector<8x8xf32>, vector<8x128xf32>, vector<8x128xf32> -> vector<8x128xf32>
    %287 = vector.extract_strided_slice %286 {offsets = [0, 0], sizes = [4, 128], strides = [1, 1]} : vector<8x128xf32> to vector<4x128xf32>
    %288 = vector.extract_strided_slice %286 {offsets = [4, 0], sizes = [4, 128], strides = [1, 1]} : vector<8x128xf32> to vector<4x128xf32>
    %289 = arith.maximumf %287, %288 : vector<4x128xf32>
    %290 = arith.addf %283, %289 : vector<4x128xf32>
    %c24 = arith.constant 24 : index
    %c0_167 = arith.constant 0 : index
    %291 = vector.load %arg3[%c24, %c0_167] : memref<34x256xf32, #tpu.memory_space<vmem>>, vector<1x128xf32>
    %292 = vector.broadcast %291 : vector<1x128xf32> to vector<4x128xf32>
    %293 = arith.mulf %290, %292 : vector<4x128xf32>
    %c25 = arith.constant 25 : index
    %c0_168 = arith.constant 0 : index
    %294 = vector.load %arg3[%c25, %c0_168] : memref<34x256xf32, #tpu.memory_space<vmem>>, vector<1x128xf32>
    %295 = vector.broadcast %294 : vector<1x128xf32> to vector<4x128xf32>
    %296 = arith.addf %293, %295 : vector<4x128xf32>
    %cst_169 = arith.constant 0.000000e+00 : f32
    %297 = vector.broadcast %cst_169 : f32 to vector<4x128xf32>
    %298 = arith.maximumf %296, %297 : vector<4x128xf32>
    %c15_170 = arith.constant 15 : index
    %c0_171 = arith.constant 0 : index
    %c0_172 = arith.constant 0 : index
    %299 = vector.load %arg2[%c15_170, %c0_171, %c0_172] : memref<19x64x16xf32, #tpu.memory_space<vmem>>, vector<1x16x4xf32>
    %300 = vector.shape_cast %299 : vector<1x16x4xf32> to vector<16x4xf32>
    %cst_173 = arith.constant dense<0.000000e+00> : vector<16x128xf32>
    %301 = tpu.matmul %300, %298, %cst_173 {dimension_numbers = #tpu.dot_dimension_numbers<[1], [0], [0], [1], [0, 0, 1, 1], [], []>} : vector<16x4xf32>, vector<4x128xf32>, vector<16x128xf32> -> vector<16x128xf32>
    %302 = vector.extract_strided_slice %301 {offsets = [0, 0], sizes = [4, 128], strides = [1, 1]} : vector<16x128xf32> to vector<4x128xf32>
    %303 = vector.extract_strided_slice %301 {offsets = [4, 0], sizes = [4, 128], strides = [1, 1]} : vector<16x128xf32> to vector<4x128xf32>
    %304 = vector.extract_strided_slice %301 {offsets = [8, 0], sizes = [4, 128], strides = [1, 1]} : vector<16x128xf32> to vector<4x128xf32>
    %305 = vector.extract_strided_slice %301 {offsets = [12, 0], sizes = [4, 128], strides = [1, 1]} : vector<16x128xf32> to vector<4x128xf32>
    %306 = tpu.concatenate %302, %303, %304, %305 in 1 : vector<4x128xf32>, vector<4x128xf32>, vector<4x128xf32>, vector<4x128xf32> -> vector<4x512xf32>
    %c0_174 = arith.constant 0 : index
    %c0_175 = arith.constant 0 : index
    %307 = vector.load %arg18[%c0_174, %c0_175] : memref<512x256xf32, #tpu.memory_space<vmem>>, vector<512x256xf32>
    %cst_176 = arith.constant dense<0.000000e+00> : vector<4x256xf32>
    %308 = tpu.matmul %306, %307, %cst_176 {dimension_numbers = #tpu.dot_dimension_numbers<[1], [0], [0], [1], [0, 0, 1, 1], [], []>} : vector<4x512xf32>, vector<512x256xf32>, vector<4x256xf32> -> vector<4x256xf32>
    %c13_177 = arith.constant 13 : index
    %c0_178 = arith.constant 0 : index
    %309 = vector.load %arg4[%c13_177, %c0_178] : memref<17x256xf32, #tpu.memory_space<vmem>>, vector<1x256xf32>
    %310 = vector.broadcast %309 : vector<1x256xf32> to vector<4x256xf32>
    %311 = arith.addf %308, %310 : vector<4x256xf32>
    %c26 = arith.constant 26 : index
    %c0_179 = arith.constant 0 : index
    %312 = vector.load %arg3[%c26, %c0_179] : memref<34x256xf32, #tpu.memory_space<vmem>>, vector<1x256xf32>
    %313 = vector.broadcast %312 : vector<1x256xf32> to vector<4x256xf32>
    %314 = arith.mulf %311, %313 : vector<4x256xf32>
    %c27 = arith.constant 27 : index
    %c0_180 = arith.constant 0 : index
    %315 = vector.load %arg3[%c27, %c0_180] : memref<34x256xf32, #tpu.memory_space<vmem>>, vector<1x256xf32>
    %316 = vector.broadcast %315 : vector<1x256xf32> to vector<4x256xf32>
    %317 = arith.addf %314, %316 : vector<4x256xf32>
    %cst_181 = arith.constant 0.000000e+00 : f32
    %318 = vector.broadcast %cst_181 : f32 to vector<4x256xf32>
    %319 = arith.maximumf %317, %318 : vector<4x256xf32>
    %c16_182 = arith.constant 16 : index
    %c0_183 = arith.constant 0 : index
    %c0_184 = arith.constant 0 : index
    %320 = vector.load %arg2[%c16_182, %c0_183, %c0_184] : memref<19x64x16xf32, #tpu.memory_space<vmem>>, vector<1x16x4xf32>
    %321 = vector.shape_cast %320 : vector<1x16x4xf32> to vector<16x4xf32>
    %cst_185 = arith.constant dense<0.000000e+00> : vector<16x256xf32>
    %322 = tpu.matmul %321, %319, %cst_185 {dimension_numbers = #tpu.dot_dimension_numbers<[1], [0], [0], [1], [0, 0, 1, 1], [], []>} : vector<16x4xf32>, vector<4x256xf32>, vector<16x256xf32> -> vector<16x256xf32>
    %323 = vector.extract_strided_slice %322 {offsets = [0, 0], sizes = [4, 256], strides = [1, 1]} : vector<16x256xf32> to vector<4x256xf32>
    %324 = vector.extract_strided_slice %322 {offsets = [4, 0], sizes = [4, 256], strides = [1, 1]} : vector<16x256xf32> to vector<4x256xf32>
    %325 = vector.extract_strided_slice %322 {offsets = [8, 0], sizes = [4, 256], strides = [1, 1]} : vector<16x256xf32> to vector<4x256xf32>
    %326 = vector.extract_strided_slice %322 {offsets = [12, 0], sizes = [4, 256], strides = [1, 1]} : vector<16x256xf32> to vector<4x256xf32>
    %327 = tpu.concatenate %323, %324, %325, %326 in 1 : vector<4x256xf32>, vector<4x256xf32>, vector<4x256xf32>, vector<4x256xf32> -> vector<4x1024xf32>
    %c0_186 = arith.constant 0 : index
    %c0_187 = arith.constant 0 : index
    %328 = vector.load %arg19[%c0_186, %c0_187] : memref<1024x256xf32, #tpu.memory_space<vmem>>, vector<1024x256xf32>
    %cst_188 = arith.constant dense<0.000000e+00> : vector<4x256xf32>
    %329 = tpu.matmul %327, %328, %cst_188 {dimension_numbers = #tpu.dot_dimension_numbers<[1], [0], [0], [1], [0, 0, 1, 1], [], []>} : vector<4x1024xf32>, vector<1024x256xf32>, vector<4x256xf32> -> vector<4x256xf32>
    %c14_189 = arith.constant 14 : index
    %c0_190 = arith.constant 0 : index
    %330 = vector.load %arg4[%c14_189, %c0_190] : memref<17x256xf32, #tpu.memory_space<vmem>>, vector<1x256xf32>
    %331 = vector.broadcast %330 : vector<1x256xf32> to vector<4x256xf32>
    %332 = arith.addf %329, %331 : vector<4x256xf32>
    %cst_191 = arith.constant 0.000000e+00 : f32
    %333 = vector.broadcast %cst_191 : f32 to vector<4x64xf32>
    %cst_192 = arith.constant 0.000000e+00 : f32
    %334 = vector.broadcast %cst_192 : f32 to vector<4x64xf32>
    %335 = tpu.concatenate %333, %290, %334 in 1 : vector<4x64xf32>, vector<4x128xf32>, vector<4x64xf32> -> vector<4x256xf32>
    %336 = arith.addf %332, %335 : vector<4x256xf32>
    %c28 = arith.constant 28 : index
    %c0_193 = arith.constant 0 : index
    %337 = vector.load %arg3[%c28, %c0_193] : memref<34x256xf32, #tpu.memory_space<vmem>>, vector<1x256xf32>
    %338 = vector.broadcast %337 : vector<1x256xf32> to vector<4x256xf32>
    %339 = arith.mulf %336, %338 : vector<4x256xf32>
    %c29 = arith.constant 29 : index
    %c0_194 = arith.constant 0 : index
    %340 = vector.load %arg3[%c29, %c0_194] : memref<34x256xf32, #tpu.memory_space<vmem>>, vector<1x256xf32>
    %341 = vector.broadcast %340 : vector<1x256xf32> to vector<4x256xf32>
    %342 = arith.addf %339, %341 : vector<4x256xf32>
    %cst_195 = arith.constant 0.000000e+00 : f32
    %343 = vector.broadcast %cst_195 : f32 to vector<4x256xf32>
    %344 = arith.maximumf %342, %343 : vector<4x256xf32>
    %c17_196 = arith.constant 17 : index
    %c0_197 = arith.constant 0 : index
    %c0_198 = arith.constant 0 : index
    %345 = vector.load %arg2[%c17_196, %c0_197, %c0_198] : memref<19x64x16xf32, #tpu.memory_space<vmem>>, vector<1x16x4xf32>
    %346 = vector.shape_cast %345 : vector<1x16x4xf32> to vector<16x4xf32>
    %cst_199 = arith.constant dense<0.000000e+00> : vector<16x256xf32>
    %347 = tpu.matmul %346, %344, %cst_199 {dimension_numbers = #tpu.dot_dimension_numbers<[1], [0], [0], [1], [0, 0, 1, 1], [], []>} : vector<16x4xf32>, vector<4x256xf32>, vector<16x256xf32> -> vector<16x256xf32>
    %348 = vector.extract_strided_slice %347 {offsets = [0, 0], sizes = [4, 256], strides = [1, 1]} : vector<16x256xf32> to vector<4x256xf32>
    %349 = vector.extract_strided_slice %347 {offsets = [4, 0], sizes = [4, 256], strides = [1, 1]} : vector<16x256xf32> to vector<4x256xf32>
    %350 = vector.extract_strided_slice %347 {offsets = [8, 0], sizes = [4, 256], strides = [1, 1]} : vector<16x256xf32> to vector<4x256xf32>
    %351 = vector.extract_strided_slice %347 {offsets = [12, 0], sizes = [4, 256], strides = [1, 1]} : vector<16x256xf32> to vector<4x256xf32>
    %352 = tpu.concatenate %348, %349, %350, %351 in 1 : vector<4x256xf32>, vector<4x256xf32>, vector<4x256xf32>, vector<4x256xf32> -> vector<4x1024xf32>
    %c0_200 = arith.constant 0 : index
    %c0_201 = arith.constant 0 : index
    %353 = vector.load %arg20[%c0_200, %c0_201] : memref<1024x256xf32, #tpu.memory_space<vmem>>, vector<1024x256xf32>
    %cst_202 = arith.constant dense<0.000000e+00> : vector<4x256xf32>
    %354 = tpu.matmul %352, %353, %cst_202 {dimension_numbers = #tpu.dot_dimension_numbers<[1], [0], [0], [1], [0, 0, 1, 1], [], []>} : vector<4x1024xf32>, vector<1024x256xf32>, vector<4x256xf32> -> vector<4x256xf32>
    %c15_203 = arith.constant 15 : index
    %c0_204 = arith.constant 0 : index
    %355 = vector.load %arg4[%c15_203, %c0_204] : memref<17x256xf32, #tpu.memory_space<vmem>>, vector<1x256xf32>
    %356 = vector.broadcast %355 : vector<1x256xf32> to vector<4x256xf32>
    %357 = arith.addf %354, %356 : vector<4x256xf32>
    %c30 = arith.constant 30 : index
    %c0_205 = arith.constant 0 : index
    %358 = vector.load %arg3[%c30, %c0_205] : memref<34x256xf32, #tpu.memory_space<vmem>>, vector<1x256xf32>
    %359 = vector.broadcast %358 : vector<1x256xf32> to vector<4x256xf32>
    %360 = arith.mulf %357, %359 : vector<4x256xf32>
    %c31 = arith.constant 31 : index
    %c0_206 = arith.constant 0 : index
    %361 = vector.load %arg3[%c31, %c0_206] : memref<34x256xf32, #tpu.memory_space<vmem>>, vector<1x256xf32>
    %362 = vector.broadcast %361 : vector<1x256xf32> to vector<4x256xf32>
    %363 = arith.addf %360, %362 : vector<4x256xf32>
    %cst_207 = arith.constant 0.000000e+00 : f32
    %364 = vector.broadcast %cst_207 : f32 to vector<4x256xf32>
    %365 = arith.maximumf %363, %364 : vector<4x256xf32>
    %c18_208 = arith.constant 18 : index
    %c0_209 = arith.constant 0 : index
    %c0_210 = arith.constant 0 : index
    %366 = vector.load %arg2[%c18_208, %c0_209, %c0_210] : memref<19x64x16xf32, #tpu.memory_space<vmem>>, vector<1x16x4xf32>
    %367 = vector.shape_cast %366 : vector<1x16x4xf32> to vector<16x4xf32>
    %cst_211 = arith.constant dense<0.000000e+00> : vector<16x256xf32>
    %368 = tpu.matmul %367, %365, %cst_211 {dimension_numbers = #tpu.dot_dimension_numbers<[1], [0], [0], [1], [0, 0, 1, 1], [], []>} : vector<16x4xf32>, vector<4x256xf32>, vector<16x256xf32> -> vector<16x256xf32>
    %369 = vector.extract_strided_slice %368 {offsets = [0, 0], sizes = [4, 256], strides = [1, 1]} : vector<16x256xf32> to vector<4x256xf32>
    %370 = vector.extract_strided_slice %368 {offsets = [4, 0], sizes = [4, 256], strides = [1, 1]} : vector<16x256xf32> to vector<4x256xf32>
    %371 = vector.extract_strided_slice %368 {offsets = [8, 0], sizes = [4, 256], strides = [1, 1]} : vector<16x256xf32> to vector<4x256xf32>
    %372 = vector.extract_strided_slice %368 {offsets = [12, 0], sizes = [4, 256], strides = [1, 1]} : vector<16x256xf32> to vector<4x256xf32>
    %373 = tpu.concatenate %369, %370, %371, %372 in 1 : vector<4x256xf32>, vector<4x256xf32>, vector<4x256xf32>, vector<4x256xf32> -> vector<4x1024xf32>
    %c0_212 = arith.constant 0 : index
    %c0_213 = arith.constant 0 : index
    %374 = vector.load %arg21[%c0_212, %c0_213] : memref<1024x256xf32, #tpu.memory_space<vmem>>, vector<1024x256xf32>
    %cst_214 = arith.constant dense<0.000000e+00> : vector<4x256xf32>
    %375 = tpu.matmul %373, %374, %cst_214 {dimension_numbers = #tpu.dot_dimension_numbers<[1], [0], [0], [1], [0, 0, 1, 1], [], []>} : vector<4x1024xf32>, vector<1024x256xf32>, vector<4x256xf32> -> vector<4x256xf32>
    %c16_215 = arith.constant 16 : index
    %c0_216 = arith.constant 0 : index
    %376 = vector.load %arg4[%c16_215, %c0_216] : memref<17x256xf32, #tpu.memory_space<vmem>>, vector<1x256xf32>
    %377 = vector.broadcast %376 : vector<1x256xf32> to vector<4x256xf32>
    %378 = arith.addf %375, %377 : vector<4x256xf32>
    %379 = arith.addf %378, %336 : vector<4x256xf32>
    %c32 = arith.constant 32 : index
    %c0_217 = arith.constant 0 : index
    %380 = vector.load %arg3[%c32, %c0_217] : memref<34x256xf32, #tpu.memory_space<vmem>>, vector<1x256xf32>
    %381 = vector.broadcast %380 : vector<1x256xf32> to vector<4x256xf32>
    %382 = arith.mulf %379, %381 : vector<4x256xf32>
    %c33 = arith.constant 33 : index
    %c0_218 = arith.constant 0 : index
    %383 = vector.load %arg3[%c33, %c0_218] : memref<34x256xf32, #tpu.memory_space<vmem>>, vector<1x256xf32>
    %384 = vector.broadcast %383 : vector<1x256xf32> to vector<4x256xf32>
    %385 = arith.addf %382, %384 : vector<4x256xf32>
    %cst_219 = arith.constant 0.000000e+00 : f32
    %386 = vector.broadcast %cst_219 : f32 to vector<4x256xf32>
    %387 = arith.maximumf %385, %386 : vector<4x256xf32>
    %c0_220 = arith.constant 0 : index
    %c0_221 = arith.constant 0 : index
    %c0_222 = arith.constant 0 : index
    %388 = vector.load %arg22[%c0_220, %c0_221, %c0_222] : memref<1x4x256xf32, #tpu.memory_space<vmem>>, vector<1x4x256xf32>
    %389 = vector.shape_cast %388 : vector<1x4x256xf32> to vector<4x256xf32>
    %390 = vector.shape_cast %387 : vector<4x256xf32> to vector<1x4x256xf32>
    tpu.vector_store %arg22[%c0_220, %c0_221, %c0_222], %390 {strides = array<i32>} : memref<1x4x256xf32, #tpu.memory_space<vmem>>, vector<1x4x256xf32>,
    return
  }
  func.func @transform_0(%arg0: i32) -> (i32, i32, i32) {
    %c0_i32 = arith.constant 0 : i32
    %c0_i32_0 = arith.constant 0 : i32
    %c0_i32_1 = arith.constant 0 : i32
    return %arg0, %c0_i32, %c0_i32_0 : i32, i32, i32
  }
  func.func @transform_1(%arg0: i32) -> (i32, i32, i32) {
    %c0_i32 = arith.constant 0 : i32
    %c0_i32_0 = arith.constant 0 : i32
    %c0_i32_1 = arith.constant 0 : i32
    %c0_i32_2 = arith.constant 0 : i32
    return %c0_i32, %c0_i32_0, %c0_i32_1 : i32, i32, i32
  }
  func.func @transform_2(%arg0: i32) -> (i32, i32) {
    %c0_i32 = arith.constant 0 : i32
    %c0_i32_0 = arith.constant 0 : i32
    %c0_i32_1 = arith.constant 0 : i32
    return %c0_i32, %c0_i32_0 : i32, i32
  }
  func.func @transform_3(%arg0: i32) -> (i32, i32) {
    %c0_i32 = arith.constant 0 : i32
    %c0_i32_0 = arith.constant 0 : i32
    %c0_i32_1 = arith.constant 0 : i32
    return %c0_i32, %c0_i32_0 : i32, i32
  }
  func.func @transform_4(%arg0: i32) -> (i32, i32) {
    %c0_i32 = arith.constant 0 : i32
    %c0_i32_0 = arith.constant 0 : i32
    %c0_i32_1 = arith.constant 0 : i32
    return %c0_i32, %c0_i32_0 : i32, i32
  }
  func.func @transform_5(%arg0: i32) -> (i32, i32) {
    %c0_i32 = arith.constant 0 : i32
    %c0_i32_0 = arith.constant 0 : i32
    %c0_i32_1 = arith.constant 0 : i32
    return %c0_i32, %c0_i32_0 : i32, i32
  }
  func.func @transform_6(%arg0: i32) -> (i32, i32) {
    %c0_i32 = arith.constant 0 : i32
    %c0_i32_0 = arith.constant 0 : i32
    %c0_i32_1 = arith.constant 0 : i32
    return %c0_i32, %c0_i32_0 : i32, i32
  }
  func.func @transform_7(%arg0: i32) -> (i32, i32) {
    %c0_i32 = arith.constant 0 : i32
    %c0_i32_0 = arith.constant 0 : i32
    %c0_i32_1 = arith.constant 0 : i32
    return %c0_i32, %c0_i32_0 : i32, i32
  }
  func.func @transform_8(%arg0: i32) -> (i32, i32) {
    %c0_i32 = arith.constant 0 : i32
    %c0_i32_0 = arith.constant 0 : i32
    %c0_i32_1 = arith.constant 0 : i32
    return %c0_i32, %c0_i32_0 : i32, i32
  }
  func.func @transform_9(%arg0: i32) -> (i32, i32) {
    %c0_i32 = arith.constant 0 : i32
    %c0_i32_0 = arith.constant 0 : i32
    %c0_i32_1 = arith.constant 0 : i32
    return %c0_i32, %c0_i32_0 : i32, i32
  }
  func.func @transform_10(%arg0: i32) -> (i32, i32) {
    %c0_i32 = arith.constant 0 : i32
    %c0_i32_0 = arith.constant 0 : i32
    %c0_i32_1 = arith.constant 0 : i32
    return %c0_i32, %c0_i32_0 : i32, i32
  }
  func.func @transform_11(%arg0: i32) -> (i32, i32) {
    %c0_i32 = arith.constant 0 : i32
    %c0_i32_0 = arith.constant 0 : i32
    %c0_i32_1 = arith.constant 0 : i32
    return %c0_i32, %c0_i32_0 : i32, i32
  }
  func.func @transform_12(%arg0: i32) -> (i32, i32) {
    %c0_i32 = arith.constant 0 : i32
    %c0_i32_0 = arith.constant 0 : i32
    %c0_i32_1 = arith.constant 0 : i32
    return %c0_i32, %c0_i32_0 : i32, i32
  }
  func.func @transform_13(%arg0: i32) -> (i32, i32) {
    %c0_i32 = arith.constant 0 : i32
    %c0_i32_0 = arith.constant 0 : i32
    %c0_i32_1 = arith.constant 0 : i32
    return %c0_i32, %c0_i32_0 : i32, i32
  }
  func.func @transform_14(%arg0: i32) -> (i32, i32) {
    %c0_i32 = arith.constant 0 : i32
    %c0_i32_0 = arith.constant 0 : i32
    %c0_i32_1 = arith.constant 0 : i32
    return %c0_i32, %c0_i32_0 : i32, i32
  }
  func.func @transform_15(%arg0: i32) -> (i32, i32) {
    %c0_i32 = arith.constant 0 : i32
    %c0_i32_0 = arith.constant 0 : i32
    %c0_i32_1 = arith.constant 0 : i32
    return %c0_i32, %c0_i32_0 : i32, i32
  }
  func.func @transform_16(%arg0: i32) -> (i32, i32) {
    %c0_i32 = arith.constant 0 : i32
    %c0_i32_0 = arith.constant 0 : i32
    %c0_i32_1 = arith.constant 0 : i32
    return %c0_i32, %c0_i32_0 : i32, i32
  }
  func.func @transform_17(%arg0: i32) -> (i32, i32) {
    %c0_i32 = arith.constant 0 : i32
    %c0_i32_0 = arith.constant 0 : i32
    %c0_i32_1 = arith.constant 0 : i32
    return %c0_i32, %c0_i32_0 : i32, i32
  }
  func.func @transform_18(%arg0: i32) -> (i32, i32) {
    %c0_i32 = arith.constant 0 : i32
    %c0_i32_0 = arith.constant 0 : i32
    %c0_i32_1 = arith.constant 0 : i32
    return %c0_i32, %c0_i32_0 : i32, i32
  }
  func.func @transform_19(%arg0: i32) -> (i32, i32) {
    %c0_i32 = arith.constant 0 : i32
    %c0_i32_0 = arith.constant 0 : i32
    %c0_i32_1 = arith.constant 0 : i32
    return %c0_i32, %c0_i32_0 : i32, i32
  }
  func.func @transform_20(%arg0: i32) -> (i32, i32) {
    %c0_i32 = arith.constant 0 : i32
    %c0_i32_0 = arith.constant 0 : i32
    %c0_i32_1 = arith.constant 0 : i32
    return %c0_i32, %c0_i32_0 : i32, i32
  }
  func.func @transform_21(%arg0: i32) -> (i32, i32, i32) {
    %c0_i32 = arith.constant 0 : i32
    %c0_i32_0 = arith.constant 0 : i32
    %c0_i32_1 = arith.constant 0 : i32
    return %arg0, %c0_i32, %c0_i32_0 : i32, i32, i32
  }
}

</mosaic_0001>

<bundles_post_ra>
// kernel: conv_encoder_1d_forward.1
= control target key start
LH: loop header
LB: loop body
LE: loop exit
PB: predicated region body
PF: predicated region fallthrough
CT: control target
= control target key end

     0   :  { %s9569_s0 = inlined_call_operand.vmem [shape: f32[2,16,4], index: 0, kind: input, shape index: {}]   ;;  %s9570_s1 = inlined_call_operand.hbm [shape: f32[19,64,16], index: 1, kind: input, shape index: {}]   ;;  %s9571_s2 = inlined_call_operand.hbm [shape: f32[34,256], index: 2, kind: input, shape index: {}]   ;;  %s9572_s3 = inlined_call_operand.hbm [shape: f32[17,256], index: 3, kind: input, shape index: {}]   ;;  %s9573_s4 = inlined_call_operand.vmem [shape: f32[16,32], index: 4, kind: input, shape index: {}]   ;;  %s9574_s5 = inlined_call_operand.hbm [shape: f32[128,32], index: 5, kind: input, shape index: {}]   ;;  %s9575_s6 = inlined_call_operand.hbm [shape: f32[128,32], index: 6, kind: input, shape index: {}]   ;;  %s9576_s7 = inlined_call_operand.hbm [shape: f32[128,32], index: 7, kind: input, shape index: {}]   ;;  %s9577_s8 = inlined_call_operand.hbm [shape: f32[128,32], index: 8, kind: input, shape index: {}]   ;;  %s9578_s9 = inlined_call_operand.hbm [shape: f32[128,64], index: 9, kind: input, shape index: {}]   ;;  %s9579_s10 = inlined_call_operand.hbm [shape: f32[256,64], index: 10, kind: input, shape index: {}]   ;;  %s9580_s11 = inlined_call_operand.hbm [shape: f32[256,64], index: 11, kind: input, shape index: {}]   ;;  %s9581_s12 = inlined_call_operand.hbm [shape: f32[256,64], index: 12, kind: input, shape index: {}]   ;;  %s9582_s13 = inlined_call_operand.hbm [shape: f32[256,128], index: 13, kind: input, shape index: {}]   ;;  %s9583_s14 = inlined_call_operand.hbm [shape: f32[512,128], index: 14, kind: input, shape index: {}]   ;;  %s9584_s15 = inlined_call_operand.hbm [shape: f32[512,128], index: 15, kind: input, shape index: {}]   ;;  %s9585_s16 = inlined_call_operand.hbm [shape: f32[512,128], index: 16, kind: input, shape index: {}]   ;;  %s9586_s17 = inlined_call_operand.hbm [shape: f32[512,256], index: 17, kind: input, shape index: {}]   ;;  %s9587_s18 = inlined_call_operand.hbm [shape: f32[1024,256], index: 18, kind: input, shape index: {}]   ;;  %s9588_s19 = inlined_call_operand.hbm [shape: f32[1024,256], index: 19, kind: input, shape index: {}]   ;;  %s9589_s20 = inlined_call_operand.hbm [shape: f32[1024,256], index: 20, kind: input, shape index: {}]   ;;  %s9590_s21 = inlined_call_operand.vmem [shape: f32[2,4,256], index: 21, kind: output, shape index: {}]  }
   0x1   :  { %9600 = sst [smem:[#allocation41_spill]] %s9569_s0 }
   0x2   :  { %9601 = sst [smem:[#allocation42_spill]] %s9570_s1 }
   0x3   :  { %9602 = sst [smem:[#allocation43_spill]] %s9571_s2 }
   0x4   :  { %9603 = sst [smem:[#allocation44_spill]] %s9572_s3 }
   0x5   :  { %9604 = sst [smem:[#allocation45_spill]] %s9573_s4 }
   0x6   :  { %9605 = sst [smem:[#allocation46_spill]] %s9574_s5 }
   0x7   :  { %9606 = sst [smem:[#allocation47_spill]] %s9576_s7 }
   0x8   :  { %9607 = sst [smem:[#allocation48_spill]] %s9578_s9 }
   0x9   :  { %9608 = sst [smem:[#allocation49_spill]] %s9580_s11 }
   0xa   :  { %26 = vsyncpa [#allocation3], 0 }
   0xb   :  { %27 = vsyncpa [#allocation5], 0 }
   0xc   :  { %28 = vsyncpa [#allocation8], 0 }
   0xd   :  { %29 = vsyncpa [#allocation11], 0 }
   0xe   :  { %30 = vsyncpa [#allocation14], 0 }
   0xf   :  { %31 = vsyncpa [#allocation17], 0 }
  0x10   :  { %32 = vsyncpa [#allocation20], 0 }
  0x11   :  { %33 = vsyncpa [#allocation23], 0 }
  0x12   :  { %34 = vsyncpa [#allocation26], 0 }
  0x13   :  { %35 = vsyncpa [#allocation29], 0  ;;  %s9000_s2 = smov 0  }
  0x14 LB: > { %s8858_s25 = smov [#allocation4]   ;;  %s9006_s27 = sadd.s32 4294967295, %s8856_s2   ;;  %s8856_s2 = sphi %s9000_s2, %s41_s2  }
  0x15   : > { %s543_s26 = sshll.u32 %s8858_s25, 4  ;;  %p7074_p0 = scmp.ge.s32.totalorder %s8856_s2, 1  ;;  %s544_s26 = int_to_ptr.vmem [resolvable:$true] %s543_s26 }
  0x16   : > { %p518_p1 = scmp.lt.s32.totalorder %s8856_s2, 3  ;;  %p8188_p2 = scmp.eq.s32.totalorder %s9006_s27, 0 }
  0x17   : > { %s8859_s29 = smov [#allocation7]   ;;  %s8860_s4 = smov [#allocation10]  }
  0x18   : > { %p9011_p3 = pnand %p7074_p0, %p518_p1  ;;  %s572_s0 = sshll.u32 %s8859_s29, 4  ;;  %s9023_s0 = int_to_ptr.vmem [resolvable:$true] %s572_s0 }
  0x19   : > { %s598_s30 = sshll.u32 %s8860_s4, 4  ;;  %s8327_s22 = scalar_lea.vmem %s544_s26, 1280  ;;  %s9025_s30 = int_to_ptr.vmem [resolvable:$true] %s598_s30 }
  0x1a   : > { %p8130_p4 = pneg %p9011_p3  ;;  %p8328_p7 = scmp.ne.s32.totalorder %s544_s26, %s8327_s22 }
  0x1b   : > { %p8335_p10 = scmp.lt.s32.totalorder %s544_s26, %s544_s26  ;;  %p8336_p11 = scmp.lt.s32.totalorder %s8327_s22, %s8327_s22 }
  0x1c   : > { %p9019_p5 = pnand %p8188_p2, %p8130_p4 }
  0x1d   : > { %p8337_p12 = por %p8336_p11, %p8335_p10 }
  0x1e   : > { %p9029_p6 = pneg %p9019_p5 }
  0x20   : > { %p8330_p8 = pnand %p8328_p7, %p9029_p6 }
  0x22   : > { %p8331_p9 = pneg %p8330_p8 }
  0x24   : > { %p8338_p13 = pnand %p8337_p12, %p8331_p9 }
  0x26   : > { %8341 = shalt.err (!%p8338_p13)
}
  0x27   : > { %s9592_s23 = smov 256   ;;  %s9594_s1 = smov 16  }
  0x28   : > { %s9612_s29 = sld [smem:[#allocation43_spill]]  ;;  %s8353_s4 = scalar_lea.vmem %s9023_s0, 2048 }
  0x29   : > { %p8354_p0 = scmp.ne.s32.totalorder %s9023_s0, %s8353_s4  ;;  %p8361_p7 = scmp.lt.s32.totalorder %s9023_s0, %s9023_s0 }
  0x2a   : > { %p8362_p8 = scmp.lt.s32.totalorder %s8353_s4, %s8353_s4 }
  0x2b   : > { %p8356_p1 = pnand %p8354_p0, %p9029_p6 }
  0x2c   : > { %p8363_p9 = por %p8362_p8, %p8361_p7 }
  0x2d   : > { %p8357_p4 = pneg %p8356_p1 }
  0x2e   : > { %8136 = dma.hbm_to_vmem [thread:$0]  (!%p9019_p5), %s9612_s29, 1280, %s544_s26, [#allocation5], %s9592_s23, %s9592_s23, %s9594_s1  }
  0x2f   : > { %p8364_p10 = pnand %p8363_p9, %p8357_p4 }
  0x31   : > { %8367 = shalt.err (!%p8364_p10)
}
  0x32   : > { %s9596_s22 = smov 128   ;;  %s9598_s24 = smov 8  }
  0x33   : > { %s9613_s29 = sld [smem:[#allocation46_spill]]  ;;  %s8379_s4 = scalar_lea.vmem %s9025_s30, 2048 }
  0x34   : > { %p8380_p11 = scmp.ne.s32.totalorder %s9025_s30, %s8379_s4  ;;  %p8387_p0 = scmp.lt.s32.totalorder %s9025_s30, %s9025_s30 }
  0x35   : > { %p8388_p1 = scmp.lt.s32.totalorder %s8379_s4, %s8379_s4 }
  0x36   : > { %p8382_p12 = pnand %p8380_p11, %p9029_p6 }
  0x37   : > { %p8389_p4 = por %p8388_p1, %p8387_p0 }
  0x38   : > { %p8383_p13 = pneg %p8382_p12 }
  0x39   : > { %8142 = dma.hbm_to_vmem [thread:$0]  (!%p9019_p5), %s9613_s29, 2048, %s9023_s0, [#allocation8], %s9596_s22, %s9596_s22, %s9598_s24  }
  0x3a   : > { %p8390_p7 = pnand %p8389_p4, %p8383_p13 }
  0x3c   : > { %8393 = shalt.err (!%p8390_p7)
}
  0x3d   : > { %s9614_s7 = sld [smem:[#allocation47_spill]]  ;;  %s8865_s0 = smov [#allocation13]  }
  0x3e   : > { %s624_s25 = sshll.u32 %s8865_s0, 4  ;;  %s8866_s29 = smov [#allocation16]   ;;  %s625_s25 = int_to_ptr.vmem [resolvable:$true] %s624_s25 }
  0x3f   : > { %s650_s1 = sshll.u32 %s8866_s29, 4  ;;  %s8405_s4 = scalar_lea.vmem %s625_s25, 2048  ;;  %s651_s1 = int_to_ptr.vmem [resolvable:$true] %s650_s1 }
  0x40   : > { %p8406_p8 = scmp.ne.s32.totalorder %s625_s25, %s8405_s4  ;;  %p8413_p11 = scmp.lt.s32.totalorder %s625_s25, %s625_s25 }
  0x41   : > { %p8414_p12 = scmp.lt.s32.totalorder %s8405_s4, %s8405_s4 }
  0x42   : > { %p8408_p9 = pnand %p8406_p8, %p9029_p6 }
  0x43   : > { %8148 = dma.hbm_to_vmem [thread:$0]  (!%p9019_p5), %s9614_s7, 2048, %s9025_s30, [#allocation11], %s9596_s22, %s9596_s22, %s9598_s24  }
  0x44   : > { %p8409_p10 = pneg %p8408_p9  ;;  %p8415_p13 = por %p8414_p12, %p8413_p11 }
  0x46   : > { %p8416_p0 = pnand %p8415_p13, %p8409_p10 }
  0x48   : > { %8419 = shalt.err (!%p8416_p0)
}
  0x49   : > { %s9615_s9 = sld [smem:[#allocation48_spill]]  ;;  %s8431_s26 = scalar_lea.vmem %s651_s1, 4096 }
  0x4a   : > { %p8432_p1 = scmp.ne.s32.totalorder %s651_s1, %s8431_s26  ;;  %p8439_p8 = scmp.lt.s32.totalorder %s651_s1, %s651_s1 }
  0x4b   : > { %p8440_p9 = scmp.lt.s32.totalorder %s8431_s26, %s8431_s26 }
  0x4c   : > { %p8434_p4 = pnand %p8432_p1, %p9029_p6 }
  0x4d   : > { %p8441_p11 = por %p8440_p9, %p8439_p8 }
  0x4e   : > { %p8435_p7 = pneg %p8434_p4 }
  0x4f   : > { %8154 = dma.hbm_to_vmem [thread:$0]  (!%p9019_p5), %s9615_s9, 2048, %s625_s25, [#allocation14], %s9596_s22, %s9596_s22, %s9598_s24  }
  0x50   : > { %p8442_p10 = pnand %p8441_p11, %p8435_p7 }
  0x52   : > { %8445 = shalt.err (!%p8442_p10)
}
  0x53   : > { %s9616_s11 = sld [smem:[#allocation49_spill]]  ;;  %s8867_s25 = smov [#allocation19]  }
  0x54   : > { %s676_s4 = sshll.u32 %s8867_s25, 4  ;;  %s8868_s30 = smov [#allocation22]   ;;  %s677_s4 = int_to_ptr.vmem [resolvable:$true] %s676_s4 }
  0x55   : > { %s702_s23 = sshll.u32 %s8868_s30, 4  ;;  %s8457_s26 = scalar_lea.vmem %s677_s4, 4096  ;;  %s703_s23 = int_to_ptr.vmem [resolvable:$true] %s702_s23 }
  0x56   : > { %p8458_p12 = scmp.ne.s32.totalorder %s677_s4, %s8457_s26  ;;  %p8465_p1 = scmp.lt.s32.totalorder %s677_s4, %s677_s4 }
  0x57   : > { %p8466_p4 = scmp.lt.s32.totalorder %s8457_s26, %s8457_s26 }
  0x58   : > { %p8460_p13 = pnand %p8458_p12, %p9029_p6 }
  0x59   : > { %8160 = dma.hbm_to_vmem [thread:$0]  (!%p9019_p5), %s9616_s11, 4096, %s651_s1, [#allocation17], %s9596_s22, %s9596_s22, %s9598_s24  }
  0x5a   : > { %p8461_p0 = pneg %p8460_p13  ;;  %p8467_p7 = por %p8466_p4, %p8465_p1 }
  0x5c   : > { %p8468_p8 = pnand %p8467_p7, %p8461_p0 }
  0x5e   : > { %8471 = shalt.err (!%p8468_p8)
}
  0x5f   : > { %8166 = dma.hbm_to_vmem [thread:$0]  (!%p9019_p5), %s9582_s13, 4096, %s677_s4, [#allocation20], %s9596_s22, %s9596_s22, %s9598_s24  }
  0x60   : > { %s8483_s29 = scalar_lea.vmem %s703_s23, 8192  ;;  %p8491_p12 = scmp.lt.s32.totalorder %s703_s23, %s703_s23 }
  0x61   : > { %p8484_p9 = scmp.ne.s32.totalorder %s703_s23, %s8483_s29  ;;  %p8492_p13 = scmp.lt.s32.totalorder %s8483_s29, %s8483_s29 }
  0x63   : > { %p8486_p11 = pnand %p8484_p9, %p9029_p6  ;;  %p8493_p1 = por %p8492_p13, %p8491_p12 }
  0x65   : > { %p8487_p10 = pneg %p8486_p11 }
  0x67   : > { %p8494_p0 = pnand %p8493_p1, %p8487_p10 }
  0x69   : > { %8497 = shalt.err (!%p8494_p0)
}
  0x6a   : > { %8172 = dma.hbm_to_vmem [thread:$0]  (!%p9019_p5), %s9584_s15, 8192, %s703_s23, [#allocation23], %s9596_s22, %s9596_s22, %s9598_s24  }
  0x6b   : > { %s8869_s4 = smov [#allocation25]   ;;  %s8870_s1 = smov [#allocation28]  }
  0x6c   : > { %s728_s26 = sshll.u32 %s8869_s4, 4  ;;  %s754_s0 = sshll.u32 %s8870_s1, 4  ;;  %s729_s26 = int_to_ptr.vmem [resolvable:$true] %s728_s26  ;;  %s755_s0 = int_to_ptr.vmem [resolvable:$true] %s754_s0 }
  0x6d   : > { %s8509_s29 = scalar_lea.vmem %s729_s26, 16384  ;;  %p8517_p9 = scmp.lt.s32.totalorder %s729_s26, %s729_s26 }
  0x6e   : > { %p8510_p4 = scmp.ne.s32.totalorder %s729_s26, %s8509_s29  ;;  %p8518_p11 = scmp.lt.s32.totalorder %s8509_s29, %s8509_s29 }
  0x70   : > { %p8512_p7 = pnand %p8510_p4, %p9029_p6  ;;  %p8519_p10 = por %p8518_p11, %p8517_p9 }
  0x72   : > { %p8513_p8 = pneg %p8512_p7 }
  0x74   : > { %p8520_p12 = pnand %p8519_p10, %p8513_p8 }
  0x76   : > { %8523 = shalt.err (!%p8520_p12)
}
  0x77   : > { %s9617_s25 = smov 16   ;;  %s9618_s23 = smov 256  }
  0x78   : > { %8178 = dma.hbm_to_vmem [thread:$0]  (!%p9019_p5), %s9586_s17, 16384, %s729_s26, [#allocation26], %s9618_s23, %s9618_s23, %s9617_s25  }
  0x79   : > { %s8535_s1 = scalar_lea.vmem %s755_s0, 32768  ;;  %p8543_p4 = scmp.lt.s32.totalorder %s755_s0, %s755_s0 }
  0x7a   : > { %p8536_p13 = scmp.ne.s32.totalorder %s755_s0, %s8535_s1  ;;  %p8544_p7 = scmp.lt.s32.totalorder %s8535_s1, %s8535_s1 }
  0x7c   : > { %p8538_p1 = pnand %p8536_p13, %p9029_p6  ;;  %p8545_p9 = por %p8544_p7, %p8543_p4 }
  0x7e   : > { %p8539_p0 = pneg %p8538_p1 }
  0x80   : > { %p8546_p8 = pnand %p8545_p9, %p8539_p0 }
  0x82   : > { %8549 = shalt.err (!%p8546_p8)
}
  0x83   : > { %8184 = dma.hbm_to_vmem [thread:$0]  (!%p9019_p5), %s9588_s19, 32768, %s755_s0, [#allocation29], %s9618_s23, %s9618_s23, %s9617_s25  }
  0x84   : > { %s8871_s26 = smov [#allocation2]   ;;  %s8872_s4 = smov [#allocation6]  }
  0x85   : > { %s530_s30 = sshll.u32 %s8871_s26, 4  ;;  %s556_s24 = sshll.u32 %s8872_s4, 4  ;;  %s531_s30 = int_to_ptr.vmem [resolvable:$true] %s530_s30  ;;  %s557_s24 = int_to_ptr.vmem [resolvable:$true] %s556_s24 }
  0x86   : > { %s8561_s1 = scalar_lea.vmem %s531_s30, 19456  ;;  %p8569_p13 = scmp.lt.s32.totalorder %s531_s30, %s531_s30 }
  0x87   : > { %p8562_p11 = scmp.ne.s32.totalorder %s531_s30, %s8561_s1  ;;  %p8570_p1 = scmp.lt.s32.totalorder %s8561_s1, %s8561_s1 }
  0x89   : > { %p8564_p10 = pnand %p8562_p11, %p9029_p6  ;;  %p8571_p0 = por %p8570_p1, %p8569_p13 }
  0x8b   : > { %p8565_p12 = pneg %p8564_p10 }
  0x8d   : > { %p8572_p4 = pnand %p8571_p0, %p8565_p12 }
  0x8f   : > { %8575 = shalt.err (!%p8572_p4)
}
  0x90   : > { %s9619_s22 = smov 8   ;;  %s9620_s0 = smov 128  }
  0x91   : > { %s9621_s4 = sld [smem:[#allocation42_spill]]  ;;  %s8587_s7 = scalar_lea.vmem %s557_s24, 768 }
  0x92   : > { %p8588_p7 = scmp.ne.s32.totalorder %s557_s24, %s8587_s7  ;;  %p8595_p11 = scmp.lt.s32.totalorder %s557_s24, %s557_s24 }
  0x93   : > { %p8596_p10 = scmp.lt.s32.totalorder %s8587_s7, %s8587_s7 }
  0x94   : > { %p8590_p9 = pnand %p8588_p7, %p9029_p6 }
  0x95   : > { %p8597_p13 = por %p8596_p10, %p8595_p11 }
  0x96   : > { %p8591_p8 = pneg %p8590_p9 }
  0x97   : > { %8133 = dma.hbm_to_vmem [thread:$0]  (!%p9019_p5), %s9621_s4, 19456, %s531_s30, [#allocation3], %s9620_s0, %s9620_s0, %s9619_s22  }
  0x98   : > { %p8598_p12 = pnand %p8597_p13, %p8591_p8 }
  0x9a   : > { %8601 = shalt.err (!%p8598_p12)
}
  0x9b   : > { %s9622_s29 = sld [smem:[#allocation44_spill]]  ;;  %s8873_s30 = smov [#allocation9]  }
  0x9c   : > { %s585_s26 = sshll.u32 %s8873_s30, 4  ;;  %s8874_s4 = smov [#allocation12]   ;;  %s586_s26 = int_to_ptr.vmem [resolvable:$true] %s585_s26 }
  0x9d   : > { %s611_s11 = sshll.u32 %s8874_s4, 4  ;;  %s8613_s7 = scalar_lea.vmem %s586_s26, 2048  ;;  %s612_s11 = int_to_ptr.vmem [resolvable:$true] %s611_s11 }
  0x9e   : > { %p8614_p1 = scmp.ne.s32.totalorder %s586_s26, %s8613_s7  ;;  %p8621_p7 = scmp.lt.s32.totalorder %s586_s26, %s586_s26 }
  0x9f   : > { %p8622_p9 = scmp.lt.s32.totalorder %s8613_s7, %s8613_s7 }
  0xa0   : > { %p8616_p0 = pnand %p8614_p1, %p9029_p6 }
  0xa1   : > { %8139 = dma.hbm_to_vmem [thread:$0]  (!%p9019_p5), %s9622_s29, 768, %s557_s24, [#allocation5], %s9618_s23, %s9618_s23, %s9617_s25  }
  0xa2   : > { %p8617_p4 = pneg %p8616_p0  ;;  %p8623_p8 = por %p8622_p9, %p8621_p7 }
  0xa4   : > { %p8624_p11 = pnand %p8623_p8, %p8617_p4 }
  0xa6   : > { %8627 = shalt.err (!%p8624_p11)
}
  0xa7   : > { %8145 = dma.hbm_to_vmem [thread:$0]  (!%p9019_p5), %s9575_s6, 2048, %s586_s26, [#allocation8], %s9620_s0, %s9620_s0, %s9619_s22  }
  0xa8   : > { %s8639_s1 = scalar_lea.vmem %s612_s11, 2048  ;;  %p8647_p1 = scmp.lt.s32.totalorder %s612_s11, %s612_s11 }
  0xa9   : > { %p8640_p10 = scmp.ne.s32.totalorder %s612_s11, %s8639_s1  ;;  %p8648_p0 = scmp.lt.s32.totalorder %s8639_s1, %s8639_s1 }
  0xab   : > { %p8642_p13 = pnand %p8640_p10, %p9029_p6  ;;  %p8649_p7 = por %p8648_p0, %p8647_p1 }
  0xad   : > { %p8643_p12 = pneg %p8642_p13 }
  0xaf   : > { %p8650_p4 = pnand %p8649_p7, %p8643_p12 }
  0xb1   : > { %8653 = shalt.err (!%p8650_p4)
}
  0xb2   : > { %8151 = dma.hbm_to_vmem [thread:$0]  (!%p9019_p5), %s9577_s8, 2048, %s612_s11, [#allocation11], %s9620_s0, %s9620_s0, %s9619_s22  }
  0xb3   : > { %s8875_s26 = smov [#allocation15]   ;;  %s8876_s7 = smov [#allocation18]  }
  0xb4   : > { %s637_s4 = sshll.u32 %s8875_s26, 4  ;;  %s663_s9 = sshll.u32 %s8876_s7, 4  ;;  %s638_s4 = int_to_ptr.vmem [resolvable:$true] %s637_s4  ;;  %s664_s9 = int_to_ptr.vmem [resolvable:$true] %s663_s9 }
  0xb5   : > { %s8665_s24 = scalar_lea.vmem %s638_s4, 4096  ;;  %p8673_p10 = scmp.lt.s32.totalorder %s638_s4, %s638_s4 }
  0xb6   : > { %p8666_p9 = scmp.ne.s32.totalorder %s638_s4, %s8665_s24  ;;  %p8674_p13 = scmp.lt.s32.totalorder %s8665_s24, %s8665_s24 }
  0xb8   : > { %p8668_p8 = pnand %p8666_p9, %p9029_p6  ;;  %p8675_p12 = por %p8674_p13, %p8673_p10 }
  0xba   : > { %p8669_p11 = pneg %p8668_p8 }
  0xbc   : > { %p8676_p1 = pnand %p8675_p12, %p8669_p11 }
  0xbe   : > { %8679 = shalt.err (!%p8676_p1)
}
  0xbf   : > { %8157 = dma.hbm_to_vmem [thread:$0]  (!%p9019_p5), %s9579_s10, 4096, %s638_s4, [#allocation14], %s9620_s0, %s9620_s0, %s9619_s22  }
  0xc0   : > { %s8691_s29 = scalar_lea.vmem %s664_s9, 4096  ;;  %p8699_p9 = scmp.lt.s32.totalorder %s664_s9, %s664_s9 }
  0xc1   : > { %p8692_p0 = scmp.ne.s32.totalorder %s664_s9, %s8691_s29  ;;  %p8700_p8 = scmp.lt.s32.totalorder %s8691_s29, %s8691_s29 }
  0xc3   : > { %p8694_p7 = pnand %p8692_p0, %p9029_p6  ;;  %p8701_p10 = por %p8700_p8, %p8699_p9 }
  0xc5   : > { %p8695_p4 = pneg %p8694_p7 }
  0xc7   : > { %p8702_p11 = pnand %p8701_p10, %p8695_p4 }
  0xc9   : > { %8705 = shalt.err (!%p8702_p11)
}
  0xca   : > { %8163 = dma.hbm_to_vmem [thread:$0]  (!%p9019_p5), %s9581_s12, 4096, %s664_s9, [#allocation17], %s9620_s0, %s9620_s0, %s9619_s22  }
  0xcb   : > { %s8877_s4 = smov [#allocation21]   ;;  %s8878_s24 = smov [#allocation24]  }
  0xcc   : > { %s689_s7 = sshll.u32 %s8877_s4, 4  ;;  %s715_s11 = sshll.u32 %s8878_s24, 4  ;;  %s690_s7 = int_to_ptr.vmem [resolvable:$true] %s689_s7  ;;  %s716_s11 = int_to_ptr.vmem [resolvable:$true] %s715_s11 }
  0xcd   : > { %s8717_s1 = scalar_lea.vmem %s690_s7, 8192  ;;  %p8725_p0 = scmp.lt.s32.totalorder %s690_s7, %s690_s7 }
  0xce   : > { %p8718_p13 = scmp.ne.s32.totalorder %s690_s7, %s8717_s1  ;;  %p8726_p7 = scmp.lt.s32.totalorder %s8717_s1, %s8717_s1 }
  0xd0   : > { %p8720_p12 = pnand %p8718_p13, %p9029_p6  ;;  %p8727_p4 = por %p8726_p7, %p8725_p0 }
  0xd2   : > { %p8721_p1 = pneg %p8720_p12 }
  0xd4   : > { %p8728_p9 = pnand %p8727_p4, %p8721_p1 }
  0xd6   : > { %8731 = shalt.err (!%p8728_p9)
}
  0xd7   : > { %8169 = dma.hbm_to_vmem [thread:$0]  (!%p9019_p5), %s9583_s14, 8192, %s690_s7, [#allocation20], %s9620_s0, %s9620_s0, %s9619_s22  }
  0xd8   : > { %s8743_s30 = scalar_lea.vmem %s716_s11, 8192  ;;  %p8751_p13 = scmp.lt.s32.totalorder %s716_s11, %s716_s11 }
  0xd9   : > { %p8744_p8 = scmp.ne.s32.totalorder %s716_s11, %s8743_s30  ;;  %p8752_p12 = scmp.lt.s32.totalorder %s8743_s30, %s8743_s30 }
  0xdb   : > { %p8746_p10 = pnand %p8744_p8, %p9029_p6  ;;  %p8753_p0 = por %p8752_p12, %p8751_p13 }
  0xdd   : > { %p8747_p11 = pneg %p8746_p10 }
  0xdf   : > { %p8754_p1 = pnand %p8753_p0, %p8747_p11 }
  0xe1   : > { %8757 = shalt.err (!%p8754_p1)
}
  0xe2   : > { %8175 = dma.hbm_to_vmem [thread:$0]  (!%p9019_p5), %s9585_s16, 8192, %s716_s11, [#allocation23], %s9620_s0, %s9620_s0, %s9619_s22  }
  0xe3   : > { %s8879_s7 = smov [#allocation27]   ;;  %s8880_s1 = smov [#allocation30]  }
  0xe4   : > { %s741_s24 = sshll.u32 %s8879_s7, 4  ;;  %s767_s9 = sshll.u32 %s8880_s1, 4  ;;  %s742_s24 = int_to_ptr.vmem [resolvable:$true] %s741_s24  ;;  %s768_s9 = int_to_ptr.vmem [resolvable:$true] %s767_s9 }
  0xe5   : > { %s8769_s29 = scalar_lea.vmem %s742_s24, 32768  ;;  %p8777_p8 = scmp.lt.s32.totalorder %s742_s24, %s742_s24 }
  0xe6   : > { %p8770_p7 = scmp.ne.s32.totalorder %s742_s24, %s8769_s29  ;;  %p8778_p10 = scmp.lt.s32.totalorder %s8769_s29, %s8769_s29 }
  0xe8   : > { %p8772_p4 = pnand %p8770_p7, %p9029_p6  ;;  %p8779_p11 = por %p8778_p10, %p8777_p8 }
  0xea   : > { %p8773_p9 = pneg %p8772_p4 }
  0xec   : > { %p8780_p13 = pnand %p8779_p11, %p8773_p9 }
  0xee   : > { %8783 = shalt.err (!%p8780_p13)
}
  0xef   : > { %8181 = dma.hbm_to_vmem [thread:$0]  (!%p9019_p5), %s9587_s18, 32768, %s742_s24, [#allocation26], %s9618_s23, %s9618_s23, %s9617_s25  }
  0xf0   : > { %s8795_s11 = scalar_lea.vmem %s768_s9, 32768  ;;  %p8803_p7 = scmp.lt.s32.totalorder %s768_s9, %s768_s9 }
  0xf1   : > { %p8796_p12 = scmp.ne.s32.totalorder %s768_s9, %s8795_s11  ;;  %p8804_p4 = scmp.lt.s32.totalorder %s8795_s11, %s8795_s11 }
  0xf3   : > { %p8798_p0 = pnand %p8796_p12, %p9029_p6  ;;  %p8805_p8 = por %p8804_p4, %p8803_p7 }
  0xf5   : > { %p8799_p1 = pneg %p8798_p0 }
  0xf7   : > { %p8806_p9 = pnand %p8805_p8, %p8799_p1 }
  0xf9   : > { %8809 = shalt.err (!%p8806_p9)
}
  0xfa   : > { %8187 = dma.hbm_to_vmem [thread:$0]  (!%p9019_p5), %s9589_s20, 32768, %s768_s9, [#allocation29], %s9618_s23, %s9618_s23, %s9617_s25  }
  0xfb   : > { %791 = sbr.rel (%p9011_p3) target bundleno = 8586 (0x218a), region = 104 }
 0x100   : > { %8815 = dma.done.wait (%p8188_p2), [#allocation3], 19456  }
 0x101   : > { %8817 = vsyncadd (%p8188_p2), [#allocation3], 4294947840 }
 0x102   : > { %8819 = dma.done.wait (%p8188_p2), [#allocation5], 2048  }
 0x103   : > { %8821 = vsyncadd (%p8188_p2), [#allocation5], 4294965248 }
 0x104   : > { %8823 = dma.done.wait (%p8188_p2), [#allocation8], 4096  }
 0x105   : > { %8825 = vsyncadd (%p8188_p2), [#allocation8], 4294963200 }
 0x106   : > { %8827 = dma.done.wait (%p8188_p2), [#allocation11], 4096  }
 0x107   : > { %8829 = vsyncadd (%p8188_p2), [#allocation11], 4294963200 }
 0x108   : > { %8831 = dma.done.wait (%p8188_p2), [#allocation14], 6144  }
 0x109   : > { %8833 = vsyncadd (%p8188_p2), [#allocation14], 4294961152 }
 0x10a   : > { %8835 = dma.done.wait (%p8188_p2), [#allocation17], 8192  }
 0x10b   : > { %8837 = vsyncadd (%p8188_p2), [#allocation17], 4294959104 }
 0x10c   : > { %8839 = dma.done.wait (%p8188_p2), [#allocation20], 12288  }
 0x10d   : > { %8841 = vsyncadd (%p8188_p2), [#allocation20], 4294955008 }
 0x10e   : > { %8843 = dma.done.wait (%p8188_p2), [#allocation23], 16384  }
 0x10f   : > { %8845 = vsyncadd (%p8188_p2), [#allocation23], 4294950912 }
 0x110   : > { %8847 = dma.done.wait (%p8188_p2), [#allocation26], 49152  }
 0x111   : > { %8849 = vsyncadd (%p8188_p2), [#allocation26], 4294918144 }
 0x112   : > { %8851 = dma.done.wait (%p8188_p2), [#allocation29], 65536  }
 0x113   : > { %8853 = vsyncadd (%p8188_p2), [#allocation29], 4294901760  ;;  %p923_p3 = scmp.lt.s32.totalorder %s9006_s27, 1  ;;  %s9623_s25 = sld [smem:[#allocation41_spill]]  ;;  %vm943_vm0 = vcmask 130048   ;;  %v935_v2 = vld [vmem:[#allocation2] sm:$0xff] }
 0x114   : > { %7735 = vmatprep.mubr.msk.f32.mxu0 %vm943_vm0, %v935_v2  ;;  %v936_v3 = vld [vmem:[#allocation2 + $0x8] sm:$0xff]  ;;  %v937_v4 = vld [vmem:[#allocation2 + $0x10] sm:$0xff]  ;;  %v938_v5 = vld [vmem:[#allocation2 + $0x18] sm:$0xff]  ;;  %s9624_s24 = sld [smem:[#allocation45_spill]]  ;;  %s8881_s29 = smov 4   ;;  %vm1097_vm1 = vcmask 31744  }
 0x115   : > { %s9626_s27 = smov (!%p923_p3, %s9006_s27), 1  ;;  %v939_v6 = vld [vmem:[#allocation2 + $0x20] sm:$0xff]  ;;  %v940_v7 = vld [vmem:[#allocation2 + $0x28] sm:$0xff]  ;;  %v941_v8 = vld [vmem:[#allocation2 + $0x30] sm:$0xff]  ;;  %s8882_s22 = smov 8   ;;  %vm1100_vm2 = vcmask 64512  }
 0x116   : > { %s7202_s3 = sshll.u32 %s9626_s27, 4  ;;  %v942_v9 = vld [vmem:[#allocation2 + $0x38] sm:$0xff]  ;;  %s8883_s0 = smov 12   ;;  %vm1103_vm3 = vcmask 97280   ;;  %v1199_v32 = vld [vmem:[#allocation2 + $0x40] sm:$0xff]  ;;  %v1200_v46 = vld [vmem:[#allocation2 + $0x48] sm:$0xff] }
 0x117   : > { %v1108_v33 = vld [vmem:[#allocation6] ss:$0 sm:$0xff]  ;;  %v1190_v35 = vld [vmem:[#allocation4] ss:$0 sm:$0xff]  ;;  %v1193_v38 = vld [vmem:[#allocation4 + $0x1] ss:$0 sm:$0xff] }
 0x118   : > { %v1201_v47 = vld [vmem:[#allocation2 + $0x50] sm:$0xff]  ;;  %v1202_v48 = vld [vmem:[#allocation2 + $0x58] sm:$0xff]  ;;  %v1203_v49 = vld [vmem:[#allocation2 + $0x60] sm:$0xff]  ;;  %s8884_s11 = smov 32   ;;  %s8885_s30 = smov 64   ;;  %vm1360_vm4 = vcmask 261120  }
 0x119   : > { %s927_s23 = scalar_lea.vmem %s9623_s25, %s7202_s3  ;;  %v1204_v50 = vld [vmem:[#allocation2 + $0x68] sm:$0xff]  ;;  %v1205_v51 = vld [vmem:[#allocation2 + $0x70] sm:$0xff]  ;;  %v1206_v52 = vld [vmem:[#allocation2 + $0x78] sm:$0xff]  ;;  %s8886_s26 = smov 96   ;;  %vm1363_vm5 = vcmask 523264   ;;  %vm1366_vm6 = vcmask 785408  }
 0x11a   : > { %v934_v0 = vld [vmem:[%s927_s23 + $0x8] sm:$0xff]  ;;  %v933_v1 = vld [vmem:[%s927_s23] sm:$0xff]  ;;  %v1384_v53 = vld [vmem:[#allocation7 + $0x78] sm:$0xff]  ;;  %vm8888_vm7 = vmmov 0   ;;  %s8889_s3 = smov 16   ;;  %vm2672_vm8 = vcmask 392192  }
 0x11b   : > { %7731 = vmatprep.subr.mxu0 %v934_v0  ;;  %v1107_v11 = vld [vmem:[%s9624_s24 + $0x8] sm:$0xff]  ;;  %v1106_v12 = vld [vmem:[%s9624_s24] sm:$0xff]  ;;  %v1383_v54 = vld [vmem:[#allocation7 + $0x70] sm:$0xff]  ;;  %vm3969_vm9 = vcmask 1043456   ;;  %s7203_s28 = sshll.u32 %s9626_s27, 3 }
 0x11c   : > { %7732 = vmatpush3.msra.mxu0 %v934_v0  ;;  %7747 = vmatprep.subr.mxu1 %v1107_v11  ;;  %v1382_v55 = vld [vmem:[#allocation7 + $0x68] sm:$0xff]  ;;  %v1381_v56 = vld [vmem:[#allocation7 + $0x60] sm:$0xff]  ;;  %v1380_v57 = vld [vmem:[#allocation7 + $0x58] sm:$0xff]  ;;  %s932_s23 = scalar_lea.vmem %s9590_s21, %s7203_s28 }
 0x11d   : > { %7733 = vmatprep.subr.mxu0 %v933_v1  ;;  %7748 = vmatpush3.msra.mxu1 %v1107_v11  ;;  %v1379_v58 = vld [vmem:[#allocation7 + $0x50] sm:$0xff]  ;;  %v1378_v59 = vld [vmem:[#allocation7 + $0x48] sm:$0xff]  ;;  %v1377_v60 = vld [vmem:[#allocation7 + $0x40] sm:$0xff] }
 0x11e   : > { %7734 = vmatpush3.msra.mxu0 %v933_v1  ;;  %7749 = vmatprep.subr.mxu1 %v1106_v12  ;;  %v1376_v61 = vld [vmem:[#allocation7 + $0x38] sm:$0xff]  ;;  %v1375_v62 = vld [vmem:[#allocation7 + $0x30] sm:$0xff]  ;;  %v1374_v63 = vld [vmem:[#allocation7 + $0x28] sm:$0xff] }
 0x11f   : > { %7736 = vmatmul.mubr.msk.f32.vlgmr.msra.gmra.mxu0 %vm943_vm0, %v936_v3  ;;  %7750 = vmatpush3.msra.mxu1 %v1106_v12  ;;  %v1373_v0 = vld [vmem:[#allocation7 + $0x20] sm:$0xff]  ;;  %v1372_v1 = vld [vmem:[#allocation7 + $0x18] sm:$0xff]  ;;  %v1371_v3 = vld [vmem:[#allocation7 + $0x10] sm:$0xff] }
 0x120   : > { %7738 = vmatprep.mubr.msk.f32.mxu0 %vm943_vm0, %v937_v4  ;;  %7770 = vmatprep.subr.mxu0 %v1384_v53 }
 0x121   : > { %7771 = vmatpush3.msra.mxu0 %v1384_v53  ;;  %v1477_v53 = vld [vmem:[#allocation2 + $0xb8] sm:$0xff] }
 0x122   : > { %7772 = vmatprep.subr.mxu0 %v1383_v54 }
 0x123   : > { %7739 = vmatmul.mubr.msk.f32.gmra.mxu0 %vm943_vm0, %v938_v5  ;;  %v1370_v5 = vld [vmem:[#allocation7 + $0x8] sm:$0xff] }
 0x124   : > { %7741 = vmatprep.mubr.msk.f32.mxu0 %vm943_vm0, %v939_v6  ;;  %7773 = vmatpush3.msra.mxu0 %v1383_v54  ;;  %v1652_v54 = vld [vmem:[#allocation9 + $0x78] sm:$0xff] }
 0x125   : > { %7774 = vmatprep.subr.mxu0 %v1382_v55 }
 0x126   : > { %7775 = vmatpush3.msra.mxu0 %v1382_v55  ;;  %v1651_v55 = vld [vmem:[#allocation9 + $0x70] sm:$0xff] }
 0x127   : > { %7742 = vmatmul.mubr.msk.f32.gmra.mxu0 %vm943_vm0, %v940_v7  ;;  %7776 = vmatprep.subr.mxu0 %v1381_v56  ;;  %v1369_v7 = vld [vmem:[#allocation7] sm:$0xff] }
 0x128   : > { %7744 = vmatprep.mubr.msk.f32.mxu0 %vm943_vm0, %v941_v8  ;;  %7777 = vmatpush3.msra.mxu0 %v1381_v56  ;;  %v1650_v56 = vld [vmem:[#allocation9 + $0x68] sm:$0xff] }
 0x129   : > { %7778 = vmatprep.subr.mxu0 %v1380_v57 }
 0x12a   : > { %7779 = vmatpush3.msra.mxu0 %v1380_v57  ;;  %v1649_v57 = vld [vmem:[#allocation9 + $0x60] sm:$0xff] }
 0x12b   : > { %7745 = vmatmul.mubr.msk.f32.gmra.mxu0 %vm943_vm0, %v942_v9  ;;  %7780 = vmatprep.subr.mxu0 %v1379_v58 }
 0x12c   : > { %7781 = vmatpush3.msra.mxu0 %v1379_v58  ;;  %v1648_v58 = vld [vmem:[#allocation9 + $0x58] sm:$0xff] }
 0x12d   : > { %7782 = vmatprep.subr.mxu0 %v1378_v59 }
 0x12e   : > { %7783 = vmatpush3.msra.mxu0 %v1378_v59  ;;  %v1647_v59 = vld [vmem:[#allocation9 + $0x50] sm:$0xff] }
 0x12f   : > { %7784 = vmatprep.subr.mxu0 %v1377_v60 }
 0x130   : > { %7785 = vmatpush3.msra.mxu0 %v1377_v60  ;;  %v1646_v60 = vld [vmem:[#allocation9 + $0x48] sm:$0xff] }
 0x131   : > { %7786 = vmatprep.subr.mxu0 %v1376_v61 }
 0x132   : > { %7787 = vmatpush3.msra.mxu0 %v1376_v61  ;;  %v1645_v61 = vld [vmem:[#allocation9 + $0x40] sm:$0xff] }
 0x133   : > { %7788 = vmatprep.subr.mxu0 %v1375_v62 }
 0x134   : > { %7789 = vmatpush3.msra.mxu0 %v1375_v62  ;;  %v1644_v62 = vld [vmem:[#allocation9 + $0x38] sm:$0xff] }
 0x135   : > { %7790 = vmatprep.subr.mxu0 %v1374_v63 }
 0x136   : > { %7791 = vmatpush3.msra.mxu0 %v1374_v63  ;;  %v1643_v63 = vld [vmem:[#allocation9 + $0x30] sm:$0xff] }
 0x137   : > { %7792 = vmatprep.subr.mxu0 %v1373_v0 }
 0x138   : > { %7793 = vmatpush3.msra.mxu0 %v1373_v0  ;;  %v1642_v0 = vld [vmem:[#allocation9 + $0x28] sm:$0xff] }
 0x139   : > { %7794 = vmatprep.subr.mxu0 %v1372_v1 }
 0x13a   : > { %7795 = vmatpush3.msra.mxu0 %v1372_v1  ;;  %v1641_v1 = vld [vmem:[#allocation9 + $0x20] sm:$0xff] }
 0x13b   : > { %7796 = vmatprep.subr.mxu0 %v1371_v3 }
 0x13c   : > { %7797 = vmatpush3.msra.mxu0 %v1371_v3 }
 0x13d   : > { %7798 = vmatprep.subr.mxu0 %v1370_v5 }
 0x13e   : > { %7799 = vmatpush3.msra.mxu0 %v1370_v5 }
 0x13f   : > { %7800 = vmatprep.subr.mxu0 %v1369_v7 }
 0x140   : > { %7801 = vmatpush3.msra.mxu0 %v1369_v7 }
 0x1df   : > { %v7737_v10 = vpop.f32.mrf.mxu0 }
 0x1e1   : > { %v1034_v13 = vpop.f32.mrf.mxu0 }
 0x1e3   : > { %v7740_v14 = vpop.f32.mrf.mxu0 }
 0x1e4   : > { %1077 = vrot.lane.b32.xlu0 %v7740_v14, %s8881_s29 }
 0x1e5   : > { %v1044_v15 = vpop.f32.mrf.mxu0 }
 0x1e7   : > { %v7743_v16 = vpop.f32.mrf.mxu0 }
 0x1e8   : > { %1075 = vrot.lane.b32.xlu0 %v1044_v15, %s8881_s29  ;;  %1085 = vrot.lane.b32.xlu1 %v7743_v16, %s8882_s22 }
 0x1e9   : > { %v1054_v17 = vpop.f32.mrf.mxu0 }
 0x1eb   : > { %v7746_v18 = vpop.f32.mrf.mxu0 }
 0x1ec   : > { %1083 = vrot.lane.b32.xlu1 %v1054_v17, %s8882_s22 }
 0x1ed   : > { %v1064_v19 = vpop.f32.mrf.mxu0 }
 0x1ee   : > { %1091 = vrot.lane.b32.xlu0 %v1064_v19, %s8883_s0 }
 0x1f0   : > { %1093 = vrot.lane.b32.xlu1 %v7746_v18, %s8883_s0 }
 0x256   : > { %v1078_v20 = vpop.permute.xlu0 %1077 }
 0x257   : > { %v1099_v27 = vsel %vm1097_vm1, %v7737_v10, %v1078_v20 }
 0x25a   : > { %v1086_v21 = vpop.permute.xlu1 %1085  ;;  %v1076_v22 = vpop.permute.xlu0 %1075 }
 0x25b   : > { %v1098_v23 = vsel %vm1097_vm1, %v1034_v13, %v1076_v22  ;;  %v1102_v29 = vsel %vm1100_vm2, %v1099_v27, %v1086_v21 }
 0x25e   : > { %v1084_v24 = vpop.permute.xlu1 %1083 }
 0x25f   : > { %v1101_v25 = vsel %vm1100_vm2, %v1098_v23, %v1084_v24 }
 0x260   : > { %v1092_v26 = vpop.permute.xlu0 %1091 }
 0x261   : > { %v1104_v28 = vsel %vm1103_vm3, %v1101_v25, %v1092_v26 }
 0x262   : > { %v1094_v30 = vpop.permute.xlu1 %1093  ;;  %7751 = vmatprep.mubr.msk.f32.mxu1 %vm943_vm0, %v1104_v28 }
 0x263   : > { %v1105_v31 = vsel %vm1103_vm3, %v1102_v29, %v1094_v30 }
 0x264   : > { %7752 = vmatmul.mubr.msk.f32.vlgmr.msra.gmra.mxu1 %vm943_vm0, %v1105_v31  ;;  %v1470_v31 = vld [vmem:[#allocation2 + $0x80] sm:$0xff] }
 0x265   : > { %7758 = vmatprep.mubr.msk.f32.mxu1 %vm943_vm0, %v1199_v32  ;;  %v1385_v32 = vld [vmem:[#allocation6 + $0x1] ss:$0 sm:$0xff] }
 0x324   : > { %v7753_v34 = vpop.f32.mrf.mxu1 }
 0x325   : > { %v1187_v36 = vadd.f32 %v7753_v34, %v1108_v33  ;;  %v1461_v34 = vld [vmem:[#allocation4 + $0x2] ss:$0 sm:$0xff] }
 0x326   : > { %v1181_v37 = vpop.f32.mrf.mxu1 }
 0x327   : > { %v1192_v39 = vmul.f32 %v1190_v35, %v1187_v36  ;;  %v1182_v40 = vadd.f32 %v1181_v37, %v1108_v33  ;;  %v1464_v37 = vld [vmem:[#allocation4 + $0x3] ss:$0 sm:$0xff] }
 0x329   : > { %v1191_v41 = vmul.f32 %v1190_v35, %v1182_v40  ;;  %v1195_v42 = vadd.f32 %v1193_v38, %v1192_v39 }
 0x32b   : > { %v9304_v43 = vmax.f32 %v1195_v42, 0.0  ;;  %v1194_v44 = vadd.f32 %v1193_v38, %v1191_v41 }
 0x32d   : > { %7754 = vmatprep.subr.mxu1 %v9304_v43  ;;  %v9307_v45 = vmax.f32 %v1194_v44, 0.0 }
 0x32e   : > { %7755 = vmatpush3.msra.mxu1 %v9304_v43 }
 0x32f   : > { %7756 = vmatprep.subr.mxu1 %v9307_v45 }
 0x330   : > { %7757 = vmatpush3.msra.mxu1 %v9307_v45 }
 0x331   : > { %7759 = vmatmul.mubr.msk.f32.vlgmr.msra.gmra.mxu1 %vm943_vm0, %v1200_v46 }
 0x332   : > { %7761 = vmatprep.mubr.msk.f32.mxu1 %vm943_vm0, %v1201_v47  ;;  %v1471_v47 = vld [vmem:[#allocation2 + $0x88] sm:$0xff] }
 0x335   : > { %7762 = vmatmul.mubr.msk.f32.gmra.mxu1 %vm943_vm0, %v1202_v48  ;;  %v1472_v48 = vld [vmem:[#allocation2 + $0x90] sm:$0xff] }
 0x336   : > { %7764 = vmatprep.mubr.msk.f32.mxu1 %vm943_vm0, %v1203_v49  ;;  %v1473_v49 = vld [vmem:[#allocation2 + $0x98] sm:$0xff] }
 0x339   : > { %7765 = vmatmul.mubr.msk.f32.gmra.mxu1 %vm943_vm0, %v1204_v50  ;;  %v1474_v50 = vld [vmem:[#allocation2 + $0xa0] sm:$0xff] }
 0x33a   : > { %7767 = vmatprep.mubr.msk.f32.mxu1 %vm943_vm0, %v1205_v51  ;;  %v1475_v51 = vld [vmem:[#allocation2 + $0xa8] sm:$0xff] }
 0x33d   : > { %7768 = vmatmul.mubr.msk.f32.gmra.mxu1 %vm943_vm0, %v1206_v52  ;;  %v1476_v52 = vld [vmem:[#allocation2 + $0xb0] sm:$0xff] }
 0x33e   : > { %7809 = vmatprep.mubr.msk.f32.mxu1 %vm943_vm0, %v1470_v31 }
 0x3f1   : > { %v7760_v2 = vpop.f32.mrf.mxu1 }
 0x3f3   : > { %v1297_v4 = vpop.f32.mrf.mxu1 }
 0x3f5   : > { %v7763_v6 = vpop.f32.mrf.mxu1 }
 0x3f7   : > { %v1307_v8 = vpop.f32.mrf.mxu1 }
 0x3f8   : > { %v8266_v9 = vpack.i.bf16 %v7763_v6, %v1307_v8  ;;  %v1638_v6 = vld [vmem:[#allocation9 + $0x8] sm:$0xff]  ;;  %v1637_v8 = vld [vmem:[#allocation9] sm:$0xff] }
 0x3f9   : > { %v7766_v10 = vpop.f32.mrf.mxu1 }
 0x3fa   : > { %8267 = vrot.lane.b32.xlu0 %v8266_v9, %s8884_s11 }
 0x3fb   : > { %v1317_v11 = vpop.f32.mrf.mxu1 }
 0x3fc   : > { %v8271_v12 = vpack.i.bf16 %v7766_v10, %v1317_v11 }
 0x3fd   : > { %v7769_v13 = vpop.f32.mrf.mxu1 }
 0x3fe   : > { %8272 = vrot.lane.b32.xlu1 %v8271_v12, %s8885_s30 }
 0x3ff   : > { %v1327_v14 = vpop.f32.mrf.mxu1 }
 0x400   : > { %v8276_v15 = vpack.i.bf16 %v7769_v13, %v1327_v14 }
 0x402   : > { %8277 = vrot.lane.b32.xlu0 %v8276_v15, %s8886_s26 }
 0x46c   : > { %v8268_v16 = vpop.permute.xlu0 %8267 }
 0x46d   : > { %v8270_v18 = vunpack.i.h.bf16 %v8268_v16  ;;  %v8269_v19 = vunpack.i.l.bf16 %v8268_v16 }
 0x46f   : > { %v1362_v23 = vsel %vm1360_vm4, %v7760_v2, %v8270_v18  ;;  %v1361_v26 = vsel %vm1360_vm4, %v1297_v4, %v8269_v19  ;;  %v1640_v2 = vld [vmem:[#allocation9 + $0x18] sm:$0xff]  ;;  %v1639_v4 = vld [vmem:[#allocation9 + $0x10] sm:$0xff] }
 0x470   : > { %v8273_v17 = vpop.permute.xlu1 %8272 }
 0x471   : > { %v8275_v20 = vunpack.i.h.bf16 %v8273_v17  ;;  %v8274_v21 = vunpack.i.l.bf16 %v8273_v17 }
 0x473   : > { %v1365_v27 = vsel %vm1363_vm5, %v1362_v23, %v8275_v20  ;;  %v1364_v28 = vsel %vm1363_vm5, %v1361_v26, %v8274_v21 }
 0x474   : > { %v8278_v22 = vpop.permute.xlu0 %8277 }
 0x475   : > { %v8280_v24 = vunpack.i.h.bf16 %v8278_v22  ;;  %v8279_v25 = vunpack.i.l.bf16 %v8278_v22 }
 0x477   : > { %v1367_v29 = vsel %vm1366_vm6, %v1364_v28, %v8279_v25  ;;  %v1368_v30 = vsel %vm1366_vm6, %v1365_v27, %v8280_v24 }
 0x478   : > { %7802 = vmatprep.mubr.f32.mxu0 %v1367_v29 }
 0x479   : > { %7803 = vmatmul.mubr.f32.vlgmr.msra.gmra.mxu0 %v1368_v30 }
 0x539   : > { %v7804_v33 = vpop.f32.mrf.mxu0 }
 0x53a   : > { %v1458_v35 = vadd.f32 %v7804_v33, %v1385_v32  ;;  %v1653_v33 = vld [vmem:[#allocation6 + $0x2] ss:$0 sm:$0xff] }
 0x53b   : > { %v1452_v36 = vpop.f32.mrf.mxu0 }
 0x53c   : > { %v1463_v38 = vmul.f32 %v1461_v34, %v1458_v35  ;;  %v1453_v39 = vadd.f32 %v1452_v36, %v1385_v32  ;;  %v1740_v32 = vld [vmem:[#allocation2 + $0xc0] sm:$0xff] }
 0x53d   : > { %7860 = vmatprep.mubr.msk.f32.mxu0 %vm943_vm0, %v1740_v32  ;;  %v2075_v32 = vld [vmem:[#allocation12 + $0x50] sm:$0xff] }
 0x53e   : > { %v1462_v40 = vmul.f32 %v1461_v34, %v1453_v39  ;;  %v1466_v41 = vadd.f32 %v1464_v37, %v1463_v38 }
 0x540   : > { %v1468_v42 = vmax.f32 %v1466_v41, 0.0  ;;  %v1465_v44 = vadd.f32 %v1464_v37, %v1462_v40  ;;  %v1731_v37 = vld [vmem:[#allocation4 + $0x4] ss:$0 sm:$0xff]  ;;  %v1734_v40 = vld [vmem:[#allocation4 + $0x5] ss:$0 sm:$0xff] }
 0x542   : > { %7805 = vmatprep.subr.mxu1 %v1468_v42  ;;  %v1467_v46 = vmax.f32 %v1465_v44, 0.0 }
 0x543   : > { %7806 = vmatpush3.msra.mxu1 %v1468_v42 }
 0x544   : > { %7807 = vmatprep.subr.mxu1 %v1467_v46 }
 0x545   : > { %7808 = vmatpush3.msra.mxu1 %v1467_v46 }
 0x546   : > { %7810 = vmatmul.mubr.msk.f32.vlgmr.msra.gmra.mxu1 %vm943_vm0, %v1471_v47  ;;  %7821 = vmatprep.subr.mxu1 %v1652_v54 }
 0x547   : > { %7812 = vmatprep.mubr.msk.f32.mxu1 %vm943_vm0, %v1472_v48  ;;  %7822 = vmatpush3.msra.mxu1 %v1652_v54  ;;  %v1869_v54 = vld [vmem:[#allocation10 + $0x68] sm:$0xff] }
 0x548   : > { %7823 = vmatprep.subr.mxu1 %v1651_v55 }
 0x549   : > { %7824 = vmatpush3.msra.mxu1 %v1651_v55  ;;  %v1868_v55 = vld [vmem:[#allocation10 + $0x60] sm:$0xff] }
 0x54a   : > { %7813 = vmatmul.mubr.msk.f32.gmra.mxu1 %vm943_vm0, %v1473_v49  ;;  %7825 = vmatprep.subr.mxu1 %v1650_v56 }
 0x54b   : > { %7815 = vmatprep.mubr.msk.f32.mxu1 %vm943_vm0, %v1474_v50  ;;  %7826 = vmatpush3.msra.mxu1 %v1650_v56  ;;  %v1741_v50 = vld [vmem:[#allocation2 + $0xc8] sm:$0xff]  ;;  %v1867_v56 = vld [vmem:[#allocation10 + $0x58] sm:$0xff] }
 0x54c   : > { %7827 = vmatprep.subr.mxu1 %v1649_v57 }
 0x54d   : > { %7828 = vmatpush3.msra.mxu1 %v1649_v57  ;;  %v1866_v57 = vld [vmem:[#allocation10 + $0x50] sm:$0xff] }
 0x54e   : > { %7816 = vmatmul.mubr.msk.f32.gmra.mxu1 %vm943_vm0, %v1475_v51  ;;  %7829 = vmatprep.subr.mxu1 %v1648_v58  ;;  %v1871_v51 = vld [vmem:[#allocation10 + $0x78] sm:$0xff] }
 0x54f   : > { %7818 = vmatprep.mubr.msk.f32.mxu1 %vm943_vm0, %v1476_v52  ;;  %7830 = vmatpush3.msra.mxu1 %v1648_v58  ;;  %v8887_v52 = vmov 0.0   ;;  %v1865_v58 = vld [vmem:[#allocation10 + $0x48] sm:$0xff] }
 0x550   : > { %7831 = vmatprep.subr.mxu1 %v1647_v59 }
 0x551   : > { %7832 = vmatpush3.msra.mxu1 %v1647_v59  ;;  %v1864_v59 = vld [vmem:[#allocation10 + $0x40] sm:$0xff] }
 0x552   : > { %7819 = vmatmul.mubr.msk.f32.gmra.mxu1 %vm943_vm0, %v1477_v53  ;;  %7833 = vmatprep.subr.mxu1 %v1646_v60  ;;  %v1743_v53 = vld [vmem:[#allocation2 + $0xd8] sm:$0xff] }
 0x553   : > { %7834 = vmatpush3.msra.mxu1 %v1646_v60  ;;  %v1863_v60 = vld [vmem:[#allocation10 + $0x38] sm:$0xff] }
 0x554   : > { %7835 = vmatprep.subr.mxu1 %v1645_v61 }
 0x555   : > { %7836 = vmatpush3.msra.mxu1 %v1645_v61  ;;  %v1862_v61 = vld [vmem:[#allocation10 + $0x30] sm:$0xff] }
 0x556   : > { %7837 = vmatprep.subr.mxu1 %v1644_v62 }
 0x557   : > { %7838 = vmatpush3.msra.mxu1 %v1644_v62  ;;  %v1861_v62 = vld [vmem:[#allocation10 + $0x28] sm:$0xff] }
 0x558   : > { %7839 = vmatprep.subr.mxu1 %v1643_v63 }
 0x559   : > { %7840 = vmatpush3.msra.mxu1 %v1643_v63  ;;  %v1860_v63 = vld [vmem:[#allocation10 + $0x20] sm:$0xff] }
 0x55a   : > { %7841 = vmatprep.subr.mxu1 %v1642_v0 }
 0x55b   : > { %7842 = vmatpush3.msra.mxu1 %v1642_v0  ;;  %v1859_v0 = vld [vmem:[#allocation10 + $0x18] sm:$0xff] }
 0x55c   : > { %7843 = vmatprep.subr.mxu1 %v1641_v1 }
 0x55d   : > { %7844 = vmatpush3.msra.mxu1 %v1641_v1  ;;  %v1858_v1 = vld [vmem:[#allocation10 + $0x10] sm:$0xff] }
 0x55e   : > { %7845 = vmatprep.subr.mxu1 %v1640_v2 }
 0x55f   : > { %7846 = vmatpush3.msra.mxu1 %v1640_v2  ;;  %v1857_v2 = vld [vmem:[#allocation10 + $0x8] sm:$0xff] }
 0x560   : > { %7847 = vmatprep.subr.mxu1 %v1639_v4 }
 0x561   : > { %7848 = vmatpush3.msra.mxu1 %v1639_v4 }
 0x562   : > { %7849 = vmatprep.subr.mxu1 %v1638_v6 }
 0x563   : > { %7850 = vmatpush3.msra.mxu1 %v1638_v6 }
 0x564   : > { %7851 = vmatprep.subr.mxu1 %v1637_v8 }
 0x565   : > { %7852 = vmatpush3.msra.mxu1 %v1637_v8 }
 0x606   : > { %v7811_v3 = vpop.f32.mrf.mxu1 }
 0x608   : > { %v1568_v5 = vpop.f32.mrf.mxu1 }
 0x60a   : > { %v7814_v7 = vpop.f32.mrf.mxu1 }
 0x60c   : > { %v1578_v9 = vpop.f32.mrf.mxu1 }
 0x60d   : > { %v8281_v10 = vpack.i.bf16 %v7814_v7, %v1578_v9 }
 0x60e   : > { %v7817_v11 = vpop.f32.mrf.mxu1 }
 0x60f   : > { %8282 = vrot.lane.b32.xlu1 %v8281_v10, %s8884_s11 }
 0x610   : > { %v1588_v12 = vpop.f32.mrf.mxu1 }
 0x611   : > { %v8286_v13 = vpack.i.bf16 %v7817_v11, %v1588_v12 }
 0x612   : > { %v7820_v14 = vpop.f32.mrf.mxu1 }
 0x613   : > { %8287 = vrot.lane.b32.xlu0 %v8286_v13, %s8885_s30 }
 0x614   : > { %v1598_v15 = vpop.f32.mrf.mxu1 }
 0x615   : > { %v8291_v16 = vpack.i.bf16 %v7820_v14, %v1598_v15  ;;  %v1949_v14 = vld [vmem:[#allocation2 + $0x100] sm:$0xff]  ;;  %v1872_v15 = vld [vmem:[#allocation6 + $0x3] ss:$0 sm:$0xff] }
 0x617   : > { %8292 = vrot.lane.b32.xlu1 %v8291_v16, %s8886_s26 }
 0x681   : > { %v8283_v17 = vpop.permute.xlu1 %8282 }
 0x682   : > { %v8285_v19 = vunpack.i.h.bf16 %v8283_v17  ;;  %v8284_v20 = vunpack.i.l.bf16 %v8283_v17  ;;  %v1943_v17 = vld [vmem:[#allocation4 + $0x6] ss:$0 sm:$0xff] }
 0x684   : > { %v1632_v24 = vsel %vm1360_vm4, %v7811_v3, %v8285_v19  ;;  %v1631_v27 = vsel %vm1360_vm4, %v1568_v5, %v8284_v20  ;;  %v1856_v3 = vld [vmem:[#allocation10] sm:$0xff] }
 0x685   : > { %v8288_v18 = vpop.permute.xlu0 %8287  ;;  %v1945_v20 = vld [vmem:[#allocation4 + $0x7] ss:$0 sm:$0xff] }
 0x686   : > { %v8290_v21 = vunpack.i.h.bf16 %v8288_v18  ;;  %v8289_v22 = vunpack.i.l.bf16 %v8288_v18 }
 0x688   : > { %v1634_v28 = vsel %vm1363_vm5, %v1632_v24, %v8290_v21  ;;  %v1633_v29 = vsel %vm1363_vm5, %v1631_v27, %v8289_v22  ;;  %v1950_v24 = vld [vmem:[#allocation2 + $0x108] sm:$0xff]  ;;  %v2080_v27 = vld [vmem:[#allocation12 + $0x78] sm:$0xff] }
 0x689   : > { %v8293_v23 = vpop.permute.xlu1 %8292 }
 0x68a   : > { %v8295_v25 = vunpack.i.h.bf16 %v8293_v23  ;;  %v8294_v26 = vunpack.i.l.bf16 %v8293_v23 }
 0x68c   : > { %v1635_v30 = vsel %vm1366_vm6, %v1633_v29, %v8294_v26  ;;  %v1636_v31 = vsel %vm1366_vm6, %v1634_v28, %v8295_v25  ;;  %v1951_v25 = vld [vmem:[#allocation2 + $0x110] sm:$0xff]  ;;  %v1952_v26 = vld [vmem:[#allocation2 + $0x118] sm:$0xff]  ;;  %v2078_v29 = vld [vmem:[#allocation12 + $0x68] sm:$0xff] }
 0x68d   : > { %7853 = vmatprep.mubr.f32.mxu1 %v1635_v30  ;;  %v2079_v28 = vld [vmem:[#allocation12 + $0x70] sm:$0xff]  ;;  %v2077_v30 = vld [vmem:[#allocation12 + $0x60] sm:$0xff] }
 0x68e   : > { %7854 = vmatmul.mubr.f32.vlgmr.msra.gmra.mxu1 %v1636_v31  ;;  %v2076_v31 = vld [vmem:[#allocation12 + $0x58] sm:$0xff] }
 0x68f   : > { %7903 = vmatprep.mubr.msk.f32.mxu1 %vm1100_vm2, %v1949_v14  ;;  %v2370_v14 = vld [vmem:[#allocation13 + $0x50] sm:$0xff] }
 0x74e   : > { %v7855_v34 = vpop.f32.mrf.mxu1 }
 0x74f   : > { %v1726_v35 = vadd.f32 %v7855_v34, %v1653_v33  ;;  %v2073_v34 = vld [vmem:[#allocation12 + $0x40] sm:$0xff] }
 0x750   : > { %v1720_v36 = vpop.f32.mrf.mxu1 }
 0x751   : > { %v9347_v38 = vadd.f32 %v1726_v35, %v9304_v43  ;;  %v1721_v39 = vadd.f32 %v1720_v36, %v1653_v33  ;;  %v1742_v43 = vld [vmem:[#allocation2 + $0xd0] sm:$0xff]  ;;  %v2074_v33 = vld [vmem:[#allocation12 + $0x48] sm:$0xff]  ;;  %v2072_v35 = vld [vmem:[#allocation12 + $0x38] sm:$0xff] }
 0x752   : > { %v2071_v36 = vld [vmem:[#allocation12 + $0x30] sm:$0xff] }
 0x753   : > { %v9350_v41 = vadd.f32 %v1721_v39, %v9307_v45  ;;  %v1733_v42 = vmul.f32 %v1731_v37, %v9347_v38  ;;  %v1870_v45 = vld [vmem:[#allocation10 + $0x70] sm:$0xff]  ;;  %v2068_v39 = vld [vmem:[#allocation12 + $0x18] sm:$0xff] }
 0x755   : > { %v1736_v44 = vadd.f32 %v1734_v40, %v1733_v42  ;;  %v1732_v46 = vmul.f32 %v1731_v37, %v9350_v41  ;;  %v2070_v37 = vld [vmem:[#allocation12 + $0x28] sm:$0xff] }
 0x756   : > { %v2066_v42 = vld [vmem:[#allocation12 + $0x8] sm:$0xff] }
 0x757   : > { %v1738_v47 = vmax.f32 %v1736_v44, 0.0  ;;  %v1735_v48 = vadd.f32 %v1734_v40, %v1732_v46  ;;  %v2067_v40 = vld [vmem:[#allocation12 + $0x10] sm:$0xff]  ;;  %v2154_v44 = vld [vmem:[#allocation2 + $0x148] sm:$0xff]  ;;  %v2065_v46 = vld [vmem:[#allocation12] sm:$0xff] }
 0x759   : > { %7856 = vmatprep.subr.mxu0 %v1738_v47  ;;  %v1737_v49 = vmax.f32 %v1735_v48, 0.0 }
 0x75a   : > { %7857 = vmatpush3.msra.mxu0 %v1738_v47 }
 0x75b   : > { %7858 = vmatprep.subr.mxu0 %v1737_v49 }
 0x75c   : > { %7859 = vmatpush3.msra.mxu0 %v1737_v49 }
 0x75d   : > { %7861 = vmatmul.mubr.msk.f32.vlgmr.msra.gmra.mxu0 %vm943_vm0, %v1741_v50  ;;  %7866 = vmatprep.subr.mxu0 %v8887_v52 }
 0x75e   : > { %7867 = vmatpush3.msra.mxu0 %v1871_v51  ;;  %7863 = vmatprep.mubr.msk.f32.mxu0 %vm943_vm0, %v1742_v43 }
 0x75f   : > { %7868 = vmatprep.subr.mxu0 %v8887_v52 }
 0x760   : > { %7869 = vmatpush3.msra.mxu0 %v1870_v45 }
 0x761   : > { %7864 = vmatmul.mubr.msk.f32.gmra.mxu0 %vm943_vm0, %v1743_v53  ;;  %7870 = vmatprep.subr.mxu0 %v8887_v52 }
 0x762   : > { %7871 = vmatpush3.msra.mxu0 %v1869_v54  ;;  %7898 = vmatprep.mubr.msk.f32.mxu0 %vm8888_vm7, %v8887_v52 }
 0x763   : > { %7872 = vmatprep.subr.mxu0 %v8887_v52 }
 0x764   : > { %7873 = vmatpush3.msra.mxu0 %v1868_v55 }
 0x765   : > { %7874 = vmatprep.subr.mxu0 %v8887_v52 }
 0x766   : > { %7875 = vmatpush3.msra.mxu0 %v1867_v56  ;;  %v2244_v56 = vld [vmem:[#allocation2 + $0x180] sm:$0xff] }
 0x767   : > { %7876 = vmatprep.subr.mxu0 %v8887_v52 }
 0x768   : > { %7877 = vmatpush3.msra.mxu0 %v1866_v57 }
 0x769   : > { %7878 = vmatprep.subr.mxu0 %v8887_v52 }
 0x76a   : > { %7879 = vmatpush3.msra.mxu0 %v1865_v58  ;;  %v2081_v58 = vld [vmem:[#allocation6 + $0x4] ss:$0 sm:$0xff] }
 0x76b   : > { %7880 = vmatprep.subr.mxu0 %v8887_v52 }
 0x76c   : > { %7881 = vmatpush3.msra.mxu0 %v1864_v59 }
 0x76d   : > { %7882 = vmatprep.subr.mxu0 %v8887_v52 }
 0x76e   : > { %7883 = vmatpush3.msra.mxu0 %v1863_v60 }
 0x76f   : > { %7884 = vmatprep.subr.mxu0 %v8887_v52 }
 0x770   : > { %7885 = vmatpush3.msra.mxu0 %v1862_v61 }
 0x771   : > { %7886 = vmatprep.subr.mxu0 %v8887_v52 }
 0x772   : > { %7887 = vmatpush3.msra.mxu0 %v1861_v62 }
 0x773   : > { %7888 = vmatprep.subr.mxu0 %v8887_v52 }
 0x774   : > { %7889 = vmatpush3.msra.mxu0 %v1860_v63  ;;  %v2238_v63 = vld [vmem:[#allocation4 + $0x10] ss:$0 sm:$0xff] }
 0x775   : > { %7890 = vmatprep.subr.mxu0 %v8887_v52 }
 0x776   : > { %7891 = vmatpush3.msra.mxu0 %v1859_v0 }
 0x777   : > { %7892 = vmatprep.subr.mxu0 %v8887_v52 }
 0x778   : > { %7893 = vmatpush3.msra.mxu0 %v1858_v1 }
 0x779   : > { %7894 = vmatprep.subr.mxu0 %v8887_v52 }
 0x77a   : > { %7895 = vmatpush3.msra.mxu0 %v1857_v2  ;;  %v2240_v2 = vld [vmem:[#allocation4 + $0x11] ss:$0 sm:$0xff] }
 0x77b   : > { %7896 = vmatprep.subr.mxu0 %v8887_v52 }
 0x77c   : > { %7897 = vmatpush3.msra.mxu0 %v1856_v3 }
 0x77d   : > { %7944 = vmatprep.subr.mxu0 %v9347_v38 }
 0x81d   : > { %v7862_v4 = vpop.f32.mrf.mxu0 }
 0x81e   : > { %1842 = vrot.lane.b32.xlu0 %v7862_v4, %s8884_s11 }
 0x81f   : > { %v1822_v5 = vpop.f32.mrf.mxu0 }
 0x821   : > { %v7865_v6 = vpop.f32.mrf.mxu0 }
 0x822   : > { %1850 = vrot.lane.b32.xlu0 %v7865_v6, %s8886_s26  ;;  %v2245_v6 = vld [vmem:[#allocation2 + $0x188] sm:$0xff] }
 0x823   : > { %v1832_v7 = vpop.f32.mrf.mxu0 }
 0x824   : > { %1846 = vrot.lane.b32.xlu1 %v1832_v7, %s8885_s30  ;;  %v2246_v7 = vld [vmem:[#allocation2 + $0x190] sm:$0xff] }
 0x890   : > { %v1843_v8 = vpop.permute.xlu0 %1842 }
 0x891   : > { %v1853_v9 = vsel %vm1360_vm4, %v1822_v5, %v1843_v8  ;;  %v2247_v8 = vld [vmem:[#allocation2 + $0x198] sm:$0xff] }
 0x894   : > { %v1851_v12 = vpop.permute.xlu0 %1850 }
 0x896   : > { %v1847_v10 = vpop.permute.xlu1 %1846 }
 0x897   : > { %v1854_v11 = vsel %vm1363_vm5, %v1853_v9, %v1847_v10  ;;  %v2375_v9 = vld [vmem:[#allocation13 + $0x78] sm:$0xff]  ;;  %v2374_v10 = vld [vmem:[#allocation13 + $0x70] sm:$0xff] }
 0x898   : > { %v1855_v13 = vsel %vm1366_vm6, %v1854_v11, %v1851_v12  ;;  %v2373_v11 = vld [vmem:[#allocation13 + $0x68] sm:$0xff]  ;;  %v2372_v12 = vld [vmem:[#allocation13 + $0x60] sm:$0xff] }
 0x899   : > { %7899 = vmatmul.mubr.f32.vlgmr.msra.gmra.mxu0 %v1855_v13  ;;  %v2371_v13 = vld [vmem:[#allocation13 + $0x58] sm:$0xff] }
 0x89a   : > { %7945 = vmatpush3.msra.mxu0 %v9347_v38  ;;  %v2069_v38 = vld [vmem:[#allocation12 + $0x20] sm:$0xff] }
 0x89b   : > { %7946 = vmatprep.subr.mxu0 %v9350_v41 }
 0x89c   : > { %7947 = vmatpush3.msra.mxu0 %v9350_v41  ;;  %v2153_v41 = vld [vmem:[#allocation2 + $0x140] sm:$0xff] }
 0x89d   : > { %7948 = vmatprep.mubr.msk.f32.mxu0 %vm943_vm0, %v2153_v41  ;;  %v2449_v41 = vld [vmem:[#allocation4 + $0x13] ss:$0 sm:$0xff] }
 0x89e   : > { %7949 = vmatmul.mubr.msk.f32.vlgmr.msra.gmra.mxu0 %vm943_vm0, %v2154_v44 }
 0x89f   : > { %7953 = vmatprep.mubr.msk.f32.mxu0 %vm1100_vm2, %v2244_v56  ;;  %v2576_v56 = vld [vmem:[#allocation15 + $0x60] sm:$0xff] }
 0x959   : > { %v1939_v16 = vpop.f32.mrf.mxu0 }
 0x95a   : > { %v1940_v18 = vadd.f32 %v1939_v16, %v1872_v15  ;;  %v2369_v15 = vld [vmem:[#allocation13 + $0x48] sm:$0xff]  ;;  %v2368_v16 = vld [vmem:[#allocation13 + $0x40] sm:$0xff] }
 0x95b   : > { %v7900_v19 = vpop.f32.mrf.mxu0 }
 0x95c   : > { %v1944_v21 = vmul.f32 %v1943_v17, %v1940_v18  ;;  %v2367_v17 = vld [vmem:[#allocation13 + $0x38] sm:$0xff]  ;;  %v2366_v18 = vld [vmem:[#allocation13 + $0x30] sm:$0xff]  ;;  %v2365_v19 = vld [vmem:[#allocation13 + $0x28] sm:$0xff] }
 0x95e   : > { %v1946_v22 = vadd.f32 %v1945_v20, %v1944_v21  ;;  %v7950_v57 = vpop.f32.mrf.mxu0  ;;  %v2364_v20 = vld [vmem:[#allocation13 + $0x20] sm:$0xff]  ;;  %v2363_v21 = vld [vmem:[#allocation13 + $0x18] sm:$0xff] }
 0x960   : > { %v1947_v23 = vmax.f32 %v1946_v22, 0.0  ;;  %v2227_v59 = vpop.f32.mrf.mxu0  ;;  %v2362_v22 = vld [vmem:[#allocation13 + $0x10] sm:$0xff] }
 0x961   : > { %v2236_v62 = vmax.f32 %v2227_v59, %v7950_v57  ;;  %v2591_v57 = vld [vmem:[#allocation15 + $0xd8] sm:$0xff]  ;;  %v2590_v59 = vld [vmem:[#allocation15 + $0xd0] sm:$0xff] }
 0x962   : > { %7901 = vmatprep.subr.mxu1 %v1947_v23 }
 0x963   : > { %7902 = vmatpush3.msra.mxu1 %v1947_v23  ;;  %v2361_v23 = vld [vmem:[#allocation13 + $0x8] sm:$0xff] }
 0x964   : > { %7904 = vmatmul.mubr.msk.f32.vlgmr.msra.gmra.mxu1 %vm1100_vm2, %v1950_v24  ;;  %7909 = vmatprep.subr.mxu1 %v8887_v52  ;;  %v2360_v24 = vld [vmem:[#allocation13] sm:$0xff] }
 0x965   : > { %7906 = vmatprep.mubr.msk.f32.mxu1 %vm1100_vm2, %v1951_v25  ;;  %7910 = vmatpush3.msra.mxu1 %v2080_v27 }
 0x966   : > { %7911 = vmatprep.subr.mxu1 %v8887_v52 }
 0x967   : > { %7912 = vmatpush3.msra.mxu1 %v2079_v28 }
 0x968   : > { %7907 = vmatmul.mubr.msk.f32.gmra.mxu1 %vm1100_vm2, %v1952_v26  ;;  %7913 = vmatprep.subr.mxu1 %v8887_v52 }
 0x969   : > { %7941 = vmatprep.mubr.msk.f32.mxu1 %vm8888_vm7, %v8887_v52  ;;  %7914 = vmatpush3.msra.mxu1 %v2078_v29 }
 0x96a   : > { %7915 = vmatprep.subr.mxu1 %v8887_v52 }
 0x96b   : > { %7916 = vmatpush3.msra.mxu1 %v2077_v30 }
 0x96c   : > { %7917 = vmatprep.subr.mxu1 %v8887_v52 }
 0x96d   : > { %7918 = vmatpush3.msra.mxu1 %v2076_v31 }
 0x96e   : > { %7919 = vmatprep.subr.mxu1 %v8887_v52 }
 0x96f   : > { %7920 = vmatpush3.msra.mxu1 %v2075_v32 }
 0x970   : > { %7921 = vmatprep.subr.mxu1 %v8887_v52 }
 0x971   : > { %7922 = vmatpush3.msra.mxu1 %v2074_v33 }
 0x972   : > { %7923 = vmatprep.subr.mxu1 %v8887_v52 }
 0x973   : > { %7924 = vmatpush3.msra.mxu1 %v2073_v34 }
 0x974   : > { %7925 = vmatprep.subr.mxu1 %v8887_v52 }
 0x975   : > { %7926 = vmatpush3.msra.mxu1 %v2072_v35  ;;  %v2453_v35 = vld [vmem:[#allocation2 + $0x1c0] sm:$0xff] }
 0x976   : > { %7927 = vmatprep.subr.mxu1 %v8887_v52 }
 0x977   : > { %7928 = vmatpush3.msra.mxu1 %v2071_v36  ;;  %v2376_v36 = vld [vmem:[#allocation6 + $0x5] ss:$0 sm:$0xff] }
 0x978   : > { %7929 = vmatprep.subr.mxu1 %v8887_v52 }
 0x979   : > { %7930 = vmatpush3.msra.mxu1 %v2070_v37 }
 0x97a   : > { %7931 = vmatprep.subr.mxu1 %v8887_v52 }
 0x97b   : > { %7932 = vmatpush3.msra.mxu1 %v2069_v38  ;;  %v2447_v38 = vld [vmem:[#allocation4 + $0x12] ss:$0 sm:$0xff] }
 0x97c   : > { %7933 = vmatprep.subr.mxu1 %v8887_v52 }
 0x97d   : > { %7934 = vmatpush3.msra.mxu1 %v2068_v39 }
 0x97e   : > { %7935 = vmatprep.subr.mxu1 %v8887_v52 }
 0x97f   : > { %7936 = vmatpush3.msra.mxu1 %v2067_v40 }
 0x980   : > { %7937 = vmatprep.subr.mxu1 %v8887_v52 }
 0x981   : > { %7938 = vmatpush3.msra.mxu1 %v2066_v42 }
 0x982   : > { %7939 = vmatprep.subr.mxu1 %v8887_v52 }
 0x983   : > { %7940 = vmatpush3.msra.mxu1 %v2065_v46 }
 0xa24   : > { %v7905_v47 = vpop.f32.mrf.mxu1 }
 0xa25   : > { %2051 = vrot.lane.b32.xlu1 %v7905_v47, %s8884_s11  ;;  %v2454_v47 = vld [vmem:[#allocation2 + $0x1c8] sm:$0xff] }
 0xa26   : > { %v2031_v48 = vpop.f32.mrf.mxu1 }
 0xa28   : > { %v7908_v49 = vpop.f32.mrf.mxu1 }
 0xa29   : > { %2059 = vrot.lane.b32.xlu1 %v7908_v49, %s8886_s26  ;;  %v2456_v49 = vld [vmem:[#allocation2 + $0x1d8] sm:$0xff] }
 0xa2a   : > { %v2041_v50 = vpop.f32.mrf.mxu1 }
 0xa2b   : > { %2055 = vrot.lane.b32.xlu0 %v2041_v50, %s8885_s30  ;;  %v2595_v50 = vld [vmem:[#allocation15 + $0xf8] sm:$0xff] }
 0xa97   : > { %v2052_v51 = vpop.permute.xlu1 %2051 }
 0xa98   : > { %v2062_v43 = vsel %vm1360_vm4, %v2031_v48, %v2052_v51  ;;  %v2455_v48 = vld [vmem:[#allocation2 + $0x1d0] sm:$0xff]  ;;  %v2579_v51 = vld [vmem:[#allocation15 + $0x78] sm:$0xff] }
 0xa9b   : > { %v2060_v54 = vpop.permute.xlu1 %2059 }
 0xa9d   : > { %v2056_v45 = vpop.permute.xlu0 %2055 }
 0xa9e   : > { %v2063_v53 = vsel %vm1363_vm5, %v2062_v43, %v2056_v45  ;;  %v2594_v43 = vld [vmem:[#allocation15 + $0xf0] sm:$0xff] }
 0xa9f   : > { %v2064_v55 = vsel %vm1366_vm6, %v2063_v53, %v2060_v54  ;;  %v2578_v45 = vld [vmem:[#allocation15 + $0x70] sm:$0xff]  ;;  %v2593_v53 = vld [vmem:[#allocation15 + $0xe8] sm:$0xff] }
 0xaa0   : > { %7942 = vmatmul.mubr.f32.vlgmr.msra.gmra.mxu1 %v2064_v55  ;;  %v2577_v54 = vld [vmem:[#allocation15 + $0x68] sm:$0xff]  ;;  %v2592_v55 = vld [vmem:[#allocation15 + $0xe0] sm:$0xff] }
 0xaa1   : > { %7996 = vmatprep.mubr.msk.f32.mxu1 %vm1100_vm2, %v2453_v35 }
 0xb60   : > { %v2148_v60 = vpop.f32.mrf.mxu1 }
 0xb61   : > { %v2149_v61 = vadd.f32 %v2148_v60, %v2081_v58  ;;  %v2575_v58 = vld [vmem:[#allocation15 + $0x58] sm:$0xff]  ;;  %v2574_v60 = vld [vmem:[#allocation15 + $0x50] sm:$0xff] }
 0xb62   : > { %v7943_v0 = vpop.f32.mrf.mxu1 }
 0xb63   : > { %v9416_v1 = vadd.f32 %v2236_v62, %v2149_v61  ;;  %v2589_v61 = vld [vmem:[#allocation15 + $0xc8] sm:$0xff]  ;;  %v2572_v0 = vld [vmem:[#allocation15 + $0x40] sm:$0xff] }
 0xb64   : > { %v2573_v62 = vld [vmem:[#allocation15 + $0x48] sm:$0xff] }
 0xb65   : > { %v2239_v3 = vmul.f32 %v2238_v63, %v9416_v1  ;;  %v2588_v63 = vld [vmem:[#allocation15 + $0xc0] sm:$0xff] }
 0xb67   : > { %v2241_v4 = vadd.f32 %v2240_v2, %v2239_v3  ;;  %v2571_v2 = vld [vmem:[#allocation15 + $0x38] sm:$0xff]  ;;  %v2586_v3 = vld [vmem:[#allocation15 + $0xb0] sm:$0xff] }
 0xb69   : > { %v2242_v5 = vmax.f32 %v2241_v4, 0.0  ;;  %v2570_v4 = vld [vmem:[#allocation15 + $0x30] sm:$0xff] }
 0xb6b   : > { %7951 = vmatprep.subr.mxu0 %v2242_v5 }
 0xb6c   : > { %7952 = vmatpush3.msra.mxu0 %v2242_v5  ;;  %v2585_v5 = vld [vmem:[#allocation15 + $0xa8] sm:$0xff] }
 0xb6d   : > { %7954 = vmatmul.mubr.msk.f32.vlgmr.msra.gmra.mxu0 %vm1100_vm2, %v2245_v6  ;;  %7959 = vmatprep.subr.mxu0 %v8887_v52  ;;  %v2569_v6 = vld [vmem:[#allocation15 + $0x28] sm:$0xff] }
 0xb6e   : > { %7956 = vmatprep.mubr.msk.f32.mxu0 %vm1100_vm2, %v2246_v7  ;;  %7960 = vmatpush3.msra.mxu0 %v2375_v9  ;;  %v2584_v7 = vld [vmem:[#allocation15 + $0xa0] sm:$0xff]  ;;  %v2583_v9 = vld [vmem:[#allocation15 + $0x98] sm:$0xff] }
 0xb6f   : > { %7961 = vmatprep.subr.mxu0 %v8887_v52 }
 0xb70   : > { %7962 = vmatpush3.msra.mxu0 %v2374_v10  ;;  %v2567_v10 = vld [vmem:[#allocation15 + $0x18] sm:$0xff] }
 0xb71   : > { %7957 = vmatmul.mubr.msk.f32.gmra.mxu0 %vm1100_vm2, %v2247_v8  ;;  %7963 = vmatprep.subr.mxu0 %v8887_v52  ;;  %v2568_v8 = vld [vmem:[#allocation15 + $0x20] sm:$0xff] }
 0xb72   : > { %7991 = vmatprep.mubr.msk.f32.mxu0 %vm8888_vm7, %v8887_v52  ;;  %7964 = vmatpush3.msra.mxu0 %v2373_v11  ;;  %v2582_v11 = vld [vmem:[#allocation15 + $0x90] sm:$0xff] }
 0xb73   : > { %7965 = vmatprep.subr.mxu0 %v8887_v52 }
 0xb74   : > { %7966 = vmatpush3.msra.mxu0 %v2372_v12  ;;  %v2566_v12 = vld [vmem:[#allocation15 + $0x10] sm:$0xff] }
 0xb75   : > { %7967 = vmatprep.subr.mxu0 %v8887_v52 }
 0xb76   : > { %7968 = vmatpush3.msra.mxu0 %v2371_v13  ;;  %v2581_v13 = vld [vmem:[#allocation15 + $0x88] sm:$0xff] }
 0xb77   : > { %7969 = vmatprep.subr.mxu0 %v8887_v52 }
 0xb78   : > { %7970 = vmatpush3.msra.mxu0 %v2370_v14  ;;  %v2565_v14 = vld [vmem:[#allocation15 + $0x8] sm:$0xff] }
 0xb79   : > { %7971 = vmatprep.subr.mxu0 %v8887_v52 }
 0xb7a   : > { %7972 = vmatpush3.msra.mxu0 %v2369_v15  ;;  %v2580_v15 = vld [vmem:[#allocation15 + $0x80] sm:$0xff] }
 0xb7b   : > { %7973 = vmatprep.subr.mxu0 %v8887_v52 }
 0xb7c   : > { %7974 = vmatpush3.msra.mxu0 %v2368_v16  ;;  %v2564_v16 = vld [vmem:[#allocation15] sm:$0xff] }
 0xb7d   : > { %7975 = vmatprep.subr.mxu0 %v8887_v52 }
 0xb7e   : > { %7976 = vmatpush3.msra.mxu0 %v2367_v17 }
 0xb7f   : > { %7977 = vmatprep.subr.mxu0 %v8887_v52 }
 0xb80   : > { %7978 = vmatpush3.msra.mxu0 %v2366_v18 }
 0xb81   : > { %7979 = vmatprep.subr.mxu0 %v8887_v52 }
 0xb82   : > { %7980 = vmatpush3.msra.mxu0 %v2365_v19 }
 0xb83   : > { %7981 = vmatprep.subr.mxu0 %v8887_v52 }
 0xb84   : > { %7982 = vmatpush3.msra.mxu0 %v2364_v20 }
 0xb85   : > { %7983 = vmatprep.subr.mxu0 %v8887_v52 }
 0xb86   : > { %7984 = vmatpush3.msra.mxu0 %v2363_v21 }
 0xb87   : > { %7985 = vmatprep.subr.mxu0 %v8887_v52 }
 0xb88   : > { %7986 = vmatpush3.msra.mxu0 %v2362_v22 }
 0xb89   : > { %7987 = vmatprep.subr.mxu0 %v8887_v52 }
 0xb8a   : > { %7988 = vmatpush3.msra.mxu0 %v2361_v23 }
 0xb8b   : > { %7989 = vmatprep.subr.mxu0 %v8887_v52 }
 0xb8c   : > { %7990 = vmatpush3.msra.mxu0 %v2360_v24 }
 0xc2d   : > { %v7955_v25 = vpop.f32.mrf.mxu0 }
 0xc2e   : > { %2346 = vrot.lane.b32.xlu0 %v7955_v25, %s8884_s11 }
 0xc2f   : > { %v2326_v26 = vpop.f32.mrf.mxu0 }
 0xc31   : > { %v7958_v27 = vpop.f32.mrf.mxu0 }
 0xc32   : > { %2354 = vrot.lane.b32.xlu0 %v7958_v27, %s8886_s26  ;;  %v2681_v27 = vld [vmem:[#allocation2 + $0x200] sm:$0xff] }
 0xc33   : > { %v2336_v28 = vpop.f32.mrf.mxu0 }
 0xc34   : > { %2350 = vrot.lane.b32.xlu1 %v2336_v28, %s8885_s30 }
 0xc36   : > { %2668 = vrot.lane.b32.xlu0 %v9416_v1, %s8889_s3  ;;  %v2587_v1 = vld [vmem:[#allocation15 + $0xb8] sm:$0xff] }
 0xca0   : > { %v2347_v29 = vpop.permute.xlu0 %2346 }
 0xca1   : > { %v2357_v30 = vsel %vm1360_vm4, %v2326_v26, %v2347_v29 }
 0xca4   : > { %v2355_v32 = vpop.permute.xlu0 %2354 }
 0xca6   : > { %v2351_v31 = vpop.permute.xlu1 %2350 }
 0xca7   : > { %v2358_v33 = vsel %vm1363_vm5, %v2357_v30, %v2351_v31  ;;  %v2596_v30 = vld [vmem:[#allocation6 + $0x6] ss:$0 sm:$0xff] }
 0xca8   : > { %v2359_v34 = vsel %vm1366_vm6, %v2358_v33, %v2355_v32  ;;  %v2669_v28 = vpop.permute.xlu0 %2668 }
 0xca9   : > { %7992 = vmatmul.mubr.f32.vlgmr.msra.gmra.mxu0 %v2359_v34  ;;  %v2671_v32 = vsel %vm943_vm0, 0.0, %v2669_v28 }
 0xcaa   : > { %8004 = vmatprep.mubr.msk.f32.mxu0 %vm1100_vm2, %v2681_v27  ;;  %v2673_v35 = vsel %vm2672_vm8, %v2671_v32, 0.0 }
 0xd69   : > { %v2443_v37 = vpop.f32.mrf.mxu0 }
 0xd6a   : > { %v2444_v39 = vadd.f32 %v2443_v37, %v2376_v36  ;;  %v2675_v36 = vld [vmem:[#allocation4 + $0x14] ss:$0 sm:$0xff] }
 0xd6b   : > { %v7993_v40 = vpop.f32.mrf.mxu0 }
 0xd6c   : > { %v2448_v42 = vmul.f32 %v2447_v38, %v2444_v39  ;;  %v2677_v38 = vld [vmem:[#allocation4 + $0x15] ss:$0 sm:$0xff] }
 0xd6e   : > { %v2450_v44 = vadd.f32 %v2449_v41, %v2448_v42  ;;  %v2682_v42 = vld [vmem:[#allocation2 + $0x208] sm:$0xff] }
 0xd70   : > { %v2451_v46 = vmax.f32 %v2450_v44, 0.0  ;;  %v2683_v44 = vld [vmem:[#allocation2 + $0x210] sm:$0xff] }
 0xd72   : > { %7994 = vmatprep.subr.mxu1 %v2451_v46 }
 0xd73   : > { %7995 = vmatpush3.msra.mxu1 %v2451_v46  ;;  %v2684_v46 = vld [vmem:[#allocation2 + $0x218] sm:$0xff] }
 0xd74   : > { %7997 = vmatmul.mubr.msk.f32.vlgmr.msra.gmra.mxu1 %vm1100_vm2, %v2454_v47  ;;  %7350 = vmatprep.subr.mxu1 %v2595_v50  ;;  %v2823_v47 = vld [vmem:[#allocation16 + $0xf8] sm:$0xff]  ;;  %v2806_v50 = vld [vmem:[#allocation16 + $0x70] sm:$0xff] }
 0xd75   : > { %7999 = vmatprep.mubr.msk.f32.mxu1 %vm1100_vm2, %v2455_v48  ;;  %7351 = vmatpush3.msra.mxu1 %v2579_v51  ;;  %v2807_v48 = vld [vmem:[#allocation16 + $0x78] sm:$0xff]  ;;  %v2821_v51 = vld [vmem:[#allocation16 + $0xe8] sm:$0xff] }
 0xd76   : > { %7352 = vmatprep.subr.mxu1 %v2594_v43  ;;  %v2805_v43 = vld [vmem:[#allocation16 + $0x68] sm:$0xff] }
 0xd77   : > { %7353 = vmatpush3.msra.mxu1 %v2578_v45  ;;  %v2820_v45 = vld [vmem:[#allocation16 + $0xe0] sm:$0xff] }
 0xd78   : > { %8000 = vmatmul.mubr.msk.f32.gmra.mxu1 %vm1100_vm2, %v2456_v49  ;;  %7354 = vmatprep.subr.mxu1 %v2593_v53  ;;  %v2822_v49 = vld [vmem:[#allocation16 + $0xf0] sm:$0xff]  ;;  %v2804_v53 = vld [vmem:[#allocation16 + $0x60] sm:$0xff] }
 0xd79   : > { %7355 = vmatpush3.msra.mxu1 %v2577_v54  ;;  %v2819_v54 = vld [vmem:[#allocation16 + $0xd8] sm:$0xff] }
 0xd7a   : > { %7356 = vmatprep.subr.mxu1 %v2592_v55  ;;  %v2803_v55 = vld [vmem:[#allocation16 + $0x58] sm:$0xff] }
 0xd7b   : > { %7357 = vmatpush3.msra.mxu1 %v2576_v56  ;;  %v2818_v56 = vld [vmem:[#allocation16 + $0xd0] sm:$0xff] }
 0xd7c   : > { %7358 = vmatprep.subr.mxu1 %v2591_v57  ;;  %v2802_v57 = vld [vmem:[#allocation16 + $0x50] sm:$0xff] }
 0xd7d   : > { %7359 = vmatpush3.msra.mxu1 %v2575_v58  ;;  %v2817_v58 = vld [vmem:[#allocation16 + $0xc8] sm:$0xff] }
 0xd7e   : > { %7360 = vmatprep.subr.mxu1 %v2590_v59  ;;  %v2801_v59 = vld [vmem:[#allocation16 + $0x48] sm:$0xff] }
 0xd7f   : > { %7361 = vmatpush3.msra.mxu1 %v2574_v60  ;;  %v2816_v60 = vld [vmem:[#allocation16 + $0xc0] sm:$0xff] }
 0xd80   : > { %7362 = vmatprep.subr.mxu1 %v2589_v61  ;;  %v2800_v61 = vld [vmem:[#allocation16 + $0x40] sm:$0xff] }
 0xd81   : > { %7363 = vmatpush3.msra.mxu1 %v2573_v62  ;;  %v2815_v62 = vld [vmem:[#allocation16 + $0xb8] sm:$0xff] }
 0xd82   : > { %7364 = vmatprep.subr.mxu1 %v2588_v63  ;;  %v2799_v63 = vld [vmem:[#allocation16 + $0x38] sm:$0xff] }
 0xd83   : > { %7365 = vmatpush3.msra.mxu1 %v2572_v0  ;;  %v2814_v0 = vld [vmem:[#allocation16 + $0xb0] sm:$0xff] }
 0xd84   : > { %7366 = vmatprep.subr.mxu1 %v2587_v1  ;;  %v2798_v1 = vld [vmem:[#allocation16 + $0x30] sm:$0xff] }
 0xd85   : > { %7367 = vmatpush3.msra.mxu1 %v2571_v2  ;;  %v2813_v2 = vld [vmem:[#allocation16 + $0xa8] sm:$0xff] }
 0xd86   : > { %7368 = vmatprep.subr.mxu1 %v2586_v3  ;;  %v2797_v3 = vld [vmem:[#allocation16 + $0x28] sm:$0xff] }
 0xd87   : > { %7369 = vmatpush3.msra.mxu1 %v2570_v4  ;;  %v2812_v4 = vld [vmem:[#allocation16 + $0xa0] sm:$0xff] }
 0xd88   : > { %7370 = vmatprep.subr.mxu1 %v2585_v5  ;;  %v2796_v5 = vld [vmem:[#allocation16 + $0x20] sm:$0xff] }
 0xd89   : > { %7371 = vmatpush3.msra.mxu1 %v2569_v6  ;;  %v2811_v6 = vld [vmem:[#allocation16 + $0x98] sm:$0xff] }
 0xd8a   : > { %7372 = vmatprep.subr.mxu1 %v2584_v7  ;;  %v2795_v7 = vld [vmem:[#allocation16 + $0x18] sm:$0xff] }
 0xd8b   : > { %7373 = vmatpush3.msra.mxu1 %v2568_v8  ;;  %v2810_v8 = vld [vmem:[#allocation16 + $0x90] sm:$0xff] }
 0xd8c   : > { %7374 = vmatprep.subr.mxu1 %v2583_v9  ;;  %v2794_v9 = vld [vmem:[#allocation16 + $0x10] sm:$0xff] }
 0xd8d   : > { %7375 = vmatpush3.msra.mxu1 %v2567_v10  ;;  %v2809_v10 = vld [vmem:[#allocation16 + $0x88] sm:$0xff] }
 0xd8e   : > { %7376 = vmatprep.subr.mxu1 %v2582_v11  ;;  %v2793_v11 = vld [vmem:[#allocation16 + $0x8] sm:$0xff] }
 0xd8f   : > { %7377 = vmatpush3.msra.mxu1 %v2566_v12  ;;  %v2808_v12 = vld [vmem:[#allocation16 + $0x80] sm:$0xff] }
 0xd90   : > { %7378 = vmatprep.subr.mxu1 %v2581_v13  ;;  %v2792_v13 = vld [vmem:[#allocation16] sm:$0xff] }
 0xd91   : > { %7379 = vmatpush3.msra.mxu1 %v2565_v14 }
 0xd92   : > { %7380 = vmatprep.subr.mxu1 %v2580_v15 }
 0xd93   : > { %7381 = vmatpush3.msra.mxu1 %v2564_v16 }
 0xe34   : > { %v7998_v17 = vpop.f32.mrf.mxu1 }
 0xe36   : > { %v2535_v18 = vpop.f32.mrf.mxu1 }
 0xe38   : > { %v8001_v19 = vpop.f32.mrf.mxu1 }
 0xe39   : > { %v8296_v20 = vpack.i.bf16 %v7998_v17, %v8001_v19 }
 0xe3a   : > { %v2545_v24 = vpop.f32.mrf.mxu1 }
 0xe3b   : > { %8297 = vrot.lane.b32.xlu1 %v8296_v20, %s8885_s30 }
 0xead   : > { %v8298_v21 = vpop.permute.xlu1 %8297 }
 0xeae   : > { %v8300_v22 = vunpack.i.h.bf16 %v8298_v21  ;;  %v8299_v23 = vunpack.i.l.bf16 %v8298_v21 }
 0xeb0   : > { %v2563_v25 = vsel %vm1363_vm5, %v2545_v24, %v8299_v23  ;;  %v2562_v26 = vsel %vm1363_vm5, %v2535_v18, %v8300_v22  ;;  %v2901_v24 = vld [vmem:[#allocation2 + $0x240] sm:$0xff] }
 0xeb1   : > { %2661 = vmatprep.mubr.f32.mxu1 %v2563_v25 }
 0xeb2   : > { %2662 = vmatmul.mubr.f32.vlgmr.msra.gmra.mxu1 %v2562_v26  ;;  %v2824_v26 = vld [vmem:[#allocation6 + $0x7] ss:$0 sm:$0xff] }
 0xeb3   : > { %8012 = vmatprep.mubr.msk.f32.mxu1 %vm1100_vm2, %v2901_v24  ;;  %v3116_v24 = vld [vmem:[#allocation4 + $0x20] ss:$0 sm:$0xff] }
 0xf72   : > { %v7382_v29 = vpop.f32.mrf.mxu1 }
 0xf74   : > { %v7383_v31 = vpop.f32.mrf.mxu1 }
 0xf75   : > { %v7384_v33 = vadd.f32 %v7383_v31, %v7382_v29  ;;  %v2895_v29 = vld [vmem:[#allocation4 + $0x16] ss:$0 sm:$0xff]  ;;  %v2897_v31 = vld [vmem:[#allocation4 + $0x17] ss:$0 sm:$0xff] }
 0xf77   : > { %v2664_v34 = vadd.f32 %v7384_v33, %v2596_v30 }
 0xf79   : > { %v9456_v37 = vadd.f32 %v2673_v35, %v2664_v34  ;;  %v2902_v35 = vld [vmem:[#allocation2 + $0x248] sm:$0xff] }
 0xf7b   : > { %v2676_v39 = vmul.f32 %v2675_v36, %v9456_v37  ;;  %v2903_v36 = vld [vmem:[#allocation2 + $0x250] sm:$0xff] }
 0xf7d   : > { %v2678_v40 = vadd.f32 %v2677_v38, %v2676_v39  ;;  %v2904_v38 = vld [vmem:[#allocation2 + $0x258] sm:$0xff] }
 0xf7e   : > { %v3043_v39 = vld [vmem:[#allocation18 + $0xf8] sm:$0xff] }
 0xf7f   : > { %v2679_v41 = vmax.f32 %v2678_v40, 0.0  ;;  %v3027_v40 = vld [vmem:[#allocation18 + $0x78] sm:$0xff] }
 0xf81   : > { %8002 = vmatprep.subr.mxu0 %v2679_v41 }
 0xf82   : > { %8003 = vmatpush3.msra.mxu0 %v2679_v41  ;;  %v3042_v41 = vld [vmem:[#allocation18 + $0xf0] sm:$0xff] }
 0xf83   : > { %8005 = vmatmul.mubr.msk.f32.vlgmr.msra.gmra.mxu0 %vm1100_vm2, %v2682_v42  ;;  %7390 = vmatprep.subr.mxu0 %v2823_v47  ;;  %v3026_v42 = vld [vmem:[#allocation18 + $0x70] sm:$0xff]  ;;  %v3040_v47 = vld [vmem:[#allocation18 + $0xe0] sm:$0xff] }
 0xf84   : > { %8007 = vmatprep.mubr.msk.f32.mxu0 %vm1100_vm2, %v2683_v44  ;;  %7391 = vmatpush3.msra.mxu0 %v2807_v48  ;;  %v3041_v44 = vld [vmem:[#allocation18 + $0xe8] sm:$0xff]  ;;  %v3024_v48 = vld [vmem:[#allocation18 + $0x60] sm:$0xff] }
 0xf85   : > { %7392 = vmatprep.subr.mxu0 %v2822_v49  ;;  %v3039_v49 = vld [vmem:[#allocation18 + $0xd8] sm:$0xff] }
 0xf86   : > { %7393 = vmatpush3.msra.mxu0 %v2806_v50  ;;  %v3023_v50 = vld [vmem:[#allocation18 + $0x58] sm:$0xff] }
 0xf87   : > { %8008 = vmatmul.mubr.msk.f32.gmra.mxu0 %vm1100_vm2, %v2684_v46  ;;  %7394 = vmatprep.subr.mxu0 %v2821_v51  ;;  %v3025_v46 = vld [vmem:[#allocation18 + $0x68] sm:$0xff]  ;;  %v3038_v51 = vld [vmem:[#allocation18 + $0xd0] sm:$0xff] }
 0xf88   : > { %7395 = vmatpush3.msra.mxu0 %v2805_v43  ;;  %v3022_v43 = vld [vmem:[#allocation18 + $0x50] sm:$0xff] }
 0xf89   : > { %7396 = vmatprep.subr.mxu0 %v2820_v45  ;;  %v3037_v45 = vld [vmem:[#allocation18 + $0xc8] sm:$0xff] }
 0xf8a   : > { %7397 = vmatpush3.msra.mxu0 %v2804_v53  ;;  %v3021_v53 = vld [vmem:[#allocation18 + $0x48] sm:$0xff] }
 0xf8b   : > { %7398 = vmatprep.subr.mxu0 %v2819_v54  ;;  %v3036_v54 = vld [vmem:[#allocation18 + $0xc0] sm:$0xff] }
 0xf8c   : > { %7399 = vmatpush3.msra.mxu0 %v2803_v55  ;;  %v3020_v55 = vld [vmem:[#allocation18 + $0x40] sm:$0xff] }
 0xf8d   : > { %7400 = vmatprep.subr.mxu0 %v2818_v56  ;;  %v3035_v56 = vld [vmem:[#allocation18 + $0xb8] sm:$0xff] }
 0xf8e   : > { %7401 = vmatpush3.msra.mxu0 %v2802_v57  ;;  %v3019_v57 = vld [vmem:[#allocation18 + $0x38] sm:$0xff] }
 0xf8f   : > { %7402 = vmatprep.subr.mxu0 %v2817_v58  ;;  %v3034_v58 = vld [vmem:[#allocation18 + $0xb0] sm:$0xff] }
 0xf90   : > { %7403 = vmatpush3.msra.mxu0 %v2801_v59  ;;  %v3018_v59 = vld [vmem:[#allocation18 + $0x30] sm:$0xff] }
 0xf91   : > { %7404 = vmatprep.subr.mxu0 %v2816_v60  ;;  %v3033_v60 = vld [vmem:[#allocation18 + $0xa8] sm:$0xff] }
 0xf92   : > { %7405 = vmatpush3.msra.mxu0 %v2800_v61  ;;  %v3017_v61 = vld [vmem:[#allocation18 + $0x28] sm:$0xff] }
 0xf93   : > { %7406 = vmatprep.subr.mxu0 %v2815_v62  ;;  %v3032_v62 = vld [vmem:[#allocation18 + $0xa0] sm:$0xff] }
 0xf94   : > { %7407 = vmatpush3.msra.mxu0 %v2799_v63  ;;  %v3016_v63 = vld [vmem:[#allocation18 + $0x20] sm:$0xff] }
 0xf95   : > { %7408 = vmatprep.subr.mxu0 %v2814_v0  ;;  %v3031_v0 = vld [vmem:[#allocation18 + $0x98] sm:$0xff] }
 0xf96   : > { %7409 = vmatpush3.msra.mxu0 %v2798_v1  ;;  %v3015_v1 = vld [vmem:[#allocation18 + $0x18] sm:$0xff] }
 0xf97   : > { %7410 = vmatprep.subr.mxu0 %v2813_v2  ;;  %v3030_v2 = vld [vmem:[#allocation18 + $0x90] sm:$0xff] }
 0xf98   : > { %7411 = vmatpush3.msra.mxu0 %v2797_v3  ;;  %v3014_v3 = vld [vmem:[#allocation18 + $0x10] sm:$0xff] }
 0xf99   : > { %7412 = vmatprep.subr.mxu0 %v2812_v4  ;;  %v3029_v4 = vld [vmem:[#allocation18 + $0x88] sm:$0xff] }
 0xf9a   : > { %7413 = vmatpush3.msra.mxu0 %v2796_v5  ;;  %v3013_v5 = vld [vmem:[#allocation18 + $0x8] sm:$0xff] }
 0xf9b   : > { %7414 = vmatprep.subr.mxu0 %v2811_v6  ;;  %v3028_v6 = vld [vmem:[#allocation18 + $0x80] sm:$0xff] }
 0xf9c   : > { %7415 = vmatpush3.msra.mxu0 %v2795_v7  ;;  %v3012_v7 = vld [vmem:[#allocation18] sm:$0xff] }
 0xf9d   : > { %7416 = vmatprep.subr.mxu0 %v2810_v8 }
 0xf9e   : > { %7417 = vmatpush3.msra.mxu0 %v2794_v9 }
 0xf9f   : > { %7418 = vmatprep.subr.mxu0 %v2809_v10 }
 0xfa0   : > { %7419 = vmatpush3.msra.mxu0 %v2793_v11 }
 0xfa1   : > { %7420 = vmatprep.subr.mxu0 %v2808_v12 }
 0xfa2   : > { %7421 = vmatpush3.msra.mxu0 %v2792_v13 }
0x1043   : > { %v8006_v14 = vpop.f32.mrf.mxu0 }
0x1045   : > { %v2763_v15 = vpop.f32.mrf.mxu0 }
0x1047   : > { %v8009_v16 = vpop.f32.mrf.mxu0 }
0x1048   : > { %v8301_v17 = vpack.i.bf16 %v8006_v14, %v8009_v16 }
0x1049   : > { %v2773_v21 = vpop.f32.mrf.mxu0 }
0x104a   : > { %8302 = vrot.lane.b32.xlu1 %v8301_v17, %s8885_s30 }
0x10bc   : > { %v8303_v18 = vpop.permute.xlu1 %8302 }
0x10bd   : > { %v8305_v19 = vunpack.i.h.bf16 %v8303_v18  ;;  %v8304_v20 = vunpack.i.l.bf16 %v8303_v18  ;;  %v3122_v18 = vld [vmem:[#allocation2 + $0x280] sm:$0xff] }
0x10bf   : > { %v2791_v22 = vsel %vm1363_vm5, %v2773_v21, %v8304_v20  ;;  %v2790_v23 = vsel %vm1363_vm5, %v2763_v15, %v8305_v19  ;;  %v3044_v20 = vld [vmem:[#allocation6 + $0x10] ss:$0 sm:$0xff] }
0x10c0   : > { %2889 = vmatprep.mubr.f32.mxu0 %v2791_v22 }
0x10c1   : > { %2890 = vmatmul.mubr.f32.vlgmr.msra.gmra.mxu0 %v2790_v23 }
0x10c2   : > { %8020 = vmatprep.mubr.msk.f32.mxu0 %vm1100_vm2, %v3122_v18  ;;  %v3488_v18 = vld [vmem:[#allocation21 + $0x168] sm:$0xff] }
0x1181   : > { %v7422_v25 = vpop.f32.mrf.mxu0 }
0x1183   : > { %v7423_v27 = vpop.f32.mrf.mxu0 }
0x1184   : > { %v7424_v28 = vadd.f32 %v7423_v27, %v7422_v25 }
0x1186   : > { %v2892_v30 = vadd.f32 %v7424_v28, %v2824_v26  ;;  %v3118_v26 = vld [vmem:[#allocation4 + $0x21] ss:$0 sm:$0xff] }
0x1188   : > { %v2896_v32 = vmul.f32 %v2895_v29, %v2892_v30  ;;  %v3123_v30 = vld [vmem:[#allocation2 + $0x288] sm:$0xff] }
0x118a   : > { %v2898_v33 = vadd.f32 %v2897_v31, %v2896_v32  ;;  %v3124_v31 = vld [vmem:[#allocation2 + $0x290] sm:$0xff]  ;;  %v3125_v32 = vld [vmem:[#allocation2 + $0x298] sm:$0xff] }
0x118c   : > { %v2899_v34 = vmax.f32 %v2898_v33, 0.0  ;;  %v3264_v33 = vld [vmem:[#allocation19 + $0xf8] sm:$0xff] }
0x118e   : > { %8010 = vmatprep.subr.mxu1 %v2899_v34 }
0x118f   : > { %8011 = vmatpush3.msra.mxu1 %v2899_v34  ;;  %v3248_v34 = vld [vmem:[#allocation19 + $0x78] sm:$0xff] }
0x1190   : > { %8013 = vmatmul.mubr.msk.f32.vlgmr.msra.gmra.mxu1 %vm1100_vm2, %v2902_v35  ;;  %7430 = vmatprep.subr.mxu1 %v3043_v39  ;;  %v3247_v35 = vld [vmem:[#allocation19 + $0x70] sm:$0xff]  ;;  %v3261_v39 = vld [vmem:[#allocation19 + $0xe0] sm:$0xff] }
0x1191   : > { %8015 = vmatprep.mubr.msk.f32.mxu1 %vm1100_vm2, %v2903_v36  ;;  %7431 = vmatpush3.msra.mxu1 %v3027_v40  ;;  %v3262_v36 = vld [vmem:[#allocation19 + $0xe8] sm:$0xff]  ;;  %v3245_v40 = vld [vmem:[#allocation19 + $0x60] sm:$0xff] }
0x1192   : > { %7432 = vmatprep.subr.mxu1 %v3042_v41  ;;  %v3260_v41 = vld [vmem:[#allocation19 + $0xd8] sm:$0xff] }
0x1193   : > { %7433 = vmatpush3.msra.mxu1 %v3026_v42  ;;  %v3244_v42 = vld [vmem:[#allocation19 + $0x58] sm:$0xff] }
0x1194   : > { %8016 = vmatmul.mubr.msk.f32.gmra.mxu1 %vm1100_vm2, %v2904_v38  ;;  %7434 = vmatprep.subr.mxu1 %v3041_v44  ;;  %v3246_v38 = vld [vmem:[#allocation19 + $0x68] sm:$0xff]  ;;  %v3259_v44 = vld [vmem:[#allocation19 + $0xd0] sm:$0xff] }
0x1195   : > { %7435 = vmatpush3.msra.mxu1 %v3025_v46  ;;  %v3243_v46 = vld [vmem:[#allocation19 + $0x50] sm:$0xff] }
0x1196   : > { %7436 = vmatprep.subr.mxu1 %v3040_v47  ;;  %v3258_v47 = vld [vmem:[#allocation19 + $0xc8] sm:$0xff] }
0x1197   : > { %7437 = vmatpush3.msra.mxu1 %v3024_v48  ;;  %v3242_v48 = vld [vmem:[#allocation19 + $0x48] sm:$0xff] }
0x1198   : > { %7438 = vmatprep.subr.mxu1 %v3039_v49  ;;  %v3257_v49 = vld [vmem:[#allocation19 + $0xc0] sm:$0xff] }
0x1199   : > { %7439 = vmatpush3.msra.mxu1 %v3023_v50  ;;  %v3241_v50 = vld [vmem:[#allocation19 + $0x40] sm:$0xff] }
0x119a   : > { %7440 = vmatprep.subr.mxu1 %v3038_v51  ;;  %v3256_v51 = vld [vmem:[#allocation19 + $0xb8] sm:$0xff] }
0x119b   : > { %7441 = vmatpush3.msra.mxu1 %v3022_v43  ;;  %v3240_v43 = vld [vmem:[#allocation19 + $0x38] sm:$0xff] }
0x119c   : > { %7442 = vmatprep.subr.mxu1 %v3037_v45  ;;  %v3255_v45 = vld [vmem:[#allocation19 + $0xb0] sm:$0xff] }
0x119d   : > { %7443 = vmatpush3.msra.mxu1 %v3021_v53  ;;  %v3239_v53 = vld [vmem:[#allocation19 + $0x30] sm:$0xff] }
0x119e   : > { %7444 = vmatprep.subr.mxu1 %v3036_v54  ;;  %v3254_v54 = vld [vmem:[#allocation19 + $0xa8] sm:$0xff] }
0x119f   : > { %7445 = vmatpush3.msra.mxu1 %v3020_v55  ;;  %v3238_v55 = vld [vmem:[#allocation19 + $0x28] sm:$0xff] }
0x11a0   : > { %7446 = vmatprep.subr.mxu1 %v3035_v56  ;;  %v3253_v56 = vld [vmem:[#allocation19 + $0xa0] sm:$0xff] }
0x11a1   : > { %7447 = vmatpush3.msra.mxu1 %v3019_v57  ;;  %v3237_v57 = vld [vmem:[#allocation19 + $0x20] sm:$0xff] }
0x11a2   : > { %7448 = vmatprep.subr.mxu1 %v3034_v58  ;;  %v3252_v58 = vld [vmem:[#allocation19 + $0x98] sm:$0xff] }
0x11a3   : > { %7449 = vmatpush3.msra.mxu1 %v3018_v59  ;;  %v3236_v59 = vld [vmem:[#allocation19 + $0x18] sm:$0xff] }
0x11a4   : > { %7450 = vmatprep.subr.mxu1 %v3033_v60  ;;  %v3251_v60 = vld [vmem:[#allocation19 + $0x90] sm:$0xff] }
0x11a5   : > { %7451 = vmatpush3.msra.mxu1 %v3017_v61  ;;  %v3235_v61 = vld [vmem:[#allocation19 + $0x10] sm:$0xff] }
0x11a6   : > { %7452 = vmatprep.subr.mxu1 %v3032_v62  ;;  %v3250_v62 = vld [vmem:[#allocation19 + $0x88] sm:$0xff] }
0x11a7   : > { %7453 = vmatpush3.msra.mxu1 %v3016_v63  ;;  %v3234_v63 = vld [vmem:[#allocation19 + $0x8] sm:$0xff] }
0x11a8   : > { %7454 = vmatprep.subr.mxu1 %v3031_v0  ;;  %v3249_v0 = vld [vmem:[#allocation19 + $0x80] sm:$0xff] }
0x11a9   : > { %7455 = vmatpush3.msra.mxu1 %v3015_v1  ;;  %v3233_v1 = vld [vmem:[#allocation19] sm:$0xff] }
0x11aa   : > { %7456 = vmatprep.subr.mxu1 %v3030_v2 }
0x11ab   : > { %7457 = vmatpush3.msra.mxu1 %v3014_v3 }
0x11ac   : > { %7458 = vmatprep.subr.mxu1 %v3029_v4 }
0x11ad   : > { %7459 = vmatpush3.msra.mxu1 %v3013_v5 }
0x11ae   : > { %7460 = vmatprep.subr.mxu1 %v3028_v6 }
0x11af   : > { %7461 = vmatpush3.msra.mxu1 %v3012_v7 }
0x1250   : > { %v8014_v8 = vpop.f32.mrf.mxu1 }
0x1252   : > { %v2983_v9 = vpop.f32.mrf.mxu1 }
0x1254   : > { %v8017_v10 = vpop.f32.mrf.mxu1 }
0x1255   : > { %v8306_v11 = vpack.i.bf16 %v8014_v8, %v8017_v10 }
0x1256   : > { %v2993_v15 = vpop.f32.mrf.mxu1 }
0x1257   : > { %8307 = vrot.lane.b32.xlu0 %v8306_v11, %s8885_s30 }
0x12c9   : > { %v8308_v12 = vpop.permute.xlu0 %8307 }
0x12ca   : > { %v8310_v13 = vunpack.i.h.bf16 %v8308_v12  ;;  %v8309_v14 = vunpack.i.l.bf16 %v8308_v12  ;;  %v3342_v12 = vld [vmem:[#allocation2 + $0x2c0] sm:$0xff] }
0x12cc   : > { %v3011_v16 = vsel %vm1363_vm5, %v2993_v15, %v8309_v14  ;;  %v3010_v17 = vsel %vm1363_vm5, %v2983_v9, %v8310_v13  ;;  %v3506_v13 = vld [vmem:[#allocation21 + $0x1f8] sm:$0xff]  ;;  %v3505_v15 = vld [vmem:[#allocation21 + $0x1f0] sm:$0xff] }
0x12cd   : > { %3109 = vmatprep.mubr.f32.mxu1 %v3011_v16  ;;  %v3490_v14 = vld [vmem:[#allocation21 + $0x178] sm:$0xff]  ;;  %v3489_v16 = vld [vmem:[#allocation21 + $0x170] sm:$0xff] }
0x12ce   : > { %3110 = vmatmul.mubr.f32.vlgmr.msra.gmra.mxu1 %v3010_v17  ;;  %v3504_v17 = vld [vmem:[#allocation21 + $0x1e8] sm:$0xff] }
0x12cf   : > { %8028 = vmatprep.mubr.msk.f32.mxu1 %vm1100_vm2, %v3342_v12  ;;  %v3462_v12 = vld [vmem:[#allocation21 + $0x98] sm:$0xff] }
0x138e   : > { %v7462_v19 = vpop.f32.mrf.mxu1 }
0x1390   : > { %v7463_v21 = vpop.f32.mrf.mxu1 }
0x1391   : > { %v7464_v22 = vadd.f32 %v7463_v21, %v7462_v19  ;;  %v3503_v19 = vld [vmem:[#allocation21 + $0x1e0] sm:$0xff]  ;;  %v3502_v21 = vld [vmem:[#allocation21 + $0x1d8] sm:$0xff] }
0x1393   : > { %v3112_v23 = vadd.f32 %v7464_v22, %v3044_v20  ;;  %v3487_v20 = vld [vmem:[#allocation21 + $0x160] sm:$0xff]  ;;  %v3486_v22 = vld [vmem:[#allocation21 + $0x158] sm:$0xff] }
0x1395   : > { %v3115_v25 = vadd.f32 %v3112_v23, %v9456_v37  ;;  %v3263_v37 = vld [vmem:[#allocation19 + $0xf0] sm:$0xff] }
0x1396   : > { %v3501_v23 = vld [vmem:[#allocation21 + $0x1d0] sm:$0xff] }
0x1397   : > { %3649 = vrot.lane.b32.xlu0 %v3115_v25, %s8884_s11  ;;  %v3117_v27 = vmul.f32 %v3116_v24, %v3115_v25  ;;  %v3485_v24 = vld [vmem:[#allocation21 + $0x150] sm:$0xff]  ;;  %v3500_v25 = vld [vmem:[#allocation21 + $0x1c8] sm:$0xff] }
0x1399   : > { %v3119_v28 = vadd.f32 %v3118_v26, %v3117_v27  ;;  %v3484_v26 = vld [vmem:[#allocation21 + $0x148] sm:$0xff]  ;;  %v3499_v27 = vld [vmem:[#allocation21 + $0x1c0] sm:$0xff] }
0x139b   : > { %v3120_v29 = vmax.f32 %v3119_v28, 0.0  ;;  %v3483_v28 = vld [vmem:[#allocation21 + $0x140] sm:$0xff] }
0x139d   : > { %8018 = vmatprep.subr.mxu0 %v3120_v29 }
0x139e   : > { %8019 = vmatpush3.msra.mxu0 %v3120_v29  ;;  %v3498_v29 = vld [vmem:[#allocation21 + $0x1b8] sm:$0xff] }
0x139f   : > { %8021 = vmatmul.mubr.msk.f32.vlgmr.msra.gmra.mxu0 %vm1100_vm2, %v3123_v30  ;;  %7470 = vmatprep.subr.mxu0 %v3264_v33  ;;  %v3482_v30 = vld [vmem:[#allocation21 + $0x138] sm:$0xff]  ;;  %v3496_v33 = vld [vmem:[#allocation21 + $0x1a8] sm:$0xff] }
0x13a0   : > { %8023 = vmatprep.mubr.msk.f32.mxu0 %vm1100_vm2, %v3124_v31  ;;  %7471 = vmatpush3.msra.mxu0 %v3248_v34  ;;  %v3497_v31 = vld [vmem:[#allocation21 + $0x1b0] sm:$0xff]  ;;  %v3480_v34 = vld [vmem:[#allocation21 + $0x128] sm:$0xff] }
0x13a1   : > { %7472 = vmatprep.subr.mxu0 %v3263_v37  ;;  %v3495_v37 = vld [vmem:[#allocation21 + $0x1a0] sm:$0xff] }
0x13a2   : > { %7473 = vmatpush3.msra.mxu0 %v3247_v35  ;;  %v3479_v35 = vld [vmem:[#allocation21 + $0x120] sm:$0xff] }
0x13a3   : > { %8024 = vmatmul.mubr.msk.f32.gmra.mxu0 %vm1100_vm2, %v3125_v32  ;;  %7474 = vmatprep.subr.mxu0 %v3262_v36  ;;  %v3481_v32 = vld [vmem:[#allocation21 + $0x130] sm:$0xff]  ;;  %v3494_v36 = vld [vmem:[#allocation21 + $0x198] sm:$0xff] }
0x13a4   : > { %7475 = vmatpush3.msra.mxu0 %v3246_v38 }
0x13a5   : > { %7476 = vmatprep.subr.mxu0 %v3261_v39  ;;  %v3265_v39 = vld [vmem:[#allocation6 + $0x11] ss:$0 sm:$0xff] }
0x13a6   : > { %7477 = vmatpush3.msra.mxu0 %v3245_v40 }
0x13a7   : > { %7478 = vmatprep.subr.mxu0 %v3260_v41 }
0x13a8   : > { %7479 = vmatpush3.msra.mxu0 %v3244_v42  ;;  %v3336_v42 = vld [vmem:[#allocation4 + $0x22] ss:$0 sm:$0xff] }
0x13a9   : > { %7480 = vmatprep.subr.mxu0 %v3259_v44 }
0x13aa   : > { %7481 = vmatpush3.msra.mxu0 %v3243_v46  ;;  %v3338_v46 = vld [vmem:[#allocation4 + $0x23] ss:$0 sm:$0xff] }
0x13ab   : > { %7482 = vmatprep.subr.mxu0 %v3258_v47 }
0x13ac   : > { %7483 = vmatpush3.msra.mxu0 %v3242_v48 }
0x13ad   : > { %7484 = vmatprep.subr.mxu0 %v3257_v49 }
0x13ae   : > { %7485 = vmatpush3.msra.mxu0 %v3241_v50  ;;  %v3343_v50 = vld [vmem:[#allocation2 + $0x2c8] sm:$0xff] }
0x13af   : > { %7486 = vmatprep.subr.mxu0 %v3256_v51  ;;  %v3474_v51 = vld [vmem:[#allocation21 + $0xf8] sm:$0xff] }
0x13b0   : > { %7487 = vmatpush3.msra.mxu0 %v3240_v43  ;;  %v3344_v43 = vld [vmem:[#allocation2 + $0x2d0] sm:$0xff] }
0x13b1   : > { %7488 = vmatprep.subr.mxu0 %v3255_v45  ;;  %v3458_v45 = vld [vmem:[#allocation21 + $0x78] sm:$0xff] }
0x13b2   : > { %7489 = vmatpush3.msra.mxu0 %v3239_v53  ;;  %v3473_v53 = vld [vmem:[#allocation21 + $0xf0] sm:$0xff] }
0x13b3   : > { %7490 = vmatprep.subr.mxu0 %v3254_v54  ;;  %v3457_v54 = vld [vmem:[#allocation21 + $0x70] sm:$0xff] }
0x13b4   : > { %7491 = vmatpush3.msra.mxu0 %v3238_v55  ;;  %v3345_v55 = vld [vmem:[#allocation2 + $0x2d8] sm:$0xff] }
0x13b5   : > { %7492 = vmatprep.subr.mxu0 %v3253_v56  ;;  %v3472_v56 = vld [vmem:[#allocation21 + $0xe8] sm:$0xff] }
0x13b6   : > { %7493 = vmatpush3.msra.mxu0 %v3237_v57  ;;  %v3456_v57 = vld [vmem:[#allocation21 + $0x68] sm:$0xff] }
0x13b7   : > { %7494 = vmatprep.subr.mxu0 %v3252_v58  ;;  %v3471_v58 = vld [vmem:[#allocation21 + $0xe0] sm:$0xff] }
0x13b8   : > { %7495 = vmatpush3.msra.mxu0 %v3236_v59  ;;  %v3455_v59 = vld [vmem:[#allocation21 + $0x60] sm:$0xff] }
0x13b9   : > { %7496 = vmatprep.subr.mxu0 %v3251_v60  ;;  %v3470_v60 = vld [vmem:[#allocation21 + $0xd8] sm:$0xff] }
0x13ba   : > { %7497 = vmatpush3.msra.mxu0 %v3235_v61  ;;  %v3454_v61 = vld [vmem:[#allocation21 + $0x58] sm:$0xff] }
0x13bb   : > { %7498 = vmatprep.subr.mxu0 %v3250_v62  ;;  %v3469_v62 = vld [vmem:[#allocation21 + $0xd0] sm:$0xff] }
0x13bc   : > { %7499 = vmatpush3.msra.mxu0 %v3234_v63  ;;  %v3453_v63 = vld [vmem:[#allocation21 + $0x50] sm:$0xff] }
0x13bd   : > { %7500 = vmatprep.subr.mxu0 %v3249_v0  ;;  %v3468_v0 = vld [vmem:[#allocation21 + $0xc8] sm:$0xff] }
0x13be   : > { %7501 = vmatpush3.msra.mxu0 %v3233_v1  ;;  %v3452_v1 = vld [vmem:[#allocation21 + $0x48] sm:$0xff] }
0x13bf   : > { %7545 = vmatprep.subr.mxu0 %v3506_v13  ;;  %v3446_v13 = vld [vmem:[#allocation21 + $0x18] sm:$0xff] }
0x145f   : > { %v8022_v2 = vpop.f32.mrf.mxu0 }
0x1461   : > { %v3204_v3 = vpop.f32.mrf.mxu0 }
0x1463   : > { %v8025_v4 = vpop.f32.mrf.mxu0 }
0x1464   : > { %v8311_v5 = vpack.i.bf16 %v8022_v2, %v8025_v4  ;;  %v3467_v2 = vld [vmem:[#allocation21 + $0xc0] sm:$0xff]  ;;  %v3466_v4 = vld [vmem:[#allocation21 + $0xb8] sm:$0xff] }
0x1465   : > { %v3214_v9 = vpop.f32.mrf.mxu0 }
0x1466   : > { %8312 = vrot.lane.b32.xlu1 %v8311_v5, %s8885_s30  ;;  %v3450_v5 = vld [vmem:[#allocation21 + $0x38] sm:$0xff] }
0x14d8   : > { %v8313_v6 = vpop.permute.xlu1 %8312 }
0x14d9   : > { %v8315_v7 = vunpack.i.h.bf16 %v8313_v6  ;;  %v8314_v8 = vunpack.i.l.bf16 %v8313_v6  ;;  %v3465_v6 = vld [vmem:[#allocation21 + $0xb0] sm:$0xff] }
0x14db   : > { %v3232_v10 = vsel %vm1363_vm5, %v3214_v9, %v8314_v8  ;;  %v3231_v11 = vsel %vm1363_vm5, %v3204_v3, %v8315_v7  ;;  %v3451_v3 = vld [vmem:[#allocation21 + $0x40] sm:$0xff]  ;;  %v3449_v7 = vld [vmem:[#allocation21 + $0x30] sm:$0xff]  ;;  %v3464_v8 = vld [vmem:[#allocation21 + $0xa8] sm:$0xff] }
0x14dc   : > { %3330 = vmatprep.mubr.f32.mxu0 %v3232_v10  ;;  %v3448_v9 = vld [vmem:[#allocation21 + $0x28] sm:$0xff]  ;;  %v3463_v10 = vld [vmem:[#allocation21 + $0xa0] sm:$0xff] }
0x14dd   : > { %3331 = vmatmul.mubr.f32.vlgmr.msra.gmra.mxu0 %v3231_v11  ;;  %v3447_v11 = vld [vmem:[#allocation21 + $0x20] sm:$0xff] }
0x14de   : > { %7546 = vmatpush3.msra.mxu0 %v3490_v14  ;;  %v3461_v14 = vld [vmem:[#allocation21 + $0x90] sm:$0xff] }
0x14df   : > { %7547 = vmatprep.subr.mxu0 %v3505_v15  ;;  %v3445_v15 = vld [vmem:[#allocation21 + $0x10] sm:$0xff] }
0x14e0   : > { %7548 = vmatpush3.msra.mxu0 %v3489_v16  ;;  %v3460_v16 = vld [vmem:[#allocation21 + $0x88] sm:$0xff] }
0x14e1   : > { %7549 = vmatprep.subr.mxu0 %v3504_v17  ;;  %v3478_v17 = vld [vmem:[#allocation21 + $0x118] sm:$0xff] }
0x14e2   : > { %7550 = vmatpush3.msra.mxu0 %v3488_v18  ;;  %v3493_v18 = vld [vmem:[#allocation21 + $0x190] sm:$0xff] }
0x14e3   : > { %7551 = vmatprep.subr.mxu0 %v3503_v19  ;;  %v3444_v19 = vld [vmem:[#allocation21 + $0x8] sm:$0xff] }
0x14e4   : > { %7552 = vmatpush3.msra.mxu0 %v3487_v20  ;;  %v3459_v20 = vld [vmem:[#allocation21 + $0x80] sm:$0xff] }
0x14e5   : > { %7553 = vmatprep.subr.mxu0 %v3502_v21  ;;  %v3477_v21 = vld [vmem:[#allocation21 + $0x110] sm:$0xff] }
0x14e6   : > { %7554 = vmatpush3.msra.mxu0 %v3486_v22  ;;  %v3492_v22 = vld [vmem:[#allocation21 + $0x188] sm:$0xff] }
0x14e7   : > { %7555 = vmatprep.subr.mxu0 %v3501_v23  ;;  %v3443_v23 = vld [vmem:[#allocation21] sm:$0xff] }
0x14e8   : > { %7556 = vmatpush3.msra.mxu0 %v3485_v24  ;;  %v3476_v24 = vld [vmem:[#allocation21 + $0x108] sm:$0xff] }
0x14e9   : > { %7557 = vmatprep.subr.mxu0 %v3500_v25  ;;  %v3491_v25 = vld [vmem:[#allocation21 + $0x180] sm:$0xff] }
0x14ea   : > { %7558 = vmatpush3.msra.mxu0 %v3484_v26  ;;  %v3475_v26 = vld [vmem:[#allocation21 + $0x100] sm:$0xff] }
0x14eb   : > { %7559 = vmatprep.subr.mxu0 %v3499_v27 }
0x14ec   : > { %7560 = vmatpush3.msra.mxu0 %v3483_v28 }
0x14ed   : > { %7561 = vmatprep.subr.mxu0 %v3498_v29 }
0x14ee   : > { %7562 = vmatpush3.msra.mxu0 %v3482_v30 }
0x14ef   : > { %7563 = vmatprep.subr.mxu0 %v3497_v31  ;;  %v3661_v31 = vld [vmem:[#allocation2 + $0x300] sm:$0xff] }
0x14f0   : > { %7564 = vmatpush3.msra.mxu0 %v3481_v32  ;;  %v3813_v32 = vld [vmem:[#allocation22 + $0x1f8] sm:$0xff] }
0x14f1   : > { %7565 = vmatprep.subr.mxu0 %v3496_v33  ;;  %v3797_v33 = vld [vmem:[#allocation22 + $0x178] sm:$0xff] }
0x14f2   : > { %7566 = vmatpush3.msra.mxu0 %v3480_v34  ;;  %v3812_v34 = vld [vmem:[#allocation22 + $0x1f0] sm:$0xff] }
0x14f3   : > { %7567 = vmatprep.subr.mxu0 %v3495_v37  ;;  %v3796_v37 = vld [vmem:[#allocation22 + $0x170] sm:$0xff] }
0x14f4   : > { %7568 = vmatpush3.msra.mxu0 %v3479_v35  ;;  %v3811_v35 = vld [vmem:[#allocation22 + $0x1e8] sm:$0xff] }
0x14f5   : > { %7569 = vmatprep.subr.mxu0 %v3494_v36  ;;  %v3795_v36 = vld [vmem:[#allocation22 + $0x168] sm:$0xff] }
0x14f6   : > { %7570 = vmatpush3.msra.mxu0 %v3478_v17  ;;  %v3763_v17 = vld [vmem:[#allocation22 + $0x68] sm:$0xff] }
0x14f7   : > { %7571 = vmatprep.subr.mxu0 %v3493_v18  ;;  %v3778_v18 = vld [vmem:[#allocation22 + $0xe0] sm:$0xff] }
0x14f8   : > { %7572 = vmatpush3.msra.mxu0 %v3477_v21  ;;  %v3761_v21 = vld [vmem:[#allocation22 + $0x58] sm:$0xff] }
0x14f9   : > { %7573 = vmatprep.subr.mxu0 %v3492_v22  ;;  %v3776_v22 = vld [vmem:[#allocation22 + $0xd0] sm:$0xff] }
0x14fa   : > { %7574 = vmatpush3.msra.mxu0 %v3476_v24  ;;  %v3775_v24 = vld [vmem:[#allocation22 + $0xc8] sm:$0xff] }
0x14fb   : > { %7575 = vmatprep.subr.mxu0 %v3491_v25  ;;  %v3759_v25 = vld [vmem:[#allocation22 + $0x48] sm:$0xff] }
0x14fc   : > { %7576 = vmatpush3.msra.mxu0 %v3475_v26  ;;  %v3774_v26 = vld [vmem:[#allocation22 + $0xc0] sm:$0xff] }
0x14fd   : > { %7618 = vmatprep.subr.mxu0 %v3813_v32  ;;  %v3771_v32 = vld [vmem:[#allocation22 + $0xa8] sm:$0xff] }
0x159d   : > { %v7502_v38 = vpop.f32.mrf.mxu0 }
0x159f   : > { %v7503_v40 = vpop.f32.mrf.mxu0 }
0x15a0   : > { %v7504_v41 = vadd.f32 %v7503_v40, %v7502_v38  ;;  %v3810_v38 = vld [vmem:[#allocation22 + $0x1e0] sm:$0xff]  ;;  %v3809_v40 = vld [vmem:[#allocation22 + $0x1d8] sm:$0xff] }
0x15a2   : > { %v3333_v44 = vadd.f32 %v7504_v41, %v3265_v39  ;;  %v3794_v39 = vld [vmem:[#allocation22 + $0x160] sm:$0xff]  ;;  %v3793_v41 = vld [vmem:[#allocation22 + $0x158] sm:$0xff] }
0x15a4   : > { %v3337_v47 = vmul.f32 %v3336_v42, %v3333_v44  ;;  %v3808_v42 = vld [vmem:[#allocation22 + $0x1d0] sm:$0xff] }
0x15a5   : > { %v3792_v44 = vld [vmem:[#allocation22 + $0x150] sm:$0xff] }
0x15a6   : > { %v3339_v48 = vadd.f32 %v3338_v46, %v3337_v47  ;;  %v3807_v46 = vld [vmem:[#allocation22 + $0x1c8] sm:$0xff] }
0x15a7   : > { %v3791_v47 = vld [vmem:[#allocation22 + $0x148] sm:$0xff] }
0x15a8   : > { %v3340_v49 = vmax.f32 %v3339_v48, 0.0  ;;  %v3806_v48 = vld [vmem:[#allocation22 + $0x1c0] sm:$0xff] }
0x15aa   : > { %8026 = vmatprep.subr.mxu1 %v3340_v49 }
0x15ab   : > { %8027 = vmatpush3.msra.mxu1 %v3340_v49  ;;  %v3790_v49 = vld [vmem:[#allocation22 + $0x140] sm:$0xff] }
0x15ac   : > { %8029 = vmatmul.mubr.msk.f32.vlgmr.msra.gmra.mxu1 %vm1100_vm2, %v3343_v50  ;;  %7510 = vmatprep.subr.mxu1 %v3474_v51  ;;  %v3805_v50 = vld [vmem:[#allocation22 + $0x1b8] sm:$0xff] }
0x15ad   : > { %8031 = vmatprep.mubr.msk.f32.mxu1 %vm1100_vm2, %v3344_v43  ;;  %7511 = vmatpush3.msra.mxu1 %v3458_v45  ;;  %v3789_v51 = vld [vmem:[#allocation22 + $0x138] sm:$0xff]  ;;  %v3804_v43 = vld [vmem:[#allocation22 + $0x1b0] sm:$0xff] }
0x15ae   : > { %7512 = vmatprep.subr.mxu1 %v3473_v53  ;;  %v3788_v45 = vld [vmem:[#allocation22 + $0x130] sm:$0xff]  ;;  %v3803_v53 = vld [vmem:[#allocation22 + $0x1a8] sm:$0xff] }
0x15af   : > { %7513 = vmatpush3.msra.mxu1 %v3457_v54  ;;  %v3787_v54 = vld [vmem:[#allocation22 + $0x128] sm:$0xff] }
0x15b0   : > { %8032 = vmatmul.mubr.msk.f32.gmra.mxu1 %vm1100_vm2, %v3345_v55  ;;  %7514 = vmatprep.subr.mxu1 %v3472_v56  ;;  %v3802_v55 = vld [vmem:[#allocation22 + $0x1a0] sm:$0xff] }
0x15b1   : > { %7515 = vmatpush3.msra.mxu1 %v3456_v57  ;;  %v3786_v56 = vld [vmem:[#allocation22 + $0x120] sm:$0xff] }
0x15b2   : > { %7516 = vmatprep.subr.mxu1 %v3471_v58 }
0x15b3   : > { %7517 = vmatpush3.msra.mxu1 %v3455_v59 }
0x15b4   : > { %7518 = vmatprep.subr.mxu1 %v3470_v60  ;;  %v3650_v60 = vpop.permute.xlu0 %3649 }
0x15b5   : > { %7519 = vmatpush3.msra.mxu1 %v3454_v61  ;;  %v3507_v61 = vld [vmem:[#allocation6 + $0x12] ss:$0 sm:$0xff] }
0x15b6   : > { %7520 = vmatprep.subr.mxu1 %v3469_v62 }
0x15b7   : > { %7521 = vmatpush3.msra.mxu1 %v3453_v63 }
0x15b8   : > { %7522 = vmatprep.subr.mxu1 %v3468_v0  ;;  %v3652_v0 = vsel %vm1360_vm4, 0.0, %v3650_v60  ;;  %v4116_v60 = vld [vmem:[#allocation24 + $0x1f0] sm:$0xff] }
0x15b9   : > { %7523 = vmatpush3.msra.mxu1 %v3452_v1 }
0x15ba   : > { %7524 = vmatprep.subr.mxu1 %v3467_v2 }
0x15bb   : > { %7525 = vmatpush3.msra.mxu1 %v3451_v3 }
0x15bc   : > { %7526 = vmatprep.subr.mxu1 %v3466_v4  ;;  %v3653_v4 = vsel %vm1366_vm6, %v3652_v0, 0.0  ;;  %v4114_v0 = vld [vmem:[#allocation24 + $0x1e0] sm:$0xff] }
0x15bd   : > { %7527 = vmatpush3.msra.mxu1 %v3450_v5  ;;  %v3655_v5 = vld [vmem:[#allocation4 + $0x24] ss:$0 sm:$0xff] }
0x15be   : > { %7528 = vmatprep.subr.mxu1 %v3465_v6 }
0x15bf   : > { %7529 = vmatpush3.msra.mxu1 %v3449_v7  ;;  %v3657_v7 = vld [vmem:[#allocation4 + $0x25] ss:$0 sm:$0xff] }
0x15c0   : > { %7530 = vmatprep.subr.mxu1 %v3464_v8 }
0x15c1   : > { %7531 = vmatpush3.msra.mxu1 %v3448_v9 }
0x15c2   : > { %7532 = vmatprep.subr.mxu1 %v3463_v10 }
0x15c3   : > { %7533 = vmatpush3.msra.mxu1 %v3447_v11  ;;  %v3662_v11 = vld [vmem:[#allocation2 + $0x308] sm:$0xff] }
0x15c4   : > { %7534 = vmatprep.subr.mxu1 %v3462_v12  ;;  %v3781_v12 = vld [vmem:[#allocation22 + $0xf8] sm:$0xff] }
0x15c5   : > { %7535 = vmatpush3.msra.mxu1 %v3446_v13  ;;  %v3765_v13 = vld [vmem:[#allocation22 + $0x78] sm:$0xff] }
0x15c6   : > { %7536 = vmatprep.subr.mxu1 %v3461_v14  ;;  %v3780_v14 = vld [vmem:[#allocation22 + $0xf0] sm:$0xff] }
0x15c7   : > { %7537 = vmatpush3.msra.mxu1 %v3445_v15  ;;  %v3764_v15 = vld [vmem:[#allocation22 + $0x70] sm:$0xff] }
0x15c8   : > { %7538 = vmatprep.subr.mxu1 %v3460_v16  ;;  %v3779_v16 = vld [vmem:[#allocation22 + $0xe8] sm:$0xff] }
0x15c9   : > { %7539 = vmatpush3.msra.mxu1 %v3444_v19  ;;  %v3762_v19 = vld [vmem:[#allocation22 + $0x60] sm:$0xff] }
0x15ca   : > { %7540 = vmatprep.subr.mxu1 %v3459_v20  ;;  %v3777_v20 = vld [vmem:[#allocation22 + $0xd8] sm:$0xff] }
0x15cb   : > { %7541 = vmatpush3.msra.mxu1 %v3443_v23  ;;  %v3760_v23 = vld [vmem:[#allocation22 + $0x50] sm:$0xff] }
0x166c   : > { %v8030_v27 = vpop.f32.mrf.mxu1 }
0x166d   : > { %3572 = vmatprep.mubr.f32.mxu1 %v8030_v27  ;;  %v3758_v27 = vld [vmem:[#allocation22 + $0x40] sm:$0xff] }
0x166e   : > { %v3424_v28 = vpop.f32.mrf.mxu1 }
0x166f   : > { %3573 = vmatmul.mubr.f32.vlgmr.msra.gmra.mxu1 %v3424_v28  ;;  %v3773_v28 = vld [vmem:[#allocation22 + $0xb8] sm:$0xff] }
0x1670   : > { %v8033_v29 = vpop.f32.mrf.mxu1  ;;  %8036 = vmatprep.mubr.msk.f32.mxu1 %vm1100_vm2, %v3661_v31  ;;  %v3756_v31 = vld [vmem:[#allocation22 + $0x30] sm:$0xff] }
0x1671   : > { %3642 = vmatprep.mubr.f32.mxu0 %v8033_v29  ;;  %v3757_v29 = vld [vmem:[#allocation22 + $0x38] sm:$0xff] }
0x1672   : > { %v3434_v30 = vpop.f32.mrf.mxu1 }
0x1673   : > { %3643 = vmatmul.mubr.f32.vlgmr.msra.gmra.mxu0 %v3434_v30  ;;  %v3772_v30 = vld [vmem:[#allocation22 + $0xb0] sm:$0xff] }
0x1674   : > { %7619 = vmatpush3.msra.mxu0 %v3797_v33  ;;  %v3755_v33 = vld [vmem:[#allocation22 + $0x28] sm:$0xff] }
0x1675   : > { %7620 = vmatprep.subr.mxu0 %v3812_v34  ;;  %v3770_v34 = vld [vmem:[#allocation22 + $0xa0] sm:$0xff] }
0x1676   : > { %7621 = vmatpush3.msra.mxu0 %v3796_v37  ;;  %v3754_v37 = vld [vmem:[#allocation22 + $0x20] sm:$0xff] }
0x1677   : > { %7622 = vmatprep.subr.mxu0 %v3811_v35  ;;  %v3769_v35 = vld [vmem:[#allocation22 + $0x98] sm:$0xff] }
0x1678   : > { %7623 = vmatpush3.msra.mxu0 %v3795_v36  ;;  %v3753_v36 = vld [vmem:[#allocation22 + $0x18] sm:$0xff] }
0x1679   : > { %7624 = vmatprep.subr.mxu0 %v3810_v38  ;;  %v3801_v38 = vld [vmem:[#allocation22 + $0x198] sm:$0xff] }
0x167a   : > { %7625 = vmatpush3.msra.mxu0 %v3794_v39  ;;  %v3785_v39 = vld [vmem:[#allocation22 + $0x118] sm:$0xff] }
0x167b   : > { %7626 = vmatprep.subr.mxu0 %v3809_v40  ;;  %v3800_v40 = vld [vmem:[#allocation22 + $0x190] sm:$0xff] }
0x167c   : > { %7627 = vmatpush3.msra.mxu0 %v3793_v41  ;;  %v3784_v41 = vld [vmem:[#allocation22 + $0x110] sm:$0xff] }
0x167d   : > { %7628 = vmatprep.subr.mxu0 %v3808_v42  ;;  %v3768_v42 = vld [vmem:[#allocation22 + $0x90] sm:$0xff] }
0x167e   : > { %7629 = vmatpush3.msra.mxu0 %v3792_v44  ;;  %v3799_v44 = vld [vmem:[#allocation22 + $0x188] sm:$0xff] }
0x167f   : > { %7630 = vmatprep.subr.mxu0 %v3807_v46  ;;  %v3752_v46 = vld [vmem:[#allocation22 + $0x10] sm:$0xff] }
0x1680   : > { %7631 = vmatpush3.msra.mxu0 %v3791_v47  ;;  %v3783_v47 = vld [vmem:[#allocation22 + $0x108] sm:$0xff] }
0x1681   : > { %7632 = vmatprep.subr.mxu0 %v3806_v48  ;;  %v3767_v48 = vld [vmem:[#allocation22 + $0x88] sm:$0xff] }
0x1682   : > { %7633 = vmatpush3.msra.mxu0 %v3790_v49  ;;  %v3798_v49 = vld [vmem:[#allocation22 + $0x180] sm:$0xff] }
0x1683   : > { %7634 = vmatprep.subr.mxu0 %v3805_v50  ;;  %v3751_v50 = vld [vmem:[#allocation22 + $0x8] sm:$0xff] }
0x1684   : > { %7635 = vmatpush3.msra.mxu0 %v3789_v51  ;;  %v3766_v51 = vld [vmem:[#allocation22 + $0x80] sm:$0xff] }
0x1685   : > { %7636 = vmatprep.subr.mxu0 %v3804_v43  ;;  %v3750_v43 = vld [vmem:[#allocation22] sm:$0xff] }
0x1686   : > { %7637 = vmatpush3.msra.mxu0 %v3788_v45  ;;  %v3782_v45 = vld [vmem:[#allocation22 + $0x100] sm:$0xff] }
0x1687   : > { %7638 = vmatprep.subr.mxu0 %v3803_v53 }
0x1688   : > { %7639 = vmatpush3.msra.mxu0 %v3787_v54 }
0x1689   : > { %7640 = vmatprep.subr.mxu0 %v3802_v55 }
0x168a   : > { %7641 = vmatpush3.msra.mxu0 %v3786_v56 }
0x168b   : > { %7642 = vmatprep.subr.mxu0 %v3801_v38  ;;  %v4083_v38 = vld [vmem:[#allocation24 + $0xe8] sm:$0xff] }
0x168c   : > { %7643 = vmatpush3.msra.mxu0 %v3785_v39  ;;  %v4067_v39 = vld [vmem:[#allocation24 + $0x68] sm:$0xff] }
0x168d   : > { %7644 = vmatprep.subr.mxu0 %v3800_v40  ;;  %v4082_v40 = vld [vmem:[#allocation24 + $0xe0] sm:$0xff] }
0x168e   : > { %7645 = vmatpush3.msra.mxu0 %v3784_v41  ;;  %v4066_v41 = vld [vmem:[#allocation24 + $0x60] sm:$0xff] }
0x168f   : > { %7646 = vmatprep.subr.mxu0 %v3799_v44  ;;  %v4065_v44 = vld [vmem:[#allocation24 + $0x58] sm:$0xff] }
0x1690   : > { %7647 = vmatpush3.msra.mxu0 %v3783_v47  ;;  %v4064_v47 = vld [vmem:[#allocation24 + $0x50] sm:$0xff] }
0x1691   : > { %7648 = vmatprep.subr.mxu0 %v3798_v49  ;;  %v4063_v49 = vld [vmem:[#allocation24 + $0x48] sm:$0xff] }
0x1692   : > { %7649 = vmatpush3.msra.mxu0 %v3782_v45  ;;  %v4061_v45 = vld [vmem:[#allocation24 + $0x38] sm:$0xff] }
0x172f   : > { %v7542_v57 = vpop.f32.mrf.mxu1 }
0x1731   : > { %v7543_v58 = vpop.f32.mrf.mxu1 }
0x1732   : > { %v7544_v59 = vadd.f32 %v7543_v58, %v7542_v57  ;;  %v3961_v57 = vld [vmem:[#allocation2 + $0x340] sm:$0xff]  ;;  %v4117_v58 = vld [vmem:[#allocation24 + $0x1f8] sm:$0xff] }
0x1733   : > { %v7577_v62 = vpop.f32.mrf.mxu0  ;;  %7691 = vmatprep.subr.mxu0 %v4117_v58  ;;  %v4058_v58 = vld [vmem:[#allocation24 + $0x20] sm:$0xff] }
0x1734   : > { %v3575_v1 = vadd.f32 %v7544_v59, %v3507_v61  ;;  %v4101_v59 = vld [vmem:[#allocation24 + $0x178] sm:$0xff]  ;;  %v4100_v61 = vld [vmem:[#allocation24 + $0x170] sm:$0xff] }
0x1735   : > { %v7578_v63 = vpop.f32.mrf.mxu0 }
0x1736   : > { %v7579_v2 = vadd.f32 %v7578_v63, %v7577_v62  ;;  %v4115_v62 = vld [vmem:[#allocation24 + $0x1e8] sm:$0xff] }
0x1737   : > { %v4099_v63 = vld [vmem:[#allocation24 + $0x168] sm:$0xff] }
0x1738   : > { %v3645_v3 = vadd.f32 %v7579_v2, %v3575_v1  ;;  %v4098_v1 = vld [vmem:[#allocation24 + $0x160] sm:$0xff]  ;;  %v4113_v2 = vld [vmem:[#allocation24 + $0x1d8] sm:$0xff] }
0x173a   : > { %v9488_v6 = vadd.f32 %v3653_v4, %v3645_v3  ;;  %v4097_v3 = vld [vmem:[#allocation24 + $0x158] sm:$0xff]  ;;  %v4112_v4 = vld [vmem:[#allocation24 + $0x1d0] sm:$0xff] }
0x173c   : > { %v3656_v8 = vmul.f32 %v3655_v5, %v9488_v6  ;;  %v4096_v5 = vld [vmem:[#allocation24 + $0x150] sm:$0xff] }
0x173e   : > { %v3658_v9 = vadd.f32 %v3657_v7, %v3656_v8  ;;  %v4111_v7 = vld [vmem:[#allocation24 + $0x1c8] sm:$0xff] }
0x173f   : > { %v4095_v8 = vld [vmem:[#allocation24 + $0x148] sm:$0xff] }
0x1740   : > { %v3659_v10 = vmax.f32 %v3658_v9, 0.0  ;;  %v4110_v9 = vld [vmem:[#allocation24 + $0x1c0] sm:$0xff] }
0x1742   : > { %8034 = vmatprep.subr.mxu1 %v3659_v10 }
0x1743   : > { %8035 = vmatpush3.msra.mxu1 %v3659_v10  ;;  %v4094_v10 = vld [vmem:[#allocation24 + $0x140] sm:$0xff] }
0x1744   : > { %8037 = vmatmul.mubr.msk.f32.vlgmr.msra.gmra.mxu1 %vm1100_vm2, %v3662_v11  ;;  %7583 = vmatprep.subr.mxu1 %v3781_v12  ;;  %v4109_v11 = vld [vmem:[#allocation24 + $0x1b8] sm:$0xff] }
0x1745   : > { %7584 = vmatpush3.msra.mxu1 %v3765_v13  ;;  %v4093_v12 = vld [vmem:[#allocation24 + $0x138] sm:$0xff]  ;;  %v4108_v13 = vld [vmem:[#allocation24 + $0x1b0] sm:$0xff] }
0x1746   : > { %7585 = vmatprep.subr.mxu1 %v3780_v14  ;;  %v4092_v14 = vld [vmem:[#allocation24 + $0x130] sm:$0xff] }
0x1747   : > { %7586 = vmatpush3.msra.mxu1 %v3764_v15  ;;  %v4107_v15 = vld [vmem:[#allocation24 + $0x1a8] sm:$0xff] }
0x1748   : > { %7587 = vmatprep.subr.mxu1 %v3779_v16  ;;  %v4091_v16 = vld [vmem:[#allocation24 + $0x128] sm:$0xff] }
0x1749   : > { %7588 = vmatpush3.msra.mxu1 %v3763_v17  ;;  %v4106_v17 = vld [vmem:[#allocation24 + $0x1a0] sm:$0xff] }
0x174a   : > { %7589 = vmatprep.subr.mxu1 %v3778_v18  ;;  %v4090_v18 = vld [vmem:[#allocation24 + $0x120] sm:$0xff] }
0x174b   : > { %7590 = vmatpush3.msra.mxu1 %v3762_v19 }
0x174c   : > { %7591 = vmatprep.subr.mxu1 %v3777_v20 }
0x174d   : > { %7592 = vmatpush3.msra.mxu1 %v3761_v21  ;;  %v3814_v21 = vld [vmem:[#allocation6 + $0x13] ss:$0 sm:$0xff] }
0x174e   : > { %7593 = vmatprep.subr.mxu1 %v3776_v22 }
0x174f   : > { %7594 = vmatpush3.msra.mxu1 %v3760_v23 }
0x1750   : > { %7595 = vmatprep.subr.mxu1 %v3775_v24 }
0x1751   : > { %7596 = vmatpush3.msra.mxu1 %v3759_v25 }
0x1752   : > { %7597 = vmatprep.subr.mxu1 %v3774_v26 }
0x1753   : > { %7598 = vmatpush3.msra.mxu1 %v3758_v27  ;;  %v3955_v27 = vld [vmem:[#allocation4 + $0x26] ss:$0 sm:$0xff] }
0x1754   : > { %7599 = vmatprep.subr.mxu1 %v3773_v28 }
0x1755   : > { %7600 = vmatpush3.msra.mxu1 %v3757_v29  ;;  %v3957_v29 = vld [vmem:[#allocation4 + $0x27] ss:$0 sm:$0xff] }
0x1756   : > { %7601 = vmatprep.subr.mxu1 %v3772_v30 }
0x1757   : > { %7602 = vmatpush3.msra.mxu1 %v3756_v31 }
0x1758   : > { %7603 = vmatprep.subr.mxu1 %v3771_v32 }
0x1759   : > { %7604 = vmatpush3.msra.mxu1 %v3755_v33  ;;  %v3962_v33 = vld [vmem:[#allocation2 + $0x348] sm:$0xff] }
0x175a   : > { %7605 = vmatprep.subr.mxu1 %v3770_v34  ;;  %v4085_v34 = vld [vmem:[#allocation24 + $0xf8] sm:$0xff] }
0x175b   : > { %7606 = vmatpush3.msra.mxu1 %v3754_v37  ;;  %v4069_v37 = vld [vmem:[#allocation24 + $0x78] sm:$0xff] }
0x175c   : > { %7607 = vmatprep.subr.mxu1 %v3769_v35  ;;  %v4084_v35 = vld [vmem:[#allocation24 + $0xf0] sm:$0xff] }
0x175d   : > { %7608 = vmatpush3.msra.mxu1 %v3753_v36  ;;  %v4068_v36 = vld [vmem:[#allocation24 + $0x70] sm:$0xff] }
0x175e   : > { %7609 = vmatprep.subr.mxu1 %v3768_v42  ;;  %v4081_v42 = vld [vmem:[#allocation24 + $0xd8] sm:$0xff] }
0x175f   : > { %7610 = vmatpush3.msra.mxu1 %v3752_v46  ;;  %v4080_v46 = vld [vmem:[#allocation24 + $0xd0] sm:$0xff] }
0x1760   : > { %7611 = vmatprep.subr.mxu1 %v3767_v48  ;;  %v4079_v48 = vld [vmem:[#allocation24 + $0xc8] sm:$0xff] }
0x1761   : > { %7612 = vmatpush3.msra.mxu1 %v3751_v50  ;;  %v4078_v50 = vld [vmem:[#allocation24 + $0xc0] sm:$0xff] }
0x1762   : > { %7613 = vmatprep.subr.mxu1 %v3766_v51  ;;  %v4062_v51 = vld [vmem:[#allocation24 + $0x40] sm:$0xff] }
0x1763   : > { %7614 = vmatpush3.msra.mxu1 %v3750_v43  ;;  %v4077_v43 = vld [vmem:[#allocation24 + $0xb8] sm:$0xff] }
0x1804   : > { %v8038_v53 = vpop.f32.mrf.mxu1 }
0x1805   : > { %v3748_v54 = vrot.slane %v8038_v53, 4 }
0x1806   : > { %v3735_v55 = vpop.f32.mrf.mxu1 }
0x1807   : > { %v3745_v56 = vrot.slane %v3735_v55, 4  ;;  %3949 = vmatprep.mubr.f32.mxu0 %v3748_v54  ;;  %v4060_v54 = vld [vmem:[#allocation24 + $0x30] sm:$0xff] }
0x1808   : > { %3950 = vmatmul.mubr.f32.vlgmr.msra.gmra.mxu0 %v8038_v53  ;;  %v4076_v53 = vld [vmem:[#allocation24 + $0xb0] sm:$0xff] }
0x1809   : > { %3879 = vmatprep.mubr.f32.mxu1 %v3745_v56  ;;  %7692 = vmatpush3.msra.mxu0 %v4101_v59  ;;  %v4059_v56 = vld [vmem:[#allocation24 + $0x28] sm:$0xff]  ;;  %v4073_v59 = vld [vmem:[#allocation24 + $0x98] sm:$0xff] }
0x180a   : > { %3880 = vmatmul.mubr.f32.vlgmr.msra.gmra.mxu1 %v3735_v55  ;;  %7693 = vmatprep.subr.mxu0 %v4116_v60  ;;  %v4075_v55 = vld [vmem:[#allocation24 + $0xa8] sm:$0xff]  ;;  %v4057_v60 = vld [vmem:[#allocation24 + $0x18] sm:$0xff] }
0x180b   : > { %8041 = vmatprep.mubr.msk.f32.mxu1 %vm1097_vm1, %v3961_v57  ;;  %7694 = vmatpush3.msra.mxu0 %v4100_v61  ;;  %v4074_v57 = vld [vmem:[#allocation24 + $0xa0] sm:$0xff]  ;;  %v4072_v61 = vld [vmem:[#allocation24 + $0x90] sm:$0xff] }
0x180c   : > { %7695 = vmatprep.subr.mxu0 %v4115_v62  ;;  %v4105_v62 = vld [vmem:[#allocation24 + $0x198] sm:$0xff] }
0x180d   : > { %7696 = vmatpush3.msra.mxu0 %v4099_v63  ;;  %v4089_v63 = vld [vmem:[#allocation24 + $0x118] sm:$0xff] }
0x180e   : > { %7697 = vmatprep.subr.mxu0 %v4114_v0  ;;  %v4104_v0 = vld [vmem:[#allocation24 + $0x190] sm:$0xff] }
0x180f   : > { %7698 = vmatpush3.msra.mxu0 %v4098_v1  ;;  %v4088_v1 = vld [vmem:[#allocation24 + $0x110] sm:$0xff] }
0x1810   : > { %7699 = vmatprep.subr.mxu0 %v4113_v2  ;;  %v4056_v2 = vld [vmem:[#allocation24 + $0x10] sm:$0xff] }
0x1811   : > { %7700 = vmatpush3.msra.mxu0 %v4097_v3  ;;  %v4103_v3 = vld [vmem:[#allocation24 + $0x188] sm:$0xff] }
0x1812   : > { %7701 = vmatprep.subr.mxu0 %v4112_v4  ;;  %v4071_v4 = vld [vmem:[#allocation24 + $0x88] sm:$0xff] }
0x1813   : > { %7702 = vmatpush3.msra.mxu0 %v4096_v5  ;;  %v4087_v5 = vld [vmem:[#allocation24 + $0x108] sm:$0xff] }
0x1814   : > { %7703 = vmatprep.subr.mxu0 %v4111_v7  ;;  %v4055_v7 = vld [vmem:[#allocation24 + $0x8] sm:$0xff] }
0x1815   : > { %7704 = vmatpush3.msra.mxu0 %v4095_v8  ;;  %v4102_v8 = vld [vmem:[#allocation24 + $0x180] sm:$0xff] }
0x1816   : > { %7705 = vmatprep.subr.mxu0 %v4110_v9  ;;  %v4070_v9 = vld [vmem:[#allocation24 + $0x80] sm:$0xff] }
0x1817   : > { %7706 = vmatpush3.msra.mxu0 %v4094_v10  ;;  %v4054_v10 = vld [vmem:[#allocation24] sm:$0xff] }
0x1818   : > { %7707 = vmatprep.subr.mxu0 %v4109_v11  ;;  %v4086_v11 = vld [vmem:[#allocation24 + $0x100] sm:$0xff] }
0x1819   : > { %7708 = vmatpush3.msra.mxu0 %v4093_v12 }
0x181a   : > { %7709 = vmatprep.subr.mxu0 %v4108_v13 }
0x181b   : > { %7710 = vmatpush3.msra.mxu0 %v4092_v14 }
0x181c   : > { %7711 = vmatprep.subr.mxu0 %v4107_v15 }
0x181d   : > { %7712 = vmatpush3.msra.mxu0 %v4091_v16  ;;  %v4260_v16 = vld [vmem:[#allocation2 + $0x380] sm:$0xff] }
0x181e   : > { %7713 = vmatprep.subr.mxu0 %v4106_v17  ;;  %v4345_v17 = vld [vmem:[#allocation2 + $0x3c0] sm:$0xff] }
0x181f   : > { %7714 = vmatpush3.msra.mxu0 %v4090_v18 }
0x1820   : > { %7715 = vmatprep.subr.mxu0 %v4105_v62  ;;  %v4447_v62 = vld [vmem:[#allocation25 + $0x50] sm:$0xff] }
0x1821   : > { %7716 = vmatpush3.msra.mxu0 %v4089_v63  ;;  %v4529_v63 = vld [vmem:[#allocation25 + $0x2e0] sm:$0xff] }
0x1822   : > { %7717 = vmatprep.subr.mxu0 %v4104_v0  ;;  %v4446_v0 = vld [vmem:[#allocation25 + $0x48] sm:$0xff] }
0x1823   : > { %7718 = vmatpush3.msra.mxu0 %v4088_v1  ;;  %v4528_v1 = vld [vmem:[#allocation25 + $0x2d8] sm:$0xff] }
0x1824   : > { %7719 = vmatprep.subr.mxu0 %v4103_v3  ;;  %v4527_v3 = vld [vmem:[#allocation25 + $0x2d0] sm:$0xff] }
0x1825   : > { %7720 = vmatpush3.msra.mxu0 %v4087_v5  ;;  %v4526_v5 = vld [vmem:[#allocation25 + $0x2c8] sm:$0xff] }
0x1826   : > { %7721 = vmatprep.subr.mxu0 %v4102_v8  ;;  %v4525_v8 = vld [vmem:[#allocation25 + $0x2c0] sm:$0xff] }
0x1827   : > { %7722 = vmatpush3.msra.mxu0 %v4086_v11  ;;  %v4441_v11 = vld [vmem:[#allocation25 + $0x20] sm:$0xff] }
0x18c8   : > { %v7650_v19 = vpop.f32.mrf.mxu0 }
0x18ca   : > { %v7615_v20 = vpop.f32.mrf.mxu1  ;;  %v7651_v23 = vpop.f32.mrf.mxu0 }
0x18cb   : > { %v7652_v26 = vadd.f32 %v7651_v23, %v7650_v19  ;;  %v4468_v19 = vld [vmem:[#allocation25 + $0xf8] sm:$0xff] }
0x18cc   : > { %v7616_v22 = vpop.f32.mrf.mxu1  ;;  %4578 = vmatprep.subr.mxu0 %v4468_v19  ;;  %v4437_v19 = vld [vmem:[#allocation25] sm:$0xff] }
0x18cd   : > { %v7617_v24 = vadd.f32 %v7616_v22, %v7615_v20  ;;  %v4467_v20 = vld [vmem:[#allocation25 + $0xf0] sm:$0xff]  ;;  %v4465_v22 = vld [vmem:[#allocation25 + $0xe0] sm:$0xff] }
0x18cf   : > { %v3882_v25 = vadd.f32 %v7617_v24, %v3814_v21  ;;  %v4466_v21 = vld [vmem:[#allocation25 + $0xe8] sm:$0xff]  ;;  %v4464_v24 = vld [vmem:[#allocation25 + $0xd8] sm:$0xff] }
0x18d1   : > { %v3952_v28 = vadd.f32 %v7652_v26, %v3882_v25  ;;  %v4118_v25 = vld [vmem:[#allocation6 + $0x14] ss:$0 sm:$0xff] }
0x18d3   : > { %v3956_v30 = vmul.f32 %v3955_v27, %v3952_v28  ;;  %v4462_v28 = vld [vmem:[#allocation25 + $0xc8] sm:$0xff] }
0x18d5   : > { %v3958_v31 = vadd.f32 %v3957_v29, %v3956_v30  ;;  %v4461_v30 = vld [vmem:[#allocation25 + $0xc0] sm:$0xff] }
0x18d7   : > { %v3959_v32 = vmax.f32 %v3958_v31, 0.0 }
0x18d9   : > { %8039 = vmatprep.subr.msk.mxu1 %vm3969_vm9, %v3959_v32 }
0x18da   : > { %8040 = vmatpush3.msk.msra.mxu1 %vm3969_vm9, %v3959_v32  ;;  %v4460_v32 = vld [vmem:[#allocation25 + $0xb8] sm:$0xff] }
0x18db   : > { %8042 = vmatmul.mubr.msk.f32.vlgmr.msra.gmra.mxu1 %vm1097_vm1, %v3962_v33  ;;  %7656 = vmatprep.subr.mxu1 %v4085_v34 }
0x18dc   : > { %7657 = vmatpush3.msra.mxu1 %v4069_v37 }
0x18dd   : > { %7658 = vmatprep.subr.mxu1 %v4084_v35  ;;  %v4459_v35 = vld [vmem:[#allocation25 + $0xb0] sm:$0xff] }
0x18de   : > { %7659 = vmatpush3.msra.mxu1 %v4068_v36 }
0x18df   : > { %7660 = vmatprep.subr.mxu1 %v4083_v38  ;;  %v4458_v38 = vld [vmem:[#allocation25 + $0xa8] sm:$0xff] }
0x18e0   : > { %7661 = vmatpush3.msra.mxu1 %v4067_v39 }
0x18e1   : > { %7662 = vmatprep.subr.mxu1 %v4082_v40 }
0x18e2   : > { %7663 = vmatpush3.msra.mxu1 %v4066_v41  ;;  %v4457_v41 = vld [vmem:[#allocation25 + $0xa0] sm:$0xff] }
0x18e3   : > { %7664 = vmatprep.subr.mxu1 %v4081_v42  ;;  %v4339_v42 = vld [vmem:[#allocation4 + $0x30] ss:$0 sm:$0xff] }
0x18e4   : > { %7665 = vmatpush3.msra.mxu1 %v4065_v44  ;;  %v4456_v44 = vld [vmem:[#allocation25 + $0x98] sm:$0xff] }
0x18e5   : > { %7666 = vmatprep.subr.mxu1 %v4080_v46 }
0x18e6   : > { %7667 = vmatpush3.msra.mxu1 %v4064_v47  ;;  %v4455_v47 = vld [vmem:[#allocation25 + $0x90] sm:$0xff] }
0x18e7   : > { %7668 = vmatprep.subr.mxu1 %v4079_v48  ;;  %v4341_v48 = vld [vmem:[#allocation4 + $0x31] ss:$0 sm:$0xff] }
0x18e8   : > { %7669 = vmatpush3.msra.mxu1 %v4063_v49  ;;  %v4454_v49 = vld [vmem:[#allocation25 + $0x88] sm:$0xff] }
0x18e9   : > { %7670 = vmatprep.subr.mxu1 %v4078_v50 }
0x18ea   : > { %7671 = vmatpush3.msra.mxu1 %v4062_v51  ;;  %v4453_v51 = vld [vmem:[#allocation25 + $0x80] sm:$0xff] }
0x18eb   : > { %7672 = vmatprep.subr.mxu1 %v4077_v43  ;;  %v4452_v43 = vld [vmem:[#allocation25 + $0x78] sm:$0xff] }
0x18ec   : > { %7673 = vmatpush3.msra.mxu1 %v4061_v45 }
0x18ed   : > { %7674 = vmatprep.subr.mxu1 %v4076_v53  ;;  %v4451_v53 = vld [vmem:[#allocation25 + $0x70] sm:$0xff] }
0x18ee   : > { %7675 = vmatpush3.msra.mxu1 %v4060_v54  ;;  %v4450_v54 = vld [vmem:[#allocation25 + $0x68] sm:$0xff] }
0x18ef   : > { %7676 = vmatprep.subr.mxu1 %v4075_v55 }
0x18f0   : > { %7677 = vmatpush3.msra.mxu1 %v4059_v56  ;;  %v4449_v56 = vld [vmem:[#allocation25 + $0x60] sm:$0xff] }
0x18f1   : > { %7678 = vmatprep.subr.mxu1 %v4074_v57  ;;  %v4346_v57 = vld [vmem:[#allocation2 + $0x3c8] sm:$0xff] }
0x18f2   : > { %7679 = vmatpush3.msra.mxu1 %v4058_v58  ;;  %v4532_v58 = vld [vmem:[#allocation25 + $0x2f8] sm:$0xff] }
0x18f3   : > { %7680 = vmatprep.subr.mxu1 %v4073_v59  ;;  %v4531_v59 = vld [vmem:[#allocation25 + $0x2f0] sm:$0xff] }
0x18f4   : > { %7681 = vmatpush3.msra.mxu1 %v4057_v60  ;;  %v4448_v60 = vld [vmem:[#allocation25 + $0x58] sm:$0xff] }
0x18f5   : > { %7682 = vmatprep.subr.mxu1 %v4072_v61  ;;  %v4530_v61 = vld [vmem:[#allocation25 + $0x2e8] sm:$0xff] }
0x18f6   : > { %7683 = vmatpush3.msra.mxu1 %v4056_v2  ;;  %v4445_v2 = vld [vmem:[#allocation25 + $0x40] sm:$0xff] }
0x18f7   : > { %7684 = vmatprep.subr.mxu1 %v4071_v4  ;;  %v4444_v4 = vld [vmem:[#allocation25 + $0x38] sm:$0xff] }
0x18f8   : > { %7685 = vmatpush3.msra.mxu1 %v4055_v7  ;;  %v4443_v7 = vld [vmem:[#allocation25 + $0x30] sm:$0xff] }
0x18f9   : > { %7686 = vmatprep.subr.mxu1 %v4070_v9  ;;  %v4442_v9 = vld [vmem:[#allocation25 + $0x28] sm:$0xff] }
0x18fa   : > { %7687 = vmatpush3.msra.mxu1 %v4054_v10  ;;  %v4524_v10 = vld [vmem:[#allocation25 + $0x2b8] sm:$0xff] }
0x18fb   : > { %8044 = vmatprep.subr.mxu1 %v8887_v52 }
0x199b   : > { %v8043_v12 = vpop.f32.mrf.mxu1 }
0x199c   : > { %v4052_v13 = vrot.slane %v8043_v12, 4 }
0x199d   : > { %v4039_v14 = vpop.f32.mrf.mxu1 }
0x199e   : > { %v4049_v15 = vrot.slane %v4039_v14, 4  ;;  %4253 = vmatprep.mubr.f32.mxu0 %v4052_v13  ;;  %v4440_v13 = vld [vmem:[#allocation25 + $0x18] sm:$0xff] }
0x199f   : > { %4254 = vmatmul.mubr.f32.vlgmr.msra.gmra.mxu0 %v8043_v12  ;;  %v4523_v12 = vld [vmem:[#allocation25 + $0x2b0] sm:$0xff] }
0x19a0   : > { %4183 = vmatprep.mubr.f32.mxu1 %v4049_v15  ;;  %4579 = vmatpush1.msra.mxu0 %v4467_v20  ;;  %v4439_v15 = vld [vmem:[#allocation25 + $0x10] sm:$0xff] }
0x19a1   : > { %4184 = vmatmul.mubr.f32.vlgmr.msra.gmra.mxu1 %v4039_v14  ;;  %4580 = vmatprep.subr.mxu0 %v4466_v21  ;;  %v4522_v14 = vld [vmem:[#allocation25 + $0x2a8] sm:$0xff]  ;;  %v4519_v20 = vld [vmem:[#allocation25 + $0x290] sm:$0xff]  ;;  %v4500_v21 = vld [vmem:[#allocation25 + $0x1f8] sm:$0xff] }
0x19a2   : > { %8045 = vmatpush3.msra.mxu1 %v9488_v6  ;;  %8046 = vmatprep.mubr.msk.f32.mxu1 %vm8888_vm7, %v8887_v52  ;;  %v4463_v6 = vld [vmem:[#allocation25 + $0xd0] sm:$0xff] }
0x19a3   : > { %4581 = vmatpush1.msra.mxu0 %v4465_v22  ;;  %v4518_v22 = vld [vmem:[#allocation25 + $0x288] sm:$0xff] }
0x19a4   : > { %4582 = vmatprep.subr.mxu0 %v4464_v24  ;;  %v4517_v24 = vld [vmem:[#allocation25 + $0x280] sm:$0xff] }
0x19a5   : > { %8047 = vmatmul.mubr.msk.f32.vlgmr.msra.gmra.mxu1 %vm1100_vm2, %v4260_v16  ;;  %4583 = vmatpush1.msra.mxu0 %v4463_v6  ;;  %v4521_v16 = vld [vmem:[#allocation25 + $0x2a0] sm:$0xff]  ;;  %v4498_v6 = vld [vmem:[#allocation25 + $0x1e8] sm:$0xff] }
0x19a6   : > { %8051 = vmatprep.mubr.msk.f32.mxu1 %vm1097_vm1, %v4345_v17  ;;  %4584 = vmatprep.subr.mxu0 %v4462_v28  ;;  %v4438_v17 = vld [vmem:[#allocation25 + $0x8] sm:$0xff]  ;;  %v4496_v28 = vld [vmem:[#allocation25 + $0x1d8] sm:$0xff] }
0x19a7   : > { %4585 = vmatpush1.msra.mxu0 %v4461_v30  ;;  %v4495_v30 = vld [vmem:[#allocation25 + $0x1d0] sm:$0xff] }
0x19a8   : > { %4586 = vmatprep.subr.mxu0 %v4460_v32  ;;  %v4494_v32 = vld [vmem:[#allocation25 + $0x1c8] sm:$0xff] }
0x19a9   : > { %4587 = vmatpush1.msra.mxu0 %v4459_v35  ;;  %v4492_v35 = vld [vmem:[#allocation25 + $0x1b8] sm:$0xff] }
0x19aa   : > { %4588 = vmatprep.subr.mxu0 %v4458_v38  ;;  %v4491_v38 = vld [vmem:[#allocation25 + $0x1b0] sm:$0xff] }
0x19ab   : > { %4589 = vmatpush1.msra.mxu0 %v4457_v41  ;;  %v4508_v41 = vld [vmem:[#allocation25 + $0x238] sm:$0xff] }
0x19ac   : > { %4590 = vmatprep.subr.mxu0 %v4456_v44  ;;  %v4507_v44 = vld [vmem:[#allocation25 + $0x230] sm:$0xff] }
0x19ad   : > { %4591 = vmatpush1.msra.mxu0 %v4455_v47  ;;  %v4506_v47 = vld [vmem:[#allocation25 + $0x228] sm:$0xff] }
0x19ae   : > { %4592 = vmatprep.subr.mxu0 %v4454_v49  ;;  %v4505_v49 = vld [vmem:[#allocation25 + $0x220] sm:$0xff] }
0x19af   : > { %4593 = vmatpush1.msra.mxu0 %v4453_v51  ;;  %v4504_v51 = vld [vmem:[#allocation25 + $0x218] sm:$0xff] }
0x19b0   : > { %4594 = vmatprep.subr.mxu0 %v4452_v43  ;;  %v4485_v43 = vld [vmem:[#allocation25 + $0x180] sm:$0xff] }
0x19b1   : > { %4595 = vmatpush1.msra.mxu0 %v4451_v53  ;;  %v4484_v53 = vld [vmem:[#allocation25 + $0x178] sm:$0xff] }
0x19b2   : > { %4596 = vmatprep.subr.mxu0 %v4450_v54  ;;  %v4502_v54 = vld [vmem:[#allocation25 + $0x208] sm:$0xff] }
0x19b3   : > { %4597 = vmatpush1.msra.mxu0 %v4449_v56  ;;  %v4501_v56 = vld [vmem:[#allocation25 + $0x200] sm:$0xff] }
0x19b4   : > { %4598 = vmatprep.subr.mxu0 %v4448_v60  ;;  %v4563_v60 = vld [vmem:[#allocation25 + $0x3f0] sm:$0xff] }
0x19b5   : > { %4599 = vmatpush1.msra.mxu0 %v4447_v62  ;;  %v4562_v62 = vld [vmem:[#allocation25 + $0x3e8] sm:$0xff] }
0x19b6   : > { %4600 = vmatprep.subr.mxu0 %v4446_v0  ;;  %v4561_v0 = vld [vmem:[#allocation25 + $0x3e0] sm:$0xff] }
0x19b7   : > { %4601 = vmatpush1.msra.mxu0 %v4445_v2  ;;  %v4560_v2 = vld [vmem:[#allocation25 + $0x3d8] sm:$0xff] }
0x19b8   : > { %4602 = vmatprep.subr.mxu0 %v4444_v4  ;;  %v4559_v4 = vld [vmem:[#allocation25 + $0x3d0] sm:$0xff] }
0x19b9   : > { %4603 = vmatpush1.msra.mxu0 %v4443_v7  ;;  %v4558_v7 = vld [vmem:[#allocation25 + $0x3c8] sm:$0xff] }
0x19ba   : > { %4604 = vmatprep.subr.mxu0 %v4442_v9  ;;  %v4557_v9 = vld [vmem:[#allocation25 + $0x3c0] sm:$0xff] }
0x19bb   : > { %4605 = vmatpush1.msra.mxu0 %v4441_v11  ;;  %v4555_v11 = vld [vmem:[#allocation25 + $0x3b0] sm:$0xff] }
0x19bc   : > { %4606 = vmatprep.subr.mxu0 %v4440_v13  ;;  %v4553_v13 = vld [vmem:[#allocation25 + $0x3a0] sm:$0xff] }
0x19bd   : > { %4607 = vmatpush1.msra.mxu0 %v4439_v15  ;;  %v4551_v15 = vld [vmem:[#allocation25 + $0x390] sm:$0xff] }
0x19be   : > { %4608 = vmatprep.subr.mxu0 %v4438_v17  ;;  %v4549_v17 = vld [vmem:[#allocation25 + $0x380] sm:$0xff] }
0x19bf   : > { %4609 = vmatpush1.msra.mxu0 %v4437_v19  ;;  %v4547_v19 = vld [vmem:[#allocation25 + $0x370] sm:$0xff] }
0x19c0   : > { %4610 = vmatprep.subr.mxu0 %v4500_v21  ;;  %v4545_v21 = vld [vmem:[#allocation25 + $0x360] sm:$0xff] }
0x1a5f   : > { %v7723_v18 = vpop.f32.mrf.mxu0 }
0x1a61   : > { %v7688_v23 = vpop.f32.mrf.mxu1  ;;  %v7724_v27 = vpop.f32.mrf.mxu0 }
0x1a62   : > { %v7725_v34 = vadd.f32 %v7724_v27, %v7723_v18  ;;  %v4520_v18 = vld [vmem:[#allocation25 + $0x298] sm:$0xff]  ;;  %v4515_v27 = vld [vmem:[#allocation25 + $0x270] sm:$0xff] }
0x1a63   : > { %v7689_v26 = vpop.f32.mrf.mxu1 }
0x1a64   : > { %v7690_v29 = vadd.f32 %v7689_v26, %v7688_v23  ;;  %v4499_v23 = vld [vmem:[#allocation25 + $0x1f0] sm:$0xff]  ;;  %v4497_v26 = vld [vmem:[#allocation25 + $0x1e0] sm:$0xff] }
0x1a65   : > { %v4330_v31 = vpop.f32.mrf.mxu1  ;;  %4611 = vmatpush2.msra.mxu0 %v4499_v23  ;;  %v4543_v23 = vld [vmem:[#allocation25 + $0x350] sm:$0xff] }
0x1a66   : > { %v4186_v33 = vadd.f32 %v7690_v29, %v4118_v25  ;;  %v4335_v37 = vrot.slane %v4330_v31, 4  ;;  %v4516_v25 = vld [vmem:[#allocation25 + $0x278] sm:$0xff]  ;;  %v4514_v29 = vld [vmem:[#allocation25 + $0x268] sm:$0xff]  ;;  %4612 = vmatprep.subr.mxu0 %v4498_v6  ;;  %v4541_v6 = vld [vmem:[#allocation25 + $0x340] sm:$0xff] }
0x1a67   : > { %v8048_v36 = vpop.f32.mrf.mxu1  ;;  %4613 = vmatpush2.msra.mxu0 %v4497_v26  ;;  %v4539_v26 = vld [vmem:[#allocation25 + $0x330] sm:$0xff] }
0x1a68   : > { %v4256_v39 = vadd.f32 %v7725_v34, %v4186_v33  ;;  %v4337_v40 = vmax.f32 %v4330_v31, %v4335_v37  ;;  %v4513_v31 = vld [vmem:[#allocation25 + $0x260] sm:$0xff]  ;;  %v4512_v33 = vld [vmem:[#allocation25 + $0x258] sm:$0xff]  ;;  %4614 = vmatprep.subr.mxu0 %v4496_v28  ;;  %v4511_v37 = vld [vmem:[#allocation25 + $0x250] sm:$0xff] }
0x1a69   : > { %v4493_v34 = vld [vmem:[#allocation25 + $0x1c0] sm:$0xff]  ;;  %4615 = vmatpush2.msra.mxu0 %v4495_v30  ;;  %v4510_v36 = vld [vmem:[#allocation25 + $0x248] sm:$0xff]  ;;  %v4536_v30 = vld [vmem:[#allocation25 + $0x318] sm:$0xff] }
0x1a6a   : > { %v4338_v46 = vadd.f32 %v4337_v40, %v4256_v39  ;;  %4616 = vmatprep.subr.mxu0 %v4494_v32  ;;  %v4509_v39 = vld [vmem:[#allocation25 + $0x240] sm:$0xff]  ;;  %v4490_v40 = vld [vmem:[#allocation25 + $0x1a8] sm:$0xff]  ;;  %v4535_v32 = vld [vmem:[#allocation25 + $0x310] sm:$0xff] }
0x1a6b   : > { %4617 = vmatpush2.msra.mxu0 %v4493_v34  ;;  %v4537_v28 = vld [vmem:[#allocation25 + $0x320] sm:$0xff]  ;;  %v4534_v34 = vld [vmem:[#allocation25 + $0x308] sm:$0xff] }
0x1a6c   : > { %v4340_v50 = vmul.f32 %v4339_v42, %v4338_v46  ;;  %5410 = vrot.lane.b32.xlu1 %v4338_v46, %s8885_s30  ;;  %4618 = vmatprep.subr.mxu0 %v4492_v35  ;;  %v4489_v42 = vld [vmem:[#allocation25 + $0x1a0] sm:$0xff]  ;;  %v4488_v46 = vld [vmem:[#allocation25 + $0x198] sm:$0xff]  ;;  %v4470_v35 = vld [vmem:[#allocation25 + $0x108] sm:$0xff] }
0x1a6d   : > { %4619 = vmatpush2.msra.mxu0 %v4491_v38  ;;  %v4533_v38 = vld [vmem:[#allocation25 + $0x300] sm:$0xff] }
0x1a6e   : > { %v4342_v45 = vadd.f32 %v4341_v48, %v4340_v50  ;;  %4620 = vmatprep.subr.mxu0 %v4490_v40  ;;  %v4487_v48 = vld [vmem:[#allocation25 + $0x190] sm:$0xff]  ;;  %v4486_v50 = vld [vmem:[#allocation25 + $0x188] sm:$0xff] }
0x1a6f   : > { %4621 = vmatpush2.msra.mxu0 %v4489_v42 }
0x1a70   : > { %v4343_v55 = vmax.f32 %v4342_v45, 0.0  ;;  %4622 = vmatprep.subr.mxu0 %v4488_v46  ;;  %v4503_v45 = vld [vmem:[#allocation25 + $0x210] sm:$0xff] }
0x1a71   : > { %4623 = vmatpush2.msra.mxu0 %v4487_v48  ;;  %v4886_v46 = vld [vmem:[#allocation27 + $0xf0] sm:$0xff]  ;;  %v4884_v48 = vld [vmem:[#allocation27 + $0xe0] sm:$0xff] }
0x1a72   : > { %8049 = vmatprep.subr.msk.mxu1 %vm3969_vm9, %v4343_v55  ;;  %4624 = vmatprep.subr.mxu0 %v4486_v50  ;;  %v4882_v50 = vld [vmem:[#allocation27 + $0xd0] sm:$0xff] }
0x1a73   : > { %8050 = vmatpush3.msk.msra.mxu1 %vm3969_vm9, %v4343_v55  ;;  %v4483_v55 = vld [vmem:[#allocation25 + $0x170] sm:$0xff]  ;;  %4625 = vmatpush2.msra.mxu0 %v4485_v43  ;;  %v4880_v43 = vld [vmem:[#allocation27 + $0xc0] sm:$0xff] }
0x1a74   : > { %8052 = vmatmul.mubr.msk.f32.vlgmr.msra.gmra.mxu1 %vm1097_vm1, %v4346_v57  ;;  %4649 = vmatprep.subr.mxu1 %v4532_v58  ;;  %v4482_v57 = vld [vmem:[#allocation25 + $0x168] sm:$0xff]  ;;  %v4564_v58 = vld [vmem:[#allocation25 + $0x3f8] sm:$0xff] }
0x1a75   : > { %4650 = vmatpush1.msra.mxu1 %v4531_v59  ;;  %4626 = vmatprep.subr.mxu0 %v4484_v53  ;;  %v4481_v59 = vld [vmem:[#allocation25 + $0x160] sm:$0xff]  ;;  %v4878_v53 = vld [vmem:[#allocation27 + $0xb0] sm:$0xff] }
0x1a76   : > { %4651 = vmatprep.subr.mxu1 %v4530_v61  ;;  %4627 = vmatpush2.msra.mxu0 %v4483_v55  ;;  %v4480_v61 = vld [vmem:[#allocation25 + $0x158] sm:$0xff]  ;;  %v4876_v55 = vld [vmem:[#allocation27 + $0xa0] sm:$0xff] }
0x1a77   : > { %4652 = vmatpush1.msra.mxu1 %v4529_v63  ;;  %4628 = vmatprep.subr.mxu0 %v4482_v57  ;;  %v4479_v63 = vld [vmem:[#allocation25 + $0x150] sm:$0xff] }
0x1a78   : > { %4653 = vmatprep.subr.mxu1 %v4528_v1  ;;  %4629 = vmatpush2.msra.mxu0 %v4481_v59  ;;  %v4478_v1 = vld [vmem:[#allocation25 + $0x148] sm:$0xff]  ;;  %v4874_v57 = vld [vmem:[#allocation27 + $0x90] sm:$0xff]  ;;  %v4872_v59 = vld [vmem:[#allocation27 + $0x80] sm:$0xff] }
0x1a79   : > { %4654 = vmatpush1.msra.mxu1 %v4527_v3  ;;  %4630 = vmatprep.subr.mxu0 %v4480_v61  ;;  %v4477_v3 = vld [vmem:[#allocation25 + $0x140] sm:$0xff]  ;;  %v4870_v61 = vld [vmem:[#allocation27 + $0x70] sm:$0xff] }
0x1a7a   : > { %4655 = vmatprep.subr.mxu1 %v4526_v5  ;;  %4631 = vmatpush2.msra.mxu0 %v4479_v63  ;;  %v4476_v5 = vld [vmem:[#allocation25 + $0x138] sm:$0xff]  ;;  %v4868_v63 = vld [vmem:[#allocation27 + $0x60] sm:$0xff] }
0x1a7b   : > { %4656 = vmatpush1.msra.mxu1 %v4525_v8  ;;  %4632 = vmatprep.subr.mxu0 %v4478_v1  ;;  %v4475_v8 = vld [vmem:[#allocation25 + $0x130] sm:$0xff] }
0x1a7c   : > { %4657 = vmatprep.subr.mxu1 %v4524_v10  ;;  %4633 = vmatpush2.msra.mxu0 %v4477_v3  ;;  %v4556_v10 = vld [vmem:[#allocation25 + $0x3b8] sm:$0xff]  ;;  %v4866_v1 = vld [vmem:[#allocation27 + $0x50] sm:$0xff]  ;;  %v4864_v3 = vld [vmem:[#allocation27 + $0x40] sm:$0xff] }
0x1a7d   : > { %4658 = vmatpush1.msra.mxu1 %v4523_v12  ;;  %4634 = vmatprep.subr.mxu0 %v4476_v5  ;;  %v4554_v12 = vld [vmem:[#allocation25 + $0x3a8] sm:$0xff]  ;;  %v4862_v5 = vld [vmem:[#allocation27 + $0x30] sm:$0xff] }
0x1a7e   : > { %4659 = vmatprep.subr.mxu1 %v4522_v14  ;;  %4635 = vmatpush2.msra.mxu0 %v4475_v8  ;;  %v4552_v14 = vld [vmem:[#allocation25 + $0x398] sm:$0xff]  ;;  %v4860_v8 = vld [vmem:[#allocation27 + $0x20] sm:$0xff] }
0x1a7f   : > { %4660 = vmatpush1.msra.mxu1 %v4521_v16  ;;  %v4550_v16 = vld [vmem:[#allocation25 + $0x388] sm:$0xff] }
0x1a80   : > { %4661 = vmatprep.subr.mxu1 %v4520_v18  ;;  %v4548_v18 = vld [vmem:[#allocation25 + $0x378] sm:$0xff] }
0x1a81   : > { %4662 = vmatpush1.msra.mxu1 %v4519_v20  ;;  %v4546_v20 = vld [vmem:[#allocation25 + $0x368] sm:$0xff] }
0x1a82   : > { %4663 = vmatprep.subr.mxu1 %v4518_v22  ;;  %v4544_v22 = vld [vmem:[#allocation25 + $0x358] sm:$0xff] }
0x1a83   : > { %4664 = vmatpush1.msra.mxu1 %v4517_v24  ;;  %v4542_v24 = vld [vmem:[#allocation25 + $0x348] sm:$0xff] }
0x1a84   : > { %4665 = vmatprep.subr.mxu1 %v4516_v25  ;;  %v4540_v25 = vld [vmem:[#allocation25 + $0x338] sm:$0xff] }
0x1a85   : > { %4666 = vmatpush1.msra.mxu1 %v4515_v27  ;;  %v4538_v27 = vld [vmem:[#allocation25 + $0x328] sm:$0xff] }
0x1a86   : > { %4667 = vmatprep.subr.mxu1 %v4514_v29  ;;  %v4474_v29 = vld [vmem:[#allocation25 + $0x128] sm:$0xff] }
0x1a87   : > { %4668 = vmatpush1.msra.mxu1 %v4513_v31  ;;  %4636 = vmatprep.subr.mxu0 %v4474_v29  ;;  %v4473_v31 = vld [vmem:[#allocation25 + $0x120] sm:$0xff]  ;;  %v4902_v29 = vld [vmem:[#allocation27 + $0x170] sm:$0xff] }
0x1a88   : > { %4669 = vmatprep.subr.mxu1 %v4512_v33  ;;  %4637 = vmatpush2.msra.mxu0 %v4473_v31  ;;  %v4472_v33 = vld [vmem:[#allocation25 + $0x118] sm:$0xff]  ;;  %v4900_v31 = vld [vmem:[#allocation27 + $0x160] sm:$0xff] }
0x1a89   : > { %4670 = vmatpush1.msra.mxu1 %v4511_v37  ;;  %4638 = vmatprep.subr.mxu0 %v4472_v33  ;;  %v4471_v37 = vld [vmem:[#allocation25 + $0x110] sm:$0xff] }
0x1a8a   : > { %4671 = vmatprep.subr.mxu1 %v4510_v36  ;;  %v4469_v36 = vld [vmem:[#allocation25 + $0x100] sm:$0xff]  ;;  %4639 = vmatpush2.msra.mxu0 %v4471_v37  ;;  %v4898_v33 = vld [vmem:[#allocation27 + $0x150] sm:$0xff] }
0x1a8b   : > { %4672 = vmatpush1.msra.mxu1 %v4509_v39  ;;  %4640 = vmatprep.subr.mxu0 %v4470_v35  ;;  %v4896_v37 = vld [vmem:[#allocation27 + $0x140] sm:$0xff]  ;;  %v4895_v35 = vld [vmem:[#allocation27 + $0x138] sm:$0xff] }
0x1a8c   : > { %4673 = vmatprep.subr.mxu1 %v4508_v41  ;;  %4641 = vmatpush2.msra.mxu0 %v4469_v36  ;;  %v4894_v36 = vld [vmem:[#allocation27 + $0x130] sm:$0xff] }
0x1a8d   : > { %4674 = vmatpush1.msra.mxu1 %v4507_v44  ;;  %v4887_v44 = vld [vmem:[#allocation27 + $0xf8] sm:$0xff] }
0x1a8e   : > { %4675 = vmatprep.subr.mxu1 %v4506_v47  ;;  %v4885_v47 = vld [vmem:[#allocation27 + $0xe8] sm:$0xff] }
0x1a8f   : > { %4676 = vmatpush1.msra.mxu1 %v4505_v49  ;;  %v4883_v49 = vld [vmem:[#allocation27 + $0xd8] sm:$0xff] }
0x1a90   : > { %4677 = vmatprep.subr.mxu1 %v4504_v51  ;;  %v4881_v51 = vld [vmem:[#allocation27 + $0xc8] sm:$0xff] }
0x1a91   : > { %4678 = vmatpush1.msra.mxu1 %v4503_v45  ;;  %v4879_v45 = vld [vmem:[#allocation27 + $0xb8] sm:$0xff] }
0x1a92   : > { %4679 = vmatprep.subr.mxu1 %v4502_v54  ;;  %v4877_v54 = vld [vmem:[#allocation27 + $0xa8] sm:$0xff] }
0x1a93   : > { %4680 = vmatpush1.msra.mxu1 %v4501_v56  ;;  %v4875_v56 = vld [vmem:[#allocation27 + $0x98] sm:$0xff] }
0x1a94   : > { %4681 = vmatprep.subr.mxu1 %v4564_v58  ;;  %v4873_v58 = vld [vmem:[#allocation27 + $0x88] sm:$0xff] }
0x1a95   : > { %4682 = vmatpush2.msra.mxu1 %v4563_v60  ;;  %v4871_v60 = vld [vmem:[#allocation27 + $0x78] sm:$0xff] }
0x1a96   : > { %4683 = vmatprep.subr.mxu1 %v4562_v62  ;;  %v4869_v62 = vld [vmem:[#allocation27 + $0x68] sm:$0xff] }
0x1a97   : > { %4684 = vmatpush2.msra.mxu1 %v4561_v0  ;;  %v4867_v0 = vld [vmem:[#allocation27 + $0x58] sm:$0xff] }
0x1a98   : > { %4685 = vmatprep.subr.mxu1 %v4560_v2  ;;  %v4865_v2 = vld [vmem:[#allocation27 + $0x48] sm:$0xff] }
0x1a99   : > { %4686 = vmatpush2.msra.mxu1 %v4559_v4  ;;  %v4863_v4 = vld [vmem:[#allocation27 + $0x38] sm:$0xff] }
0x1a9a   : > { %4687 = vmatprep.subr.mxu1 %v4558_v7  ;;  %v4861_v7 = vld [vmem:[#allocation27 + $0x28] sm:$0xff] }
0x1a9b   : > { %4688 = vmatpush2.msra.mxu1 %v4557_v9  ;;  %v4859_v9 = vld [vmem:[#allocation27 + $0x18] sm:$0xff] }
0x1a9c   : > { %4689 = vmatprep.subr.mxu1 %v4556_v10  ;;  %v4858_v10 = vld [vmem:[#allocation27 + $0x10] sm:$0xff] }
0x1a9d   : > { %4690 = vmatpush2.msra.mxu1 %v4555_v11  ;;  %v4857_v11 = vld [vmem:[#allocation27 + $0x8] sm:$0xff] }
0x1a9e   : > { %4691 = vmatprep.subr.mxu1 %v4554_v12  ;;  %v4856_v12 = vld [vmem:[#allocation27] sm:$0xff] }
0x1a9f   : > { %4692 = vmatpush2.msra.mxu1 %v4553_v13  ;;  %v4919_v13 = vld [vmem:[#allocation27 + $0x1f8] sm:$0xff] }
0x1aa0   : > { %4693 = vmatprep.subr.mxu1 %v4552_v14  ;;  %v4918_v14 = vld [vmem:[#allocation27 + $0x1f0] sm:$0xff] }
0x1aa1   : > { %4694 = vmatpush2.msra.mxu1 %v4551_v15  ;;  %v4917_v15 = vld [vmem:[#allocation27 + $0x1e8] sm:$0xff] }
0x1aa2   : > { %4695 = vmatprep.subr.mxu1 %v4550_v16  ;;  %v4916_v16 = vld [vmem:[#allocation27 + $0x1e0] sm:$0xff] }
0x1aa3   : > { %4696 = vmatpush2.msra.mxu1 %v4549_v17  ;;  %v4915_v17 = vld [vmem:[#allocation27 + $0x1d8] sm:$0xff] }
0x1aa4   : > { %4697 = vmatprep.subr.mxu1 %v4548_v18  ;;  %v4914_v18 = vld [vmem:[#allocation27 + $0x1d0] sm:$0xff] }
0x1aa5   : > { %4698 = vmatpush2.msra.mxu1 %v4547_v19  ;;  %v4913_v19 = vld [vmem:[#allocation27 + $0x1c8] sm:$0xff] }
0x1aa6   : > { %4699 = vmatprep.subr.mxu1 %v4546_v20  ;;  %v4912_v20 = vld [vmem:[#allocation27 + $0x1c0] sm:$0xff] }
0x1aa7   : > { %4700 = vmatpush2.msra.mxu1 %v4545_v21  ;;  %v4911_v21 = vld [vmem:[#allocation27 + $0x1b8] sm:$0xff] }
0x1aa8   : > { %4701 = vmatprep.subr.mxu1 %v4544_v22  ;;  %v4910_v22 = vld [vmem:[#allocation27 + $0x1b0] sm:$0xff] }
0x1aa9   : > { %4702 = vmatpush2.msra.mxu1 %v4543_v23  ;;  %v4909_v23 = vld [vmem:[#allocation27 + $0x1a8] sm:$0xff] }
0x1aaa   : > { %4703 = vmatprep.subr.mxu1 %v4542_v24  ;;  %v4908_v24 = vld [vmem:[#allocation27 + $0x1a0] sm:$0xff] }
0x1aab   : > { %4704 = vmatpush2.msra.mxu1 %v4541_v6  ;;  %v4907_v6 = vld [vmem:[#allocation27 + $0x198] sm:$0xff] }
0x1aac   : > { %4705 = vmatprep.subr.mxu1 %v4540_v25  ;;  %v4906_v25 = vld [vmem:[#allocation27 + $0x190] sm:$0xff] }
0x1aad   : > { %4706 = vmatpush2.msra.mxu1 %v4539_v26  ;;  %v4905_v26 = vld [vmem:[#allocation27 + $0x188] sm:$0xff] }
0x1aae   : > { %4707 = vmatprep.subr.mxu1 %v4538_v27  ;;  %v4904_v27 = vld [vmem:[#allocation27 + $0x180] sm:$0xff] }
0x1aaf   : > { %4708 = vmatpush2.msra.mxu1 %v4537_v28  ;;  %v4903_v28 = vld [vmem:[#allocation27 + $0x178] sm:$0xff] }
0x1ab0   : > { %4709 = vmatprep.subr.mxu1 %v4536_v30  ;;  %v4901_v30 = vld [vmem:[#allocation27 + $0x168] sm:$0xff] }
0x1ab1   : > { %4710 = vmatpush2.msra.mxu1 %v4535_v32  ;;  %v4899_v32 = vld [vmem:[#allocation27 + $0x158] sm:$0xff] }
0x1ab2   : > { %4711 = vmatprep.subr.mxu1 %v4534_v34  ;;  %v4897_v34 = vld [vmem:[#allocation27 + $0x148] sm:$0xff] }
0x1ab3   : > { %4712 = vmatpush2.msra.mxu1 %v4533_v38  ;;  %v4893_v38 = vld [vmem:[#allocation27 + $0x128] sm:$0xff] }
0x1ab4   : > { %5125 = vmatprep.subr.mxu1 %v4887_v44 }
0x1b34   : > { %v8053_v39 = vpop.f32.mrf.mxu1 }
0x1b35   : > { %v4435_v40 = vrot.slane %v8053_v39, 4 }
0x1b36   : > { %v4422_v41 = vpop.f32.mrf.mxu1 }
0x1b37   : > { %v4432_v42 = vrot.slane %v4422_v41, 4  ;;  %4713 = vmatprep.mubr.f32.mxu1 %v4435_v40  ;;  %v4891_v40 = vld [vmem:[#allocation27 + $0x118] sm:$0xff] }
0x1b38   : > { %4714 = vmatmul.mubr.f32.vlgmr.msra.gmra.mxu1 %v8053_v39  ;;  %v4892_v39 = vld [vmem:[#allocation27 + $0x120] sm:$0xff] }
0x1b39   : > { %4642 = vmatprep.mubr.f32.mxu0 %v4432_v42  ;;  %5126 = vmatpush1.msra.mxu1 %v4886_v46  ;;  %v4566_v46 = vld [vmem:[#allocation6 + $0x15] ss:$8 sm:$0x3] }
0x1b3a   : > { %4643 = vmatmul.mubr.f32.vlgmr.msra.gmra.mxu0 %v4422_v41  ;;  %5127 = vmatprep.subr.mxu1 %v4885_v47  ;;  %v4568_v41 = vlaneseq }
0x1b3b   : > { %4831 = vmatprep.mubr.f32.mxu0 %v8887_v52  ;;  %5128 = vmatpush1.msra.mxu1 %v4884_v48 }
0x1b3c   : > { %5129 = vmatprep.subr.mxu1 %v4883_v49  ;;  %v4569_v42 = vshrl.u32 %v4568_v41, 7  ;;  %v4721_v49 = vld [vmem:[#allocation4 + $0x32] ss:$8 sm:$0x3]  ;;  %v4981_v41 = vld [vmem:[#allocation27 + $0x3e8] sm:$0xff] }
0x1b3d   : > { %5130 = vmatpush1.msra.mxu1 %v4882_v50 }
0x1b3e   : > { %5131 = vmatprep.subr.mxu1 %v4881_v51  ;;  %v9507_v44 = vsub.s32 0, %v4569_v42  ;;  %v9509_v47 = vsub.s32 1, %v4569_v42  ;;  %v4980_v42 = vld [vmem:[#allocation27 + $0x3e0] sm:$0xff] }
0x1b3f   : > { %5132 = vmatpush1.msra.mxu1 %v4880_v43 }
0x1b40   : > { %5133 = vmatprep.subr.mxu1 %v4879_v45  ;;  %v4571_v48 = vrot.slane %v4566_v46, %v9507_v44  ;;  %v4575_v50 = vrot.slane %v4566_v46, %v9509_v47  ;;  %v4979_v46 = vld [vmem:[#allocation27 + $0x3d8] sm:$0xff] }
0x1b41   : > { %5134 = vmatpush1.msra.mxu1 %v4878_v53  ;;  %v4726_v53 = vrot.slane %v4721_v49, %v9507_v44 }
0x1b42   : > { %5135 = vmatprep.subr.mxu1 %v4877_v54  ;;  %v4736_v54 = vld [vmem:[#allocation4 + $0x33] ss:$8 sm:$0x3] }
0x1b43   : > { %5136 = vmatpush1.msra.mxu1 %v4876_v55 }
0x1b44   : > { %5137 = vmatprep.subr.mxu1 %v4875_v56 }
0x1b45   : > { %5138 = vmatpush1.msra.mxu1 %v4874_v57 }
0x1b46   : > { %5139 = vmatprep.subr.mxu1 %v4873_v58  ;;  %v4730_v58 = vrot.slane %v4721_v49, %v9509_v47  ;;  %v4977_v49 = vld [vmem:[#allocation27 + $0x3c8] sm:$0xff] }
0x1b47   : > { %5140 = vmatpush1.msra.mxu1 %v4872_v59  ;;  %v4741_v59 = vrot.slane %v4736_v54, %v9507_v44 }
0x1b48   : > { %5141 = vmatprep.subr.mxu1 %v4871_v60 }
0x1b49   : > { %5142 = vmatpush1.msra.mxu1 %v4870_v61 }
0x1b4a   : > { %5143 = vmatprep.subr.mxu1 %v4869_v62 }
0x1b4b   : > { %5144 = vmatpush1.msra.mxu1 %v4868_v63  ;;  %v4745_v63 = vrot.slane %v4736_v54, %v9509_v47  ;;  %v4971_v54 = vld [vmem:[#allocation27 + $0x398] sm:$0xff] }
0x1b4c   : > { %5145 = vmatprep.subr.mxu1 %v4867_v0 }
0x1b4d   : > { %5146 = vmatpush1.msra.mxu1 %v4866_v1 }
0x1b4e   : > { %5147 = vmatprep.subr.mxu1 %v4865_v2 }
0x1b4f   : > { %5148 = vmatpush1.msra.mxu1 %v4864_v3 }
0x1b50   : > { %5149 = vmatprep.subr.mxu1 %v4863_v4 }
0x1b51   : > { %5150 = vmatpush1.msra.mxu1 %v4862_v5  ;;  %v4753_v5 = vld [vmem:[#allocation2 + $0x400] sm:$0xff] }
0x1b52   : > { %5151 = vmatprep.subr.mxu1 %v4861_v7  ;;  %v4951_v7 = vld [vmem:[#allocation27 + $0x2f8] sm:$0xff] }
0x1b53   : > { %5152 = vmatpush1.msra.mxu1 %v4860_v8  ;;  %v4950_v8 = vld [vmem:[#allocation27 + $0x2f0] sm:$0xff] }
0x1b54   : > { %5153 = vmatprep.subr.mxu1 %v4859_v9  ;;  %v4949_v9 = vld [vmem:[#allocation27 + $0x2e8] sm:$0xff] }
0x1b55   : > { %5154 = vmatpush1.msra.mxu1 %v4858_v10  ;;  %v4948_v10 = vld [vmem:[#allocation27 + $0x2e0] sm:$0xff] }
0x1b56   : > { %5155 = vmatprep.subr.mxu1 %v4857_v11  ;;  %v4754_v11 = vld [vmem:[#allocation2 + $0x408] sm:$0xff] }
0x1b57   : > { %5156 = vmatpush1.msra.mxu1 %v4856_v12  ;;  %v4947_v12 = vld [vmem:[#allocation27 + $0x2d8] sm:$0xff] }
0x1b58   : > { %5157 = vmatprep.subr.mxu1 %v4919_v13  ;;  %v4946_v13 = vld [vmem:[#allocation27 + $0x2d0] sm:$0xff] }
0x1b59   : > { %5158 = vmatpush2.msra.mxu1 %v4918_v14  ;;  %v4945_v14 = vld [vmem:[#allocation27 + $0x2c8] sm:$0xff] }
0x1b5a   : > { %5159 = vmatprep.subr.mxu1 %v4917_v15  ;;  %v4944_v15 = vld [vmem:[#allocation27 + $0x2c0] sm:$0xff] }
0x1b5b   : > { %5160 = vmatpush2.msra.mxu1 %v4916_v16  ;;  %v4943_v16 = vld [vmem:[#allocation27 + $0x2b8] sm:$0xff] }
0x1b5c   : > { %5161 = vmatprep.subr.mxu1 %v4915_v17  ;;  %v4942_v17 = vld [vmem:[#allocation27 + $0x2b0] sm:$0xff] }
0x1b5d   : > { %5162 = vmatpush2.msra.mxu1 %v4914_v18  ;;  %v4941_v18 = vld [vmem:[#allocation27 + $0x2a8] sm:$0xff] }
0x1b5e   : > { %5163 = vmatprep.subr.mxu1 %v4913_v19  ;;  %v4940_v19 = vld [vmem:[#allocation27 + $0x2a0] sm:$0xff] }
0x1b5f   : > { %5164 = vmatpush2.msra.mxu1 %v4912_v20  ;;  %v4939_v20 = vld [vmem:[#allocation27 + $0x298] sm:$0xff] }
0x1b60   : > { %5165 = vmatprep.subr.mxu1 %v4911_v21  ;;  %v4938_v21 = vld [vmem:[#allocation27 + $0x290] sm:$0xff] }
0x1b61   : > { %5166 = vmatpush2.msra.mxu1 %v4910_v22  ;;  %v4937_v22 = vld [vmem:[#allocation27 + $0x288] sm:$0xff] }
0x1b62   : > { %5167 = vmatprep.subr.mxu1 %v4909_v23  ;;  %v4936_v23 = vld [vmem:[#allocation27 + $0x280] sm:$0xff] }
0x1b63   : > { %5168 = vmatpush2.msra.mxu1 %v4908_v24  ;;  %v4935_v24 = vld [vmem:[#allocation27 + $0x278] sm:$0xff] }
0x1b64   : > { %5169 = vmatprep.subr.mxu1 %v4907_v6  ;;  %v4934_v6 = vld [vmem:[#allocation27 + $0x270] sm:$0xff] }
0x1b65   : > { %5170 = vmatpush2.msra.mxu1 %v4906_v25  ;;  %v4933_v25 = vld [vmem:[#allocation27 + $0x268] sm:$0xff] }
0x1b66   : > { %5171 = vmatprep.subr.mxu1 %v4905_v26  ;;  %v4932_v26 = vld [vmem:[#allocation27 + $0x260] sm:$0xff] }
0x1b67   : > { %5172 = vmatpush2.msra.mxu1 %v4904_v27  ;;  %v4931_v27 = vld [vmem:[#allocation27 + $0x258] sm:$0xff] }
0x1b68   : > { %5173 = vmatprep.subr.mxu1 %v4903_v28  ;;  %v4930_v28 = vld [vmem:[#allocation27 + $0x250] sm:$0xff] }
0x1b69   : > { %5174 = vmatpush2.msra.mxu1 %v4902_v29  ;;  %v4929_v29 = vld [vmem:[#allocation27 + $0x248] sm:$0xff] }
0x1b6a   : > { %5175 = vmatprep.subr.mxu1 %v4901_v30  ;;  %v4928_v30 = vld [vmem:[#allocation27 + $0x240] sm:$0xff] }
0x1b6b   : > { %5176 = vmatpush2.msra.mxu1 %v4900_v31  ;;  %v4927_v31 = vld [vmem:[#allocation27 + $0x238] sm:$0xff] }
0x1b6c   : > { %5177 = vmatprep.subr.mxu1 %v4899_v32  ;;  %v4926_v32 = vld [vmem:[#allocation27 + $0x230] sm:$0xff] }
0x1b6d   : > { %5178 = vmatpush2.msra.mxu1 %v4898_v33  ;;  %v4925_v33 = vld [vmem:[#allocation27 + $0x228] sm:$0xff] }
0x1b6e   : > { %5179 = vmatprep.subr.mxu1 %v4897_v34  ;;  %v4924_v34 = vld [vmem:[#allocation27 + $0x220] sm:$0xff] }
0x1b6f   : > { %5180 = vmatpush2.msra.mxu1 %v4896_v37  ;;  %v4923_v37 = vld [vmem:[#allocation27 + $0x218] sm:$0xff] }
0x1b70   : > { %5181 = vmatprep.subr.mxu1 %v4895_v35  ;;  %v4922_v35 = vld [vmem:[#allocation27 + $0x210] sm:$0xff] }
0x1b71   : > { %5182 = vmatpush2.msra.mxu1 %v4894_v36  ;;  %v4921_v36 = vld [vmem:[#allocation27 + $0x208] sm:$0xff] }
0x1b72   : > { %5183 = vmatprep.subr.mxu1 %v4893_v38  ;;  %v4920_v38 = vld [vmem:[#allocation27 + $0x200] sm:$0xff] }
0x1b73   : > { %5184 = vmatpush2.msra.mxu1 %v4892_v39  ;;  %v4983_v39 = vld [vmem:[#allocation27 + $0x3f8] sm:$0xff] }
0x1b74   : > { %5185 = vmatprep.subr.mxu1 %v4891_v40  ;;  %v4982_v40 = vld [vmem:[#allocation27 + $0x3f0] sm:$0xff] }
0x1bf8   : > { %v4715_v43 = vpop.f32.mrf.mxu1 }
0x1bfa   : > { %v4644_v51 = vpop.f32.mrf.mxu0  ;;  %v4717_v60 = vpop.f32.mrf.mxu1 }
0x1bfb   : > { %v4645_v45 = vadd.f32 %v4644_v51, %v4571_v48  ;;  %v4978_v48 = vld [vmem:[#allocation27 + $0x3d0] sm:$0xff]  ;;  %v4975_v51 = vld [vmem:[#allocation27 + $0x3b8] sm:$0xff] }
0x1bfc   : > { %v4646_v55 = vpop.f32.mrf.mxu0 }
0x1bfd   : > { %v4647_v56 = vadd.f32 %v4646_v55, %v4575_v50  ;;  %v4716_v57 = vadd.f32 %v4715_v43, %v4645_v45  ;;  %v4976_v50 = vld [vmem:[#allocation27 + $0x3c0] sm:$0xff]  ;;  %v4974_v43 = vld [vmem:[#allocation27 + $0x3b0] sm:$0xff]  ;;  %v4973_v45 = vld [vmem:[#allocation27 + $0x3a8] sm:$0xff] }
0x1bfe   : > { %v4970_v55 = vld [vmem:[#allocation27 + $0x390] sm:$0xff] }
0x1bff   : > { %v4733_v61 = vmul.f32 %v4726_v53, %v4716_v57  ;;  %v4718_v62 = vadd.f32 %v4717_v60, %v4647_v56  ;;  %v4972_v53 = vld [vmem:[#allocation27 + $0x3a0] sm:$0xff]  ;;  %v4969_v56 = vld [vmem:[#allocation27 + $0x388] sm:$0xff] }
0x1c00   : > { %v4968_v57 = vld [vmem:[#allocation27 + $0x380] sm:$0xff]  ;;  %v4965_v60 = vld [vmem:[#allocation27 + $0x368] sm:$0xff] }
0x1c01   : > { %v4734_v0 = vmul.f32 %v4730_v58, %v4718_v62  ;;  %v4748_v1 = vadd.f32 %v4741_v59, %v4733_v61  ;;  %v4967_v58 = vld [vmem:[#allocation27 + $0x378] sm:$0xff]  ;;  %v4966_v59 = vld [vmem:[#allocation27 + $0x370] sm:$0xff]  ;;  %v4964_v61 = vld [vmem:[#allocation27 + $0x360] sm:$0xff] }
0x1c02   : > { %v4963_v62 = vld [vmem:[#allocation27 + $0x358] sm:$0xff] }
0x1c03   : > { %v4749_v2 = vadd.f32 %v4745_v63, %v4734_v0  ;;  %v4750_v4 = vmax.f32 %v4748_v1, 0.0  ;;  %v4962_v63 = vld [vmem:[#allocation27 + $0x350] sm:$0xff]  ;;  %v4961_v0 = vld [vmem:[#allocation27 + $0x348] sm:$0xff]  ;;  %v4960_v1 = vld [vmem:[#allocation27 + $0x340] sm:$0xff] }
0x1c05   : > { %v4751_v3 = vmax.f32 %v4749_v2, 0.0  ;;  %v4959_v2 = vld [vmem:[#allocation27 + $0x338] sm:$0xff] }
0x1c07   : > { %7188 = vmatprep.subr.msk.mxu0 %vm3969_vm9, %v4751_v3  ;;  %v4958_v3 = vld [vmem:[#allocation27 + $0x330] sm:$0xff] }
0x1c08   : > { %7189 = vmatpush1.msk.msra.mxu0 %vm3969_vm9, %v4750_v4  ;;  %v4957_v4 = vld [vmem:[#allocation27 + $0x328] sm:$0xff] }
0x1c09   : > { %7190 = vmatmul.mubr.msk.f32.vlgmr.msra.gmra.mxu0 %vm1097_vm1, %v4753_v5  ;;  %5196 = vmatprep.subr.mxu0 %v4951_v7  ;;  %v4890_v5 = vld [vmem:[#allocation27 + $0x110] sm:$0xff]  ;;  %v4956_v7 = vld [vmem:[#allocation27 + $0x320] sm:$0xff] }
0x1c0a   : > { %4837 = vmatprep.mubr.f32.mxu0 %v8887_v52  ;;  %5197 = vmatpush1.msra.mxu0 %v4950_v8  ;;  %v4889_v8 = vld [vmem:[#allocation27 + $0x108] sm:$0xff] }
0x1c0b   : > { %5198 = vmatprep.subr.mxu0 %v4949_v9  ;;  %5186 = vmatpush2.msra.mxu1 %v4890_v5  ;;  %v4955_v9 = vld [vmem:[#allocation27 + $0x318] sm:$0xff]  ;;  %v5056_v5 = vld [vmem:[#allocation27 + $0x640] sm:$0xff] }
0x1c0c   : > { %5199 = vmatpush1.msra.mxu0 %v4948_v10  ;;  %5187 = vmatprep.subr.mxu1 %v4889_v8  ;;  %v4888_v10 = vld [vmem:[#allocation27 + $0x100] sm:$0xff]  ;;  %v5055_v8 = vld [vmem:[#allocation27 + $0x638] sm:$0xff] }
0x1c0d   : > { %7191 = vmatmul.mubr.msk.f32.gmra.mxu0 %vm1097_vm1, %v4754_v11  ;;  %5200 = vmatprep.subr.mxu0 %v4947_v12  ;;  %v4954_v11 = vld [vmem:[#allocation27 + $0x310] sm:$0xff]  ;;  %v4953_v12 = vld [vmem:[#allocation27 + $0x308] sm:$0xff] }
0x1c0e   : > { %5201 = vmatpush1.msra.mxu0 %v4946_v13  ;;  %5188 = vmatpush2.msra.mxu1 %v4888_v10  ;;  %v5015_v13 = vld [vmem:[#allocation27 + $0x4f8] sm:$0xff]  ;;  %v5054_v10 = vld [vmem:[#allocation27 + $0x630] sm:$0xff] }
0x1c0f   : > { %5202 = vmatprep.subr.mxu0 %v4945_v14  ;;  %5267 = vmatprep.subr.mxu1 %v5015_v13  ;;  %v4952_v14 = vld [vmem:[#allocation27 + $0x300] sm:$0xff]  ;;  %v4986_v13 = vld [vmem:[#allocation27 + $0x410] sm:$0xff] }
0x1c10   : > { %5203 = vmatpush1.msra.mxu0 %v4944_v15  ;;  %v5079_v15 = vld [vmem:[#allocation27 + $0x6f8] sm:$0xff] }
0x1c11   : > { %5204 = vmatprep.subr.mxu0 %v4943_v16 }
0x1c12   : > { %5205 = vmatpush1.msra.mxu0 %v4942_v17 }
0x1c13   : > { %5206 = vmatprep.subr.mxu0 %v4941_v18  ;;  %v5014_v18 = vld [vmem:[#allocation27 + $0x4f0] sm:$0xff] }
0x1c14   : > { %5207 = vmatpush1.msra.mxu0 %v4940_v19 }
0x1c15   : > { %5208 = vmatprep.subr.mxu0 %v4939_v20  ;;  %v5013_v20 = vld [vmem:[#allocation27 + $0x4e8] sm:$0xff] }
0x1c16   : > { %5209 = vmatpush1.msra.mxu0 %v4938_v21 }
0x1c17   : > { %5210 = vmatprep.subr.mxu0 %v4937_v22  ;;  %v5012_v22 = vld [vmem:[#allocation27 + $0x4e0] sm:$0xff] }
0x1c18   : > { %5211 = vmatpush1.msra.mxu0 %v4936_v23  ;;  %v5078_v23 = vld [vmem:[#allocation27 + $0x6f0] sm:$0xff] }
0x1c19   : > { %5212 = vmatprep.subr.mxu0 %v4935_v24  ;;  %v5011_v24 = vld [vmem:[#allocation27 + $0x4d8] sm:$0xff] }
0x1c1a   : > { %5213 = vmatpush1.msra.mxu0 %v4934_v6  ;;  %v5077_v6 = vld [vmem:[#allocation27 + $0x6e8] sm:$0xff] }
0x1c1b   : > { %5214 = vmatprep.subr.mxu0 %v4933_v25  ;;  %v5010_v25 = vld [vmem:[#allocation27 + $0x4d0] sm:$0xff] }
0x1c1c   : > { %5215 = vmatpush1.msra.mxu0 %v4932_v26  ;;  %v5076_v26 = vld [vmem:[#allocation27 + $0x6e0] sm:$0xff] }
0x1c1d   : > { %5216 = vmatprep.subr.mxu0 %v4931_v27  ;;  %v5009_v27 = vld [vmem:[#allocation27 + $0x4c8] sm:$0xff] }
0x1c1e   : > { %5217 = vmatpush1.msra.mxu0 %v4930_v28  ;;  %v5075_v28 = vld [vmem:[#allocation27 + $0x6d8] sm:$0xff] }
0x1c1f   : > { %5218 = vmatprep.subr.mxu0 %v4929_v29  ;;  %v5008_v29 = vld [vmem:[#allocation27 + $0x4c0] sm:$0xff] }
0x1c20   : > { %5219 = vmatpush1.msra.mxu0 %v4928_v30  ;;  %v5074_v30 = vld [vmem:[#allocation27 + $0x6d0] sm:$0xff] }
0x1c21   : > { %5220 = vmatprep.subr.mxu0 %v4927_v31  ;;  %v5007_v31 = vld [vmem:[#allocation27 + $0x4b8] sm:$0xff] }
0x1c22   : > { %5221 = vmatpush1.msra.mxu0 %v4926_v32  ;;  %v5073_v32 = vld [vmem:[#allocation27 + $0x6c8] sm:$0xff] }
0x1c23   : > { %5222 = vmatprep.subr.mxu0 %v4925_v33  ;;  %v5006_v33 = vld [vmem:[#allocation27 + $0x4b0] sm:$0xff] }
0x1c24   : > { %5223 = vmatpush1.msra.mxu0 %v4924_v34  ;;  %v5072_v34 = vld [vmem:[#allocation27 + $0x6c0] sm:$0xff] }
0x1c25   : > { %5224 = vmatprep.subr.mxu0 %v4923_v37  ;;  %v5005_v37 = vld [vmem:[#allocation27 + $0x4a8] sm:$0xff] }
0x1c26   : > { %5225 = vmatpush1.msra.mxu0 %v4922_v35  ;;  %v5071_v35 = vld [vmem:[#allocation27 + $0x6b8] sm:$0xff] }
0x1c27   : > { %5226 = vmatprep.subr.mxu0 %v4921_v36  ;;  %v5004_v36 = vld [vmem:[#allocation27 + $0x4a0] sm:$0xff] }
0x1c28   : > { %5227 = vmatpush1.msra.mxu0 %v4920_v38  ;;  %v5070_v38 = vld [vmem:[#allocation27 + $0x6b0] sm:$0xff] }
0x1c29   : > { %5228 = vmatprep.subr.mxu0 %v4983_v39  ;;  %v5003_v39 = vld [vmem:[#allocation27 + $0x498] sm:$0xff] }
0x1c2a   : > { %5229 = vmatpush2.msra.mxu0 %v4982_v40  ;;  %v5069_v40 = vld [vmem:[#allocation27 + $0x6a8] sm:$0xff] }
0x1c2b   : > { %5230 = vmatprep.subr.mxu0 %v4981_v41  ;;  %v5002_v41 = vld [vmem:[#allocation27 + $0x490] sm:$0xff] }
0x1c2c   : > { %5231 = vmatpush2.msra.mxu0 %v4980_v42  ;;  %v5068_v42 = vld [vmem:[#allocation27 + $0x6a0] sm:$0xff] }
0x1c2d   : > { %5232 = vmatprep.subr.mxu0 %v4979_v46  ;;  %v5001_v46 = vld [vmem:[#allocation27 + $0x488] sm:$0xff] }
0x1c2e   : > { %5233 = vmatpush2.msra.mxu0 %v4978_v48  ;;  %v5067_v48 = vld [vmem:[#allocation27 + $0x698] sm:$0xff] }
0x1c2f   : > { %5234 = vmatprep.subr.mxu0 %v4977_v49  ;;  %v5000_v49 = vld [vmem:[#allocation27 + $0x480] sm:$0xff] }
0x1c30   : > { %5235 = vmatpush2.msra.mxu0 %v4976_v50  ;;  %v5066_v50 = vld [vmem:[#allocation27 + $0x690] sm:$0xff] }
0x1c31   : > { %5236 = vmatprep.subr.mxu0 %v4975_v51  ;;  %v4999_v51 = vld [vmem:[#allocation27 + $0x478] sm:$0xff] }
0x1c32   : > { %5237 = vmatpush2.msra.mxu0 %v4974_v43  ;;  %v5065_v43 = vld [vmem:[#allocation27 + $0x688] sm:$0xff] }
0x1c33   : > { %5238 = vmatprep.subr.mxu0 %v4973_v45  ;;  %v4998_v45 = vld [vmem:[#allocation27 + $0x470] sm:$0xff] }
0x1c34   : > { %5239 = vmatpush2.msra.mxu0 %v4972_v53  ;;  %v5064_v53 = vld [vmem:[#allocation27 + $0x680] sm:$0xff] }
0x1c35   : > { %5240 = vmatprep.subr.mxu0 %v4971_v54  ;;  %v4997_v54 = vld [vmem:[#allocation27 + $0x468] sm:$0xff] }
0x1c36   : > { %5241 = vmatpush2.msra.mxu0 %v4970_v55  ;;  %v5063_v55 = vld [vmem:[#allocation27 + $0x678] sm:$0xff] }
0x1c37   : > { %5242 = vmatprep.subr.mxu0 %v4969_v56  ;;  %v4996_v56 = vld [vmem:[#allocation27 + $0x460] sm:$0xff] }
0x1c38   : > { %5243 = vmatpush2.msra.mxu0 %v4968_v57  ;;  %v5062_v57 = vld [vmem:[#allocation27 + $0x670] sm:$0xff] }
0x1c39   : > { %5244 = vmatprep.subr.mxu0 %v4967_v58  ;;  %v4995_v58 = vld [vmem:[#allocation27 + $0x458] sm:$0xff] }
0x1c3a   : > { %5245 = vmatpush2.msra.mxu0 %v4966_v59  ;;  %v5061_v59 = vld [vmem:[#allocation27 + $0x668] sm:$0xff] }
0x1c3b   : > { %5246 = vmatprep.subr.mxu0 %v4965_v60  ;;  %v4994_v60 = vld [vmem:[#allocation27 + $0x450] sm:$0xff] }
0x1c3c   : > { %5247 = vmatpush2.msra.mxu0 %v4964_v61  ;;  %v5060_v61 = vld [vmem:[#allocation27 + $0x660] sm:$0xff] }
0x1c3d   : > { %5248 = vmatprep.subr.mxu0 %v4963_v62  ;;  %v4993_v62 = vld [vmem:[#allocation27 + $0x448] sm:$0xff] }
0x1c3e   : > { %5249 = vmatpush2.msra.mxu0 %v4962_v63  ;;  %v5059_v63 = vld [vmem:[#allocation27 + $0x658] sm:$0xff] }
0x1c3f   : > { %5250 = vmatprep.subr.mxu0 %v4961_v0  ;;  %v4992_v0 = vld [vmem:[#allocation27 + $0x440] sm:$0xff] }
0x1c40   : > { %5251 = vmatpush2.msra.mxu0 %v4960_v1  ;;  %v5058_v1 = vld [vmem:[#allocation27 + $0x650] sm:$0xff] }
0x1c41   : > { %5252 = vmatprep.subr.mxu0 %v4959_v2  ;;  %v4991_v2 = vld [vmem:[#allocation27 + $0x438] sm:$0xff] }
0x1c42   : > { %5253 = vmatpush2.msra.mxu0 %v4958_v3  ;;  %v5057_v3 = vld [vmem:[#allocation27 + $0x648] sm:$0xff] }
0x1c43   : > { %5254 = vmatprep.subr.mxu0 %v4957_v4  ;;  %v4990_v4 = vld [vmem:[#allocation27 + $0x430] sm:$0xff] }
0x1c44   : > { %5255 = vmatpush2.msra.mxu0 %v4956_v7  ;;  %v4989_v7 = vld [vmem:[#allocation27 + $0x428] sm:$0xff] }
0x1c45   : > { %5256 = vmatprep.subr.mxu0 %v4955_v9  ;;  %v4988_v9 = vld [vmem:[#allocation27 + $0x420] sm:$0xff] }
0x1c46   : > { %5257 = vmatpush2.msra.mxu0 %v4954_v11  ;;  %v4987_v11 = vld [vmem:[#allocation27 + $0x418] sm:$0xff] }
0x1c47   : > { %5258 = vmatprep.subr.mxu0 %v4953_v12  ;;  %v5053_v12 = vld [vmem:[#allocation27 + $0x628] sm:$0xff] }
0x1c48   : > { %5259 = vmatpush2.msra.mxu0 %v4952_v14  ;;  %v5052_v14 = vld [vmem:[#allocation27 + $0x620] sm:$0xff] }
0x1c49   : > { %5338 = vmatprep.subr.mxu0 %v5079_v15  ;;  %v4985_v15 = vld [vmem:[#allocation27 + $0x408] sm:$0xff] }
0x1cc9   : > { %v4833_v16 = vpop.f32.mrf.mxu0 }
0x1cca   : > { %v4846_v21 = vrot.slane %v4833_v16, 4 }
0x1ccb   : > { %v4835_v17 = vpop.f32.mrf.mxu0 }
0x1ccc   : > { %v4847_v19 = vrot.slane %v4835_v17, 4  ;;  %5189 = vmatprep.mubr.f32.mxu1 %v4835_v17  ;;  %v4984_v17 = vld [vmem:[#allocation27 + $0x400] sm:$0xff] }
0x1ccd   : > { %5190 = vmatmul.mubr.f32.vlgmr.msra.gmra.mxu1 %v4833_v16  ;;  %v5051_v16 = vld [vmem:[#allocation27 + $0x618] sm:$0xff] }
0x1cce   : > { %5268 = vmatpush1.msra.mxu1 %v5014_v18  ;;  %5260 = vmatprep.mubr.f32.mxu0 %v4847_v19  ;;  %v5050_v18 = vld [vmem:[#allocation27 + $0x610] sm:$0xff]  ;;  %v5047_v19 = vld [vmem:[#allocation27 + $0x5f8] sm:$0xff] }
0x1ccf   : > { %5269 = vmatprep.subr.mxu1 %v5013_v20  ;;  %5261 = vmatmul.mubr.f32.vlgmr.msra.gmra.mxu0 %v4846_v21  ;;  %v5049_v20 = vld [vmem:[#allocation27 + $0x608] sm:$0xff]  ;;  %v5046_v21 = vld [vmem:[#allocation27 + $0x5f0] sm:$0xff] }
0x1cd0   : > { %5270 = vmatpush1.msra.mxu1 %v5012_v22  ;;  %5339 = vmatpush1.msra.mxu0 %v5078_v23  ;;  %v5048_v22 = vld [vmem:[#allocation27 + $0x600] sm:$0xff]  ;;  %v5045_v23 = vld [vmem:[#allocation27 + $0x5e8] sm:$0xff] }
0x1cd1   : > { %5271 = vmatprep.subr.mxu1 %v5011_v24  ;;  %5340 = vmatprep.subr.mxu0 %v5077_v6  ;;  %v5111_v24 = vld [vmem:[#allocation27 + $0x7f8] sm:$0xff]  ;;  %v5044_v6 = vld [vmem:[#allocation27 + $0x5e0] sm:$0xff] }
0x1cd2   : > { %5272 = vmatpush1.msra.mxu1 %v5010_v25  ;;  %5341 = vmatpush1.msra.mxu0 %v5076_v26  ;;  %v5110_v25 = vld [vmem:[#allocation27 + $0x7f0] sm:$0xff]  ;;  %v5043_v26 = vld [vmem:[#allocation27 + $0x5d8] sm:$0xff] }
0x1cd3   : > { %5273 = vmatprep.subr.mxu1 %v5009_v27  ;;  %5342 = vmatprep.subr.mxu0 %v5075_v28  ;;  %v5109_v27 = vld [vmem:[#allocation27 + $0x7e8] sm:$0xff]  ;;  %v5042_v28 = vld [vmem:[#allocation27 + $0x5d0] sm:$0xff] }
0x1cd4   : > { %5274 = vmatpush1.msra.mxu1 %v5008_v29  ;;  %5343 = vmatpush1.msra.mxu0 %v5074_v30  ;;  %v5108_v29 = vld [vmem:[#allocation27 + $0x7e0] sm:$0xff]  ;;  %v5041_v30 = vld [vmem:[#allocation27 + $0x5c8] sm:$0xff] }
0x1cd5   : > { %5275 = vmatprep.subr.mxu1 %v5007_v31  ;;  %5344 = vmatprep.subr.mxu0 %v5073_v32  ;;  %v5107_v31 = vld [vmem:[#allocation27 + $0x7d8] sm:$0xff]  ;;  %v5040_v32 = vld [vmem:[#allocation27 + $0x5c0] sm:$0xff] }
0x1cd6   : > { %5276 = vmatpush1.msra.mxu1 %v5006_v33  ;;  %5345 = vmatpush1.msra.mxu0 %v5072_v34  ;;  %v5106_v33 = vld [vmem:[#allocation27 + $0x7d0] sm:$0xff]  ;;  %v5039_v34 = vld [vmem:[#allocation27 + $0x5b8] sm:$0xff] }
0x1cd7   : > { %5277 = vmatprep.subr.mxu1 %v5005_v37  ;;  %5346 = vmatprep.subr.mxu0 %v5071_v35  ;;  %v5105_v37 = vld [vmem:[#allocation27 + $0x7c8] sm:$0xff]  ;;  %v5038_v35 = vld [vmem:[#allocation27 + $0x5b0] sm:$0xff] }
0x1cd8   : > { %5278 = vmatpush1.msra.mxu1 %v5004_v36  ;;  %5347 = vmatpush1.msra.mxu0 %v5070_v38  ;;  %v5104_v36 = vld [vmem:[#allocation27 + $0x7c0] sm:$0xff]  ;;  %v5037_v38 = vld [vmem:[#allocation27 + $0x5a8] sm:$0xff] }
0x1cd9   : > { %5279 = vmatprep.subr.mxu1 %v5003_v39  ;;  %5348 = vmatprep.subr.mxu0 %v5069_v40  ;;  %v5103_v39 = vld [vmem:[#allocation27 + $0x7b8] sm:$0xff]  ;;  %v5036_v40 = vld [vmem:[#allocation27 + $0x5a0] sm:$0xff] }
0x1cda   : > { %5280 = vmatpush1.msra.mxu1 %v5002_v41  ;;  %5349 = vmatpush1.msra.mxu0 %v5068_v42  ;;  %v5102_v41 = vld [vmem:[#allocation27 + $0x7b0] sm:$0xff]  ;;  %v5035_v42 = vld [vmem:[#allocation27 + $0x598] sm:$0xff] }
0x1cdb   : > { %5281 = vmatprep.subr.mxu1 %v5001_v46  ;;  %5350 = vmatprep.subr.mxu0 %v5067_v48  ;;  %v5101_v46 = vld [vmem:[#allocation27 + $0x7a8] sm:$0xff]  ;;  %v5034_v48 = vld [vmem:[#allocation27 + $0x590] sm:$0xff] }
0x1cdc   : > { %5282 = vmatpush1.msra.mxu1 %v5000_v49  ;;  %5351 = vmatpush1.msra.mxu0 %v5066_v50  ;;  %v5100_v49 = vld [vmem:[#allocation27 + $0x7a0] sm:$0xff]  ;;  %v5033_v50 = vld [vmem:[#allocation27 + $0x588] sm:$0xff] }
0x1cdd   : > { %5283 = vmatprep.subr.mxu1 %v4999_v51  ;;  %5352 = vmatprep.subr.mxu0 %v5065_v43  ;;  %v5099_v51 = vld [vmem:[#allocation27 + $0x798] sm:$0xff]  ;;  %v5032_v43 = vld [vmem:[#allocation27 + $0x580] sm:$0xff] }
0x1cde   : > { %5284 = vmatpush1.msra.mxu1 %v4998_v45  ;;  %5353 = vmatpush1.msra.mxu0 %v5064_v53  ;;  %v5098_v45 = vld [vmem:[#allocation27 + $0x790] sm:$0xff]  ;;  %v5031_v53 = vld [vmem:[#allocation27 + $0x578] sm:$0xff] }
0x1cdf   : > { %5285 = vmatprep.subr.mxu1 %v4997_v54  ;;  %5354 = vmatprep.subr.mxu0 %v5063_v55  ;;  %v5097_v54 = vld [vmem:[#allocation27 + $0x788] sm:$0xff]  ;;  %v5030_v55 = vld [vmem:[#allocation27 + $0x570] sm:$0xff] }
0x1ce0   : > { %5286 = vmatpush1.msra.mxu1 %v4996_v56  ;;  %5355 = vmatpush1.msra.mxu0 %v5062_v57  ;;  %v5096_v56 = vld [vmem:[#allocation27 + $0x780] sm:$0xff]  ;;  %v5029_v57 = vld [vmem:[#allocation27 + $0x568] sm:$0xff] }
0x1ce1   : > { %5287 = vmatprep.subr.mxu1 %v4995_v58  ;;  %5356 = vmatprep.subr.mxu0 %v5061_v59  ;;  %v5095_v58 = vld [vmem:[#allocation27 + $0x778] sm:$0xff]  ;;  %v5028_v59 = vld [vmem:[#allocation27 + $0x560] sm:$0xff] }
0x1ce2   : > { %5288 = vmatpush1.msra.mxu1 %v4994_v60  ;;  %5357 = vmatpush1.msra.mxu0 %v5060_v61  ;;  %v5094_v60 = vld [vmem:[#allocation27 + $0x770] sm:$0xff]  ;;  %v5027_v61 = vld [vmem:[#allocation27 + $0x558] sm:$0xff] }
0x1ce3   : > { %5289 = vmatprep.subr.mxu1 %v4993_v62  ;;  %5358 = vmatprep.subr.mxu0 %v5059_v63  ;;  %v5093_v62 = vld [vmem:[#allocation27 + $0x768] sm:$0xff]  ;;  %v5026_v63 = vld [vmem:[#allocation27 + $0x550] sm:$0xff] }
0x1ce4   : > { %5290 = vmatpush1.msra.mxu1 %v4992_v0  ;;  %5359 = vmatpush1.msra.mxu0 %v5058_v1  ;;  %v5092_v0 = vld [vmem:[#allocation27 + $0x760] sm:$0xff]  ;;  %v5025_v1 = vld [vmem:[#allocation27 + $0x548] sm:$0xff] }
0x1ce5   : > { %5291 = vmatprep.subr.mxu1 %v4991_v2  ;;  %5360 = vmatprep.subr.mxu0 %v5057_v3  ;;  %v5091_v2 = vld [vmem:[#allocation27 + $0x758] sm:$0xff]  ;;  %v5024_v3 = vld [vmem:[#allocation27 + $0x540] sm:$0xff] }
0x1ce6   : > { %5292 = vmatpush1.msra.mxu1 %v4990_v4  ;;  %5361 = vmatpush1.msra.mxu0 %v5056_v5  ;;  %v5090_v4 = vld [vmem:[#allocation27 + $0x750] sm:$0xff]  ;;  %v5023_v5 = vld [vmem:[#allocation27 + $0x538] sm:$0xff] }
0x1ce7   : > { %5293 = vmatprep.subr.mxu1 %v4989_v7  ;;  %5362 = vmatprep.subr.mxu0 %v5055_v8  ;;  %v5089_v7 = vld [vmem:[#allocation27 + $0x748] sm:$0xff]  ;;  %v5022_v8 = vld [vmem:[#allocation27 + $0x530] sm:$0xff] }
0x1ce8   : > { %5294 = vmatpush1.msra.mxu1 %v4988_v9  ;;  %5363 = vmatpush1.msra.mxu0 %v5054_v10  ;;  %v5088_v9 = vld [vmem:[#allocation27 + $0x740] sm:$0xff]  ;;  %v4839_v10 = vpop.f32.mrf.mxu0 }
0x1ce9   : > { %5295 = vmatprep.subr.mxu1 %v4987_v11  ;;  %5364 = vmatprep.subr.mxu0 %v5053_v12  ;;  %v5021_v11 = vld [vmem:[#allocation27 + $0x528] sm:$0xff]  ;;  %v5087_v12 = vld [vmem:[#allocation27 + $0x738] sm:$0xff] }
0x1cea   : > { %5296 = vmatpush1.msra.mxu1 %v4986_v13  ;;  %5365 = vmatpush1.msra.mxu0 %v5052_v14  ;;  %v5020_v13 = vld [vmem:[#allocation27 + $0x520] sm:$0xff]  ;;  %v5086_v14 = vld [vmem:[#allocation27 + $0x730] sm:$0xff] }
0x1ceb   : > { %5297 = vmatprep.subr.mxu1 %v4985_v15  ;;  %5366 = vmatprep.subr.mxu0 %v5051_v16  ;;  %v5019_v15 = vld [vmem:[#allocation27 + $0x518] sm:$0xff]  ;;  %v5085_v16 = vld [vmem:[#allocation27 + $0x728] sm:$0xff] }
0x1cec   : > { %5298 = vmatpush1.msra.mxu1 %v4984_v17  ;;  %5367 = vmatpush1.msra.mxu0 %v5050_v18  ;;  %v5018_v17 = vld [vmem:[#allocation27 + $0x510] sm:$0xff]  ;;  %v5084_v18 = vld [vmem:[#allocation27 + $0x720] sm:$0xff] }
0x1ced   : > { %5299 = vmatprep.subr.mxu1 %v5047_v19  ;;  %5368 = vmatprep.subr.mxu0 %v5049_v20  ;;  %v4841_v19 = vpop.f32.mrf.mxu0  ;;  %v5017_v20 = vld [vmem:[#allocation27 + $0x508] sm:$0xff] }
0x1cee   : > { %5300 = vmatpush2.msra.mxu1 %v5046_v21  ;;  %5369 = vmatpush1.msra.mxu0 %v5048_v22  ;;  %v5083_v21 = vld [vmem:[#allocation27 + $0x718] sm:$0xff]  ;;  %v5016_v22 = vld [vmem:[#allocation27 + $0x500] sm:$0xff] }
0x1cef   : > { %5301 = vmatprep.subr.mxu1 %v5045_v23  ;;  %5370 = vmatprep.subr.mxu0 %v5111_v24  ;;  %v4853_v23 = vrot.slane %v4841_v19, 4  ;;  %v5082_v24 = vld [vmem:[#allocation27 + $0x710] sm:$0xff] }
0x1cf0   : > { %5302 = vmatpush2.msra.mxu1 %v5044_v6  ;;  %5371 = vmatpush2.msra.mxu0 %v5110_v25  ;;  %v5081_v6 = vld [vmem:[#allocation27 + $0x708] sm:$0xff]  ;;  %v5080_v25 = vld [vmem:[#allocation27 + $0x700] sm:$0xff] }
0x1cf1   : > { %5303 = vmatprep.subr.mxu1 %v5043_v26  ;;  %5372 = vmatprep.subr.mxu0 %v5109_v27  ;;  %v4852_v26 = vrot.slane %v4839_v10, 4  ;;  %v5584_v27 = vld [vmem:[#allocation28 + $0xf8] sm:$0xff] }
0x1cf2   : > { %5304 = vmatpush2.msra.mxu1 %v5042_v28  ;;  %5373 = vmatpush2.msra.mxu0 %v5108_v29  ;;  %v5583_v28 = vld [vmem:[#allocation28 + $0xf0] sm:$0xff]  ;;  %v5582_v29 = vld [vmem:[#allocation28 + $0xe8] sm:$0xff] }
0x1cf3   : > { %5305 = vmatprep.subr.mxu1 %v5041_v30  ;;  %5374 = vmatprep.subr.mxu0 %v5107_v31  ;;  %v5581_v30 = vld [vmem:[#allocation28 + $0xe0] sm:$0xff]  ;;  %v5580_v31 = vld [vmem:[#allocation28 + $0xd8] sm:$0xff] }
0x1cf4   : > { %5306 = vmatpush2.msra.mxu1 %v5040_v32  ;;  %5375 = vmatpush2.msra.mxu0 %v5106_v33  ;;  %v5579_v32 = vld [vmem:[#allocation28 + $0xd0] sm:$0xff]  ;;  %v5578_v33 = vld [vmem:[#allocation28 + $0xc8] sm:$0xff] }
0x1cf5   : > { %5307 = vmatprep.subr.mxu1 %v5039_v34  ;;  %5376 = vmatprep.subr.mxu0 %v5105_v37  ;;  %v5577_v34 = vld [vmem:[#allocation28 + $0xc0] sm:$0xff]  ;;  %v5576_v37 = vld [vmem:[#allocation28 + $0xb8] sm:$0xff] }
0x1cf6   : > { %5308 = vmatpush2.msra.mxu1 %v5038_v35  ;;  %5377 = vmatpush2.msra.mxu0 %v5104_v36  ;;  %v5575_v35 = vld [vmem:[#allocation28 + $0xb0] sm:$0xff]  ;;  %v5574_v36 = vld [vmem:[#allocation28 + $0xa8] sm:$0xff] }
0x1cf7   : > { %5309 = vmatprep.subr.mxu1 %v5037_v38  ;;  %5378 = vmatprep.subr.mxu0 %v5103_v39  ;;  %v5573_v38 = vld [vmem:[#allocation28 + $0xa0] sm:$0xff]  ;;  %v5572_v39 = vld [vmem:[#allocation28 + $0x98] sm:$0xff] }
0x1cf8   : > { %5310 = vmatpush2.msra.mxu1 %v5036_v40  ;;  %5379 = vmatpush2.msra.mxu0 %v5102_v41  ;;  %v5571_v40 = vld [vmem:[#allocation28 + $0x90] sm:$0xff]  ;;  %v5570_v41 = vld [vmem:[#allocation28 + $0x88] sm:$0xff] }
0x1cf9   : > { %5311 = vmatprep.subr.mxu1 %v5035_v42  ;;  %5380 = vmatprep.subr.mxu0 %v5101_v46  ;;  %v5569_v42 = vld [vmem:[#allocation28 + $0x80] sm:$0xff]  ;;  %v5568_v46 = vld [vmem:[#allocation28 + $0x78] sm:$0xff] }
0x1cfa   : > { %5312 = vmatpush2.msra.mxu1 %v5034_v48  ;;  %5381 = vmatpush2.msra.mxu0 %v5100_v49  ;;  %v5567_v48 = vld [vmem:[#allocation28 + $0x70] sm:$0xff]  ;;  %v5566_v49 = vld [vmem:[#allocation28 + $0x68] sm:$0xff] }
0x1cfb   : > { %5313 = vmatprep.subr.mxu1 %v5033_v50  ;;  %5382 = vmatprep.subr.mxu0 %v5099_v51  ;;  %v5565_v50 = vld [vmem:[#allocation28 + $0x60] sm:$0xff]  ;;  %v5564_v51 = vld [vmem:[#allocation28 + $0x58] sm:$0xff] }
0x1cfc   : > { %5314 = vmatpush2.msra.mxu1 %v5032_v43  ;;  %5383 = vmatpush2.msra.mxu0 %v5098_v45  ;;  %v5563_v43 = vld [vmem:[#allocation28 + $0x50] sm:$0xff]  ;;  %v5562_v45 = vld [vmem:[#allocation28 + $0x48] sm:$0xff] }
0x1cfd   : > { %5315 = vmatprep.subr.mxu1 %v5031_v53  ;;  %5384 = vmatprep.subr.mxu0 %v5097_v54  ;;  %v5561_v53 = vld [vmem:[#allocation28 + $0x40] sm:$0xff]  ;;  %v5560_v54 = vld [vmem:[#allocation28 + $0x38] sm:$0xff] }
0x1cfe   : > { %5316 = vmatpush2.msra.mxu1 %v5030_v55  ;;  %5385 = vmatpush2.msra.mxu0 %v5096_v56  ;;  %v5559_v55 = vld [vmem:[#allocation28 + $0x30] sm:$0xff]  ;;  %v5558_v56 = vld [vmem:[#allocation28 + $0x28] sm:$0xff] }
0x1cff   : > { %5317 = vmatprep.subr.mxu1 %v5029_v57  ;;  %5386 = vmatprep.subr.mxu0 %v5095_v58  ;;  %v5557_v57 = vld [vmem:[#allocation28 + $0x20] sm:$0xff]  ;;  %v5556_v58 = vld [vmem:[#allocation28 + $0x18] sm:$0xff] }
0x1d00   : > { %5318 = vmatpush2.msra.mxu1 %v5028_v59  ;;  %5387 = vmatpush2.msra.mxu0 %v5094_v60  ;;  %v5555_v59 = vld [vmem:[#allocation28 + $0x10] sm:$0xff]  ;;  %v5554_v60 = vld [vmem:[#allocation28 + $0x8] sm:$0xff] }
0x1d01   : > { %5319 = vmatprep.subr.mxu1 %v5027_v61  ;;  %5388 = vmatprep.subr.mxu0 %v5093_v62  ;;  %v5553_v61 = vld [vmem:[#allocation28] sm:$0xff]  ;;  %v5616_v62 = vld [vmem:[#allocation28 + $0x1f8] sm:$0xff] }
0x1d02   : > { %5320 = vmatpush2.msra.mxu1 %v5026_v63  ;;  %5389 = vmatpush2.msra.mxu0 %v5092_v0  ;;  %v5615_v63 = vld [vmem:[#allocation28 + $0x1f0] sm:$0xff]  ;;  %v5614_v0 = vld [vmem:[#allocation28 + $0x1e8] sm:$0xff] }
0x1d03   : > { %5321 = vmatprep.subr.mxu1 %v5025_v1  ;;  %5390 = vmatprep.subr.mxu0 %v5091_v2  ;;  %v5613_v1 = vld [vmem:[#allocation28 + $0x1e0] sm:$0xff]  ;;  %v5612_v2 = vld [vmem:[#allocation28 + $0x1d8] sm:$0xff] }
0x1d04   : > { %5322 = vmatpush2.msra.mxu1 %v5024_v3  ;;  %5391 = vmatpush2.msra.mxu0 %v5090_v4  ;;  %v5611_v3 = vld [vmem:[#allocation28 + $0x1d0] sm:$0xff]  ;;  %v5610_v4 = vld [vmem:[#allocation28 + $0x1c8] sm:$0xff] }
0x1d05   : > { %5323 = vmatprep.subr.mxu1 %v5023_v5  ;;  %5392 = vmatprep.subr.mxu0 %v5089_v7  ;;  %v5609_v5 = vld [vmem:[#allocation28 + $0x1c0] sm:$0xff]  ;;  %v5608_v7 = vld [vmem:[#allocation28 + $0x1b8] sm:$0xff] }
0x1d06   : > { %5324 = vmatpush2.msra.mxu1 %v5022_v8  ;;  %5393 = vmatpush2.msra.mxu0 %v5088_v9  ;;  %v5607_v8 = vld [vmem:[#allocation28 + $0x1b0] sm:$0xff]  ;;  %v5606_v9 = vld [vmem:[#allocation28 + $0x1a8] sm:$0xff] }
0x1d07   : > { %5325 = vmatprep.subr.mxu1 %v5021_v11  ;;  %5394 = vmatprep.subr.mxu0 %v5087_v12  ;;  %v5604_v11 = vld [vmem:[#allocation28 + $0x198] sm:$0xff]  ;;  %v5603_v12 = vld [vmem:[#allocation28 + $0x190] sm:$0xff] }
0x1d08   : > { %5326 = vmatpush2.msra.mxu1 %v5020_v13  ;;  %5395 = vmatpush2.msra.mxu0 %v5086_v14  ;;  %v5602_v13 = vld [vmem:[#allocation28 + $0x188] sm:$0xff]  ;;  %v5601_v14 = vld [vmem:[#allocation28 + $0x180] sm:$0xff] }
0x1d09   : > { %5327 = vmatprep.subr.mxu1 %v5019_v15  ;;  %5396 = vmatprep.subr.mxu0 %v5085_v16  ;;  %v5600_v15 = vld [vmem:[#allocation28 + $0x178] sm:$0xff]  ;;  %v5599_v16 = vld [vmem:[#allocation28 + $0x170] sm:$0xff] }
0x1d0a   : > { %5328 = vmatpush2.msra.mxu1 %v5018_v17  ;;  %5397 = vmatpush2.msra.mxu0 %v5084_v18  ;;  %v5598_v17 = vld [vmem:[#allocation28 + $0x168] sm:$0xff]  ;;  %v5597_v18 = vld [vmem:[#allocation28 + $0x160] sm:$0xff] }
0x1d0b   : > { %5329 = vmatprep.subr.mxu1 %v5017_v20  ;;  %5398 = vmatprep.subr.mxu0 %v5083_v21  ;;  %v5595_v20 = vld [vmem:[#allocation28 + $0x150] sm:$0xff]  ;;  %v5594_v21 = vld [vmem:[#allocation28 + $0x148] sm:$0xff] }
0x1d0c   : > { %5330 = vmatpush2.msra.mxu1 %v5016_v22  ;;  %5331 = vmatprep.mubr.f32.mxu1 %v4841_v19  ;;  %v5596_v19 = vld [vmem:[#allocation28 + $0x158] sm:$0xff]  ;;  %v5593_v22 = vld [vmem:[#allocation28 + $0x140] sm:$0xff] }
0x1d0d   : > { %5399 = vmatpush2.msra.mxu0 %v5082_v24  ;;  %5332 = vmatmul.mubr.f32.vlgmr.msra.gmra.mxu1 %v4839_v10  ;;  %v5605_v10 = vld [vmem:[#allocation28 + $0x1a0] sm:$0xff]  ;;  %v5591_v24 = vld [vmem:[#allocation28 + $0x130] sm:$0xff] }
0x1d0e   : > { %5400 = vmatprep.subr.mxu0 %v5081_v6  ;;  %5402 = vmatprep.mubr.f32.mxu0 %v4853_v23  ;;  %v5592_v23 = vld [vmem:[#allocation28 + $0x138] sm:$0xff]  ;;  %v5590_v6 = vld [vmem:[#allocation28 + $0x128] sm:$0xff] }
0x1d0f   : > { %5401 = vmatpush2.msra.mxu0 %v5080_v25  ;;  %5528 = vmatprep.mubr.f32.mxu1 %v8887_v52  ;;  %v5589_v25 = vld [vmem:[#allocation28 + $0x120] sm:$0xff] }
0x1d10   : > { %5403 = vmatmul.mubr.f32.vlgmr.msra.gmra.mxu0 %v4852_v26  ;;  %5822 = vmatprep.subr.mxu0 %v5584_v27  ;;  %v5588_v26 = vld [vmem:[#allocation28 + $0x118] sm:$0xff]  ;;  %v5113_v27 = vld [vmem:[#allocation6 + $0x16] ss:$8 sm:$0x3] }
0x1d11   : > { %5823 = vmatpush1.msra.mxu0 %v5583_v28 }
0x1d12   : > { %5824 = vmatprep.subr.mxu0 %v5582_v29  ;;  %v5118_v29 = vrot.slane %v5113_v27, %v9507_v44 }
0x1d13   : > { %5825 = vmatpush1.msra.mxu0 %v5581_v30  ;;  %v5122_v30 = vrot.slane %v5113_v27, %v9509_v47  ;;  %v5625_v27 = vld [vmem:[#allocation28 + $0x240] sm:$0xff] }
0x1d14   : > { %5826 = vmatprep.subr.mxu0 %v5580_v31 }
0x1d15   : > { %5827 = vmatpush1.msra.mxu0 %v5579_v32 }
0x1d16   : > { %5828 = vmatprep.subr.mxu0 %v5578_v33 }
0x1d17   : > { %5829 = vmatpush1.msra.mxu0 %v5577_v34 }
0x1d18   : > { %5830 = vmatprep.subr.mxu0 %v5576_v37 }
0x1d19   : > { %5831 = vmatpush1.msra.mxu0 %v5575_v35 }
0x1d1a   : > { %5832 = vmatprep.subr.mxu0 %v5574_v36 }
0x1d1b   : > { %5833 = vmatpush1.msra.mxu0 %v5573_v38 }
0x1d1c   : > { %5834 = vmatprep.subr.mxu0 %v5572_v39 }
0x1d1d   : > { %5835 = vmatpush1.msra.mxu0 %v5571_v40  ;;  %v5418_v40 = vld [vmem:[#allocation4 + $0x34] ss:$8 sm:$0x3] }
0x1d1e   : > { %5836 = vmatprep.subr.mxu0 %v5570_v41  ;;  %v5411_v41 = vpop.permute.xlu1 %5410 }
0x1d1f   : > { %5837 = vmatpush1.msra.mxu0 %v5569_v42 }
0x1d20   : > { %5838 = vmatprep.subr.mxu0 %v5568_v46 }
0x1d21   : > { %5839 = vmatpush1.msra.mxu0 %v5567_v48 }
0x1d22   : > { %5840 = vmatprep.subr.mxu0 %v5566_v49 }
0x1d23   : > { %5841 = vmatpush1.msra.mxu0 %v5565_v50  ;;  %v5423_v50 = vrot.slane %v5418_v40, %v9507_v44 }
0x1d24   : > { %5842 = vmatprep.subr.mxu0 %v5564_v51  ;;  %v5433_v51 = vld [vmem:[#allocation4 + $0x35] ss:$8 sm:$0x3] }
0x1d25   : > { %5843 = vmatpush1.msra.mxu0 %v5563_v43  ;;  %v5413_v43 = vsel %vm1363_vm5, 0.0, %v5411_v41 }
0x1d26   : > { %5844 = vmatprep.subr.mxu0 %v5562_v45 }
0x1d27   : > { %5845 = vmatpush1.msra.mxu0 %v5561_v53 }
0x1d28   : > { %5846 = vmatprep.subr.mxu0 %v5560_v54 }
0x1d29   : > { %5847 = vmatpush1.msra.mxu0 %v5559_v55  ;;  %v5427_v55 = vrot.slane %v5418_v40, %v9509_v47  ;;  %v5676_v40 = vld [vmem:[#allocation28 + $0x3d8] sm:$0xff] }
0x1d2a   : > { %5848 = vmatprep.subr.mxu0 %v5558_v56  ;;  %v5414_v56 = vsel %vm1363_vm5, %v5411_v41, 0.0  ;;  %v5675_v41 = vld [vmem:[#allocation28 + $0x3d0] sm:$0xff] }
0x1d2b   : > { %5849 = vmatpush1.msra.mxu0 %v5557_v57  ;;  %v5438_v57 = vrot.slane %v5433_v51, %v9507_v44 }
0x1d2c   : > { %5850 = vmatprep.subr.mxu0 %v5556_v58 }
0x1d2d   : > { %5851 = vmatpush1.msra.mxu0 %v5555_v59 }
0x1d2e   : > { %5852 = vmatprep.subr.mxu0 %v5554_v60  ;;  %v5442_v60 = vrot.slane %v5433_v51, %v9509_v47  ;;  %v5669_v51 = vld [vmem:[#allocation28 + $0x3a0] sm:$0xff] }
0x1d2f   : > { %5853 = vmatpush1.msra.mxu0 %v5553_v61 }
0x1d30   : > { %5854 = vmatprep.subr.mxu0 %v5616_v62 }
0x1d31   : > { %5855 = vmatpush2.msra.mxu0 %v5615_v63 }
0x1d32   : > { %5856 = vmatprep.subr.mxu0 %v5614_v0 }
0x1d33   : > { %5857 = vmatpush2.msra.mxu0 %v5613_v1 }
0x1d34   : > { %5858 = vmatprep.subr.mxu0 %v5612_v2  ;;  %v5450_v2 = vld [vmem:[#allocation2 + $0x440] sm:$0xff] }
0x1d35   : > { %5859 = vmatpush2.msra.mxu0 %v5611_v3  ;;  %v5648_v3 = vld [vmem:[#allocation28 + $0x2f8] sm:$0xff] }
0x1d36   : > { %5860 = vmatprep.subr.mxu0 %v5610_v4  ;;  %v5647_v4 = vld [vmem:[#allocation28 + $0x2f0] sm:$0xff] }
0x1d37   : > { %5861 = vmatpush2.msra.mxu0 %v5609_v5  ;;  %v5646_v5 = vld [vmem:[#allocation28 + $0x2e8] sm:$0xff] }
0x1d38   : > { %5862 = vmatprep.subr.mxu0 %v5608_v7  ;;  %v5645_v7 = vld [vmem:[#allocation28 + $0x2e0] sm:$0xff] }
0x1d39   : > { %5863 = vmatpush2.msra.mxu0 %v5607_v8  ;;  %v5451_v8 = vld [vmem:[#allocation2 + $0x448] sm:$0xff] }
0x1d3a   : > { %5864 = vmatprep.subr.mxu0 %v5606_v9  ;;  %v5644_v9 = vld [vmem:[#allocation28 + $0x2d8] sm:$0xff] }
0x1d3b   : > { %5865 = vmatpush2.msra.mxu0 %v5605_v10  ;;  %v5643_v10 = vld [vmem:[#allocation28 + $0x2d0] sm:$0xff] }
0x1d3c   : > { %5866 = vmatprep.subr.mxu0 %v5604_v11  ;;  %v5642_v11 = vld [vmem:[#allocation28 + $0x2c8] sm:$0xff] }
0x1d3d   : > { %5867 = vmatpush2.msra.mxu0 %v5603_v12  ;;  %v5641_v12 = vld [vmem:[#allocation28 + $0x2c0] sm:$0xff] }
0x1d3e   : > { %5868 = vmatprep.subr.mxu0 %v5602_v13  ;;  %v5640_v13 = vld [vmem:[#allocation28 + $0x2b8] sm:$0xff] }
0x1d3f   : > { %5869 = vmatpush2.msra.mxu0 %v5601_v14  ;;  %v5639_v14 = vld [vmem:[#allocation28 + $0x2b0] sm:$0xff] }
0x1d40   : > { %5870 = vmatprep.subr.mxu0 %v5600_v15  ;;  %v5638_v15 = vld [vmem:[#allocation28 + $0x2a8] sm:$0xff] }
0x1d41   : > { %5871 = vmatpush2.msra.mxu0 %v5599_v16  ;;  %v5637_v16 = vld [vmem:[#allocation28 + $0x2a0] sm:$0xff] }
0x1d42   : > { %5872 = vmatprep.subr.mxu0 %v5598_v17  ;;  %v5636_v17 = vld [vmem:[#allocation28 + $0x298] sm:$0xff] }
0x1d43   : > { %5873 = vmatpush2.msra.mxu0 %v5597_v18  ;;  %v5635_v18 = vld [vmem:[#allocation28 + $0x290] sm:$0xff] }
0x1d44   : > { %5874 = vmatprep.subr.mxu0 %v5596_v19  ;;  %v5634_v19 = vld [vmem:[#allocation28 + $0x288] sm:$0xff] }
0x1d45   : > { %5875 = vmatpush2.msra.mxu0 %v5595_v20  ;;  %v5633_v20 = vld [vmem:[#allocation28 + $0x280] sm:$0xff] }
0x1d46   : > { %5876 = vmatprep.subr.mxu0 %v5594_v21  ;;  %v5632_v21 = vld [vmem:[#allocation28 + $0x278] sm:$0xff] }
0x1d47   : > { %5877 = vmatpush2.msra.mxu0 %v5593_v22  ;;  %v5631_v22 = vld [vmem:[#allocation28 + $0x270] sm:$0xff] }
0x1d48   : > { %5878 = vmatprep.subr.mxu0 %v5592_v23  ;;  %v5630_v23 = vld [vmem:[#allocation28 + $0x268] sm:$0xff] }
0x1d49   : > { %5879 = vmatpush2.msra.mxu0 %v5591_v24  ;;  %v5629_v24 = vld [vmem:[#allocation28 + $0x260] sm:$0xff] }
0x1d4a   : > { %5880 = vmatprep.subr.mxu0 %v5590_v6  ;;  %v5628_v6 = vld [vmem:[#allocation28 + $0x258] sm:$0xff] }
0x1d4b   : > { %5881 = vmatpush2.msra.mxu0 %v5589_v25  ;;  %v5627_v25 = vld [vmem:[#allocation28 + $0x250] sm:$0xff] }
0x1d4c   : > { %5882 = vmatprep.subr.mxu0 %v5588_v26  ;;  %v5626_v26 = vld [vmem:[#allocation28 + $0x248] sm:$0xff] }
0x1d8d   : > { %v5191_v28 = vpop.f32.mrf.mxu1 }
0x1d8e   : > { %v5192_v33 = vadd.f32 %v5191_v28, %v5118_v29  ;;  %v5624_v28 = vld [vmem:[#allocation28 + $0x238] sm:$0xff]  ;;  %v5623_v29 = vld [vmem:[#allocation28 + $0x230] sm:$0xff] }
0x1d8f   : > { %v5193_v31 = vpop.f32.mrf.mxu1  ;;  %v5262_v32 = vpop.f32.mrf.mxu0 }
0x1d90   : > { %v5194_v34 = vadd.f32 %v5193_v31, %v5122_v30  ;;  %v5263_v35 = vadd.f32 %v5262_v32, %v5192_v33  ;;  %v5622_v30 = vld [vmem:[#allocation28 + $0x228] sm:$0xff]  ;;  %v5621_v31 = vld [vmem:[#allocation28 + $0x220] sm:$0xff]  ;;  %v5620_v32 = vld [vmem:[#allocation28 + $0x218] sm:$0xff] }
0x1d91   : > { %v5264_v37 = vpop.f32.mrf.mxu0  ;;  %v5619_v33 = vld [vmem:[#allocation28 + $0x210] sm:$0xff] }
0x1d92   : > { %v5265_v38 = vadd.f32 %v5264_v37, %v5194_v34  ;;  %v5618_v34 = vld [vmem:[#allocation28 + $0x208] sm:$0xff]  ;;  %v5617_v37 = vld [vmem:[#allocation28 + $0x200] sm:$0xff] }
0x1dcd   : > { %v5333_v36 = vpop.f32.mrf.mxu1 }
0x1dce   : > { %v5334_v39 = vadd.f32 %v5333_v36, %v5263_v35  ;;  %v5680_v35 = vld [vmem:[#allocation28 + $0x3f8] sm:$0xff]  ;;  %v5679_v36 = vld [vmem:[#allocation28 + $0x3f0] sm:$0xff] }
0x1dcf   : > { %v5335_v42 = vpop.f32.mrf.mxu1 }
0x1dd0   : > { %v5336_v46 = vadd.f32 %v5335_v42, %v5265_v38  ;;  %v5404_v48 = vpop.f32.mrf.mxu0  ;;  %v5678_v38 = vld [vmem:[#allocation28 + $0x3e8] sm:$0xff] }
0x1dd1   : > { %v5405_v49 = vadd.f32 %v5404_v48, %v5334_v39  ;;  %v5677_v39 = vld [vmem:[#allocation28 + $0x3e0] sm:$0xff]  ;;  %v5674_v42 = vld [vmem:[#allocation28 + $0x3c8] sm:$0xff]  ;;  %v5672_v48 = vld [vmem:[#allocation28 + $0x3b8] sm:$0xff] }
0x1dd2   : > { %v5406_v45 = vpop.f32.mrf.mxu0 }
0x1dd3   : > { %v9527_v53 = vadd.f32 %v5413_v43, %v5405_v49  ;;  %v5407_v54 = vadd.f32 %v5406_v45, %v5336_v46  ;;  %v5673_v46 = vld [vmem:[#allocation28 + $0x3c0] sm:$0xff]  ;;  %v5671_v49 = vld [vmem:[#allocation28 + $0x3b0] sm:$0xff]  ;;  %v5668_v43 = vld [vmem:[#allocation28 + $0x398] sm:$0xff] }
0x1dd4   : > { %v5667_v45 = vld [vmem:[#allocation28 + $0x390] sm:$0xff] }
0x1dd5   : > { %v5430_v58 = vmul.f32 %v5423_v50, %v9527_v53  ;;  %v9533_v59 = vadd.f32 %v5414_v56, %v5407_v54  ;;  %v5670_v50 = vld [vmem:[#allocation28 + $0x3a8] sm:$0xff]  ;;  %v5664_v56 = vld [vmem:[#allocation28 + $0x378] sm:$0xff] }
0x1dd6   : > { %v5666_v54 = vld [vmem:[#allocation28 + $0x388] sm:$0xff] }
0x1dd7   : > { %v5431_v61 = vmul.f32 %v5427_v55, %v9533_v59  ;;  %v5445_v62 = vadd.f32 %v5438_v57, %v5430_v58  ;;  %v5665_v55 = vld [vmem:[#allocation28 + $0x380] sm:$0xff]  ;;  %v5663_v57 = vld [vmem:[#allocation28 + $0x370] sm:$0xff]  ;;  %v5662_v58 = vld [vmem:[#allocation28 + $0x368] sm:$0xff] }
0x1dd9   : > { %v5446_v63 = vadd.f32 %v5442_v60, %v5431_v61  ;;  %v5447_v1 = vmax.f32 %v5445_v62, 0.0  ;;  %v5661_v60 = vld [vmem:[#allocation28 + $0x360] sm:$0xff]  ;;  %v5660_v61 = vld [vmem:[#allocation28 + $0x358] sm:$0xff]  ;;  %v5659_v62 = vld [vmem:[#allocation28 + $0x350] sm:$0xff] }
0x1ddb   : > { %v5448_v0 = vmax.f32 %v5446_v63, 0.0  ;;  %v5658_v63 = vld [vmem:[#allocation28 + $0x348] sm:$0xff] }
0x1ddd   : > { %7192 = vmatprep.subr.msk.mxu1 %vm3969_vm9, %v5448_v0  ;;  %v5657_v0 = vld [vmem:[#allocation28 + $0x340] sm:$0xff] }
0x1dde   : > { %7193 = vmatpush1.msk.msra.mxu1 %vm3969_vm9, %v5447_v1  ;;  %v5656_v1 = vld [vmem:[#allocation28 + $0x338] sm:$0xff] }
0x1ddf   : > { %7194 = vmatmul.mubr.msk.f32.vlgmr.msra.gmra.mxu1 %vm1097_vm1, %v5450_v2  ;;  %5893 = vmatprep.subr.mxu1 %v5648_v3  ;;  %v5655_v2 = vld [vmem:[#allocation28 + $0x330] sm:$0xff]  ;;  %v5654_v3 = vld [vmem:[#allocation28 + $0x328] sm:$0xff] }
0x1de0   : > { %5534 = vmatprep.mubr.f32.mxu1 %v8887_v52  ;;  %5894 = vmatpush1.msra.mxu1 %v5647_v4  ;;  %v5587_v4 = vld [vmem:[#allocation28 + $0x110] sm:$0xff] }
0x1de1   : > { %5895 = vmatprep.subr.mxu1 %v5646_v5  ;;  %v5653_v5 = vld [vmem:[#allocation28 + $0x320] sm:$0xff]  ;;  %5883 = vmatpush2.msra.mxu0 %v5587_v4  ;;  %v5754_v4 = vld [vmem:[#allocation28 + $0x648] sm:$0xff] }
0x1de2   : > { %5896 = vmatpush1.msra.mxu1 %v5645_v7  ;;  %v5586_v7 = vld [vmem:[#allocation28 + $0x108] sm:$0xff] }
0x1de3   : > { %7195 = vmatmul.mubr.msk.f32.gmra.mxu1 %vm1097_vm1, %v5451_v8  ;;  %5897 = vmatprep.subr.mxu1 %v5644_v9  ;;  %v5652_v8 = vld [vmem:[#allocation28 + $0x318] sm:$0xff]  ;;  %v5585_v9 = vld [vmem:[#allocation28 + $0x100] sm:$0xff] }
0x1de4   : > { %5898 = vmatpush1.msra.mxu1 %v5643_v10  ;;  %5884 = vmatprep.subr.mxu0 %v5586_v7  ;;  %v5651_v10 = vld [vmem:[#allocation28 + $0x310] sm:$0xff]  ;;  %v5753_v7 = vld [vmem:[#allocation28 + $0x640] sm:$0xff] }
0x1de5   : > { %5899 = vmatprep.subr.mxu1 %v5642_v11  ;;  %5885 = vmatpush2.msra.mxu0 %v5585_v9  ;;  %v5650_v11 = vld [vmem:[#allocation28 + $0x308] sm:$0xff]  ;;  %v5752_v9 = vld [vmem:[#allocation28 + $0x638] sm:$0xff] }
0x1de6   : > { %5900 = vmatpush1.msra.mxu1 %v5641_v12  ;;  %v5712_v12 = vld [vmem:[#allocation28 + $0x4f8] sm:$0xff] }
0x1de7   : > { %5901 = vmatprep.subr.mxu1 %v5640_v13  ;;  %5964 = vmatprep.subr.mxu0 %v5712_v12  ;;  %v5649_v13 = vld [vmem:[#allocation28 + $0x300] sm:$0xff]  ;;  %v5684_v12 = vld [vmem:[#allocation28 + $0x418] sm:$0xff] }
0x1de8   : > { %5902 = vmatpush1.msra.mxu1 %v5639_v14  ;;  %v5776_v14 = vld [vmem:[#allocation28 + $0x6f8] sm:$0xff] }
0x1de9   : > { %5903 = vmatprep.subr.mxu1 %v5638_v15 }
0x1dea   : > { %5904 = vmatpush1.msra.mxu1 %v5637_v16 }
0x1deb   : > { %5905 = vmatprep.subr.mxu1 %v5636_v17  ;;  %v5711_v17 = vld [vmem:[#allocation28 + $0x4f0] sm:$0xff] }
0x1dec   : > { %5906 = vmatpush1.msra.mxu1 %v5635_v18 }
0x1ded   : > { %5907 = vmatprep.subr.mxu1 %v5634_v19  ;;  %v5710_v19 = vld [vmem:[#allocation28 + $0x4e8] sm:$0xff] }
0x1dee   : > { %5908 = vmatpush1.msra.mxu1 %v5633_v20 }
0x1def   : > { %5909 = vmatprep.subr.mxu1 %v5632_v21  ;;  %v5709_v21 = vld [vmem:[#allocation28 + $0x4e0] sm:$0xff] }
0x1df0   : > { %5910 = vmatpush1.msra.mxu1 %v5631_v22  ;;  %v5775_v22 = vld [vmem:[#allocation28 + $0x6f0] sm:$0xff] }
0x1df1   : > { %5911 = vmatprep.subr.mxu1 %v5630_v23  ;;  %v5708_v23 = vld [vmem:[#allocation28 + $0x4d8] sm:$0xff] }
0x1df2   : > { %5912 = vmatpush1.msra.mxu1 %v5629_v24  ;;  %v5774_v24 = vld [vmem:[#allocation28 + $0x6e8] sm:$0xff] }
0x1df3   : > { %5913 = vmatprep.subr.mxu1 %v5628_v6  ;;  %v5707_v6 = vld [vmem:[#allocation28 + $0x4d0] sm:$0xff] }
0x1df4   : > { %5914 = vmatpush1.msra.mxu1 %v5627_v25  ;;  %v5773_v25 = vld [vmem:[#allocation28 + $0x6e0] sm:$0xff] }
0x1df5   : > { %5915 = vmatprep.subr.mxu1 %v5626_v26  ;;  %v5706_v26 = vld [vmem:[#allocation28 + $0x4c8] sm:$0xff] }
0x1df6   : > { %5916 = vmatpush1.msra.mxu1 %v5625_v27  ;;  %v5772_v27 = vld [vmem:[#allocation28 + $0x6d8] sm:$0xff] }
0x1df7   : > { %5917 = vmatprep.subr.mxu1 %v5624_v28  ;;  %v5705_v28 = vld [vmem:[#allocation28 + $0x4c0] sm:$0xff] }
0x1df8   : > { %5918 = vmatpush1.msra.mxu1 %v5623_v29  ;;  %v5771_v29 = vld [vmem:[#allocation28 + $0x6d0] sm:$0xff] }
0x1df9   : > { %5919 = vmatprep.subr.mxu1 %v5622_v30  ;;  %v5704_v30 = vld [vmem:[#allocation28 + $0x4b8] sm:$0xff] }
0x1dfa   : > { %5920 = vmatpush1.msra.mxu1 %v5621_v31  ;;  %v5770_v31 = vld [vmem:[#allocation28 + $0x6c8] sm:$0xff] }
0x1dfb   : > { %5921 = vmatprep.subr.mxu1 %v5620_v32  ;;  %v5703_v32 = vld [vmem:[#allocation28 + $0x4b0] sm:$0xff] }
0x1dfc   : > { %5922 = vmatpush1.msra.mxu1 %v5619_v33  ;;  %v5769_v33 = vld [vmem:[#allocation28 + $0x6c0] sm:$0xff] }
0x1dfd   : > { %5923 = vmatprep.subr.mxu1 %v5618_v34  ;;  %v5702_v34 = vld [vmem:[#allocation28 + $0x4a8] sm:$0xff] }
0x1dfe   : > { %5924 = vmatpush1.msra.mxu1 %v5617_v37  ;;  %v5768_v37 = vld [vmem:[#allocation28 + $0x6b8] sm:$0xff] }
0x1dff   : > { %5925 = vmatprep.subr.mxu1 %v5680_v35  ;;  %v5701_v35 = vld [vmem:[#allocation28 + $0x4a0] sm:$0xff] }
0x1e00   : > { %5926 = vmatpush2.msra.mxu1 %v5679_v36  ;;  %v5767_v36 = vld [vmem:[#allocation28 + $0x6b0] sm:$0xff] }
0x1e01   : > { %5927 = vmatprep.subr.mxu1 %v5678_v38  ;;  %v5700_v38 = vld [vmem:[#allocation28 + $0x498] sm:$0xff] }
0x1e02   : > { %5928 = vmatpush2.msra.mxu1 %v5677_v39  ;;  %v5766_v39 = vld [vmem:[#allocation28 + $0x6a8] sm:$0xff] }
0x1e03   : > { %5929 = vmatprep.subr.mxu1 %v5676_v40  ;;  %v5699_v40 = vld [vmem:[#allocation28 + $0x490] sm:$0xff] }
0x1e04   : > { %5930 = vmatpush2.msra.mxu1 %v5675_v41  ;;  %v5765_v41 = vld [vmem:[#allocation28 + $0x6a0] sm:$0xff] }
0x1e05   : > { %5931 = vmatprep.subr.mxu1 %v5674_v42  ;;  %v5698_v42 = vld [vmem:[#allocation28 + $0x488] sm:$0xff] }
0x1e06   : > { %5932 = vmatpush2.msra.mxu1 %v5673_v46  ;;  %v5764_v46 = vld [vmem:[#allocation28 + $0x698] sm:$0xff] }
0x1e07   : > { %5933 = vmatprep.subr.mxu1 %v5672_v48  ;;  %v5697_v48 = vld [vmem:[#allocation28 + $0x480] sm:$0xff] }
0x1e08   : > { %5934 = vmatpush2.msra.mxu1 %v5671_v49  ;;  %v5763_v49 = vld [vmem:[#allocation28 + $0x690] sm:$0xff] }
0x1e09   : > { %5935 = vmatprep.subr.mxu1 %v5670_v50  ;;  %v5696_v50 = vld [vmem:[#allocation28 + $0x478] sm:$0xff] }
0x1e0a   : > { %5936 = vmatpush2.msra.mxu1 %v5669_v51  ;;  %v5762_v51 = vld [vmem:[#allocation28 + $0x688] sm:$0xff] }
0x1e0b   : > { %5937 = vmatprep.subr.mxu1 %v5668_v43  ;;  %v5695_v43 = vld [vmem:[#allocation28 + $0x470] sm:$0xff] }
0x1e0c   : > { %5938 = vmatpush2.msra.mxu1 %v5667_v45  ;;  %v5761_v45 = vld [vmem:[#allocation28 + $0x680] sm:$0xff] }
0x1e0d   : > { %5939 = vmatprep.subr.mxu1 %v5666_v54  ;;  %v5694_v54 = vld [vmem:[#allocation28 + $0x468] sm:$0xff] }
0x1e0e   : > { %5940 = vmatpush2.msra.mxu1 %v5665_v55  ;;  %v5760_v55 = vld [vmem:[#allocation28 + $0x678] sm:$0xff] }
0x1e0f   : > { %5941 = vmatprep.subr.mxu1 %v5664_v56  ;;  %v5693_v56 = vld [vmem:[#allocation28 + $0x460] sm:$0xff] }
0x1e10   : > { %5942 = vmatpush2.msra.mxu1 %v5663_v57  ;;  %v5759_v57 = vld [vmem:[#allocation28 + $0x670] sm:$0xff] }
0x1e11   : > { %5943 = vmatprep.subr.mxu1 %v5662_v58  ;;  %v5692_v58 = vld [vmem:[#allocation28 + $0x458] sm:$0xff] }
0x1e12   : > { %5944 = vmatpush2.msra.mxu1 %v5661_v60  ;;  %v5758_v60 = vld [vmem:[#allocation28 + $0x668] sm:$0xff] }
0x1e13   : > { %5945 = vmatprep.subr.mxu1 %v5660_v61  ;;  %v5691_v61 = vld [vmem:[#allocation28 + $0x450] sm:$0xff] }
0x1e14   : > { %5946 = vmatpush2.msra.mxu1 %v5659_v62  ;;  %v5757_v62 = vld [vmem:[#allocation28 + $0x660] sm:$0xff] }
0x1e15   : > { %5947 = vmatprep.subr.mxu1 %v5658_v63  ;;  %v5690_v63 = vld [vmem:[#allocation28 + $0x448] sm:$0xff] }
0x1e16   : > { %5948 = vmatpush2.msra.mxu1 %v5657_v0  ;;  %v5756_v0 = vld [vmem:[#allocation28 + $0x658] sm:$0xff] }
0x1e17   : > { %5949 = vmatprep.subr.mxu1 %v5656_v1  ;;  %v5689_v1 = vld [vmem:[#allocation28 + $0x440] sm:$0xff] }
0x1e18   : > { %5950 = vmatpush2.msra.mxu1 %v5655_v2  ;;  %v5755_v2 = vld [vmem:[#allocation28 + $0x650] sm:$0xff] }
0x1e19   : > { %5951 = vmatprep.subr.mxu1 %v5654_v3  ;;  %v5688_v3 = vld [vmem:[#allocation28 + $0x438] sm:$0xff] }
0x1e1a   : > { %5952 = vmatpush2.msra.mxu1 %v5653_v5  ;;  %v5687_v5 = vld [vmem:[#allocation28 + $0x430] sm:$0xff] }
0x1e1b   : > { %5953 = vmatprep.subr.mxu1 %v5652_v8  ;;  %v5686_v8 = vld [vmem:[#allocation28 + $0x428] sm:$0xff] }
0x1e1c   : > { %5954 = vmatpush2.msra.mxu1 %v5651_v10  ;;  %v5685_v10 = vld [vmem:[#allocation28 + $0x420] sm:$0xff] }
0x1e1d   : > { %5955 = vmatprep.subr.mxu1 %v5650_v11  ;;  %v5751_v11 = vld [vmem:[#allocation28 + $0x630] sm:$0xff] }
0x1e1e   : > { %5956 = vmatpush2.msra.mxu1 %v5649_v13  ;;  %v5750_v13 = vld [vmem:[#allocation28 + $0x628] sm:$0xff] }
0x1e1f   : > { %6035 = vmatprep.subr.mxu1 %v5776_v14  ;;  %v5683_v14 = vld [vmem:[#allocation28 + $0x410] sm:$0xff] }
0x1e9f   : > { %v5530_v15 = vpop.f32.mrf.mxu1 }
0x1ea0   : > { %v5543_v20 = vrot.slane %v5530_v15, 4 }
0x1ea1   : > { %v5532_v16 = vpop.f32.mrf.mxu1 }
0x1ea2   : > { %v5544_v18 = vrot.slane %v5532_v16, 4  ;;  %5886 = vmatprep.mubr.f32.mxu0 %v5532_v16  ;;  %v5682_v16 = vld [vmem:[#allocation28 + $0x408] sm:$0xff] }
0x1ea3   : > { %5887 = vmatmul.mubr.f32.vlgmr.msra.gmra.mxu0 %v5530_v15  ;;  %v5749_v15 = vld [vmem:[#allocation28 + $0x620] sm:$0xff] }
0x1ea4   : > { %5965 = vmatpush1.msra.mxu0 %v5711_v17  ;;  %5957 = vmatprep.mubr.f32.mxu1 %v5544_v18  ;;  %v5748_v17 = vld [vmem:[#allocation28 + $0x618] sm:$0xff]  ;;  %v5681_v18 = vld [vmem:[#allocation28 + $0x400] sm:$0xff] }
0x1ea5   : > { %5966 = vmatprep.subr.mxu0 %v5710_v19  ;;  %5958 = vmatmul.mubr.f32.vlgmr.msra.gmra.mxu1 %v5543_v20  ;;  %v5747_v19 = vld [vmem:[#allocation28 + $0x610] sm:$0xff]  ;;  %v5744_v20 = vld [vmem:[#allocation28 + $0x5f8] sm:$0xff] }
0x1ea6   : > { %5967 = vmatpush1.msra.mxu0 %v5709_v21  ;;  %6036 = vmatpush1.msra.mxu1 %v5775_v22  ;;  %v5746_v21 = vld [vmem:[#allocation28 + $0x608] sm:$0xff]  ;;  %v5743_v22 = vld [vmem:[#allocation28 + $0x5f0] sm:$0xff] }
0x1ea7   : > { %5968 = vmatprep.subr.mxu0 %v5708_v23  ;;  %6037 = vmatprep.subr.mxu1 %v5774_v24  ;;  %v5745_v23 = vld [vmem:[#allocation28 + $0x600] sm:$0xff]  ;;  %v5742_v24 = vld [vmem:[#allocation28 + $0x5e8] sm:$0xff] }
0x1ea8   : > { %5969 = vmatpush1.msra.mxu0 %v5707_v6  ;;  %6038 = vmatpush1.msra.mxu1 %v5773_v25  ;;  %v5808_v6 = vld [vmem:[#allocation28 + $0x7f8] sm:$0xff]  ;;  %v5741_v25 = vld [vmem:[#allocation28 + $0x5e0] sm:$0xff] }
0x1ea9   : > { %5970 = vmatprep.subr.mxu0 %v5706_v26  ;;  %6039 = vmatprep.subr.mxu1 %v5772_v27  ;;  %v5807_v26 = vld [vmem:[#allocation28 + $0x7f0] sm:$0xff]  ;;  %v5740_v27 = vld [vmem:[#allocation28 + $0x5d8] sm:$0xff] }
0x1eaa   : > { %5971 = vmatpush1.msra.mxu0 %v5705_v28  ;;  %6040 = vmatpush1.msra.mxu1 %v5771_v29  ;;  %v5806_v28 = vld [vmem:[#allocation28 + $0x7e8] sm:$0xff]  ;;  %v5739_v29 = vld [vmem:[#allocation28 + $0x5d0] sm:$0xff] }
0x1eab   : > { %5972 = vmatprep.subr.mxu0 %v5704_v30  ;;  %6041 = vmatprep.subr.mxu1 %v5770_v31  ;;  %v5805_v30 = vld [vmem:[#allocation28 + $0x7e0] sm:$0xff]  ;;  %v5738_v31 = vld [vmem:[#allocation28 + $0x5c8] sm:$0xff] }
0x1eac   : > { %5973 = vmatpush1.msra.mxu0 %v5703_v32  ;;  %6042 = vmatpush1.msra.mxu1 %v5769_v33  ;;  %v5804_v32 = vld [vmem:[#allocation28 + $0x7d8] sm:$0xff]  ;;  %v5737_v33 = vld [vmem:[#allocation28 + $0x5c0] sm:$0xff] }
0x1ead   : > { %5974 = vmatprep.subr.mxu0 %v5702_v34  ;;  %6043 = vmatprep.subr.mxu1 %v5768_v37  ;;  %v5803_v34 = vld [vmem:[#allocation28 + $0x7d0] sm:$0xff]  ;;  %v5736_v37 = vld [vmem:[#allocation28 + $0x5b8] sm:$0xff] }
0x1eae   : > { %5975 = vmatpush1.msra.mxu0 %v5701_v35  ;;  %6044 = vmatpush1.msra.mxu1 %v5767_v36  ;;  %v5802_v35 = vld [vmem:[#allocation28 + $0x7c8] sm:$0xff]  ;;  %v5735_v36 = vld [vmem:[#allocation28 + $0x5b0] sm:$0xff] }
0x1eaf   : > { %5976 = vmatprep.subr.mxu0 %v5700_v38  ;;  %6045 = vmatprep.subr.mxu1 %v5766_v39  ;;  %v5801_v38 = vld [vmem:[#allocation28 + $0x7c0] sm:$0xff]  ;;  %v5734_v39 = vld [vmem:[#allocation28 + $0x5a8] sm:$0xff] }
0x1eb0   : > { %5977 = vmatpush1.msra.mxu0 %v5699_v40  ;;  %6046 = vmatpush1.msra.mxu1 %v5765_v41  ;;  %v5800_v40 = vld [vmem:[#allocation28 + $0x7b8] sm:$0xff]  ;;  %v5733_v41 = vld [vmem:[#allocation28 + $0x5a0] sm:$0xff] }
0x1eb1   : > { %5978 = vmatprep.subr.mxu0 %v5698_v42  ;;  %6047 = vmatprep.subr.mxu1 %v5764_v46  ;;  %v5799_v42 = vld [vmem:[#allocation28 + $0x7b0] sm:$0xff]  ;;  %v5732_v46 = vld [vmem:[#allocation28 + $0x598] sm:$0xff] }
0x1eb2   : > { %5979 = vmatpush1.msra.mxu0 %v5697_v48  ;;  %6048 = vmatpush1.msra.mxu1 %v5763_v49  ;;  %v5798_v48 = vld [vmem:[#allocation28 + $0x7a8] sm:$0xff]  ;;  %v5731_v49 = vld [vmem:[#allocation28 + $0x590] sm:$0xff] }
0x1eb3   : > { %5980 = vmatprep.subr.mxu0 %v5696_v50  ;;  %6049 = vmatprep.subr.mxu1 %v5762_v51  ;;  %v5797_v50 = vld [vmem:[#allocation28 + $0x7a0] sm:$0xff]  ;;  %v5730_v51 = vld [vmem:[#allocation28 + $0x588] sm:$0xff] }
0x1eb4   : > { %5981 = vmatpush1.msra.mxu0 %v5695_v43  ;;  %6050 = vmatpush1.msra.mxu1 %v5761_v45  ;;  %v5796_v43 = vld [vmem:[#allocation28 + $0x798] sm:$0xff]  ;;  %v5729_v45 = vld [vmem:[#allocation28 + $0x580] sm:$0xff] }
0x1eb5   : > { %5982 = vmatprep.subr.mxu0 %v5694_v54  ;;  %6051 = vmatprep.subr.mxu1 %v5760_v55  ;;  %v5795_v54 = vld [vmem:[#allocation28 + $0x790] sm:$0xff]  ;;  %v5728_v55 = vld [vmem:[#allocation28 + $0x578] sm:$0xff] }
0x1eb6   : > { %5983 = vmatpush1.msra.mxu0 %v5693_v56  ;;  %6052 = vmatpush1.msra.mxu1 %v5759_v57  ;;  %v5794_v56 = vld [vmem:[#allocation28 + $0x788] sm:$0xff]  ;;  %v5727_v57 = vld [vmem:[#allocation28 + $0x570] sm:$0xff] }
0x1eb7   : > { %5984 = vmatprep.subr.mxu0 %v5692_v58  ;;  %6053 = vmatprep.subr.mxu1 %v5758_v60  ;;  %v5793_v58 = vld [vmem:[#allocation28 + $0x780] sm:$0xff]  ;;  %v5726_v60 = vld [vmem:[#allocation28 + $0x568] sm:$0xff] }
0x1eb8   : > { %5985 = vmatpush1.msra.mxu0 %v5691_v61  ;;  %6054 = vmatpush1.msra.mxu1 %v5757_v62  ;;  %v5792_v61 = vld [vmem:[#allocation28 + $0x778] sm:$0xff]  ;;  %v5725_v62 = vld [vmem:[#allocation28 + $0x560] sm:$0xff] }
0x1eb9   : > { %5986 = vmatprep.subr.mxu0 %v5690_v63  ;;  %6055 = vmatprep.subr.mxu1 %v5756_v0  ;;  %v5791_v63 = vld [vmem:[#allocation28 + $0x770] sm:$0xff]  ;;  %v5724_v0 = vld [vmem:[#allocation28 + $0x558] sm:$0xff] }
0x1eba   : > { %5987 = vmatpush1.msra.mxu0 %v5689_v1  ;;  %6056 = vmatpush1.msra.mxu1 %v5755_v2  ;;  %v5790_v1 = vld [vmem:[#allocation28 + $0x768] sm:$0xff]  ;;  %v5723_v2 = vld [vmem:[#allocation28 + $0x550] sm:$0xff] }
0x1ebb   : > { %5988 = vmatprep.subr.mxu0 %v5688_v3  ;;  %6057 = vmatprep.subr.mxu1 %v5754_v4  ;;  %v5789_v3 = vld [vmem:[#allocation28 + $0x760] sm:$0xff]  ;;  %v5722_v4 = vld [vmem:[#allocation28 + $0x548] sm:$0xff] }
0x1ebc   : > { %5989 = vmatpush1.msra.mxu0 %v5687_v5  ;;  %6058 = vmatpush1.msra.mxu1 %v5753_v7  ;;  %v5788_v5 = vld [vmem:[#allocation28 + $0x758] sm:$0xff]  ;;  %v5721_v7 = vld [vmem:[#allocation28 + $0x540] sm:$0xff] }
0x1ebd   : > { %5990 = vmatprep.subr.mxu0 %v5686_v8  ;;  %6059 = vmatprep.subr.mxu1 %v5752_v9  ;;  %v5787_v8 = vld [vmem:[#allocation28 + $0x750] sm:$0xff]  ;;  %v5720_v9 = vld [vmem:[#allocation28 + $0x538] sm:$0xff] }
0x1ebe   : > { %5991 = vmatpush1.msra.mxu0 %v5685_v10  ;;  %6060 = vmatpush1.msra.mxu1 %v5751_v11  ;;  %v5786_v10 = vld [vmem:[#allocation28 + $0x748] sm:$0xff]  ;;  %v5719_v11 = vld [vmem:[#allocation28 + $0x530] sm:$0xff] }
0x1ebf   : > { %5992 = vmatprep.subr.mxu0 %v5684_v12  ;;  %6061 = vmatprep.subr.mxu1 %v5750_v13  ;;  %v5785_v12 = vld [vmem:[#allocation28 + $0x740] sm:$0xff]  ;;  %v5536_v13 = vpop.f32.mrf.mxu1 }
0x1ec0   : > { %5993 = vmatpush1.msra.mxu0 %v5683_v14  ;;  %6062 = vmatpush1.msra.mxu1 %v5749_v15  ;;  %v5718_v14 = vld [vmem:[#allocation28 + $0x528] sm:$0xff]  ;;  %v5784_v15 = vld [vmem:[#allocation28 + $0x738] sm:$0xff] }
0x1ec1   : > { %5994 = vmatprep.subr.mxu0 %v5682_v16  ;;  %6063 = vmatprep.subr.mxu1 %v5748_v17  ;;  %v5717_v16 = vld [vmem:[#allocation28 + $0x520] sm:$0xff]  ;;  %v5783_v17 = vld [vmem:[#allocation28 + $0x730] sm:$0xff] }
0x1ec2   : > { %5995 = vmatpush1.msra.mxu0 %v5681_v18  ;;  %6064 = vmatpush1.msra.mxu1 %v5747_v19  ;;  %v5716_v18 = vld [vmem:[#allocation28 + $0x518] sm:$0xff]  ;;  %v5782_v19 = vld [vmem:[#allocation28 + $0x728] sm:$0xff] }
0x1ec3   : > { %5996 = vmatprep.subr.mxu0 %v5744_v20  ;;  %6065 = vmatprep.subr.mxu1 %v5746_v21  ;;  %v5715_v20 = vld [vmem:[#allocation28 + $0x510] sm:$0xff]  ;;  %v5781_v21 = vld [vmem:[#allocation28 + $0x720] sm:$0xff] }
0x1ec4   : > { %5997 = vmatpush2.msra.mxu0 %v5743_v22  ;;  %6066 = vmatpush1.msra.mxu1 %v5745_v23  ;;  %v5538_v22 = vpop.f32.mrf.mxu1  ;;  %v5714_v23 = vld [vmem:[#allocation28 + $0x508] sm:$0xff] }
0x1ec5   : > { %5998 = vmatprep.subr.mxu0 %v5742_v24  ;;  %6067 = vmatprep.subr.mxu1 %v5808_v6  ;;  %v5780_v24 = vld [vmem:[#allocation28 + $0x718] sm:$0xff]  ;;  %v5713_v6 = vld [vmem:[#allocation28 + $0x500] sm:$0xff] }
0x1ec6   : > { %5999 = vmatpush2.msra.mxu0 %v5741_v25  ;;  %6068 = vmatpush2.msra.mxu1 %v5807_v26  ;;  %v5550_v25 = vrot.slane %v5538_v22, 4  ;;  %v5779_v26 = vld [vmem:[#allocation28 + $0x710] sm:$0xff] }
0x1ec7   : > { %6000 = vmatprep.subr.mxu0 %v5740_v27  ;;  %6069 = vmatprep.subr.mxu1 %v5806_v28  ;;  %v5778_v27 = vld [vmem:[#allocation28 + $0x708] sm:$0xff]  ;;  %v5777_v28 = vld [vmem:[#allocation28 + $0x700] sm:$0xff] }
0x1ec8   : > { %6001 = vmatpush2.msra.mxu0 %v5739_v29  ;;  %6070 = vmatpush2.msra.mxu1 %v5805_v30  ;;  %v5549_v29 = vrot.slane %v5536_v13, 4  ;;  %v6273_v30 = vld [vmem:[#allocation30 + $0xf8] sm:$0xff] }
0x1ec9   : > { %6002 = vmatprep.subr.mxu0 %v5738_v31  ;;  %6071 = vmatprep.subr.mxu1 %v5804_v32  ;;  %v6272_v31 = vld [vmem:[#allocation30 + $0xf0] sm:$0xff]  ;;  %v6271_v32 = vld [vmem:[#allocation30 + $0xe8] sm:$0xff] }
0x1eca   : > { %6003 = vmatpush2.msra.mxu0 %v5737_v33  ;;  %6072 = vmatpush2.msra.mxu1 %v5803_v34  ;;  %v6270_v33 = vld [vmem:[#allocation30 + $0xe0] sm:$0xff]  ;;  %v6269_v34 = vld [vmem:[#allocation30 + $0xd8] sm:$0xff] }
0x1ecb   : > { %6004 = vmatprep.subr.mxu0 %v5736_v37  ;;  %6073 = vmatprep.subr.mxu1 %v5802_v35  ;;  %v6268_v37 = vld [vmem:[#allocation30 + $0xd0] sm:$0xff]  ;;  %v6267_v35 = vld [vmem:[#allocation30 + $0xc8] sm:$0xff] }
0x1ecc   : > { %6005 = vmatpush2.msra.mxu0 %v5735_v36  ;;  %6074 = vmatpush2.msra.mxu1 %v5801_v38  ;;  %v6266_v36 = vld [vmem:[#allocation30 + $0xc0] sm:$0xff]  ;;  %v6265_v38 = vld [vmem:[#allocation30 + $0xb8] sm:$0xff] }
0x1ecd   : > { %6006 = vmatprep.subr.mxu0 %v5734_v39  ;;  %6075 = vmatprep.subr.mxu1 %v5800_v40  ;;  %v6264_v39 = vld [vmem:[#allocation30 + $0xb0] sm:$0xff]  ;;  %v6263_v40 = vld [vmem:[#allocation30 + $0xa8] sm:$0xff] }
0x1ece   : > { %6007 = vmatpush2.msra.mxu0 %v5733_v41  ;;  %6076 = vmatpush2.msra.mxu1 %v5799_v42  ;;  %v6262_v41 = vld [vmem:[#allocation30 + $0xa0] sm:$0xff]  ;;  %v6261_v42 = vld [vmem:[#allocation30 + $0x98] sm:$0xff] }
0x1ecf   : > { %6008 = vmatprep.subr.mxu0 %v5732_v46  ;;  %6077 = vmatprep.subr.mxu1 %v5798_v48  ;;  %v6260_v46 = vld [vmem:[#allocation30 + $0x90] sm:$0xff]  ;;  %v6259_v48 = vld [vmem:[#allocation30 + $0x88] sm:$0xff] }
0x1ed0   : > { %6009 = vmatpush2.msra.mxu0 %v5731_v49  ;;  %6078 = vmatpush2.msra.mxu1 %v5797_v50  ;;  %v6258_v49 = vld [vmem:[#allocation30 + $0x80] sm:$0xff]  ;;  %v6257_v50 = vld [vmem:[#allocation30 + $0x78] sm:$0xff] }
0x1ed1   : > { %6010 = vmatprep.subr.mxu0 %v5730_v51  ;;  %6079 = vmatprep.subr.mxu1 %v5796_v43  ;;  %v6256_v51 = vld [vmem:[#allocation30 + $0x70] sm:$0xff]  ;;  %v6255_v43 = vld [vmem:[#allocation30 + $0x68] sm:$0xff] }
0x1ed2   : > { %6011 = vmatpush2.msra.mxu0 %v5729_v45  ;;  %6080 = vmatpush2.msra.mxu1 %v5795_v54  ;;  %v6254_v45 = vld [vmem:[#allocation30 + $0x60] sm:$0xff]  ;;  %v6253_v54 = vld [vmem:[#allocation30 + $0x58] sm:$0xff] }
0x1ed3   : > { %6012 = vmatprep.subr.mxu0 %v5728_v55  ;;  %6081 = vmatprep.subr.mxu1 %v5794_v56  ;;  %v6252_v55 = vld [vmem:[#allocation30 + $0x50] sm:$0xff]  ;;  %v6251_v56 = vld [vmem:[#allocation30 + $0x48] sm:$0xff] }
0x1ed4   : > { %6013 = vmatpush2.msra.mxu0 %v5727_v57  ;;  %6082 = vmatpush2.msra.mxu1 %v5793_v58  ;;  %v6250_v57 = vld [vmem:[#allocation30 + $0x40] sm:$0xff]  ;;  %v6249_v58 = vld [vmem:[#allocation30 + $0x38] sm:$0xff] }
0x1ed5   : > { %6014 = vmatprep.subr.mxu0 %v5726_v60  ;;  %6083 = vmatprep.subr.mxu1 %v5792_v61  ;;  %v6248_v60 = vld [vmem:[#allocation30 + $0x30] sm:$0xff]  ;;  %v6247_v61 = vld [vmem:[#allocation30 + $0x28] sm:$0xff] }
0x1ed6   : > { %6015 = vmatpush2.msra.mxu0 %v5725_v62  ;;  %6084 = vmatpush2.msra.mxu1 %v5791_v63  ;;  %v6246_v62 = vld [vmem:[#allocation30 + $0x20] sm:$0xff]  ;;  %v6245_v63 = vld [vmem:[#allocation30 + $0x18] sm:$0xff] }
0x1ed7   : > { %6016 = vmatprep.subr.mxu0 %v5724_v0  ;;  %6085 = vmatprep.subr.mxu1 %v5790_v1  ;;  %v6244_v0 = vld [vmem:[#allocation30 + $0x10] sm:$0xff]  ;;  %v6243_v1 = vld [vmem:[#allocation30 + $0x8] sm:$0xff] }
0x1ed8   : > { %6017 = vmatpush2.msra.mxu0 %v5723_v2  ;;  %6086 = vmatpush2.msra.mxu1 %v5789_v3  ;;  %v6242_v2 = vld [vmem:[#allocation30] sm:$0xff]  ;;  %v6305_v3 = vld [vmem:[#allocation30 + $0x1f8] sm:$0xff] }
0x1ed9   : > { %6018 = vmatprep.subr.mxu0 %v5722_v4  ;;  %6087 = vmatprep.subr.mxu1 %v5788_v5  ;;  %v6304_v4 = vld [vmem:[#allocation30 + $0x1f0] sm:$0xff]  ;;  %v6303_v5 = vld [vmem:[#allocation30 + $0x1e8] sm:$0xff] }
0x1eda   : > { %6019 = vmatpush2.msra.mxu0 %v5721_v7  ;;  %6088 = vmatpush2.msra.mxu1 %v5787_v8  ;;  %v6302_v7 = vld [vmem:[#allocation30 + $0x1e0] sm:$0xff]  ;;  %v6301_v8 = vld [vmem:[#allocation30 + $0x1d8] sm:$0xff] }
0x1edb   : > { %6020 = vmatprep.subr.mxu0 %v5720_v9  ;;  %6089 = vmatprep.subr.mxu1 %v5786_v10  ;;  %v6300_v9 = vld [vmem:[#allocation30 + $0x1d0] sm:$0xff]  ;;  %v6299_v10 = vld [vmem:[#allocation30 + $0x1c8] sm:$0xff] }
0x1edc   : > { %6021 = vmatpush2.msra.mxu0 %v5719_v11  ;;  %6090 = vmatpush2.msra.mxu1 %v5785_v12  ;;  %v6298_v11 = vld [vmem:[#allocation30 + $0x1c0] sm:$0xff]  ;;  %v6297_v12 = vld [vmem:[#allocation30 + $0x1b8] sm:$0xff] }
0x1edd   : > { %6022 = vmatprep.subr.mxu0 %v5718_v14  ;;  %6091 = vmatprep.subr.mxu1 %v5784_v15  ;;  %v6295_v14 = vld [vmem:[#allocation30 + $0x1a8] sm:$0xff]  ;;  %v6294_v15 = vld [vmem:[#allocation30 + $0x1a0] sm:$0xff] }
0x1ede   : > { %6023 = vmatpush2.msra.mxu0 %v5717_v16  ;;  %6092 = vmatpush2.msra.mxu1 %v5783_v17  ;;  %v6293_v16 = vld [vmem:[#allocation30 + $0x198] sm:$0xff]  ;;  %v6292_v17 = vld [vmem:[#allocation30 + $0x190] sm:$0xff] }
0x1edf   : > { %6024 = vmatprep.subr.mxu0 %v5716_v18  ;;  %6093 = vmatprep.subr.mxu1 %v5782_v19  ;;  %v6291_v18 = vld [vmem:[#allocation30 + $0x188] sm:$0xff]  ;;  %v6290_v19 = vld [vmem:[#allocation30 + $0x180] sm:$0xff] }
0x1ee0   : > { %6025 = vmatpush2.msra.mxu0 %v5715_v20  ;;  %6094 = vmatpush2.msra.mxu1 %v5781_v21  ;;  %v6289_v20 = vld [vmem:[#allocation30 + $0x178] sm:$0xff]  ;;  %v6288_v21 = vld [vmem:[#allocation30 + $0x170] sm:$0xff] }
0x1ee1   : > { %6026 = vmatprep.subr.mxu0 %v5714_v23  ;;  %6095 = vmatprep.subr.mxu1 %v5780_v24  ;;  %v6286_v23 = vld [vmem:[#allocation30 + $0x160] sm:$0xff]  ;;  %v6285_v24 = vld [vmem:[#allocation30 + $0x158] sm:$0xff] }
0x1ee2   : > { %6027 = vmatpush2.msra.mxu0 %v5713_v6  ;;  %6028 = vmatprep.mubr.f32.mxu0 %v5538_v22  ;;  %v6287_v22 = vld [vmem:[#allocation30 + $0x168] sm:$0xff]  ;;  %v6284_v6 = vld [vmem:[#allocation30 + $0x150] sm:$0xff] }
0x1ee3   : > { %6096 = vmatpush2.msra.mxu1 %v5779_v26  ;;  %6029 = vmatmul.mubr.f32.vlgmr.msra.gmra.mxu0 %v5536_v13  ;;  %v6296_v13 = vld [vmem:[#allocation30 + $0x1b0] sm:$0xff]  ;;  %v6282_v26 = vld [vmem:[#allocation30 + $0x140] sm:$0xff] }
0x1ee4   : > { %6097 = vmatprep.subr.mxu1 %v5778_v27  ;;  %6099 = vmatprep.mubr.f32.mxu1 %v5550_v25  ;;  %v6283_v25 = vld [vmem:[#allocation30 + $0x148] sm:$0xff]  ;;  %v6281_v27 = vld [vmem:[#allocation30 + $0x138] sm:$0xff] }
0x1ee5   : > { %6098 = vmatpush2.msra.mxu1 %v5777_v28  ;;  %6217 = vmatprep.mubr.f32.mxu0 %v8887_v52  ;;  %v6280_v28 = vld [vmem:[#allocation30 + $0x130] sm:$0xff] }
0x1ee6   : > { %6100 = vmatmul.mubr.f32.vlgmr.msra.gmra.mxu1 %v5549_v29  ;;  %6511 = vmatprep.subr.mxu1 %v6273_v30  ;;  %v6279_v29 = vld [vmem:[#allocation30 + $0x128] sm:$0xff]  ;;  %v6278_v30 = vld [vmem:[#allocation30 + $0x120] sm:$0xff] }
0x1ee7   : > { %6512 = vmatpush1.msra.mxu1 %v6272_v31  ;;  %v6277_v31 = vld [vmem:[#allocation30 + $0x118] sm:$0xff] }
0x1ee8   : > { %6513 = vmatprep.subr.mxu1 %v6271_v32  ;;  %v5810_v32 = vld [vmem:[#allocation6 + $0x17] ss:$8 sm:$0x3] }
0x1ee9   : > { %6514 = vmatpush1.msra.mxu1 %v6270_v33 }
0x1eea   : > { %6515 = vmatprep.subr.mxu1 %v6269_v34  ;;  %v5815_v34 = vrot.slane %v5810_v32, %v9507_v44 }
0x1eeb   : > { %6516 = vmatpush1.msra.mxu1 %v6268_v37  ;;  %v5819_v37 = vrot.slane %v5810_v32, %v9509_v47  ;;  %v6310_v32 = vld [vmem:[#allocation30 + $0x220] sm:$0xff] }
0x1eec   : > { %6517 = vmatprep.subr.mxu1 %v6267_v35 }
0x1eed   : > { %6518 = vmatpush1.msra.mxu1 %v6266_v36 }
0x1eee   : > { %6519 = vmatprep.subr.mxu1 %v6265_v38 }
0x1eef   : > { %6520 = vmatpush1.msra.mxu1 %v6264_v39 }
0x1ef0   : > { %6521 = vmatprep.subr.mxu1 %v6263_v40 }
0x1ef1   : > { %6522 = vmatpush1.msra.mxu1 %v6262_v41 }
0x1ef2   : > { %6523 = vmatprep.subr.mxu1 %v6261_v42  ;;  %v6107_v42 = vld [vmem:[#allocation4 + $0x36] ss:$8 sm:$0x3] }
0x1ef3   : > { %6524 = vmatpush1.msra.mxu1 %v6260_v46 }
0x1ef4   : > { %6525 = vmatprep.subr.mxu1 %v6259_v48 }
0x1ef5   : > { %6526 = vmatpush1.msra.mxu1 %v6258_v49 }
0x1ef6   : > { %6527 = vmatprep.subr.mxu1 %v6257_v50 }
0x1ef7   : > { %6528 = vmatpush1.msra.mxu1 %v6256_v51  ;;  %v6112_v51 = vrot.slane %v6107_v42, %v9507_v44 }
0x1ef8   : > { %6529 = vmatprep.subr.mxu1 %v6255_v43  ;;  %v6122_v43 = vld [vmem:[#allocation4 + $0x37] ss:$8 sm:$0x3] }
0x1ef9   : > { %6530 = vmatpush1.msra.mxu1 %v6254_v45 }
0x1efa   : > { %6531 = vmatprep.subr.mxu1 %v6253_v54 }
0x1efb   : > { %6532 = vmatpush1.msra.mxu1 %v6252_v55 }
0x1efc   : > { %6533 = vmatprep.subr.mxu1 %v6251_v56  ;;  %v6116_v56 = vrot.slane %v6107_v42, %v9509_v47  ;;  %v6364_v42 = vld [vmem:[#allocation30 + $0x3d0] sm:$0xff] }
0x1efd   : > { %6534 = vmatpush1.msra.mxu1 %v6250_v57  ;;  %v6127_v57 = vrot.slane %v6122_v43, %v9507_v44 }
0x1efe   : > { %6535 = vmatprep.subr.mxu1 %v6249_v58 }
0x1eff   : > { %6536 = vmatpush1.msra.mxu1 %v6248_v60 }
0x1f00   : > { %6537 = vmatprep.subr.mxu1 %v6247_v61 }
0x1f01   : > { %6538 = vmatpush1.msra.mxu1 %v6246_v62  ;;  %v6131_v62 = vrot.slane %v6122_v43, %v9509_v47  ;;  %v6358_v43 = vld [vmem:[#allocation30 + $0x3a0] sm:$0xff] }
0x1f02   : > { %6539 = vmatprep.subr.mxu1 %v6245_v63 }
0x1f03   : > { %6540 = vmatpush1.msra.mxu1 %v6244_v0 }
0x1f04   : > { %6541 = vmatprep.subr.mxu1 %v6243_v1 }
0x1f05   : > { %6542 = vmatpush1.msra.mxu1 %v6242_v2 }
0x1f06   : > { %6543 = vmatprep.subr.mxu1 %v6305_v3 }
0x1f07   : > { %6544 = vmatpush2.msra.mxu1 %v6304_v4  ;;  %v6139_v4 = vld [vmem:[#allocation2 + $0x480] sm:$0xff] }
0x1f08   : > { %6545 = vmatprep.subr.mxu1 %v6303_v5  ;;  %v6337_v5 = vld [vmem:[#allocation30 + $0x2f8] sm:$0xff] }
0x1f09   : > { %6546 = vmatpush2.msra.mxu1 %v6302_v7  ;;  %v6336_v7 = vld [vmem:[#allocation30 + $0x2f0] sm:$0xff] }
0x1f0a   : > { %6547 = vmatprep.subr.mxu1 %v6301_v8  ;;  %v6335_v8 = vld [vmem:[#allocation30 + $0x2e8] sm:$0xff] }
0x1f0b   : > { %6548 = vmatpush2.msra.mxu1 %v6300_v9  ;;  %v6334_v9 = vld [vmem:[#allocation30 + $0x2e0] sm:$0xff] }
0x1f0c   : > { %6549 = vmatprep.subr.mxu1 %v6299_v10  ;;  %v6140_v10 = vld [vmem:[#allocation2 + $0x488] sm:$0xff] }
0x1f0d   : > { %6550 = vmatpush2.msra.mxu1 %v6298_v11  ;;  %v6333_v11 = vld [vmem:[#allocation30 + $0x2d8] sm:$0xff] }
0x1f0e   : > { %6551 = vmatprep.subr.mxu1 %v6297_v12  ;;  %v6332_v12 = vld [vmem:[#allocation30 + $0x2d0] sm:$0xff] }
0x1f0f   : > { %6552 = vmatpush2.msra.mxu1 %v6296_v13  ;;  %v6331_v13 = vld [vmem:[#allocation30 + $0x2c8] sm:$0xff] }
0x1f10   : > { %6553 = vmatprep.subr.mxu1 %v6295_v14  ;;  %v6330_v14 = vld [vmem:[#allocation30 + $0x2c0] sm:$0xff] }
0x1f11   : > { %6554 = vmatpush2.msra.mxu1 %v6294_v15  ;;  %v6329_v15 = vld [vmem:[#allocation30 + $0x2b8] sm:$0xff] }
0x1f12   : > { %6555 = vmatprep.subr.mxu1 %v6293_v16  ;;  %v6328_v16 = vld [vmem:[#allocation30 + $0x2b0] sm:$0xff] }
0x1f13   : > { %6556 = vmatpush2.msra.mxu1 %v6292_v17  ;;  %v6327_v17 = vld [vmem:[#allocation30 + $0x2a8] sm:$0xff] }
0x1f14   : > { %6557 = vmatprep.subr.mxu1 %v6291_v18  ;;  %v6326_v18 = vld [vmem:[#allocation30 + $0x2a0] sm:$0xff] }
0x1f15   : > { %6558 = vmatpush2.msra.mxu1 %v6290_v19  ;;  %v6324_v19 = vld [vmem:[#allocation30 + $0x290] sm:$0xff] }
0x1f16   : > { %6559 = vmatprep.subr.mxu1 %v6289_v20  ;;  %v6323_v20 = vld [vmem:[#allocation30 + $0x288] sm:$0xff] }
0x1f17   : > { %6560 = vmatpush2.msra.mxu1 %v6288_v21  ;;  %v6322_v21 = vld [vmem:[#allocation30 + $0x280] sm:$0xff] }
0x1f18   : > { %6561 = vmatprep.subr.mxu1 %v6287_v22  ;;  %v6321_v22 = vld [vmem:[#allocation30 + $0x278] sm:$0xff] }
0x1f19   : > { %6562 = vmatpush2.msra.mxu1 %v6286_v23  ;;  %v6320_v23 = vld [vmem:[#allocation30 + $0x270] sm:$0xff] }
0x1f1a   : > { %6563 = vmatprep.subr.mxu1 %v6285_v24  ;;  %v6319_v24 = vld [vmem:[#allocation30 + $0x268] sm:$0xff] }
0x1f1b   : > { %6564 = vmatpush2.msra.mxu1 %v6284_v6  ;;  %v6318_v6 = vld [vmem:[#allocation30 + $0x260] sm:$0xff] }
0x1f1c   : > { %6565 = vmatprep.subr.mxu1 %v6283_v25  ;;  %v6317_v25 = vld [vmem:[#allocation30 + $0x258] sm:$0xff] }
0x1f1d   : > { %6566 = vmatpush2.msra.mxu1 %v6282_v26  ;;  %v6316_v26 = vld [vmem:[#allocation30 + $0x250] sm:$0xff] }
0x1f1e   : > { %6567 = vmatprep.subr.mxu1 %v6281_v27  ;;  %v6315_v27 = vld [vmem:[#allocation30 + $0x248] sm:$0xff] }
0x1f1f   : > { %6568 = vmatpush2.msra.mxu1 %v6280_v28  ;;  %v6314_v28 = vld [vmem:[#allocation30 + $0x240] sm:$0xff] }
0x1f20   : > { %6569 = vmatprep.subr.mxu1 %v6279_v29  ;;  %v6313_v29 = vld [vmem:[#allocation30 + $0x238] sm:$0xff] }
0x1f21   : > { %6570 = vmatpush2.msra.mxu1 %v6278_v30  ;;  %v6312_v30 = vld [vmem:[#allocation30 + $0x230] sm:$0xff] }
0x1f22   : > { %6571 = vmatprep.subr.mxu1 %v6277_v31  ;;  %v6311_v31 = vld [vmem:[#allocation30 + $0x228] sm:$0xff] }
0x1f63   : > { %v5888_v33 = vpop.f32.mrf.mxu0 }
0x1f64   : > { %v5889_v38 = vadd.f32 %v5888_v33, %v5815_v34  ;;  %v6309_v33 = vld [vmem:[#allocation30 + $0x218] sm:$0xff]  ;;  %v6308_v34 = vld [vmem:[#allocation30 + $0x210] sm:$0xff] }
0x1f65   : > { %v5890_v35 = vpop.f32.mrf.mxu0  ;;  %v5959_v36 = vpop.f32.mrf.mxu1 }
0x1f66   : > { %v5891_v39 = vadd.f32 %v5890_v35, %v5819_v37  ;;  %v5960_v41 = vadd.f32 %v5959_v36, %v5889_v38  ;;  %v6307_v37 = vld [vmem:[#allocation30 + $0x208] sm:$0xff]  ;;  %v6306_v35 = vld [vmem:[#allocation30 + $0x200] sm:$0xff]  ;;  %v6369_v36 = vld [vmem:[#allocation30 + $0x3f8] sm:$0xff] }
0x1f67   : > { %v5961_v40 = vpop.f32.mrf.mxu1  ;;  %v6368_v38 = vld [vmem:[#allocation30 + $0x3f0] sm:$0xff] }
0x1f68   : > { %v5962_v48 = vadd.f32 %v5961_v40, %v5891_v39  ;;  %v6367_v39 = vld [vmem:[#allocation30 + $0x3e8] sm:$0xff]  ;;  %v6366_v40 = vld [vmem:[#allocation30 + $0x3e0] sm:$0xff] }
0x1fa3   : > { %v6030_v46 = vpop.f32.mrf.mxu0 }
0x1fa4   : > { %v6031_v49 = vadd.f32 %v6030_v46, %v5960_v41  ;;  %v6365_v41 = vld [vmem:[#allocation30 + $0x3d8] sm:$0xff]  ;;  %v6363_v46 = vld [vmem:[#allocation30 + $0x3c8] sm:$0xff] }
0x1fa5   : > { %v6032_v50 = vpop.f32.mrf.mxu0 }
0x1fa6   : > { %v6033_v45 = vadd.f32 %v6032_v50, %v5962_v48  ;;  %v6101_v54 = vpop.f32.mrf.mxu1  ;;  %v6362_v48 = vld [vmem:[#allocation30 + $0x3c0] sm:$0xff]  ;;  %v6360_v50 = vld [vmem:[#allocation30 + $0x3b0] sm:$0xff] }
0x1fa7   : > { %v6102_v55 = vadd.f32 %v6101_v54, %v6031_v49  ;;  %v6361_v49 = vld [vmem:[#allocation30 + $0x3b8] sm:$0xff]  ;;  %v6356_v54 = vld [vmem:[#allocation30 + $0x390] sm:$0xff] }
0x1fa8   : > { %v6103_v58 = vpop.f32.mrf.mxu1 }
0x1fa9   : > { %v6119_v60 = vmul.f32 %v6112_v51, %v6102_v55  ;;  %v6104_v61 = vadd.f32 %v6103_v58, %v6033_v45  ;;  %v6359_v51 = vld [vmem:[#allocation30 + $0x3a8] sm:$0xff]  ;;  %v6357_v45 = vld [vmem:[#allocation30 + $0x398] sm:$0xff]  ;;  %v6352_v58 = vld [vmem:[#allocation30 + $0x370] sm:$0xff] }
0x1faa   : > { %v6355_v55 = vld [vmem:[#allocation30 + $0x388] sm:$0xff] }
0x1fab   : > { %v6120_v63 = vmul.f32 %v6116_v56, %v6104_v61  ;;  %v6134_v0 = vadd.f32 %v6127_v57, %v6119_v60  ;;  %v6354_v56 = vld [vmem:[#allocation30 + $0x380] sm:$0xff]  ;;  %v6353_v57 = vld [vmem:[#allocation30 + $0x378] sm:$0xff]  ;;  %v6351_v60 = vld [vmem:[#allocation30 + $0x368] sm:$0xff] }
0x1fac   : > { %v6350_v61 = vld [vmem:[#allocation30 + $0x360] sm:$0xff] }
0x1fad   : > { %v6135_v1 = vadd.f32 %v6131_v62, %v6120_v63  ;;  %v6136_v3 = vmax.f32 %v6134_v0, 0.0  ;;  %v6349_v62 = vld [vmem:[#allocation30 + $0x358] sm:$0xff]  ;;  %v6348_v63 = vld [vmem:[#allocation30 + $0x350] sm:$0xff]  ;;  %v6347_v0 = vld [vmem:[#allocation30 + $0x348] sm:$0xff] }
0x1faf   : > { %v6137_v2 = vmax.f32 %v6135_v1, 0.0  ;;  %v6346_v1 = vld [vmem:[#allocation30 + $0x340] sm:$0xff] }
0x1fb1   : > { %7196 = vmatprep.subr.msk.mxu0 %vm3969_vm9, %v6137_v2  ;;  %v6345_v2 = vld [vmem:[#allocation30 + $0x338] sm:$0xff] }
0x1fb2   : > { %7197 = vmatpush1.msk.msra.mxu0 %vm3969_vm9, %v6136_v3  ;;  %v6344_v3 = vld [vmem:[#allocation30 + $0x330] sm:$0xff] }
0x1fb3   : > { %7198 = vmatmul.mubr.msk.f32.vlgmr.msra.gmra.mxu0 %vm1097_vm1, %v6139_v4  ;;  %6582 = vmatprep.subr.mxu0 %v6337_v5  ;;  %v6343_v4 = vld [vmem:[#allocation30 + $0x328] sm:$0xff]  ;;  %v6276_v5 = vld [vmem:[#allocation30 + $0x110] sm:$0xff] }
0x1fb4   : > { %6223 = vmatprep.mubr.f32.mxu0 %v8887_v52  ;;  %6583 = vmatpush1.msra.mxu0 %v6336_v7  ;;  %v6325_v52 = vld [vmem:[#allocation30 + $0x298] sm:$0xff]  ;;  %v6342_v7 = vld [vmem:[#allocation30 + $0x320] sm:$0xff] }
0x1fb5   : > { %6584 = vmatprep.subr.mxu0 %v6335_v8  ;;  %6572 = vmatpush2.msra.mxu1 %v6276_v5  ;;  %v6275_v8 = vld [vmem:[#allocation30 + $0x108] sm:$0xff]  ;;  %v6376_v5 = vld [vmem:[#allocation30 + $0x430] sm:$0xff] }
0x1fb6   : > { %6585 = vmatpush1.msra.mxu0 %v6334_v9  ;;  %v6341_v9 = vld [vmem:[#allocation30 + $0x318] sm:$0xff]  ;;  %6573 = vmatprep.subr.mxu1 %v6275_v8  ;;  %v6375_v8 = vld [vmem:[#allocation30 + $0x428] sm:$0xff] }
0x1fb7   : > { %7199 = vmatmul.mubr.msk.f32.gmra.mxu0 %vm1097_vm1, %v6140_v10  ;;  %6586 = vmatprep.subr.mxu0 %v6333_v11  ;;  %v6274_v10 = vld [vmem:[#allocation30 + $0x100] sm:$0xff]  ;;  %v6340_v11 = vld [vmem:[#allocation30 + $0x310] sm:$0xff] }
0x1fb8   : > { %6587 = vmatpush1.msra.mxu0 %v6332_v12  ;;  %6574 = vmatpush2.msra.mxu1 %v6274_v10  ;;  %v6339_v12 = vld [vmem:[#allocation30 + $0x308] sm:$0xff]  ;;  %v6374_v10 = vld [vmem:[#allocation30 + $0x420] sm:$0xff] }
0x1fb9   : > { %6588 = vmatprep.subr.mxu0 %v6331_v13  ;;  %v6401_v13 = vld [vmem:[#allocation30 + $0x4f8] sm:$0xff] }
0x1fba   : > { %6589 = vmatpush1.msra.mxu0 %v6330_v14  ;;  %6653 = vmatprep.subr.mxu1 %v6401_v13  ;;  %v6338_v14 = vld [vmem:[#allocation30 + $0x300] sm:$0xff]  ;;  %v6439_v13 = vld [vmem:[#allocation30 + $0x628] sm:$0xff] }
0x1fbb   : > { %6590 = vmatprep.subr.mxu0 %v6329_v15  ;;  %v6465_v15 = vld [vmem:[#allocation30 + $0x6f8] sm:$0xff] }
0x1fbc   : > { %6591 = vmatpush1.msra.mxu0 %v6328_v16 }
0x1fbd   : > { %6592 = vmatprep.subr.mxu0 %v6327_v17 }
0x1fbe   : > { %6593 = vmatpush1.msra.mxu0 %v6326_v18  ;;  %v6400_v18 = vld [vmem:[#allocation30 + $0x4f0] sm:$0xff] }
0x1fbf   : > { %6594 = vmatprep.subr.mxu0 %v6325_v52 }
0x1fc0   : > { %6595 = vmatpush1.msra.mxu0 %v6324_v19  ;;  %v6399_v19 = vld [vmem:[#allocation30 + $0x4e8] sm:$0xff] }
0x1fc1   : > { %6596 = vmatprep.subr.mxu0 %v6323_v20 }
0x1fc2   : > { %6597 = vmatpush1.msra.mxu0 %v6322_v21  ;;  %v6398_v21 = vld [vmem:[#allocation30 + $0x4e0] sm:$0xff] }
0x1fc3   : > { %6598 = vmatprep.subr.mxu0 %v6321_v22  ;;  %v6464_v22 = vld [vmem:[#allocation30 + $0x6f0] sm:$0xff] }
0x1fc4   : > { %6599 = vmatpush1.msra.mxu0 %v6320_v23  ;;  %v6397_v23 = vld [vmem:[#allocation30 + $0x4d8] sm:$0xff] }
0x1fc5   : > { %6600 = vmatprep.subr.mxu0 %v6319_v24  ;;  %v6463_v24 = vld [vmem:[#allocation30 + $0x6e8] sm:$0xff] }
0x1fc6   : > { %6601 = vmatpush1.msra.mxu0 %v6318_v6  ;;  %v6396_v6 = vld [vmem:[#allocation30 + $0x4d0] sm:$0xff] }
0x1fc7   : > { %6602 = vmatprep.subr.mxu0 %v6317_v25  ;;  %v6462_v25 = vld [vmem:[#allocation30 + $0x6e0] sm:$0xff] }
0x1fc8   : > { %6603 = vmatpush1.msra.mxu0 %v6316_v26  ;;  %v6395_v26 = vld [vmem:[#allocation30 + $0x4c8] sm:$0xff] }
0x1fc9   : > { %6604 = vmatprep.subr.mxu0 %v6315_v27  ;;  %v6461_v27 = vld [vmem:[#allocation30 + $0x6d8] sm:$0xff] }
0x1fca   : > { %6605 = vmatpush1.msra.mxu0 %v6314_v28  ;;  %v6394_v28 = vld [vmem:[#allocation30 + $0x4c0] sm:$0xff] }
0x1fcb   : > { %6606 = vmatprep.subr.mxu0 %v6313_v29  ;;  %v6460_v29 = vld [vmem:[#allocation30 + $0x6d0] sm:$0xff] }
0x1fcc   : > { %6607 = vmatpush1.msra.mxu0 %v6312_v30  ;;  %v6393_v30 = vld [vmem:[#allocation30 + $0x4b8] sm:$0xff] }
0x1fcd   : > { %6608 = vmatprep.subr.mxu0 %v6311_v31  ;;  %v6459_v31 = vld [vmem:[#allocation30 + $0x6c8] sm:$0xff] }
0x1fce   : > { %6609 = vmatpush1.msra.mxu0 %v6310_v32  ;;  %v6392_v32 = vld [vmem:[#allocation30 + $0x4b0] sm:$0xff] }
0x1fcf   : > { %6610 = vmatprep.subr.mxu0 %v6309_v33  ;;  %v6458_v33 = vld [vmem:[#allocation30 + $0x6c0] sm:$0xff] }
0x1fd0   : > { %6611 = vmatpush1.msra.mxu0 %v6308_v34  ;;  %v6391_v34 = vld [vmem:[#allocation30 + $0x4a8] sm:$0xff] }
0x1fd1   : > { %6612 = vmatprep.subr.mxu0 %v6307_v37  ;;  %v6457_v37 = vld [vmem:[#allocation30 + $0x6b8] sm:$0xff] }
0x1fd2   : > { %6613 = vmatpush1.msra.mxu0 %v6306_v35  ;;  %v6390_v35 = vld [vmem:[#allocation30 + $0x4a0] sm:$0xff] }
0x1fd3   : > { %6614 = vmatprep.subr.mxu0 %v6369_v36  ;;  %v6456_v36 = vld [vmem:[#allocation30 + $0x6b0] sm:$0xff] }
0x1fd4   : > { %6615 = vmatpush2.msra.mxu0 %v6368_v38  ;;  %v6389_v38 = vld [vmem:[#allocation30 + $0x498] sm:$0xff] }
0x1fd5   : > { %6616 = vmatprep.subr.mxu0 %v6367_v39  ;;  %v6455_v39 = vld [vmem:[#allocation30 + $0x6a8] sm:$0xff] }
0x1fd6   : > { %6617 = vmatpush2.msra.mxu0 %v6366_v40  ;;  %v6388_v40 = vld [vmem:[#allocation30 + $0x490] sm:$0xff] }
0x1fd7   : > { %6618 = vmatprep.subr.mxu0 %v6365_v41  ;;  %v6454_v41 = vld [vmem:[#allocation30 + $0x6a0] sm:$0xff] }
0x1fd8   : > { %6619 = vmatpush2.msra.mxu0 %v6364_v42  ;;  %v6387_v42 = vld [vmem:[#allocation30 + $0x488] sm:$0xff] }
0x1fd9   : > { %6620 = vmatprep.subr.mxu0 %v6363_v46  ;;  %v6453_v46 = vld [vmem:[#allocation30 + $0x698] sm:$0xff] }
0x1fda   : > { %6621 = vmatpush2.msra.mxu0 %v6362_v48  ;;  %v6386_v48 = vld [vmem:[#allocation30 + $0x480] sm:$0xff] }
0x1fdb   : > { %6622 = vmatprep.subr.mxu0 %v6361_v49  ;;  %v6452_v49 = vld [vmem:[#allocation30 + $0x690] sm:$0xff] }
0x1fdc   : > { %6623 = vmatpush2.msra.mxu0 %v6360_v50  ;;  %v6385_v50 = vld [vmem:[#allocation30 + $0x478] sm:$0xff] }
0x1fdd   : > { %6624 = vmatprep.subr.mxu0 %v6359_v51  ;;  %v6451_v51 = vld [vmem:[#allocation30 + $0x688] sm:$0xff] }
0x1fde   : > { %6625 = vmatpush2.msra.mxu0 %v6358_v43  ;;  %v6384_v43 = vld [vmem:[#allocation30 + $0x470] sm:$0xff] }
0x1fdf   : > { %6626 = vmatprep.subr.mxu0 %v6357_v45  ;;  %v6450_v45 = vld [vmem:[#allocation30 + $0x680] sm:$0xff] }
0x1fe0   : > { %6627 = vmatpush2.msra.mxu0 %v6356_v54  ;;  %v6383_v54 = vld [vmem:[#allocation30 + $0x468] sm:$0xff] }
0x1fe1   : > { %6628 = vmatprep.subr.mxu0 %v6355_v55  ;;  %v6449_v55 = vld [vmem:[#allocation30 + $0x678] sm:$0xff] }
0x1fe2   : > { %6629 = vmatpush2.msra.mxu0 %v6354_v56  ;;  %v6382_v56 = vld [vmem:[#allocation30 + $0x460] sm:$0xff] }
0x1fe3   : > { %6630 = vmatprep.subr.mxu0 %v6353_v57  ;;  %v6448_v57 = vld [vmem:[#allocation30 + $0x670] sm:$0xff] }
0x1fe4   : > { %6631 = vmatpush2.msra.mxu0 %v6352_v58  ;;  %v6381_v58 = vld [vmem:[#allocation30 + $0x458] sm:$0xff] }
0x1fe5   : > { %6632 = vmatprep.subr.mxu0 %v6351_v60  ;;  %v6447_v60 = vld [vmem:[#allocation30 + $0x668] sm:$0xff] }
0x1fe6   : > { %6633 = vmatpush2.msra.mxu0 %v6350_v61  ;;  %v6380_v61 = vld [vmem:[#allocation30 + $0x450] sm:$0xff] }
0x1fe7   : > { %6634 = vmatprep.subr.mxu0 %v6349_v62  ;;  %v6446_v62 = vld [vmem:[#allocation30 + $0x660] sm:$0xff] }
0x1fe8   : > { %6635 = vmatpush2.msra.mxu0 %v6348_v63  ;;  %v6379_v63 = vld [vmem:[#allocation30 + $0x448] sm:$0xff] }
0x1fe9   : > { %6636 = vmatprep.subr.mxu0 %v6347_v0  ;;  %v6445_v0 = vld [vmem:[#allocation30 + $0x658] sm:$0xff] }
0x1fea   : > { %6637 = vmatpush2.msra.mxu0 %v6346_v1  ;;  %v6378_v1 = vld [vmem:[#allocation30 + $0x440] sm:$0xff] }
0x1feb   : > { %6638 = vmatprep.subr.mxu0 %v6345_v2  ;;  %v6444_v2 = vld [vmem:[#allocation30 + $0x650] sm:$0xff] }
0x1fec   : > { %6639 = vmatpush2.msra.mxu0 %v6344_v3  ;;  %v6377_v3 = vld [vmem:[#allocation30 + $0x438] sm:$0xff] }
0x1fed   : > { %6640 = vmatprep.subr.mxu0 %v6343_v4  ;;  %v6443_v4 = vld [vmem:[#allocation30 + $0x648] sm:$0xff] }
0x1fee   : > { %6641 = vmatpush2.msra.mxu0 %v6342_v7  ;;  %v6442_v7 = vld [vmem:[#allocation30 + $0x640] sm:$0xff] }
0x1fef   : > { %6642 = vmatprep.subr.mxu0 %v6341_v9  ;;  %v6441_v9 = vld [vmem:[#allocation30 + $0x638] sm:$0xff] }
0x1ff0   : > { %6643 = vmatpush2.msra.mxu0 %v6340_v11  ;;  %v6440_v11 = vld [vmem:[#allocation30 + $0x630] sm:$0xff] }
0x1ff1   : > { %6644 = vmatprep.subr.mxu0 %v6339_v12  ;;  %v6373_v12 = vld [vmem:[#allocation30 + $0x418] sm:$0xff] }
0x1ff2   : > { %6645 = vmatpush2.msra.mxu0 %v6338_v14  ;;  %v6372_v14 = vld [vmem:[#allocation30 + $0x410] sm:$0xff] }
0x1ff3   : > { %6724 = vmatprep.subr.mxu0 %v6465_v15  ;;  %v6438_v15 = vld [vmem:[#allocation30 + $0x620] sm:$0xff] }
0x2073   : > { %v6219_v16 = vpop.f32.mrf.mxu0 }
0x2074   : > { %v6232_v20 = vrot.slane %v6219_v16, 4 }
0x2075   : > { %v6221_v17 = vpop.f32.mrf.mxu0 }
0x2076   : > { %v6233_v52 = vrot.slane %v6221_v17, 4  ;;  %6575 = vmatprep.mubr.f32.mxu1 %v6221_v17  ;;  %v6437_v17 = vld [vmem:[#allocation30 + $0x618] sm:$0xff] }
0x2077   : > { %6576 = vmatmul.mubr.f32.vlgmr.msra.gmra.mxu1 %v6219_v16  ;;  %v6371_v16 = vld [vmem:[#allocation30 + $0x408] sm:$0xff] }
0x2078   : > { %6654 = vmatpush1.msra.mxu1 %v6400_v18  ;;  %6646 = vmatprep.mubr.f32.mxu0 %v6233_v52  ;;  %v6370_v18 = vld [vmem:[#allocation30 + $0x400] sm:$0xff]  ;;  %v6436_v52 = vld [vmem:[#allocation30 + $0x610] sm:$0xff] }
0x2079   : > { %6655 = vmatprep.subr.mxu1 %v6399_v19  ;;  %6647 = vmatmul.mubr.f32.vlgmr.msra.gmra.mxu0 %v6232_v20  ;;  %v6433_v19 = vld [vmem:[#allocation30 + $0x5f8] sm:$0xff]  ;;  %v6435_v20 = vld [vmem:[#allocation30 + $0x608] sm:$0xff] }
0x207a   : > { %6656 = vmatpush1.msra.mxu1 %v6398_v21  ;;  %6725 = vmatpush1.msra.mxu0 %v6464_v22  ;;  %v6432_v21 = vld [vmem:[#allocation30 + $0x5f0] sm:$0xff]  ;;  %v6434_v22 = vld [vmem:[#allocation30 + $0x600] sm:$0xff] }
0x207b   : > { %6657 = vmatprep.subr.mxu1 %v6397_v23  ;;  %6726 = vmatprep.subr.mxu0 %v6463_v24  ;;  %v6431_v23 = vld [vmem:[#allocation30 + $0x5e8] sm:$0xff]  ;;  %v6497_v24 = vld [vmem:[#allocation30 + $0x7f8] sm:$0xff] }
0x207c   : > { %6658 = vmatpush1.msra.mxu1 %v6396_v6  ;;  %6727 = vmatpush1.msra.mxu0 %v6462_v25  ;;  %v6430_v6 = vld [vmem:[#allocation30 + $0x5e0] sm:$0xff]  ;;  %v6496_v25 = vld [vmem:[#allocation30 + $0x7f0] sm:$0xff] }
0x207d   : > { %6659 = vmatprep.subr.mxu1 %v6395_v26  ;;  %6728 = vmatprep.subr.mxu0 %v6461_v27  ;;  %v6429_v26 = vld [vmem:[#allocation30 + $0x5d8] sm:$0xff]  ;;  %v6495_v27 = vld [vmem:[#allocation30 + $0x7e8] sm:$0xff] }
0x207e   : > { %6660 = vmatpush1.msra.mxu1 %v6394_v28  ;;  %6729 = vmatpush1.msra.mxu0 %v6460_v29  ;;  %v6428_v28 = vld [vmem:[#allocation30 + $0x5d0] sm:$0xff]  ;;  %v6494_v29 = vld [vmem:[#allocation30 + $0x7e0] sm:$0xff] }
0x207f   : > { %6661 = vmatprep.subr.mxu1 %v6393_v30  ;;  %6730 = vmatprep.subr.mxu0 %v6459_v31  ;;  %v6427_v30 = vld [vmem:[#allocation30 + $0x5c8] sm:$0xff]  ;;  %v6493_v31 = vld [vmem:[#allocation30 + $0x7d8] sm:$0xff] }
0x2080   : > { %6662 = vmatpush1.msra.mxu1 %v6392_v32  ;;  %6731 = vmatpush1.msra.mxu0 %v6458_v33  ;;  %v6426_v32 = vld [vmem:[#allocation30 + $0x5c0] sm:$0xff]  ;;  %v6492_v33 = vld [vmem:[#allocation30 + $0x7d0] sm:$0xff] }
0x2081   : > { %6663 = vmatprep.subr.mxu1 %v6391_v34  ;;  %6732 = vmatprep.subr.mxu0 %v6457_v37  ;;  %v6425_v34 = vld [vmem:[#allocation30 + $0x5b8] sm:$0xff]  ;;  %v6491_v37 = vld [vmem:[#allocation30 + $0x7c8] sm:$0xff] }
0x2082   : > { %6664 = vmatpush1.msra.mxu1 %v6390_v35  ;;  %6733 = vmatpush1.msra.mxu0 %v6456_v36  ;;  %v6424_v35 = vld [vmem:[#allocation30 + $0x5b0] sm:$0xff]  ;;  %v6490_v36 = vld [vmem:[#allocation30 + $0x7c0] sm:$0xff] }
0x2083   : > { %6665 = vmatprep.subr.mxu1 %v6389_v38  ;;  %6734 = vmatprep.subr.mxu0 %v6455_v39  ;;  %v6423_v38 = vld [vmem:[#allocation30 + $0x5a8] sm:$0xff]  ;;  %v6489_v39 = vld [vmem:[#allocation30 + $0x7b8] sm:$0xff] }
0x2084   : > { %6666 = vmatpush1.msra.mxu1 %v6388_v40  ;;  %6735 = vmatpush1.msra.mxu0 %v6454_v41  ;;  %v6422_v40 = vld [vmem:[#allocation30 + $0x5a0] sm:$0xff]  ;;  %v6488_v41 = vld [vmem:[#allocation30 + $0x7b0] sm:$0xff] }
0x2085   : > { %6667 = vmatprep.subr.mxu1 %v6387_v42  ;;  %6736 = vmatprep.subr.mxu0 %v6453_v46  ;;  %v6421_v42 = vld [vmem:[#allocation30 + $0x598] sm:$0xff]  ;;  %v6487_v46 = vld [vmem:[#allocation30 + $0x7a8] sm:$0xff] }
0x2086   : > { %6668 = vmatpush1.msra.mxu1 %v6386_v48  ;;  %6737 = vmatpush1.msra.mxu0 %v6452_v49  ;;  %v6420_v48 = vld [vmem:[#allocation30 + $0x590] sm:$0xff]  ;;  %v6486_v49 = vld [vmem:[#allocation30 + $0x7a0] sm:$0xff] }
0x2087   : > { %6669 = vmatprep.subr.mxu1 %v6385_v50  ;;  %6738 = vmatprep.subr.mxu0 %v6451_v51  ;;  %v6419_v50 = vld [vmem:[#allocation30 + $0x588] sm:$0xff]  ;;  %v6485_v51 = vld [vmem:[#allocation30 + $0x798] sm:$0xff] }
0x2088   : > { %6670 = vmatpush1.msra.mxu1 %v6384_v43  ;;  %6739 = vmatpush1.msra.mxu0 %v6450_v45  ;;  %v6418_v43 = vld [vmem:[#allocation30 + $0x580] sm:$0xff]  ;;  %v6484_v45 = vld [vmem:[#allocation30 + $0x790] sm:$0xff] }
0x2089   : > { %6671 = vmatprep.subr.mxu1 %v6383_v54  ;;  %6740 = vmatprep.subr.mxu0 %v6449_v55  ;;  %v6417_v54 = vld [vmem:[#allocation30 + $0x578] sm:$0xff]  ;;  %v6483_v55 = vld [vmem:[#allocation30 + $0x788] sm:$0xff] }
0x208a   : > { %6672 = vmatpush1.msra.mxu1 %v6382_v56  ;;  %6741 = vmatpush1.msra.mxu0 %v6448_v57  ;;  %v6416_v56 = vld [vmem:[#allocation30 + $0x570] sm:$0xff]  ;;  %v6482_v57 = vld [vmem:[#allocation30 + $0x780] sm:$0xff] }
0x208b   : > { %6673 = vmatprep.subr.mxu1 %v6381_v58  ;;  %6742 = vmatprep.subr.mxu0 %v6447_v60  ;;  %v6415_v58 = vld [vmem:[#allocation30 + $0x568] sm:$0xff]  ;;  %v6481_v60 = vld [vmem:[#allocation30 + $0x778] sm:$0xff] }
0x208c   : > { %6674 = vmatpush1.msra.mxu1 %v6380_v61  ;;  %6743 = vmatpush1.msra.mxu0 %v6446_v62  ;;  %v6414_v61 = vld [vmem:[#allocation30 + $0x560] sm:$0xff]  ;;  %v6480_v62 = vld [vmem:[#allocation30 + $0x770] sm:$0xff] }
0x208d   : > { %6675 = vmatprep.subr.mxu1 %v6379_v63  ;;  %6744 = vmatprep.subr.mxu0 %v6445_v0  ;;  %v6413_v63 = vld [vmem:[#allocation30 + $0x558] sm:$0xff]  ;;  %v6479_v0 = vld [vmem:[#allocation30 + $0x768] sm:$0xff] }
0x208e   : > { %6676 = vmatpush1.msra.mxu1 %v6378_v1  ;;  %6745 = vmatpush1.msra.mxu0 %v6444_v2  ;;  %v6412_v1 = vld [vmem:[#allocation30 + $0x550] sm:$0xff]  ;;  %v6478_v2 = vld [vmem:[#allocation30 + $0x760] sm:$0xff] }
0x208f   : > { %6677 = vmatprep.subr.mxu1 %v6377_v3  ;;  %6746 = vmatprep.subr.mxu0 %v6443_v4  ;;  %v6411_v3 = vld [vmem:[#allocation30 + $0x548] sm:$0xff]  ;;  %v6477_v4 = vld [vmem:[#allocation30 + $0x758] sm:$0xff] }
0x2090   : > { %6678 = vmatpush1.msra.mxu1 %v6376_v5  ;;  %6747 = vmatpush1.msra.mxu0 %v6442_v7  ;;  %v6410_v5 = vld [vmem:[#allocation30 + $0x540] sm:$0xff]  ;;  %v6476_v7 = vld [vmem:[#allocation30 + $0x750] sm:$0xff] }
0x2091   : > { %6679 = vmatprep.subr.mxu1 %v6375_v8  ;;  %6748 = vmatprep.subr.mxu0 %v6441_v9  ;;  %v6409_v8 = vld [vmem:[#allocation30 + $0x538] sm:$0xff]  ;;  %v6475_v9 = vld [vmem:[#allocation30 + $0x748] sm:$0xff] }
0x2092   : > { %6680 = vmatpush1.msra.mxu1 %v6374_v10  ;;  %6749 = vmatpush1.msra.mxu0 %v6440_v11  ;;  %v6408_v10 = vld [vmem:[#allocation30 + $0x530] sm:$0xff]  ;;  %v6474_v11 = vld [vmem:[#allocation30 + $0x740] sm:$0xff] }
0x2093   : > { %6681 = vmatprep.subr.mxu1 %v6373_v12  ;;  %6750 = vmatprep.subr.mxu0 %v6439_v13  ;;  %v6225_v12 = vpop.f32.mrf.mxu0  ;;  %v6407_v13 = vld [vmem:[#allocation30 + $0x528] sm:$0xff] }
0x2094   : > { %6682 = vmatpush1.msra.mxu1 %v6372_v14  ;;  %6751 = vmatpush1.msra.mxu0 %v6438_v15  ;;  %v6473_v14 = vld [vmem:[#allocation30 + $0x738] sm:$0xff]  ;;  %v6406_v15 = vld [vmem:[#allocation30 + $0x520] sm:$0xff] }
0x2095   : > { %6683 = vmatprep.subr.mxu1 %v6371_v16  ;;  %6752 = vmatprep.subr.mxu0 %v6437_v17  ;;  %v6472_v16 = vld [vmem:[#allocation30 + $0x730] sm:$0xff]  ;;  %v6405_v17 = vld [vmem:[#allocation30 + $0x518] sm:$0xff] }
0x2096   : > { %6684 = vmatpush1.msra.mxu1 %v6370_v18  ;;  %6753 = vmatpush1.msra.mxu0 %v6436_v52  ;;  %v6471_v18 = vld [vmem:[#allocation30 + $0x728] sm:$0xff]  ;;  %v6404_v52 = vld [vmem:[#allocation30 + $0x510] sm:$0xff] }
0x2097   : > { %6685 = vmatprep.subr.mxu1 %v6433_v19  ;;  %6754 = vmatprep.subr.mxu0 %v6435_v20  ;;  %v6470_v19 = vld [vmem:[#allocation30 + $0x720] sm:$0xff]  ;;  %v6227_v20 = vpop.f32.mrf.mxu0 }
0x2098   : > { %6686 = vmatpush2.msra.mxu1 %v6432_v21  ;;  %6755 = vmatpush1.msra.mxu0 %v6434_v22  ;;  %v6403_v21 = vld [vmem:[#allocation30 + $0x508] sm:$0xff]  ;;  %v6469_v22 = vld [vmem:[#allocation30 + $0x718] sm:$0xff] }
0x2099   : > { %6687 = vmatprep.subr.mxu1 %v6431_v23  ;;  %6756 = vmatprep.subr.mxu0 %v6497_v24  ;;  %v6402_v23 = vld [vmem:[#allocation30 + $0x500] sm:$0xff]  ;;  %v6239_v24 = vrot.slane %v6227_v20, 4 }
0x209a   : > { %6688 = vmatpush2.msra.mxu1 %v6430_v6  ;;  %6757 = vmatpush2.msra.mxu0 %v6496_v25  ;;  %v6468_v6 = vld [vmem:[#allocation30 + $0x710] sm:$0xff]  ;;  %v6467_v25 = vld [vmem:[#allocation30 + $0x708] sm:$0xff] }
0x209b   : > { %6689 = vmatprep.subr.mxu1 %v6429_v26  ;;  %6758 = vmatprep.subr.mxu0 %v6495_v27  ;;  %v6466_v26 = vld [vmem:[#allocation30 + $0x700] sm:$0xff]  ;;  %v6238_v27 = vrot.slane %v6225_v12, 4 }
0x209c   : > { %6690 = vmatpush2.msra.mxu1 %v6428_v28  ;;  %6759 = vmatpush2.msra.mxu0 %v6494_v29  ;;  %v6499_v28 = vld [vmem:[#allocation6 + $0x20] ss:$8 sm:$0x3] }
0x209d   : > { %6691 = vmatprep.subr.mxu1 %v6427_v30  ;;  %6760 = vmatprep.subr.mxu0 %v6493_v31  ;;  %v6504_v30 = vrot.slane %v6499_v28, %v9507_v44  ;;  %v6508_v31 = vrot.slane %v6499_v28, %v9509_v47 }
0x209e   : > { %6692 = vmatpush2.msra.mxu1 %v6426_v32  ;;  %6761 = vmatpush2.msra.mxu0 %v6492_v33 }
0x209f   : > { %6693 = vmatprep.subr.mxu1 %v6425_v34  ;;  %6762 = vmatprep.subr.mxu0 %v6491_v37 }
0x20a0   : > { %6694 = vmatpush2.msra.mxu1 %v6424_v35  ;;  %6763 = vmatpush2.msra.mxu0 %v6490_v36 }
0x20a1   : > { %6695 = vmatprep.subr.mxu1 %v6423_v38  ;;  %6764 = vmatprep.subr.mxu0 %v6489_v39 }
0x20a2   : > { %6696 = vmatpush2.msra.mxu1 %v6422_v40  ;;  %6765 = vmatpush2.msra.mxu0 %v6488_v41  ;;  %v6798_v41 = vld [vmem:[#allocation4 + $0x40] ss:$8 sm:$0x3] }
0x20a3   : > { %6697 = vmatprep.subr.mxu1 %v6421_v42  ;;  %6766 = vmatprep.subr.mxu0 %v6487_v46 }
0x20a4   : > { %6698 = vmatpush2.msra.mxu1 %v6420_v48  ;;  %6767 = vmatpush2.msra.mxu0 %v6486_v49  ;;  %v6813_v49 = vld [vmem:[#allocation4 + $0x41] ss:$8 sm:$0x3] }
0x20a5   : > { %6699 = vmatprep.subr.mxu1 %v6419_v50  ;;  %6768 = vmatprep.subr.mxu0 %v6485_v51  ;;  %v6803_v51 = vrot.slane %v6798_v41, %v9507_v44 }
0x20a6   : > { %6700 = vmatpush2.msra.mxu1 %v6418_v43  ;;  %6769 = vmatpush2.msra.mxu0 %v6484_v45 }
0x20a7   : > { %6701 = vmatprep.subr.mxu1 %v6417_v54  ;;  %6770 = vmatprep.subr.mxu0 %v6483_v55  ;;  %v6818_v54 = vrot.slane %v6813_v49, %v9507_v44 }
0x20a8   : > { %6702 = vmatpush2.msra.mxu1 %v6416_v56  ;;  %6771 = vmatpush2.msra.mxu0 %v6482_v57  ;;  %v6807_v56 = vrot.slane %v6798_v41, %v9509_v47 }
0x20a9   : > { %6703 = vmatprep.subr.mxu1 %v6415_v58  ;;  %6772 = vmatprep.subr.mxu0 %v6481_v60  ;;  %v6822_v60 = vrot.slane %v6813_v49, %v9509_v47 }
0x20aa   : > { %6704 = vmatpush2.msra.mxu1 %v6414_v61  ;;  %6773 = vmatpush2.msra.mxu0 %v6480_v62 }
0x20ab   : > { %6705 = vmatprep.subr.mxu1 %v6413_v63  ;;  %6774 = vmatprep.subr.mxu0 %v6479_v0 }
0x20ac   : > { %6706 = vmatpush2.msra.mxu1 %v6412_v1  ;;  %6775 = vmatpush2.msra.mxu0 %v6478_v2 }
0x20ad   : > { %6707 = vmatprep.subr.mxu1 %v6411_v3  ;;  %6776 = vmatprep.subr.mxu0 %v6477_v4 }
0x20ae   : > { %6708 = vmatpush2.msra.mxu1 %v6410_v5  ;;  %6777 = vmatpush2.msra.mxu0 %v6476_v7 }
0x20af   : > { %6709 = vmatprep.subr.mxu1 %v6409_v8  ;;  %6778 = vmatprep.subr.mxu0 %v6475_v9 }
0x20b0   : > { %6710 = vmatpush2.msra.mxu1 %v6408_v10  ;;  %6779 = vmatpush2.msra.mxu0 %v6474_v11 }
0x20b1   : > { %6711 = vmatprep.subr.mxu1 %v6407_v13  ;;  %6780 = vmatprep.subr.mxu0 %v6473_v14 }
0x20b2   : > { %6712 = vmatpush2.msra.mxu1 %v6406_v15  ;;  %6781 = vmatpush2.msra.mxu0 %v6472_v16 }
0x20b3   : > { %6713 = vmatprep.subr.mxu1 %v6405_v17  ;;  %6782 = vmatprep.subr.mxu0 %v6471_v18 }
0x20b4   : > { %6714 = vmatpush2.msra.mxu1 %v6404_v52  ;;  %6783 = vmatpush2.msra.mxu0 %v6470_v19 }
0x20b5   : > { %6715 = vmatprep.subr.mxu1 %v6403_v21  ;;  %6784 = vmatprep.subr.mxu0 %v6469_v22 }
0x20b6   : > { %6716 = vmatpush2.msra.mxu1 %v6402_v23  ;;  %6717 = vmatprep.mubr.f32.mxu1 %v6227_v20 }
0x20b7   : > { %6785 = vmatpush2.msra.mxu0 %v6468_v6  ;;  %6718 = vmatmul.mubr.f32.vlgmr.msra.gmra.mxu1 %v6225_v12 }
0x20b8   : > { %6786 = vmatprep.subr.mxu0 %v6467_v25  ;;  %6788 = vmatprep.mubr.f32.mxu0 %v6239_v24 }
0x20b9   : > { %6787 = vmatpush2.msra.mxu0 %v6466_v26 }
0x20ba   : > { %6789 = vmatmul.mubr.f32.vlgmr.msra.gmra.mxu0 %v6238_v27 }
0x2137   : > { %v6577_v29 = vpop.f32.mrf.mxu1 }
0x2138   : > { %v6578_v34 = vadd.f32 %v6577_v29, %v6504_v30 }
0x2139   : > { %v6579_v32 = vpop.f32.mrf.mxu1  ;;  %v6648_v33 = vpop.f32.mrf.mxu0 }
0x213a   : > { %v6580_v37 = vadd.f32 %v6579_v32, %v6508_v31  ;;  %v6649_v36 = vadd.f32 %v6648_v33, %v6578_v34 }
0x213b   : > { %v6650_v35 = vpop.f32.mrf.mxu0 }
0x213c   : > { %v6651_v39 = vadd.f32 %v6650_v35, %v6580_v37 }
0x2177   : > { %v6719_v38 = vpop.f32.mrf.mxu1 }
0x2178   : > { %v6720_v40 = vadd.f32 %v6719_v38, %v6649_v36 }
0x2179   : > { %v6721_v42 = vpop.f32.mrf.mxu1 }
0x217a   : > { %v6722_v46 = vadd.f32 %v6721_v42, %v6651_v39  ;;  %v6790_v48 = vpop.f32.mrf.mxu0 }
0x217b   : > { %v6791_v50 = vadd.f32 %v6790_v48, %v6720_v40 }
0x217c   : > { %v6792_v43 = vpop.f32.mrf.mxu0 }
0x217d   : > { %v6795_v45 = vadd.f32 %v6791_v50, %v9527_v53  ;;  %v6793_v55 = vadd.f32 %v6792_v43, %v6722_v46 }
0x217f   : > { %v6810_v57 = vmul.f32 %v6803_v51, %v6795_v45  ;;  %v6796_v58 = vadd.f32 %v6793_v55, %v9533_v59 }
0x2181   : > { %v6825_v61 = vadd.f32 %v6818_v54, %v6810_v57  ;;  %v6811_v62 = vmul.f32 %v6807_v56, %v6796_v58 }
0x2183   : > { %v6826_v63 = vadd.f32 %v6822_v60, %v6811_v62  ;;  %v6827_v0 = vmax.f32 %v6825_v61, 0.0 }
0x2185   : > { %v6828_v1 = vmax.f32 %v6826_v63, 0.0 }
0x2187   : > { %v6831_v53 = vcombine.low %v6827_v0, %v6828_v1 }
0x2189   : > { %6833 = vst [vmem:[%s932_s23] sm:$0xff] %v6831_v53 }
0x218a PF: > { %s41_s2 = sadd.s32 1, %s8856_s2  }
0x218b   : > { %p38_p2 = scmp.ge.s32.totalorder %s41_s2, 4  }
0x218d   :  { %40 = sbr.rel (!%p38_p2) target bundleno = 20 (0x14), region = 241 }
0x2192   :  { %6855 = vsyncpa [#allocation3], 1 }
0x2193   :  { %6857 = vsyncpa [#allocation3 + $0x1], 1 }
0x2194   :  { %6858 = vsyncpa [#allocation5], 1 }
0x2195   :  { %6859 = vsyncpa [#allocation8], 1 }
0x2196   :  { %6860 = vsyncpa [#allocation11], 1 }
0x2197   :  { %6861 = vsyncpa [#allocation14], 1 }
0x2198   :  { %6862 = vsyncpa [#allocation17], 1 }
0x2199   :  { %6863 = vsyncpa [#allocation20], 1 }
0x219a   :  { %6864 = vsyncpa [#allocation23], 1 }
0x219b   :  { %6865 = vsyncpa [#allocation26], 1 }
0x219c   :  { %6866 = vsyncpa [#allocation29], 1 }

</bundles_post_ra>
